<compile_context>
chip_gen: v7x
topology: tpu7x:2x2x1
jax: 0.10.0
libtpu: 0.0.40
codegen_flags: <defaults>
</compile_context>

<pallas_src>
import functools
import math

import jax
import jax.numpy as jnp
from jax.experimental import pallas as pl
from jax.experimental.pallas import tpu as pltpu

CPAD = 128          # every channel dim is zero-padded to one full 128-lane register row
STEM_CH = 16
HEAD_CH = 64
BN_EPS = 1e-3

# Scaled-down EfficientNetV2-S style configuration (documentation):
# (expand_ratio, kernel, stride, c_in, c_out, layers, use_se, fused)
STAGES = [
    (1, 3, 1, 16, 16, 1, False, True),   # Fused-MBConv, e=1
    (4, 3, 2, 16, 24, 1, False, True),   # Fused-MBConv, e=4, downsample
    (4, 3, 2, 24, 32, 1, True,  False),  # MBConv + SE,  e=4, downsample
]


# ----------------------------------------------------------------------------
# In-kernel helpers
# ----------------------------------------------------------------------------
def _silu(x):
    return x * jax.nn.sigmoid(x)


def _conv3x3_mxu(ph_ref, w_ref, ho, wo, stride):
    """3x3 conv as ONE deep-K MXU matmul (tap accumulation inside the MXU).

    ph_ref: (n_phases, 1, Hp, Wp, CPAD) bf16 per-image phase block
            (stride 1 -> 1 phase = the padded map; stride 2 -> 4-phase partition)
    w_ref : (9*CPAD, CPAD) bf16, tap-major rows (tap t = di*3+dj occupies rows t*CPAD:(t+1)*CPAD).
    Returns f32 (ho*wo, CPAD).
    """
    m = ho * wo
    parts = []
    for di in range(3):
        for dj in range(3):
            if stride == 2:
                idx = (di % 2) * 2 + (dj % 2)
                oi, oj = di // 2, dj // 2
            else:
                idx, oi, oj = 0, di, dj
            win = ph_ref[idx, 0, oi:oi + ho, oj:oj + wo, :]          # (ho, wo, CPAD) bf16
            parts.append(win.reshape(m, CPAD))
    a = jnp.concatenate(parts, axis=-1)                              # (m, 9*CPAD) bf16
    return jnp.dot(a, w_ref[...], preferred_element_type=jnp.float32)


# ----------------------------------------------------------------------------
# Kernels
# ----------------------------------------------------------------------------
def _stem_kernel(ho, wo, ph_ref, w_ref, b_ref, o_ref):
    """Stem: 3x3 stride-2 conv + SiLU (one image per grid step)."""
    acc = _conv3x3_mxu(ph_ref, w_ref, ho, wo, stride=2) + b_ref[...]
    o_ref[...] = _silu(acc).astype(o_ref.dtype)


def _stage1_kernel(ho, wo, ph_ref, w_ref, b_ref, o_ref):
    """Stage 1 Fused-MBConv (e=1): 3x3 stride-1 conv + SiLU + residual.
    The residual is the center-tap window of the padded map (no second DMA of the activation)."""
    acc = _conv3x3_mxu(ph_ref, w_ref, ho, wo, stride=1) + b_ref[...]
    res = ph_ref[0, 0, 1:1 + ho, 1:1 + wo, :].reshape(ho * wo, CPAD).astype(jnp.float32)
    o_ref[...] = (_silu(acc) + res).astype(o_ref.dtype)


def _stage2_kernel(ho, wo, ph_ref, we_ref, be_ref, w23_ref, b23_ref, o_ref):
    """Stage 2 Fused-MBConv (e=4, s2): 3x3 expand + SiLU, then the folded
    (stage-2 1x1 proj -> stage-3 1x1 expand) single matmul + SiLU (exact algebraic fold)."""
    acc = _conv3x3_mxu(ph_ref, we_ref, ho, wo, stride=2) + be_ref[...]
    h = _silu(acc)                                                   # fused expand activation
    e = jnp.dot(h.astype(jnp.bfloat16), w23_ref[...],
                preferred_element_type=jnp.float32) + b23_ref[...]
    o_ref[...] = _silu(e).astype(o_ref.dtype)


def _tail_kernel(ho, wo, ph_ref, wd_ref, bd_ref, w1_ref, b1_ref, w2_ref, b2_ref,
                 wph_ref, bph_ref, wf_ref, bf_ref, o_ref):
    """Fused tail (one image per grid step):
    depthwise 3x3/s2 + SiLU, SE squeeze/excite gate, gate multiply,
    folded (stage-3 1x1 proj -> head 1x1) matmul + SiLU, global-avg-pool, classifier."""
    m = ho * wo
    # depthwise conv: 9 unrolled VPU multiply-adds on (ho, wo, 128) tiles
    acc = jnp.zeros((ho, wo, CPAD), jnp.float32)
    wd = wd_ref[...]                                                 # (9, CPAD) f32
    for di in range(3):
        for dj in range(3):
            idx = (di % 2) * 2 + (dj % 2)
            oi, oj = di // 2, dj // 2
            win = ph_ref[idx, 0, oi:oi + ho, oj:oj + wo, :].astype(jnp.float32)
            t = di * 3 + dj
            acc = acc + win * wd[t:t + 1, :]                         # per-channel FMA
    acc = acc + bd_ref[...]
    h = _silu(acc).reshape(m, CPAD)                                  # (m, CPAD) f32, pixel rows
    # SE: spatial mean, squeeze (SiLU), excite (sigmoid)
    s = jnp.sum(h, axis=0, keepdims=True) * (1.0 / m)                # (1, CPAD)
    z = _silu(jnp.dot(s.astype(jnp.bfloat16), w1_ref[...],
                      preferred_element_type=jnp.float32) + b1_ref[...])
    g = jax.nn.sigmoid(jnp.dot(z.astype(jnp.bfloat16), w2_ref[...],
                               preferred_element_type=jnp.float32) + b2_ref[...])
    x = h * g                                                        # gate broadcast over rows
    # folded stage-3 proj + head 1x1 conv (+ SiLU)
    hh = _silu(jnp.dot(x.astype(jnp.bfloat16), wph_ref[...],
                       preferred_element_type=jnp.float32) + bph_ref[...])
    pooled = jnp.sum(hh, axis=0, keepdims=True) * (1.0 / m)          # global average pool
    logits = jnp.dot(pooled.astype(jnp.bfloat16), wf_ref[...],
                     preferred_element_type=jnp.float32) + bf_ref[...]   # (1, CPAD)
    o_ref[...] = jnp.broadcast_to(logits, (8, CPAD))                 # sublane-dense store


# ----------------------------------------------------------------------------
# pallas_call wrappers (grid over batch, both TCs busy via "parallel")
# ----------------------------------------------------------------------------
def _call_stem(ph, w, b, n, ho, wo):
    m = ho * wo
    hp, wp_ = ph.shape[2], ph.shape[3]
    return pl.pallas_call(
        functools.partial(_stem_kernel, ho, wo),
        out_shape=jax.ShapeDtypeStruct((n * m, CPAD), jnp.bfloat16),
        grid=(n,),
        in_specs=[
            pl.BlockSpec((4, 1, hp, wp_, CPAD), lambda i: (0, i, 0, 0, 0)),
            pl.BlockSpec((9 * CPAD, CPAD), lambda i: (0, 0)),
            pl.BlockSpec((1, CPAD), lambda i: (0, 0)),
        ],
        out_specs=pl.BlockSpec((m, CPAD), lambda i: (i, 0)),
        compiler_params=pltpu.CompilerParams(dimension_semantics=("parallel",)),
    )(ph, w, b)


def _call_stage1(ph, w, b, n, ho, wo):
    m = ho * wo
    hp, wp_ = ph.shape[2], ph.shape[3]
    return pl.pallas_call(
        functools.partial(_stage1_kernel, ho, wo),
        out_shape=jax.ShapeDtypeStruct((n * m, CPAD), jnp.bfloat16),
        grid=(n,),
        in_specs=[
            pl.BlockSpec((1, 1, hp, wp_, CPAD), lambda i: (0, i, 0, 0, 0)),
            pl.BlockSpec((9 * CPAD, CPAD), lambda i: (0, 0)),
            pl.BlockSpec((1, CPAD), lambda i: (0, 0)),
        ],
        out_specs=pl.BlockSpec((m, CPAD), lambda i: (i, 0)),
        compiler_params=pltpu.CompilerParams(dimension_semantics=("parallel",)),
    )(ph, w, b)


def _call_stage2(ph, we, be, w23, b23, n, ho, wo):
    m = ho * wo
    hp, wp_ = ph.shape[2], ph.shape[3]
    return pl.pallas_call(
        functools.partial(_stage2_kernel, ho, wo),
        out_shape=jax.ShapeDtypeStruct((n * m, CPAD), jnp.bfloat16),
        grid=(n,),
        in_specs=[
            pl.BlockSpec((4, 1, hp, wp_, CPAD), lambda i: (0, i, 0, 0, 0)),
            pl.BlockSpec((9 * CPAD, CPAD), lambda i: (0, 0)),
            pl.BlockSpec((1, CPAD), lambda i: (0, 0)),
            pl.BlockSpec((CPAD, CPAD), lambda i: (0, 0)),
            pl.BlockSpec((1, CPAD), lambda i: (0, 0)),
        ],
        out_specs=pl.BlockSpec((m, CPAD), lambda i: (i, 0)),
        compiler_params=pltpu.CompilerParams(dimension_semantics=("parallel",)),
    )(ph, we, be, w23, b23)


def _call_tail(ph, wd, bd, w1, b1, w2, b2, wph, bph, wf, bf, n, ho, wo):
    hp, wp_ = ph.shape[2], ph.shape[3]
    return pl.pallas_call(
        functools.partial(_tail_kernel, ho, wo),
        out_shape=jax.ShapeDtypeStruct((n * 8, CPAD), jnp.float32),
        grid=(n,),
        in_specs=[
            pl.BlockSpec((4, 1, hp, wp_, CPAD), lambda i: (0, i, 0, 0, 0)),
            pl.BlockSpec((9, CPAD), lambda i: (0, 0)),
            pl.BlockSpec((1, CPAD), lambda i: (0, 0)),
            pl.BlockSpec((CPAD, CPAD), lambda i: (0, 0)),
            pl.BlockSpec((1, CPAD), lambda i: (0, 0)),
            pl.BlockSpec((CPAD, CPAD), lambda i: (0, 0)),
            pl.BlockSpec((1, CPAD), lambda i: (0, 0)),
            pl.BlockSpec((CPAD, CPAD), lambda i: (0, 0)),
            pl.BlockSpec((1, CPAD), lambda i: (0, 0)),
            pl.BlockSpec((CPAD, CPAD), lambda i: (0, 0)),
            pl.BlockSpec((1, CPAD), lambda i: (0, 0)),
        ],
        out_specs=pl.BlockSpec((8, CPAD), lambda i: (i, 0)),
        compiler_params=pltpu.CompilerParams(dimension_semantics=("parallel",)),
    )(ph, wd, bd, w1, b1, w2, b2, wph, bph, wf, bf)


# ----------------------------------------------------------------------------
# Plain-JAX glue (cheap layout plumbing only: pad / phase-partition, now in bf16)
# ----------------------------------------------------------------------------
def _to_phases(x4, stride):
    """x4 (N,H,W,CPAD) bf16 -> (n_phases, N, Hp, Wp, CPAD), pad=1 ('same' 3x3).
    stride 1: single phase (the padded map); stride 2: 4-phase partition (pure partition)."""
    xp = jnp.pad(x4, ((0, 0), (1, 1), (1, 1), (0, 0)))
    if stride == 1:
        return xp[None]
    phases = [xp[:, a::2, b::2, :] for a in range(2) for b in range(2)]
    return jnp.stack(phases, axis=0)


def forward(params, x_nchw, num_classes):
    x = jnp.transpose(x_nchw, (0, 2, 3, 1)).astype(jnp.float32)      # NCHW -> NHWC
    n, h, w, c = x.shape
    x = jnp.pad(x, ((0, 0), (0, 0), (0, 0), (0, CPAD - c)))          # lane-dense channels
    x = x.astype(jnp.bfloat16)

    # ---- K1 stem: 3x3 s2 conv + SiLU ---------------------------------------
    ph = _to_phases(x, 2)
    h, w = h // 2, w // 2
    y = _call_stem(ph, params["stem_w"], params["stem_b"], n, h, w)  # (n*h*w, 128) bf16

    # ---- K2 stage 1: Fused-MBConv e=1, s1, residual ------------------------
    ph = _to_phases(y.reshape(n, h, w, CPAD), 1)
    y = _call_stage1(ph, params["s1_w"], params["s1_b"], n, h, w)

    # ---- K3 stage 2 (Fused-MBConv e=4, s2) + folded stage-3 1x1 expand -----
    ph = _to_phases(y.reshape(n, h, w, CPAD), 2)
    h, w = h // 2, w // 2
    y = _call_stage2(ph, params["s2_we"], params["s2_be"],
                     params["s23_w"], params["s23_b"], n, h, w)

    # ---- K4 fused tail: dw 3x3 s2 + SiLU + SE + proj/head + GAP + fc -------
    ph = _to_phases(y.reshape(n, h, w, CPAD), 2)
    h, w = h // 2, w // 2
    out = _call_tail(ph, params["s3_wd"], params["s3_bd"],
                     params["s3_w1"], params["s3_b1"],
                     params["s3_w2"], params["s3_b2"],
                     params["ph_w"], params["ph_b"],
                     params["fc_w"], params["fc_b"], n, h, w)        # (n*8, 128) f32
    logits = out.reshape(n, 8, CPAD)[:, 0, :num_classes]
    return logits


# ----------------------------------------------------------------------------
# Deterministic synthetic parameters (BN folded; consecutive linear 1x1s folded),
# packed into padded lane-dense kernel layout.
# ----------------------------------------------------------------------------
def _pad_mat(w):                           # (ci,co) -> (CPAD, CPAD) f32
    ci, co = w.shape
    return jnp.zeros((CPAD, CPAD), jnp.float32).at[:ci, :co].set(w)


def _pack_mat(w):                          # (ci,co) -> (CPAD, CPAD) bf16
    return _pad_mat(w).astype(jnp.bfloat16)


def _pack_bias(b):                         # (c,) -> (1, CPAD) f32
    b = jnp.asarray(b, jnp.float32)
    return jnp.zeros((1, CPAD), jnp.float32).at[0, :b.shape[0]].set(b)


def _pack_conv3x3(w):                      # (3,3,ci,co) -> (9*CPAD, CPAD) bf16, tap-major rows
    kh, kw, ci, co = w.shape
    out = jnp.zeros((kh * kw, CPAD, CPAD), jnp.float32)
    out = out.at[:, :ci, :co].set(w.reshape(kh * kw, ci, co))
    return out.reshape(kh * kw * CPAD, CPAD).astype(jnp.bfloat16)


def _pack_dw(w):                           # (3,3,c) -> (9, CPAD) f32
    kh, kw, c = w.shape
    return jnp.zeros((kh * kw, CPAD), jnp.float32).at[:, :c].set(w.reshape(kh * kw, c))


def init_params(key, num_classes):
    keys = iter(jax.random.split(key, 64))

    def conv_w(kh, kw, cin, cout):
        return jax.random.normal(next(keys), (kh, kw, cin, cout), jnp.float32) / math.sqrt(kh * kw * cin)

    def dw_w(k, c):
        return jax.random.normal(next(keys), (k, k, c), jnp.float32) / math.sqrt(k * k)

    def bn(c):
        k1, k2, k3, k4 = jax.random.split(next(keys), 4)
        gamma = 1.0 + 0.1 * jax.random.normal(k1, (c,), jnp.float32)
        beta = 0.1 * jax.random.normal(k2, (c,), jnp.float32)
        mean = 0.1 * jax.random.normal(k3, (c,), jnp.float32)
        var = 1.0 + 0.1 * jax.random.uniform(k4, (c,), jnp.float32)
        return gamma, beta, mean, var

    def fold(w, bn_p):
        gamma, beta, mean, var = bn_p
        scale = gamma / jnp.sqrt(var + BN_EPS)
        return w * scale, beta - mean * scale

    p = {}
    # stem 3x3 s2: 3 -> 16
    w, b = fold(conv_w(3, 3, 3, STEM_CH), bn(STEM_CH))
    p["stem_w"], p["stem_b"] = _pack_conv3x3(w), _pack_bias(b)
    # stage 1: Fused-MBConv e=1: 3x3 s1, 16 -> 16
    w, b = fold(conv_w(3, 3, 16, 16), bn(16))
    p["s1_w"], p["s1_b"] = _pack_conv3x3(w), _pack_bias(b)
    # stage 2: Fused-MBConv e=4: 3x3 s2 expand 16 -> 64
    w, b = fold(conv_w(3, 3, 16, 64), bn(64))
    p["s2_we"], p["s2_be"] = _pack_conv3x3(w), _pack_bias(b)
    # exact fold: stage-2 1x1 proj (64->24, linear) @ stage-3 1x1 expand (24->96)
    wp, bp = fold(conv_w(1, 1, 64, 24), bn(24))
    we3, be3 = fold(conv_w(1, 1, 24, 96), bn(96))
    wp_m, we3_m = _pad_mat(wp.reshape(64, 24)), _pad_mat(we3.reshape(24, 96))
    p["s23_w"] = (wp_m @ we3_m).astype(jnp.bfloat16)
    p["s23_b"] = _pack_bias(bp) @ we3_m + _pack_bias(be3)
    # stage 3: depthwise 3x3 s2 (96 ch) + SE(96 -> 6 -> 96)
    w, b = fold(dw_w(3, 96), bn(96))
    p["s3_wd"], p["s3_bd"] = _pack_dw(w), _pack_bias(b)
    cse = max(1, 24 // 4)
    p["s3_w1"] = _pack_mat(jax.random.normal(next(keys), (96, cse), jnp.float32) / math.sqrt(96))
    p["s3_b1"] = _pack_bias(0.01 * jax.random.normal(next(keys), (cse,), jnp.float32))
    p["s3_w2"] = _pack_mat(jax.random.normal(next(keys), (cse, 96), jnp.float32) / math.sqrt(cse))
    p["s3_b2"] = _pack_bias(0.01 * jax.random.normal(next(keys), (96,), jnp.float32))
    # exact fold: stage-3 1x1 proj (96->32, linear) @ head 1x1 conv (32->64); SiLU applied after
    wp3, bp3 = fold(conv_w(1, 1, 96, 32), bn(32))
    wh, bh = fold(conv_w(1, 1, 32, HEAD_CH), bn(HEAD_CH))
    wp3_m, wh_m = _pad_mat(wp3.reshape(96, 32)), _pad_mat(wh.reshape(32, HEAD_CH))
    p["ph_w"] = (wp3_m @ wh_m).astype(jnp.bfloat16)
    p["ph_b"] = _pack_bias(bp3) @ wh_m + _pack_bias(bh)
    # classifier 64 -> num_classes
    p["fc_w"] = _pack_mat(jax.random.normal(next(keys), (HEAD_CH, num_classes), jnp.float32) / math.sqrt(HEAD_CH))
    p["fc_b"] = _pack_bias(jnp.zeros((num_classes,), jnp.float32))
    return p


# ----------------------------------------------------------------------------
if __name__ == "__main__":
    key = jax.random.PRNGKey(0)
    pkey, xkey = jax.random.split(key)

    num_classes = 10
    params = init_params(pkey, num_classes)

    # Small NCHW image batch, matching the PyTorch module's input convention.
    x = jax.random.normal(xkey, (2, 3, 32, 32), jnp.float32)

    fwd = jax.jit(lambda p, xx: forward(p, xx, num_classes))
    logits = jax.block_until_ready(fwd(params, x))

    assert logits.shape == (2, num_classes), logits.shape
    assert logits.dtype == jnp.float32
    assert bool(jnp.all(jnp.isfinite(logits)))
    print("KERNEL_OK")
</pallas_src>

<mosaic_0001>
module attributes {stable_mosaic.version = 11 : i64} {
  func.func @_stem_kernel(%arg0: i32, %arg1: memref<4x1x17x17x128xbf16, #tpu.memory_space<vmem>>, %arg2: memref<1152x128xbf16, #tpu.memory_space<vmem>>, %arg3: memref<1x128xf32, #tpu.memory_space<vmem>>, %arg4: memref<256x128xbf16, #tpu.memory_space<vmem>>) attributes {dimension_semantics = [#tpu.dimension_semantics<parallel>], iteration_bounds = array<i64: 2>, scalar_prefetch = 0 : i64, scratch_operands = 0 : i64, tpu.core_type = #tpu.core_type<tc>, window_params = [{transform_indices = @transform_0, window_bounds = array<i64: 4, 1, 17, 17, 128>}, {pipeline_mode = #tpu.pipeline_mode<synchronous>, transform_indices = @transform_1, window_bounds = array<i64: 1152, 128>}, {pipeline_mode = #tpu.pipeline_mode<synchronous>, transform_indices = @transform_2, window_bounds = array<i64: 1, 128>}, {transform_indices = @transform_3, window_bounds = array<i64: 256, 128>}]} {
    %c0 = arith.constant 0 : index
    %c0_0 = arith.constant 0 : index
    %c0_1 = arith.constant 0 : index
    %c0_2 = arith.constant 0 : index
    %c0_3 = arith.constant 0 : index
    %0 = vector.load %arg1[%c0, %c0_0, %c0_1, %c0_2, %c0_3] : memref<4x1x17x17x128xbf16, #tpu.memory_space<vmem>>, vector<1x1x16x16x128xbf16>
    %1 = vector.shape_cast %0 : vector<1x1x16x16x128xbf16> to vector<16x16x128xbf16>
    %2 = vector.shape_cast %1 : vector<16x16x128xbf16> to vector<256x128xbf16>
    %c1 = arith.constant 1 : index
    %c0_4 = arith.constant 0 : index
    %c0_5 = arith.constant 0 : index
    %c0_6 = arith.constant 0 : index
    %c0_7 = arith.constant 0 : index
    %3 = vector.load %arg1[%c1, %c0_4, %c0_5, %c0_6, %c0_7] : memref<4x1x17x17x128xbf16, #tpu.memory_space<vmem>>, vector<1x1x16x16x128xbf16>
    %4 = vector.shape_cast %3 : vector<1x1x16x16x128xbf16> to vector<16x16x128xbf16>
    %5 = vector.shape_cast %4 : vector<16x16x128xbf16> to vector<256x128xbf16>
    %c0_8 = arith.constant 0 : index
    %c0_9 = arith.constant 0 : index
    %c0_10 = arith.constant 0 : index
    %c1_11 = arith.constant 1 : index
    %c0_12 = arith.constant 0 : index
    %6 = vector.load %arg1[%c0_8, %c0_9, %c0_10, %c1_11, %c0_12] : memref<4x1x17x17x128xbf16, #tpu.memory_space<vmem>>, vector<1x1x16x16x128xbf16>
    %7 = vector.shape_cast %6 : vector<1x1x16x16x128xbf16> to vector<16x16x128xbf16>
    %8 = vector.shape_cast %7 : vector<16x16x128xbf16> to vector<256x128xbf16>
    %c2 = arith.constant 2 : index
    %c0_13 = arith.constant 0 : index
    %c0_14 = arith.constant 0 : index
    %c0_15 = arith.constant 0 : index
    %c0_16 = arith.constant 0 : index
    %9 = vector.load %arg1[%c2, %c0_13, %c0_14, %c0_15, %c0_16] : memref<4x1x17x17x128xbf16, #tpu.memory_space<vmem>>, vector<1x1x16x16x128xbf16>
    %10 = vector.shape_cast %9 : vector<1x1x16x16x128xbf16> to vector<16x16x128xbf16>
    %11 = vector.shape_cast %10 : vector<16x16x128xbf16> to vector<256x128xbf16>
    %c3 = arith.constant 3 : index
    %c0_17 = arith.constant 0 : index
    %c0_18 = arith.constant 0 : index
    %c0_19 = arith.constant 0 : index
    %c0_20 = arith.constant 0 : index
    %12 = vector.load %arg1[%c3, %c0_17, %c0_18, %c0_19, %c0_20] : memref<4x1x17x17x128xbf16, #tpu.memory_space<vmem>>, vector<1x1x16x16x128xbf16>
    %13 = vector.shape_cast %12 : vector<1x1x16x16x128xbf16> to vector<16x16x128xbf16>
    %14 = vector.shape_cast %13 : vector<16x16x128xbf16> to vector<256x128xbf16>
    %c2_21 = arith.constant 2 : index
    %c0_22 = arith.constant 0 : index
    %c0_23 = arith.constant 0 : index
    %c1_24 = arith.constant 1 : index
    %c0_25 = arith.constant 0 : index
    %15 = vector.load %arg1[%c2_21, %c0_22, %c0_23, %c1_24, %c0_25] : memref<4x1x17x17x128xbf16, #tpu.memory_space<vmem>>, vector<1x1x16x16x128xbf16>
    %16 = vector.shape_cast %15 : vector<1x1x16x16x128xbf16> to vector<16x16x128xbf16>
    %17 = vector.shape_cast %16 : vector<16x16x128xbf16> to vector<256x128xbf16>
    %c0_26 = arith.constant 0 : index
    %c0_27 = arith.constant 0 : index
    %c1_28 = arith.constant 1 : index
    %c0_29 = arith.constant 0 : index
    %c0_30 = arith.constant 0 : index
    %18 = vector.load %arg1[%c0_26, %c0_27, %c1_28, %c0_29, %c0_30] : memref<4x1x17x17x128xbf16, #tpu.memory_space<vmem>>, vector<1x1x16x16x128xbf16>
    %19 = vector.shape_cast %18 : vector<1x1x16x16x128xbf16> to vector<16x16x128xbf16>
    %20 = vector.shape_cast %19 : vector<16x16x128xbf16> to vector<256x128xbf16>
    %c1_31 = arith.constant 1 : index
    %c0_32 = arith.constant 0 : index
    %c1_33 = arith.constant 1 : index
    %c0_34 = arith.constant 0 : index
    %c0_35 = arith.constant 0 : index
    %21 = vector.load %arg1[%c1_31, %c0_32, %c1_33, %c0_34, %c0_35] : memref<4x1x17x17x128xbf16, #tpu.memory_space<vmem>>, vector<1x1x16x16x128xbf16>
    %22 = vector.shape_cast %21 : vector<1x1x16x16x128xbf16> to vector<16x16x128xbf16>
    %23 = vector.shape_cast %22 : vector<16x16x128xbf16> to vector<256x128xbf16>
    %c0_36 = arith.constant 0 : index
    %c0_37 = arith.constant 0 : index
    %c1_38 = arith.constant 1 : index
    %c1_39 = arith.constant 1 : index
    %c0_40 = arith.constant 0 : index
    %24 = vector.load %arg1[%c0_36, %c0_37, %c1_38, %c1_39, %c0_40] : memref<4x1x17x17x128xbf16, #tpu.memory_space<vmem>>, vector<1x1x16x16x128xbf16>
    %25 = vector.shape_cast %24 : vector<1x1x16x16x128xbf16> to vector<16x16x128xbf16>
    %26 = vector.shape_cast %25 : vector<16x16x128xbf16> to vector<256x128xbf16>
    %27 = tpu.concatenate %2, %5, %8, %11, %14, %17, %20, %23, %26 in 1 : vector<256x128xbf16>, vector<256x128xbf16>, vector<256x128xbf16>, vector<256x128xbf16>, vector<256x128xbf16>, vector<256x128xbf16>, vector<256x128xbf16>, vector<256x128xbf16>, vector<256x128xbf16> -> vector<256x1152xbf16>
    %c0_41 = arith.constant 0 : index
    %c0_42 = arith.constant 0 : index
    %28 = vector.load %arg2[%c0_41, %c0_42] : memref<1152x128xbf16, #tpu.memory_space<vmem>>, vector<1152x128xbf16>
    %cst = arith.constant dense<0.000000e+00> : vector<256x128xf32>
    %29 = tpu.matmul %27, %28, %cst {dimension_numbers = #tpu.dot_dimension_numbers<[1], [0], [0], [1], [0, 0, 1, 1], [], []>} : vector<256x1152xbf16>, vector<1152x128xbf16>, vector<256x128xf32> -> vector<256x128xf32>
    %c0_43 = arith.constant 0 : index
    %c0_44 = arith.constant 0 : index
    %30 = vector.load %arg3[%c0_43, %c0_44] : memref<1x128xf32, #tpu.memory_space<vmem>>, vector<1x128xf32>
    %31 = vector.broadcast %30 : vector<1x128xf32> to vector<256x128xf32>
    %32 = arith.addf %29, %31 : vector<256x128xf32>
    %33 = arith.negf %32 : vector<256x128xf32>
    %34 = math.exp %33 : vector<256x128xf32>
    %cst_45 = arith.constant 1.000000e+00 : f32
    %35 = vector.broadcast %cst_45 : f32 to vector<256x128xf32>
    %36 = arith.addf %35, %34 : vector<256x128xf32>
    %37 = arith.divf %35, %36 : vector<256x128xf32>
    %38 = arith.mulf %32, %37 : vector<256x128xf32>
    %39 = arith.truncf %38 : vector<256x128xf32> to vector<256x128xbf16>
    %c0_46 = arith.constant 0 : index
    %c0_47 = arith.constant 0 : index
    %40 = vector.load %arg4[%c0_46, %c0_47] : memref<256x128xbf16, #tpu.memory_space<vmem>>, vector<256x128xbf16>
    tpu.vector_store %arg4[%c0_46, %c0_47], %39 {strides = array<i32>} : memref<256x128xbf16, #tpu.memory_space<vmem>>, vector<256x128xbf16>,
    return
  }
  func.func @transform_0(%arg0: i32) -> (i32, i32, i32, i32, i32) {
    %c0_i32 = arith.constant 0 : i32
    %c0_i32_0 = arith.constant 0 : i32
    %c0_i32_1 = arith.constant 0 : i32
    %c0_i32_2 = arith.constant 0 : i32
    %c0_i32_3 = arith.constant 0 : i32
    return %c0_i32, %arg0, %c0_i32_0, %c0_i32_1, %c0_i32_2 : i32, i32, i32, i32, i32
  }
  func.func @transform_1(%arg0: i32) -> (i32, i32) {
    %c0_i32 = arith.constant 0 : i32
    %c0_i32_0 = arith.constant 0 : i32
    %c0_i32_1 = arith.constant 0 : i32
    return %c0_i32, %c0_i32_0 : i32, i32
  }
  func.func @transform_2(%arg0: i32) -> (i32, i32) {
    %c0_i32 = arith.constant 0 : i32
    %c0_i32_0 = arith.constant 0 : i32
    %c0_i32_1 = arith.constant 0 : i32
    return %c0_i32, %c0_i32_0 : i32, i32
  }
  func.func @transform_3(%arg0: i32) -> (i32, i32) {
    %c0_i32 = arith.constant 0 : i32
    %c0_i32_0 = arith.constant 0 : i32
    return %arg0, %c0_i32 : i32, i32
  }
}

module attributes {stable_mosaic.version = 11 : i64} {
  func.func @_stage1_kernel(%arg0: i32, %arg1: memref<1x1x18x18x128xbf16, #tpu.memory_space<vmem>>, %arg2: memref<1152x128xbf16, #tpu.memory_space<vmem>>, %arg3: memref<1x128xf32, #tpu.memory_space<vmem>>, %arg4: memref<256x128xbf16, #tpu.memory_space<vmem>>) attributes {dimension_semantics = [#tpu.dimension_semantics<parallel>], iteration_bounds = array<i64: 2>, scalar_prefetch = 0 : i64, scratch_operands = 0 : i64, tpu.core_type = #tpu.core_type<tc>, window_params = [{transform_indices = @transform_0, window_bounds = array<i64: 1, 1, 18, 18, 128>}, {pipeline_mode = #tpu.pipeline_mode<synchronous>, transform_indices = @transform_1, window_bounds = array<i64: 1152, 128>}, {pipeline_mode = #tpu.pipeline_mode<synchronous>, transform_indices = @transform_2, window_bounds = array<i64: 1, 128>}, {transform_indices = @transform_3, window_bounds = array<i64: 256, 128>}]} {
    %c0 = arith.constant 0 : index
    %c0_0 = arith.constant 0 : index
    %c0_1 = arith.constant 0 : index
    %c0_2 = arith.constant 0 : index
    %c0_3 = arith.constant 0 : index
    %0 = vector.load %arg1[%c0, %c0_0, %c0_1, %c0_2, %c0_3] : memref<1x1x18x18x128xbf16, #tpu.memory_space<vmem>>, vector<1x1x16x16x128xbf16>
    %1 = vector.shape_cast %0 : vector<1x1x16x16x128xbf16> to vector<16x16x128xbf16>
    %2 = vector.shape_cast %1 : vector<16x16x128xbf16> to vector<256x128xbf16>
    %c0_4 = arith.constant 0 : index
    %c0_5 = arith.constant 0 : index
    %c0_6 = arith.constant 0 : index
    %c1 = arith.constant 1 : index
    %c0_7 = arith.constant 0 : index
    %3 = vector.load %arg1[%c0_4, %c0_5, %c0_6, %c1, %c0_7] : memref<1x1x18x18x128xbf16, #tpu.memory_space<vmem>>, vector<1x1x16x16x128xbf16>
    %4 = vector.shape_cast %3 : vector<1x1x16x16x128xbf16> to vector<16x16x128xbf16>
    %5 = vector.shape_cast %4 : vector<16x16x128xbf16> to vector<256x128xbf16>
    %c0_8 = arith.constant 0 : index
    %c0_9 = arith.constant 0 : index
    %c0_10 = arith.constant 0 : index
    %c2 = arith.constant 2 : index
    %c0_11 = arith.constant 0 : index
    %6 = vector.load %arg1[%c0_8, %c0_9, %c0_10, %c2, %c0_11] : memref<1x1x18x18x128xbf16, #tpu.memory_space<vmem>>, vector<1x1x16x16x128xbf16>
    %7 = vector.shape_cast %6 : vector<1x1x16x16x128xbf16> to vector<16x16x128xbf16>
    %8 = vector.shape_cast %7 : vector<16x16x128xbf16> to vector<256x128xbf16>
    %c0_12 = arith.constant 0 : index
    %c0_13 = arith.constant 0 : index
    %c1_14 = arith.constant 1 : index
    %c0_15 = arith.constant 0 : index
    %c0_16 = arith.constant 0 : index
    %9 = vector.load %arg1[%c0_12, %c0_13, %c1_14, %c0_15, %c0_16] : memref<1x1x18x18x128xbf16, #tpu.memory_space<vmem>>, vector<1x1x16x16x128xbf16>
    %10 = vector.shape_cast %9 : vector<1x1x16x16x128xbf16> to vector<16x16x128xbf16>
    %11 = vector.shape_cast %10 : vector<16x16x128xbf16> to vector<256x128xbf16>
    %c0_17 = arith.constant 0 : index
    %c0_18 = arith.constant 0 : index
    %c1_19 = arith.constant 1 : index
    %c1_20 = arith.constant 1 : index
    %c0_21 = arith.constant 0 : index
    %12 = vector.load %arg1[%c0_17, %c0_18, %c1_19, %c1_20, %c0_21] : memref<1x1x18x18x128xbf16, #tpu.memory_space<vmem>>, vector<1x1x16x16x128xbf16>
    %13 = vector.shape_cast %12 : vector<1x1x16x16x128xbf16> to vector<16x16x128xbf16>
    %14 = vector.shape_cast %13 : vector<16x16x128xbf16> to vector<256x128xbf16>
    %c0_22 = arith.constant 0 : index
    %c0_23 = arith.constant 0 : index
    %c1_24 = arith.constant 1 : index
    %c2_25 = arith.constant 2 : index
    %c0_26 = arith.constant 0 : index
    %15 = vector.load %arg1[%c0_22, %c0_23, %c1_24, %c2_25, %c0_26] : memref<1x1x18x18x128xbf16, #tpu.memory_space<vmem>>, vector<1x1x16x16x128xbf16>
    %16 = vector.shape_cast %15 : vector<1x1x16x16x128xbf16> to vector<16x16x128xbf16>
    %17 = vector.shape_cast %16 : vector<16x16x128xbf16> to vector<256x128xbf16>
    %c0_27 = arith.constant 0 : index
    %c0_28 = arith.constant 0 : index
    %c2_29 = arith.constant 2 : index
    %c0_30 = arith.constant 0 : index
    %c0_31 = arith.constant 0 : index
    %18 = vector.load %arg1[%c0_27, %c0_28, %c2_29, %c0_30, %c0_31] : memref<1x1x18x18x128xbf16, #tpu.memory_space<vmem>>, vector<1x1x16x16x128xbf16>
    %19 = vector.shape_cast %18 : vector<1x1x16x16x128xbf16> to vector<16x16x128xbf16>
    %20 = vector.shape_cast %19 : vector<16x16x128xbf16> to vector<256x128xbf16>
    %c0_32 = arith.constant 0 : index
    %c0_33 = arith.constant 0 : index
    %c2_34 = arith.constant 2 : index
    %c1_35 = arith.constant 1 : index
    %c0_36 = arith.constant 0 : index
    %21 = vector.load %arg1[%c0_32, %c0_33, %c2_34, %c1_35, %c0_36] : memref<1x1x18x18x128xbf16, #tpu.memory_space<vmem>>, vector<1x1x16x16x128xbf16>
    %22 = vector.shape_cast %21 : vector<1x1x16x16x128xbf16> to vector<16x16x128xbf16>
    %23 = vector.shape_cast %22 : vector<16x16x128xbf16> to vector<256x128xbf16>
    %c0_37 = arith.constant 0 : index
    %c0_38 = arith.constant 0 : index
    %c2_39 = arith.constant 2 : index
    %c2_40 = arith.constant 2 : index
    %c0_41 = arith.constant 0 : index
    %24 = vector.load %arg1[%c0_37, %c0_38, %c2_39, %c2_40, %c0_41] : memref<1x1x18x18x128xbf16, #tpu.memory_space<vmem>>, vector<1x1x16x16x128xbf16>
    %25 = vector.shape_cast %24 : vector<1x1x16x16x128xbf16> to vector<16x16x128xbf16>
    %26 = vector.shape_cast %25 : vector<16x16x128xbf16> to vector<256x128xbf16>
    %27 = tpu.concatenate %2, %5, %8, %11, %14, %17, %20, %23, %26 in 1 : vector<256x128xbf16>, vector<256x128xbf16>, vector<256x128xbf16>, vector<256x128xbf16>, vector<256x128xbf16>, vector<256x128xbf16>, vector<256x128xbf16>, vector<256x128xbf16>, vector<256x128xbf16> -> vector<256x1152xbf16>
    %c0_42 = arith.constant 0 : index
    %c0_43 = arith.constant 0 : index
    %28 = vector.load %arg2[%c0_42, %c0_43] : memref<1152x128xbf16, #tpu.memory_space<vmem>>, vector<1152x128xbf16>
    %cst = arith.constant dense<0.000000e+00> : vector<256x128xf32>
    %29 = tpu.matmul %27, %28, %cst {dimension_numbers = #tpu.dot_dimension_numbers<[1], [0], [0], [1], [0, 0, 1, 1], [], []>} : vector<256x1152xbf16>, vector<1152x128xbf16>, vector<256x128xf32> -> vector<256x128xf32>
    %c0_44 = arith.constant 0 : index
    %c0_45 = arith.constant 0 : index
    %30 = vector.load %arg3[%c0_44, %c0_45] : memref<1x128xf32, #tpu.memory_space<vmem>>, vector<1x128xf32>
    %31 = vector.broadcast %30 : vector<1x128xf32> to vector<256x128xf32>
    %32 = arith.addf %29, %31 : vector<256x128xf32>
    %c0_46 = arith.constant 0 : index
    %c0_47 = arith.constant 0 : index
    %c1_48 = arith.constant 1 : index
    %c1_49 = arith.constant 1 : index
    %c0_50 = arith.constant 0 : index
    %33 = vector.load %arg1[%c0_46, %c0_47, %c1_48, %c1_49, %c0_50] : memref<1x1x18x18x128xbf16, #tpu.memory_space<vmem>>, vector<1x1x16x16x128xbf16>
    %34 = vector.shape_cast %33 : vector<1x1x16x16x128xbf16> to vector<16x16x128xbf16>
    %35 = vector.shape_cast %34 : vector<16x16x128xbf16> to vector<256x128xbf16>
    %36 = arith.extf %35 : vector<256x128xbf16> to vector<256x128xf32>
    %37 = arith.negf %32 : vector<256x128xf32>
    %38 = math.exp %37 : vector<256x128xf32>
    %cst_51 = arith.constant 1.000000e+00 : f32
    %39 = vector.broadcast %cst_51 : f32 to vector<256x128xf32>
    %40 = arith.addf %39, %38 : vector<256x128xf32>
    %41 = arith.divf %39, %40 : vector<256x128xf32>
    %42 = arith.mulf %32, %41 : vector<256x128xf32>
    %43 = arith.addf %42, %36 : vector<256x128xf32>
    %44 = arith.truncf %43 : vector<256x128xf32> to vector<256x128xbf16>
    %c0_52 = arith.constant 0 : index
    %c0_53 = arith.constant 0 : index
    %45 = vector.load %arg4[%c0_52, %c0_53] : memref<256x128xbf16, #tpu.memory_space<vmem>>, vector<256x128xbf16>
    tpu.vector_store %arg4[%c0_52, %c0_53], %44 {strides = array<i32>} : memref<256x128xbf16, #tpu.memory_space<vmem>>, vector<256x128xbf16>,
    return
  }
  func.func @transform_0(%arg0: i32) -> (i32, i32, i32, i32, i32) {
    %c0_i32 = arith.constant 0 : i32
    %c0_i32_0 = arith.constant 0 : i32
    %c0_i32_1 = arith.constant 0 : i32
    %c0_i32_2 = arith.constant 0 : i32
    %c0_i32_3 = arith.constant 0 : i32
    return %c0_i32, %arg0, %c0_i32_0, %c0_i32_1, %c0_i32_2 : i32, i32, i32, i32, i32
  }
  func.func @transform_1(%arg0: i32) -> (i32, i32) {
    %c0_i32 = arith.constant 0 : i32
    %c0_i32_0 = arith.constant 0 : i32
    %c0_i32_1 = arith.constant 0 : i32
    return %c0_i32, %c0_i32_0 : i32, i32
  }
  func.func @transform_2(%arg0: i32) -> (i32, i32) {
    %c0_i32 = arith.constant 0 : i32
    %c0_i32_0 = arith.constant 0 : i32
    %c0_i32_1 = arith.constant 0 : i32
    return %c0_i32, %c0_i32_0 : i32, i32
  }
  func.func @transform_3(%arg0: i32) -> (i32, i32) {
    %c0_i32 = arith.constant 0 : i32
    %c0_i32_0 = arith.constant 0 : i32
    return %arg0, %c0_i32 : i32, i32
  }
}

module attributes {stable_mosaic.version = 11 : i64} {
  func.func @_stage2_kernel(%arg0: i32, %arg1: memref<4x1x9x9x128xbf16, #tpu.memory_space<vmem>>, %arg2: memref<1152x128xbf16, #tpu.memory_space<vmem>>, %arg3: memref<1x128xf32, #tpu.memory_space<vmem>>, %arg4: memref<128x128xbf16, #tpu.memory_space<vmem>>, %arg5: memref<1x128xf32, #tpu.memory_space<vmem>>, %arg6: memref<64x128xbf16, #tpu.memory_space<vmem>>) attributes {dimension_semantics = [#tpu.dimension_semantics<parallel>], iteration_bounds = array<i64: 2>, scalar_prefetch = 0 : i64, scratch_operands = 0 : i64, tpu.core_type = #tpu.core_type<tc>, window_params = [{transform_indices = @transform_0, window_bounds = array<i64: 4, 1, 9, 9, 128>}, {pipeline_mode = #tpu.pipeline_mode<synchronous>, transform_indices = @transform_1, window_bounds = array<i64: 1152, 128>}, {pipeline_mode = #tpu.pipeline_mode<synchronous>, transform_indices = @transform_2, window_bounds = array<i64: 1, 128>}, {pipeline_mode = #tpu.pipeline_mode<synchronous>, transform_indices = @transform_3, window_bounds = array<i64: 128, 128>}, {pipeline_mode = #tpu.pipeline_mode<synchronous>, transform_indices = @transform_4, window_bounds = array<i64: 1, 128>}, {transform_indices = @transform_5, window_bounds = array<i64: 64, 128>}]} {
    %c0 = arith.constant 0 : index
    %c0_0 = arith.constant 0 : index
    %c0_1 = arith.constant 0 : index
    %c0_2 = arith.constant 0 : index
    %c0_3 = arith.constant 0 : index
    %0 = vector.load %arg1[%c0, %c0_0, %c0_1, %c0_2, %c0_3] : memref<4x1x9x9x128xbf16, #tpu.memory_space<vmem>>, vector<1x1x8x8x128xbf16>
    %1 = vector.shape_cast %0 : vector<1x1x8x8x128xbf16> to vector<8x8x128xbf16>
    %2 = vector.shape_cast %1 : vector<8x8x128xbf16> to vector<64x128xbf16>
    %c1 = arith.constant 1 : index
    %c0_4 = arith.constant 0 : index
    %c0_5 = arith.constant 0 : index
    %c0_6 = arith.constant 0 : index
    %c0_7 = arith.constant 0 : index
    %3 = vector.load %arg1[%c1, %c0_4, %c0_5, %c0_6, %c0_7] : memref<4x1x9x9x128xbf16, #tpu.memory_space<vmem>>, vector<1x1x8x8x128xbf16>
    %4 = vector.shape_cast %3 : vector<1x1x8x8x128xbf16> to vector<8x8x128xbf16>
    %5 = vector.shape_cast %4 : vector<8x8x128xbf16> to vector<64x128xbf16>
    %c0_8 = arith.constant 0 : index
    %c0_9 = arith.constant 0 : index
    %c0_10 = arith.constant 0 : index
    %c1_11 = arith.constant 1 : index
    %c0_12 = arith.constant 0 : index
    %6 = vector.load %arg1[%c0_8, %c0_9, %c0_10, %c1_11, %c0_12] : memref<4x1x9x9x128xbf16, #tpu.memory_space<vmem>>, vector<1x1x8x8x128xbf16>
    %7 = vector.shape_cast %6 : vector<1x1x8x8x128xbf16> to vector<8x8x128xbf16>
    %8 = vector.shape_cast %7 : vector<8x8x128xbf16> to vector<64x128xbf16>
    %c2 = arith.constant 2 : index
    %c0_13 = arith.constant 0 : index
    %c0_14 = arith.constant 0 : index
    %c0_15 = arith.constant 0 : index
    %c0_16 = arith.constant 0 : index
    %9 = vector.load %arg1[%c2, %c0_13, %c0_14, %c0_15, %c0_16] : memref<4x1x9x9x128xbf16, #tpu.memory_space<vmem>>, vector<1x1x8x8x128xbf16>
    %10 = vector.shape_cast %9 : vector<1x1x8x8x128xbf16> to vector<8x8x128xbf16>
    %11 = vector.shape_cast %10 : vector<8x8x128xbf16> to vector<64x128xbf16>
    %c3 = arith.constant 3 : index
    %c0_17 = arith.constant 0 : index
    %c0_18 = arith.constant 0 : index
    %c0_19 = arith.constant 0 : index
    %c0_20 = arith.constant 0 : index
    %12 = vector.load %arg1[%c3, %c0_17, %c0_18, %c0_19, %c0_20] : memref<4x1x9x9x128xbf16, #tpu.memory_space<vmem>>, vector<1x1x8x8x128xbf16>
    %13 = vector.shape_cast %12 : vector<1x1x8x8x128xbf16> to vector<8x8x128xbf16>
    %14 = vector.shape_cast %13 : vector<8x8x128xbf16> to vector<64x128xbf16>
    %c2_21 = arith.constant 2 : index
    %c0_22 = arith.constant 0 : index
    %c0_23 = arith.constant 0 : index
    %c1_24 = arith.constant 1 : index
    %c0_25 = arith.constant 0 : index
    %15 = vector.load %arg1[%c2_21, %c0_22, %c0_23, %c1_24, %c0_25] : memref<4x1x9x9x128xbf16, #tpu.memory_space<vmem>>, vector<1x1x8x8x128xbf16>
    %16 = vector.shape_cast %15 : vector<1x1x8x8x128xbf16> to vector<8x8x128xbf16>
    %17 = vector.shape_cast %16 : vector<8x8x128xbf16> to vector<64x128xbf16>
    %c0_26 = arith.constant 0 : index
    %c0_27 = arith.constant 0 : index
    %c1_28 = arith.constant 1 : index
    %c0_29 = arith.constant 0 : index
    %c0_30 = arith.constant 0 : index
    %18 = vector.load %arg1[%c0_26, %c0_27, %c1_28, %c0_29, %c0_30] : memref<4x1x9x9x128xbf16, #tpu.memory_space<vmem>>, vector<1x1x8x8x128xbf16>
    %19 = vector.shape_cast %18 : vector<1x1x8x8x128xbf16> to vector<8x8x128xbf16>
    %20 = vector.shape_cast %19 : vector<8x8x128xbf16> to vector<64x128xbf16>
    %c1_31 = arith.constant 1 : index
    %c0_32 = arith.constant 0 : index
    %c1_33 = arith.constant 1 : index
    %c0_34 = arith.constant 0 : index
    %c0_35 = arith.constant 0 : index
    %21 = vector.load %arg1[%c1_31, %c0_32, %c1_33, %c0_34, %c0_35] : memref<4x1x9x9x128xbf16, #tpu.memory_space<vmem>>, vector<1x1x8x8x128xbf16>
    %22 = vector.shape_cast %21 : vector<1x1x8x8x128xbf16> to vector<8x8x128xbf16>
    %23 = vector.shape_cast %22 : vector<8x8x128xbf16> to vector<64x128xbf16>
    %c0_36 = arith.constant 0 : index
    %c0_37 = arith.constant 0 : index
    %c1_38 = arith.constant 1 : index
    %c1_39 = arith.constant 1 : index
    %c0_40 = arith.constant 0 : index
    %24 = vector.load %arg1[%c0_36, %c0_37, %c1_38, %c1_39, %c0_40] : memref<4x1x9x9x128xbf16, #tpu.memory_space<vmem>>, vector<1x1x8x8x128xbf16>
    %25 = vector.shape_cast %24 : vector<1x1x8x8x128xbf16> to vector<8x8x128xbf16>
    %26 = vector.shape_cast %25 : vector<8x8x128xbf16> to vector<64x128xbf16>
    %27 = tpu.concatenate %2, %5, %8, %11, %14, %17, %20, %23, %26 in 1 : vector<64x128xbf16>, vector<64x128xbf16>, vector<64x128xbf16>, vector<64x128xbf16>, vector<64x128xbf16>, vector<64x128xbf16>, vector<64x128xbf16>, vector<64x128xbf16>, vector<64x128xbf16> -> vector<64x1152xbf16>
    %c0_41 = arith.constant 0 : index
    %c0_42 = arith.constant 0 : index
    %28 = vector.load %arg2[%c0_41, %c0_42] : memref<1152x128xbf16, #tpu.memory_space<vmem>>, vector<1152x128xbf16>
    %cst = arith.constant dense<0.000000e+00> : vector<64x128xf32>
    %29 = tpu.matmul %27, %28, %cst {dimension_numbers = #tpu.dot_dimension_numbers<[1], [0], [0], [1], [0, 0, 1, 1], [], []>} : vector<64x1152xbf16>, vector<1152x128xbf16>, vector<64x128xf32> -> vector<64x128xf32>
    %c0_43 = arith.constant 0 : index
    %c0_44 = arith.constant 0 : index
    %30 = vector.load %arg3[%c0_43, %c0_44] : memref<1x128xf32, #tpu.memory_space<vmem>>, vector<1x128xf32>
    %31 = vector.broadcast %30 : vector<1x128xf32> to vector<64x128xf32>
    %32 = arith.addf %29, %31 : vector<64x128xf32>
    %33 = arith.negf %32 : vector<64x128xf32>
    %34 = math.exp %33 : vector<64x128xf32>
    %cst_45 = arith.constant 1.000000e+00 : f32
    %35 = vector.broadcast %cst_45 : f32 to vector<64x128xf32>
    %36 = arith.addf %35, %34 : vector<64x128xf32>
    %37 = arith.divf %35, %36 : vector<64x128xf32>
    %38 = arith.mulf %32, %37 : vector<64x128xf32>
    %39 = arith.truncf %38 : vector<64x128xf32> to vector<64x128xbf16>
    %c0_46 = arith.constant 0 : index
    %c0_47 = arith.constant 0 : index
    %40 = vector.load %arg4[%c0_46, %c0_47] : memref<128x128xbf16, #tpu.memory_space<vmem>>, vector<128x128xbf16>
    %cst_48 = arith.constant dense<0.000000e+00> : vector<64x128xf32>
    %41 = tpu.matmul %39, %40, %cst_48 {dimension_numbers = #tpu.dot_dimension_numbers<[1], [0], [0], [1], [0, 0, 1, 1], [], []>} : vector<64x128xbf16>, vector<128x128xbf16>, vector<64x128xf32> -> vector<64x128xf32>
    %c0_49 = arith.constant 0 : index
    %c0_50 = arith.constant 0 : index
    %42 = vector.load %arg5[%c0_49, %c0_50] : memref<1x128xf32, #tpu.memory_space<vmem>>, vector<1x128xf32>
    %43 = vector.broadcast %42 : vector<1x128xf32> to vector<64x128xf32>
    %44 = arith.addf %41, %43 : vector<64x128xf32>
    %45 = arith.negf %44 : vector<64x128xf32>
    %46 = math.exp %45 : vector<64x128xf32>
    %cst_51 = arith.constant 1.000000e+00 : f32
    %47 = vector.broadcast %cst_51 : f32 to vector<64x128xf32>
    %48 = arith.addf %47, %46 : vector<64x128xf32>
    %49 = arith.divf %47, %48 : vector<64x128xf32>
    %50 = arith.mulf %44, %49 : vector<64x128xf32>
    %51 = arith.truncf %50 : vector<64x128xf32> to vector<64x128xbf16>
    %c0_52 = arith.constant 0 : index
    %c0_53 = arith.constant 0 : index
    %52 = vector.load %arg6[%c0_52, %c0_53] : memref<64x128xbf16, #tpu.memory_space<vmem>>, vector<64x128xbf16>
    tpu.vector_store %arg6[%c0_52, %c0_53], %51 {strides = array<i32>} : memref<64x128xbf16, #tpu.memory_space<vmem>>, vector<64x128xbf16>,
    return
  }
  func.func @transform_0(%arg0: i32) -> (i32, i32, i32, i32, i32) {
    %c0_i32 = arith.constant 0 : i32
    %c0_i32_0 = arith.constant 0 : i32
    %c0_i32_1 = arith.constant 0 : i32
    %c0_i32_2 = arith.constant 0 : i32
    %c0_i32_3 = arith.constant 0 : i32
    return %c0_i32, %arg0, %c0_i32_0, %c0_i32_1, %c0_i32_2 : i32, i32, i32, i32, i32
  }
  func.func @transform_1(%arg0: i32) -> (i32, i32) {
    %c0_i32 = arith.constant 0 : i32
    %c0_i32_0 = arith.constant 0 : i32
    %c0_i32_1 = arith.constant 0 : i32
    return %c0_i32, %c0_i32_0 : i32, i32
  }
  func.func @transform_2(%arg0: i32) -> (i32, i32) {
    %c0_i32 = arith.constant 0 : i32
    %c0_i32_0 = arith.constant 0 : i32
    %c0_i32_1 = arith.constant 0 : i32
    return %c0_i32, %c0_i32_0 : i32, i32
  }
  func.func @transform_3(%arg0: i32) -> (i32, i32) {
    %c0_i32 = arith.constant 0 : i32
    %c0_i32_0 = arith.constant 0 : i32
    %c0_i32_1 = arith.constant 0 : i32
    return %c0_i32, %c0_i32_0 : i32, i32
  }
  func.func @transform_4(%arg0: i32) -> (i32, i32) {
    %c0_i32 = arith.constant 0 : i32
    %c0_i32_0 = arith.constant 0 : i32
    %c0_i32_1 = arith.constant 0 : i32
    return %c0_i32, %c0_i32_0 : i32, i32
  }
  func.func @transform_5(%arg0: i32) -> (i32, i32) {
    %c0_i32 = arith.constant 0 : i32
    %c0_i32_0 = arith.constant 0 : i32
    return %arg0, %c0_i32 : i32, i32
  }
}

module attributes {stable_mosaic.version = 11 : i64} {
  func.func @_tail_kernel(%arg0: i32, %arg1: memref<4x1x5x5x128xbf16, #tpu.memory_space<vmem>>, %arg2: memref<9x128xf32, #tpu.memory_space<vmem>>, %arg3: memref<1x128xf32, #tpu.memory_space<vmem>>, %arg4: memref<128x128xbf16, #tpu.memory_space<vmem>>, %arg5: memref<1x128xf32, #tpu.memory_space<vmem>>, %arg6: memref<128x128xbf16, #tpu.memory_space<vmem>>, %arg7: memref<1x128xf32, #tpu.memory_space<vmem>>, %arg8: memref<128x128xbf16, #tpu.memory_space<vmem>>, %arg9: memref<1x128xf32, #tpu.memory_space<vmem>>, %arg10: memref<128x128xbf16, #tpu.memory_space<vmem>>, %arg11: memref<1x128xf32, #tpu.memory_space<vmem>>, %arg12: memref<8x128xf32, #tpu.memory_space<vmem>>) attributes {dimension_semantics = [#tpu.dimension_semantics<parallel>], iteration_bounds = array<i64: 2>, scalar_prefetch = 0 : i64, scratch_operands = 0 : i64, tpu.core_type = #tpu.core_type<tc>, window_params = [{transform_indices = @transform_0, window_bounds = array<i64: 4, 1, 5, 5, 128>}, {pipeline_mode = #tpu.pipeline_mode<synchronous>, transform_indices = @transform_1, window_bounds = array<i64: 9, 128>}, {pipeline_mode = #tpu.pipeline_mode<synchronous>, transform_indices = @transform_2, window_bounds = array<i64: 1, 128>}, {pipeline_mode = #tpu.pipeline_mode<synchronous>, transform_indices = @transform_3, window_bounds = array<i64: 128, 128>}, {pipeline_mode = #tpu.pipeline_mode<synchronous>, transform_indices = @transform_4, window_bounds = array<i64: 1, 128>}, {pipeline_mode = #tpu.pipeline_mode<synchronous>, transform_indices = @transform_5, window_bounds = array<i64: 128, 128>}, {pipeline_mode = #tpu.pipeline_mode<synchronous>, transform_indices = @transform_6, window_bounds = array<i64: 1, 128>}, {pipeline_mode = #tpu.pipeline_mode<synchronous>, transform_indices = @transform_7, window_bounds = array<i64: 128, 128>}, {pipeline_mode = #tpu.pipeline_mode<synchronous>, transform_indices = @transform_8, window_bounds = array<i64: 1, 128>}, {pipeline_mode = #tpu.pipeline_mode<synchronous>, transform_indices = @transform_9, window_bounds = array<i64: 128, 128>}, {pipeline_mode = #tpu.pipeline_mode<synchronous>, transform_indices = @transform_10, window_bounds = array<i64: 1, 128>}, {transform_indices = @transform_11, window_bounds = array<i64: 8, 128>}]} {
    %cst = arith.constant 0.000000e+00 : f32
    %0 = vector.broadcast %cst : f32 to vector<4x4x128xf32>
    %c0 = arith.constant 0 : index
    %c0_0 = arith.constant 0 : index
    %1 = vector.load %arg2[%c0, %c0_0] : memref<9x128xf32, #tpu.memory_space<vmem>>, vector<9x128xf32>
    %c0_1 = arith.constant 0 : index
    %c0_2 = arith.constant 0 : index
    %c0_3 = arith.constant 0 : index
    %c0_4 = arith.constant 0 : index
    %c0_5 = arith.constant 0 : index
    %2 = vector.load %arg1[%c0_1, %c0_2, %c0_3, %c0_4, %c0_5] : memref<4x1x5x5x128xbf16, #tpu.memory_space<vmem>>, vector<1x1x4x4x128xbf16>
    %3 = vector.shape_cast %2 : vector<1x1x4x4x128xbf16> to vector<4x4x128xbf16>
    %4 = arith.extf %3 : vector<4x4x128xbf16> to vector<4x4x128xf32>
    %5 = vector.extract_strided_slice %1 {offsets = [0, 0], sizes = [1, 128], strides = [1, 1]} : vector<9x128xf32> to vector<1x128xf32>
    %6 = vector.shape_cast %5 : vector<1x128xf32> to vector<1x1x128xf32>
    %7 = vector.broadcast %6 : vector<1x1x128xf32> to vector<4x4x128xf32>
    %8 = arith.mulf %4, %7 : vector<4x4x128xf32>
    %9 = arith.addf %0, %8 : vector<4x4x128xf32>
    %c1 = arith.constant 1 : index
    %c0_6 = arith.constant 0 : index
    %c0_7 = arith.constant 0 : index
    %c0_8 = arith.constant 0 : index
    %c0_9 = arith.constant 0 : index
    %10 = vector.load %arg1[%c1, %c0_6, %c0_7, %c0_8, %c0_9] : memref<4x1x5x5x128xbf16, #tpu.memory_space<vmem>>, vector<1x1x4x4x128xbf16>
    %11 = vector.shape_cast %10 : vector<1x1x4x4x128xbf16> to vector<4x4x128xbf16>
    %12 = arith.extf %11 : vector<4x4x128xbf16> to vector<4x4x128xf32>
    %13 = vector.extract_strided_slice %1 {offsets = [1, 0], sizes = [1, 128], strides = [1, 1]} : vector<9x128xf32> to vector<1x128xf32>
    %14 = vector.shape_cast %13 : vector<1x128xf32> to vector<1x1x128xf32>
    %15 = vector.broadcast %14 : vector<1x1x128xf32> to vector<4x4x128xf32>
    %16 = arith.mulf %12, %15 : vector<4x4x128xf32>
    %17 = arith.addf %9, %16 : vector<4x4x128xf32>
    %c0_10 = arith.constant 0 : index
    %c0_11 = arith.constant 0 : index
    %c0_12 = arith.constant 0 : index
    %c1_13 = arith.constant 1 : index
    %c0_14 = arith.constant 0 : index
    %18 = vector.load %arg1[%c0_10, %c0_11, %c0_12, %c1_13, %c0_14] : memref<4x1x5x5x128xbf16, #tpu.memory_space<vmem>>, vector<1x1x4x4x128xbf16>
    %19 = vector.shape_cast %18 : vector<1x1x4x4x128xbf16> to vector<4x4x128xbf16>
    %20 = arith.extf %19 : vector<4x4x128xbf16> to vector<4x4x128xf32>
    %21 = vector.extract_strided_slice %1 {offsets = [2, 0], sizes = [1, 128], strides = [1, 1]} : vector<9x128xf32> to vector<1x128xf32>
    %22 = vector.shape_cast %21 : vector<1x128xf32> to vector<1x1x128xf32>
    %23 = vector.broadcast %22 : vector<1x1x128xf32> to vector<4x4x128xf32>
    %24 = arith.mulf %20, %23 : vector<4x4x128xf32>
    %25 = arith.addf %17, %24 : vector<4x4x128xf32>
    %c2 = arith.constant 2 : index
    %c0_15 = arith.constant 0 : index
    %c0_16 = arith.constant 0 : index
    %c0_17 = arith.constant 0 : index
    %c0_18 = arith.constant 0 : index
    %26 = vector.load %arg1[%c2, %c0_15, %c0_16, %c0_17, %c0_18] : memref<4x1x5x5x128xbf16, #tpu.memory_space<vmem>>, vector<1x1x4x4x128xbf16>
    %27 = vector.shape_cast %26 : vector<1x1x4x4x128xbf16> to vector<4x4x128xbf16>
    %28 = arith.extf %27 : vector<4x4x128xbf16> to vector<4x4x128xf32>
    %29 = vector.extract_strided_slice %1 {offsets = [3, 0], sizes = [1, 128], strides = [1, 1]} : vector<9x128xf32> to vector<1x128xf32>
    %30 = vector.shape_cast %29 : vector<1x128xf32> to vector<1x1x128xf32>
    %31 = vector.broadcast %30 : vector<1x1x128xf32> to vector<4x4x128xf32>
    %32 = arith.mulf %28, %31 : vector<4x4x128xf32>
    %33 = arith.addf %25, %32 : vector<4x4x128xf32>
    %c3 = arith.constant 3 : index
    %c0_19 = arith.constant 0 : index
    %c0_20 = arith.constant 0 : index
    %c0_21 = arith.constant 0 : index
    %c0_22 = arith.constant 0 : index
    %34 = vector.load %arg1[%c3, %c0_19, %c0_20, %c0_21, %c0_22] : memref<4x1x5x5x128xbf16, #tpu.memory_space<vmem>>, vector<1x1x4x4x128xbf16>
    %35 = vector.shape_cast %34 : vector<1x1x4x4x128xbf16> to vector<4x4x128xbf16>
    %36 = arith.extf %35 : vector<4x4x128xbf16> to vector<4x4x128xf32>
    %37 = vector.extract_strided_slice %1 {offsets = [4, 0], sizes = [1, 128], strides = [1, 1]} : vector<9x128xf32> to vector<1x128xf32>
    %38 = vector.shape_cast %37 : vector<1x128xf32> to vector<1x1x128xf32>
    %39 = vector.broadcast %38 : vector<1x1x128xf32> to vector<4x4x128xf32>
    %40 = arith.mulf %36, %39 : vector<4x4x128xf32>
    %41 = arith.addf %33, %40 : vector<4x4x128xf32>
    %c2_23 = arith.constant 2 : index
    %c0_24 = arith.constant 0 : index
    %c0_25 = arith.constant 0 : index
    %c1_26 = arith.constant 1 : index
    %c0_27 = arith.constant 0 : index
    %42 = vector.load %arg1[%c2_23, %c0_24, %c0_25, %c1_26, %c0_27] : memref<4x1x5x5x128xbf16, #tpu.memory_space<vmem>>, vector<1x1x4x4x128xbf16>
    %43 = vector.shape_cast %42 : vector<1x1x4x4x128xbf16> to vector<4x4x128xbf16>
    %44 = arith.extf %43 : vector<4x4x128xbf16> to vector<4x4x128xf32>
    %45 = vector.extract_strided_slice %1 {offsets = [5, 0], sizes = [1, 128], strides = [1, 1]} : vector<9x128xf32> to vector<1x128xf32>
    %46 = vector.shape_cast %45 : vector<1x128xf32> to vector<1x1x128xf32>
    %47 = vector.broadcast %46 : vector<1x1x128xf32> to vector<4x4x128xf32>
    %48 = arith.mulf %44, %47 : vector<4x4x128xf32>
    %49 = arith.addf %41, %48 : vector<4x4x128xf32>
    %c0_28 = arith.constant 0 : index
    %c0_29 = arith.constant 0 : index
    %c1_30 = arith.constant 1 : index
    %c0_31 = arith.constant 0 : index
    %c0_32 = arith.constant 0 : index
    %50 = vector.load %arg1[%c0_28, %c0_29, %c1_30, %c0_31, %c0_32] : memref<4x1x5x5x128xbf16, #tpu.memory_space<vmem>>, vector<1x1x4x4x128xbf16>
    %51 = vector.shape_cast %50 : vector<1x1x4x4x128xbf16> to vector<4x4x128xbf16>
    %52 = arith.extf %51 : vector<4x4x128xbf16> to vector<4x4x128xf32>
    %53 = vector.extract_strided_slice %1 {offsets = [6, 0], sizes = [1, 128], strides = [1, 1]} : vector<9x128xf32> to vector<1x128xf32>
    %54 = vector.shape_cast %53 : vector<1x128xf32> to vector<1x1x128xf32>
    %55 = vector.broadcast %54 : vector<1x1x128xf32> to vector<4x4x128xf32>
    %56 = arith.mulf %52, %55 : vector<4x4x128xf32>
    %57 = arith.addf %49, %56 : vector<4x4x128xf32>
    %c1_33 = arith.constant 1 : index
    %c0_34 = arith.constant 0 : index
    %c1_35 = arith.constant 1 : index
    %c0_36 = arith.constant 0 : index
    %c0_37 = arith.constant 0 : index
    %58 = vector.load %arg1[%c1_33, %c0_34, %c1_35, %c0_36, %c0_37] : memref<4x1x5x5x128xbf16, #tpu.memory_space<vmem>>, vector<1x1x4x4x128xbf16>
    %59 = vector.shape_cast %58 : vector<1x1x4x4x128xbf16> to vector<4x4x128xbf16>
    %60 = arith.extf %59 : vector<4x4x128xbf16> to vector<4x4x128xf32>
    %61 = vector.extract_strided_slice %1 {offsets = [7, 0], sizes = [1, 128], strides = [1, 1]} : vector<9x128xf32> to vector<1x128xf32>
    %62 = vector.shape_cast %61 : vector<1x128xf32> to vector<1x1x128xf32>
    %63 = vector.broadcast %62 : vector<1x1x128xf32> to vector<4x4x128xf32>
    %64 = arith.mulf %60, %63 : vector<4x4x128xf32>
    %65 = arith.addf %57, %64 : vector<4x4x128xf32>
    %c0_38 = arith.constant 0 : index
    %c0_39 = arith.constant 0 : index
    %c1_40 = arith.constant 1 : index
    %c1_41 = arith.constant 1 : index
    %c0_42 = arith.constant 0 : index
    %66 = vector.load %arg1[%c0_38, %c0_39, %c1_40, %c1_41, %c0_42] : memref<4x1x5x5x128xbf16, #tpu.memory_space<vmem>>, vector<1x1x4x4x128xbf16>
    %67 = vector.shape_cast %66 : vector<1x1x4x4x128xbf16> to vector<4x4x128xbf16>
    %68 = arith.extf %67 : vector<4x4x128xbf16> to vector<4x4x128xf32>
    %69 = vector.extract_strided_slice %1 {offsets = [8, 0], sizes = [1, 128], strides = [1, 1]} : vector<9x128xf32> to vector<1x128xf32>
    %70 = vector.shape_cast %69 : vector<1x128xf32> to vector<1x1x128xf32>
    %71 = vector.broadcast %70 : vector<1x1x128xf32> to vector<4x4x128xf32>
    %72 = arith.mulf %68, %71 : vector<4x4x128xf32>
    %73 = arith.addf %65, %72 : vector<4x4x128xf32>
    %c0_43 = arith.constant 0 : index
    %c0_44 = arith.constant 0 : index
    %74 = vector.load %arg3[%c0_43, %c0_44] : memref<1x128xf32, #tpu.memory_space<vmem>>, vector<1x128xf32>
    %75 = vector.shape_cast %74 : vector<1x128xf32> to vector<1x1x128xf32>
    %76 = vector.broadcast %75 : vector<1x1x128xf32> to vector<4x4x128xf32>
    %77 = arith.addf %73, %76 : vector<4x4x128xf32>
    %78 = arith.negf %77 : vector<4x4x128xf32>
    %79 = math.exp %78 : vector<4x4x128xf32>
    %cst_45 = arith.constant 1.000000e+00 : f32
    %80 = vector.broadcast %cst_45 : f32 to vector<4x4x128xf32>
    %81 = arith.addf %80, %79 : vector<4x4x128xf32>
    %82 = arith.divf %80, %81 : vector<4x4x128xf32>
    %83 = arith.mulf %77, %82 : vector<4x4x128xf32>
    %84 = vector.shape_cast %83 : vector<4x4x128xf32> to vector<16x128xf32>
    %cst_46 = arith.constant dense<0.000000e+00> : vector<128xf32>
    %85 = vector.multi_reduction <add>, %84, %cst_46 [0] : vector<16x128xf32> to vector<128xf32>
    %86 = vector.shape_cast %85 : vector<128xf32> to vector<1x128xf32>
    %cst_47 = arith.constant 6.250000e-02 : f32
    %87 = vector.broadcast %cst_47 : f32 to vector<1x128xf32>
    %88 = arith.mulf %86, %87 : vector<1x128xf32>
    %89 = arith.truncf %88 : vector<1x128xf32> to vector<1x128xbf16>
    %c0_48 = arith.constant 0 : index
    %c0_49 = arith.constant 0 : index
    %90 = vector.load %arg4[%c0_48, %c0_49] : memref<128x128xbf16, #tpu.memory_space<vmem>>, vector<128x128xbf16>
    %cst_50 = arith.constant dense<0.000000e+00> : vector<1x128xf32>
    %91 = tpu.matmul %89, %90, %cst_50 {dimension_numbers = #tpu.dot_dimension_numbers<[1], [0], [0], [1], [0, 0, 1, 1], [], []>} : vector<1x128xbf16>, vector<128x128xbf16>, vector<1x128xf32> -> vector<1x128xf32>
    %c0_51 = arith.constant 0 : index
    %c0_52 = arith.constant 0 : index
    %92 = vector.load %arg5[%c0_51, %c0_52] : memref<1x128xf32, #tpu.memory_space<vmem>>, vector<1x128xf32>
    %93 = arith.addf %91, %92 : vector<1x128xf32>
    %94 = arith.negf %93 : vector<1x128xf32>
    %95 = math.exp %94 : vector<1x128xf32>
    %cst_53 = arith.constant 1.000000e+00 : f32
    %96 = vector.broadcast %cst_53 : f32 to vector<1x128xf32>
    %97 = arith.addf %96, %95 : vector<1x128xf32>
    %98 = arith.divf %96, %97 : vector<1x128xf32>
    %99 = arith.mulf %93, %98 : vector<1x128xf32>
    %100 = arith.truncf %99 : vector<1x128xf32> to vector<1x128xbf16>
    %c0_54 = arith.constant 0 : index
    %c0_55 = arith.constant 0 : index
    %101 = vector.load %arg6[%c0_54, %c0_55] : memref<128x128xbf16, #tpu.memory_space<vmem>>, vector<128x128xbf16>
    %cst_56 = arith.constant dense<0.000000e+00> : vector<1x128xf32>
    %102 = tpu.matmul %100, %101, %cst_56 {dimension_numbers = #tpu.dot_dimension_numbers<[1], [0], [0], [1], [0, 0, 1, 1], [], []>} : vector<1x128xbf16>, vector<128x128xbf16>, vector<1x128xf32> -> vector<1x128xf32>
    %c0_57 = arith.constant 0 : index
    %c0_58 = arith.constant 0 : index
    %103 = vector.load %arg7[%c0_57, %c0_58] : memref<1x128xf32, #tpu.memory_space<vmem>>, vector<1x128xf32>
    %104 = arith.addf %102, %103 : vector<1x128xf32>
    %105 = arith.negf %104 : vector<1x128xf32>
    %106 = math.exp %105 : vector<1x128xf32>
    %cst_59 = arith.constant 1.000000e+00 : f32
    %107 = vector.broadcast %cst_59 : f32 to vector<1x128xf32>
    %108 = arith.addf %107, %106 : vector<1x128xf32>
    %109 = arith.divf %107, %108 : vector<1x128xf32>
    %110 = vector.broadcast %109 : vector<1x128xf32> to vector<16x128xf32>
    %111 = arith.mulf %84, %110 : vector<16x128xf32>
    %112 = arith.truncf %111 : vector<16x128xf32> to vector<16x128xbf16>
    %c0_60 = arith.constant 0 : index
    %c0_61 = arith.constant 0 : index
    %113 = vector.load %arg8[%c0_60, %c0_61] : memref<128x128xbf16, #tpu.memory_space<vmem>>, vector<128x128xbf16>
    %cst_62 = arith.constant dense<0.000000e+00> : vector<16x128xf32>
    %114 = tpu.matmul %112, %113, %cst_62 {dimension_numbers = #tpu.dot_dimension_numbers<[1], [0], [0], [1], [0, 0, 1, 1], [], []>} : vector<16x128xbf16>, vector<128x128xbf16>, vector<16x128xf32> -> vector<16x128xf32>
    %c0_63 = arith.constant 0 : index
    %c0_64 = arith.constant 0 : index
    %115 = vector.load %arg9[%c0_63, %c0_64] : memref<1x128xf32, #tpu.memory_space<vmem>>, vector<1x128xf32>
    %116 = vector.broadcast %115 : vector<1x128xf32> to vector<16x128xf32>
    %117 = arith.addf %114, %116 : vector<16x128xf32>
    %118 = arith.negf %117 : vector<16x128xf32>
    %119 = math.exp %118 : vector<16x128xf32>
    %cst_65 = arith.constant 1.000000e+00 : f32
    %120 = vector.broadcast %cst_65 : f32 to vector<16x128xf32>
    %121 = arith.addf %120, %119 : vector<16x128xf32>
    %122 = arith.divf %120, %121 : vector<16x128xf32>
    %123 = arith.mulf %117, %122 : vector<16x128xf32>
    %cst_66 = arith.constant dense<0.000000e+00> : vector<128xf32>
    %124 = vector.multi_reduction <add>, %123, %cst_66 [0] : vector<16x128xf32> to vector<128xf32>
    %125 = vector.shape_cast %124 : vector<128xf32> to vector<1x128xf32>
    %cst_67 = arith.constant 6.250000e-02 : f32
    %126 = vector.broadcast %cst_67 : f32 to vector<1x128xf32>
    %127 = arith.mulf %125, %126 : vector<1x128xf32>
    %128 = arith.truncf %127 : vector<1x128xf32> to vector<1x128xbf16>
    %c0_68 = arith.constant 0 : index
    %c0_69 = arith.constant 0 : index
    %129 = vector.load %arg10[%c0_68, %c0_69] : memref<128x128xbf16, #tpu.memory_space<vmem>>, vector<128x128xbf16>
    %cst_70 = arith.constant dense<0.000000e+00> : vector<1x128xf32>
    %130 = tpu.matmul %128, %129, %cst_70 {dimension_numbers = #tpu.dot_dimension_numbers<[1], [0], [0], [1], [0, 0, 1, 1], [], []>} : vector<1x128xbf16>, vector<128x128xbf16>, vector<1x128xf32> -> vector<1x128xf32>
    %c0_71 = arith.constant 0 : index
    %c0_72 = arith.constant 0 : index
    %131 = vector.load %arg11[%c0_71, %c0_72] : memref<1x128xf32, #tpu.memory_space<vmem>>, vector<1x128xf32>
    %132 = arith.addf %130, %131 : vector<1x128xf32>
    %133 = vector.shape_cast %132 : vector<1x128xf32> to vector<1x128xf32>
    %134 = vector.broadcast %133 : vector<1x128xf32> to vector<8x128xf32>
    %c0_73 = arith.constant 0 : index
    %c0_74 = arith.constant 0 : index
    %135 = vector.load %arg12[%c0_73, %c0_74] : memref<8x128xf32, #tpu.memory_space<vmem>>, vector<8x128xf32>
    tpu.vector_store %arg12[%c0_73, %c0_74], %134 {strides = array<i32>} : memref<8x128xf32, #tpu.memory_space<vmem>>, vector<8x128xf32>,
    return
  }
  func.func @transform_0(%arg0: i32) -> (i32, i32, i32, i32, i32) {
    %c0_i32 = arith.constant 0 : i32
    %c0_i32_0 = arith.constant 0 : i32
    %c0_i32_1 = arith.constant 0 : i32
    %c0_i32_2 = arith.constant 0 : i32
    %c0_i32_3 = arith.constant 0 : i32
    return %c0_i32, %arg0, %c0_i32_0, %c0_i32_1, %c0_i32_2 : i32, i32, i32, i32, i32
  }
  func.func @transform_1(%arg0: i32) -> (i32, i32) {
    %c0_i32 = arith.constant 0 : i32
    %c0_i32_0 = arith.constant 0 : i32
    %c0_i32_1 = arith.constant 0 : i32
    return %c0_i32, %c0_i32_0 : i32, i32
  }
  func.func @transform_2(%arg0: i32) -> (i32, i32) {
    %c0_i32 = arith.constant 0 : i32
    %c0_i32_0 = arith.constant 0 : i32
    %c0_i32_1 = arith.constant 0 : i32
    return %c0_i32, %c0_i32_0 : i32, i32
  }
  func.func @transform_3(%arg0: i32) -> (i32, i32) {
    %c0_i32 = arith.constant 0 : i32
    %c0_i32_0 = arith.constant 0 : i32
    %c0_i32_1 = arith.constant 0 : i32
    return %c0_i32, %c0_i32_0 : i32, i32
  }
  func.func @transform_4(%arg0: i32) -> (i32, i32) {
    %c0_i32 = arith.constant 0 : i32
    %c0_i32_0 = arith.constant 0 : i32
    %c0_i32_1 = arith.constant 0 : i32
    return %c0_i32, %c0_i32_0 : i32, i32
  }
  func.func @transform_5(%arg0: i32) -> (i32, i32) {
    %c0_i32 = arith.constant 0 : i32
    %c0_i32_0 = arith.constant 0 : i32
    %c0_i32_1 = arith.constant 0 : i32
    return %c0_i32, %c0_i32_0 : i32, i32
  }
  func.func @transform_6(%arg0: i32) -> (i32, i32) {
    %c0_i32 = arith.constant 0 : i32
    %c0_i32_0 = arith.constant 0 : i32
    %c0_i32_1 = arith.constant 0 : i32
    return %c0_i32, %c0_i32_0 : i32, i32
  }
  func.func @transform_7(%arg0: i32) -> (i32, i32) {
    %c0_i32 = arith.constant 0 : i32
    %c0_i32_0 = arith.constant 0 : i32
    %c0_i32_1 = arith.constant 0 : i32
    return %c0_i32, %c0_i32_0 : i32, i32
  }
  func.func @transform_8(%arg0: i32) -> (i32, i32) {
    %c0_i32 = arith.constant 0 : i32
    %c0_i32_0 = arith.constant 0 : i32
    %c0_i32_1 = arith.constant 0 : i32
    return %c0_i32, %c0_i32_0 : i32, i32
  }
  func.func @transform_9(%arg0: i32) -> (i32, i32) {
    %c0_i32 = arith.constant 0 : i32
    %c0_i32_0 = arith.constant 0 : i32
    %c0_i32_1 = arith.constant 0 : i32
    return %c0_i32, %c0_i32_0 : i32, i32
  }
  func.func @transform_10(%arg0: i32) -> (i32, i32) {
    %c0_i32 = arith.constant 0 : i32
    %c0_i32_0 = arith.constant 0 : i32
    %c0_i32_1 = arith.constant 0 : i32
    return %c0_i32, %c0_i32_0 : i32, i32
  }
  func.func @transform_11(%arg0: i32) -> (i32, i32) {
    %c0_i32 = arith.constant 0 : i32
    %c0_i32_0 = arith.constant 0 : i32
    return %arg0, %c0_i32 : i32, i32
  }
}

</mosaic_0001>

<bundles_post_ra>
// kernel: _lambda_.5
= control target key start
LH: loop header
LB: loop body
LE: loop exit
PB: predicated region body
PF: predicated region fallthrough
CT: control target
= control target key end

     0   :  { %s5976_s12 = smov 0   ;;  %s8529_s0 = inlined_call_operand.vmem [shape: bf16[1,2,18,18,128], index: 0, kind: input, shape index: {}]   ;;  %s8530_s1 = inlined_call_operand.vmem [shape: bf16[1152,128], index: 1, kind: input, shape index: {}]   ;;  %s8531_s2 = inlined_call_operand.vmem [shape: f32[1,128], index: 2, kind: input, shape index: {}]   ;;  %s8532_s3 = inlined_call_operand.vmem [shape: bf16[512,128], index: 3, kind: output, shape index: {}]  }
   0x1 LB: > { %s5982_s13 = sadd.s32 4294967295, %s5954_s12   ;;  %p4557_p0 = scmp.ge.s32.totalorder %s5954_s12, 1  ;;  %s5954_s12 = sphi %s5976_s12, %s13_s12  }
   0x2   : > { %p137_p1 = scmp.lt.s32.totalorder %s5954_s12, 3 }
   0x4   : > { %p138_p2 = pnand %p4557_p0, %p137_p1 }
   0x6   : > { %141 = sbr.rel (%p138_p2) target bundleno = 610 (0x262), region = 32 }
   0xd   : > { %v5692_v0 = vld [vmem:[%s8530_s1 + $0x40] sm:$0xff]   ;;  %p161_p3 = scmp.lt.s32.totalorder %s5982_s13, 1  ;;  %v5694_v2 = vld [vmem:[%s8530_s1 + $0x48] sm:$0xff]   ;;  %v5696_v4 = vld [vmem:[%s8530_s1 + $0x50] sm:$0xff]   ;;  %vm221_vm0 = vsmask.f32 3328 }
   0xe   : > { %v5693_v1 = vld [vmem:[%s8530_s1] sm:$0xff]   ;;  %5147 = vmatprep.subr.bf16.mxu0 %v5692_v0  ;;  %5667 = vmatprep.subr.bf16.mxu1 %v5692_v0  ;;  %v5695_v3 = vld [vmem:[%s8530_s1 + $0x8] sm:$0xff]   ;;  %v5697_v5 = vld [vmem:[%s8530_s1 + $0x10] sm:$0xff]   ;;  %vm222_vm1 = vsmask.f32 7440  ;;  %vm672_vm3 = vcmask 1042432  }
   0xf   : > { %5148 = vmatpush3.bf16.msra.mxu0 %v5693_v1  ;;  %5675 = vmatpush3.bf16.msra.mxu1 %v5693_v1  ;;  %s162_s24 = scalar_select %p161_p3, %s5982_s13, 1  ;;  %v5698_v6 = vld [vmem:[%s8530_s1 + $0x58] sm:$0xff]   ;;  %v5700_v8 = vld [vmem:[%s8530_s1 + $0x60] sm:$0xff]   ;;  %v5702_v10 = vld [vmem:[%s8530_s1 + $0x68] sm:$0xff]   ;;  %vm673_vm4 = vcmask 1046532  }
  0x10   : > { %5149 = vmatprep.subr.bf16.mxu0 %v5694_v2  ;;  %5668 = vmatprep.subr.bf16.mxu1 %v5694_v2  ;;  %v5699_v7 = vld [vmem:[%s8530_s1 + $0x18] sm:$0xff]   ;;  %v5701_v9 = vld [vmem:[%s8530_s1 + $0x20] sm:$0xff]   ;;  %v5703_v20 = vld [vmem:[%s8530_s1 + $0x28] sm:$0xff]   ;;  %s4559_s21 = sshll.u32 %s5982_s13, 5 }
  0x11   : > { %s5683_s29 = smul.u32 216, %s162_s24  ;;  %v5704_v25 = vld [vmem:[%s8530_s1 + $0x70] sm:$0xff]   ;;  %vm6060_vm2 = vmor %vm221_vm0, %vm222_vm1  ;;  %v5706_v42 = vld [vmem:[%s8530_s1 + $0x78] sm:$0xff]   ;;  %p8322_p4 = scmp.lt.s32.totalorder %s4559_s21, 63 }
  0x12   : > { %v5705_v38 = vld [vmem:[%s8530_s1 + $0x30] sm:$0xff]   ;;  %v5707_v45 = vld [vmem:[%s8530_s1 + $0x38] sm:$0xff]   ;;  %v5710_v55 = vld [vmem:[%s8530_s1 + $0xc0] sm:$0xff]  }
  0x13   : > { %5150 = vmatpush3.bf16.msra.mxu0 %v5695_v3  ;;  %5676 = vmatpush3.bf16.msra.mxu1 %v5695_v3  ;;  %s6018_s9 = scalar_lea.vmem %s8529_s0, %s5683_s29  ;;  %v5713_v58 = vld [vmem:[%s8530_s1 + $0x140] sm:$0xff]   ;;  %vm6254_vm5 = vmor %vm672_vm3, %vm673_vm4  ;;  %s8671_s21 = smov (!%p8322_p4, %s4559_s21), 63 }
  0x14   : > { %5151 = vmatprep.subr.bf16.mxu0 %v5696_v4  ;;  %5669 = vmatprep.subr.bf16.mxu1 %v5696_v4  ;;  %v6027_v11 = vld [vmem:[%s6018_s9] sm:$0xf]  ;;  %v6030_v12 = vld [vmem:[%s6018_s9 + $0x4] sm:$0xf]  ;;  %v6033_v13 = vld [vmem:[%s6018_s9 + $0x8] sm:$0x1] }
  0x15   : > { %v225_v14 = vshrl.u32 %v6027_v11, 16  ;;  %v228_v15 = vshll.u32 %v6027_v11, 16  ;;  %v234_v16 = vshll.u32 %v6030_v12, 16  ;;  %v238_v17 = vshrl.u32 %v6030_v12, 16  ;;  %v6041_v19 = vld [vmem:[%s6018_s9 + $0x90] sm:$0xf] }
  0x16   : > { %v244_v18 = vshll.u32 %v6033_v13, 16  ;;  %v6047_v23 = vld [vmem:[%s6018_s9 + $0x94] sm:$0xf]  ;;  %v513_v24 = vshrl.u32 %v6041_v19, 16  ;;  %v6054_v29 = vld [vmem:[%s6018_s9 + $0x98] sm:$0x1]  ;;  %v4737_v57 = vcombine.low %v6027_v11, %v6030_v12 }
  0x17   : > { %5152 = vmatpush3.bf16.msra.mxu0 %v5697_v5  ;;  %5677 = vmatpush3.bf16.msra.mxu1 %v5697_v5  ;;  %v227_v21 = vrot.slane %v225_v14, 4  ;;  %v230_v22 = vrot.slane %v228_v15, 5  ;;  %v236_v26 = vrot.slane %v234_v16, 5  ;;  %v240_v27 = vrot.slane %v238_v17, 4  ;;  %v6090_v59 = vld [vmem:[%s6018_s9 + $0xc] sm:$0xf] }
  0x18   : > { %5153 = vmatprep.subr.bf16.mxu0 %v5698_v6  ;;  %5670 = vmatprep.subr.bf16.mxu1 %v5698_v6  ;;  %v246_v28 = vrot.slane %v244_v18, 5  ;;  %v515_v31 = vrot.slane %v513_v24, 4  ;;  %v516_v32 = vshll.u32 %v6041_v19, 16  ;;  %v522_v33 = vshll.u32 %v6047_v23, 16  ;;  %v5711_v62 = vld [vmem:[%s8530_s1 + $0x80] sm:$0xff]   ;;  %v5712_v4 = vld [vmem:[%s8530_s1 + $0xc8] sm:$0xff]  }
  0x19   : > { %v231_v30 = vor.u32 %v230_v22, %v227_v21  ;;  %v241_v35 = vor.u32 %v240_v27, %v236_v26  ;;  %v526_v36 = vshrl.u32 %v6047_v23, 16  ;;  %v532_v37 = vshll.u32 %v6054_v29, 16  ;;  %v6100_v63 = vld [vmem:[%s6018_s9 + $0x10] sm:$0xf]  ;;  %v6103_v0 = vld [vmem:[%s6018_s9 + $0x14] sm:$0x1] }
  0x1a   : > { %v518_v40 = vrot.slane %v516_v32, 5  ;;  %v524_v41 = vrot.slane %v522_v33, 5  ;;  %v677_v47 = vrot.slane %v6030_v12, 5  ;;  %v680_v50 = vrot.slane %v6033_v13, 5  ;;  %v5715_v5 = vld [vmem:[%s8530_s1 + $0x100] sm:$0xff]   ;;  %v5714_v21 = vld [vmem:[%s8530_s1 + $0x88] sm:$0xff]  }
  0x1b   : > { %5154 = vmatpush3.bf16.msra.mxu0 %v5699_v7  ;;  %5678 = vmatpush3.bf16.msra.mxu1 %v5699_v7  ;;  %v232_v39 = vrot.slane %v231_v30, 4  ;;  %v242_v43 = vrot.slane %v241_v35, 4  ;;  %v528_v44 = vrot.slane %v526_v36, 4  ;;  %v534_v52 = vrot.slane %v532_v37, 5  ;;  %v6122_v15 = vld [vmem:[%s6018_s9 + $0xa0] sm:$0xf] }
  0x1c   : > { %5155 = vmatprep.subr.bf16.mxu0 %v5700_v8  ;;  %5671 = vmatprep.subr.bf16.mxu1 %v5700_v8  ;;  %v519_v48 = vor.u32 %v518_v40, %v515_v31  ;;  %v4749_v61 = vcombine.low %v6041_v19, %v6047_v23  ;;  %v249_v1 = vshrl.u32 %v6090_v59, 16  ;;  %v252_v2 = vshll.u32 %v6090_v59, 16  ;;  %v218_v16 = vld [vmem:[%s6018_s9 + $0xa4] sm:$0x1]  ;;  %s4560_s13 = sshll.u32 %s8671_s21, 2 }
  0x1d   : > { %v237_v46 = vsel %vm6060_vm2, %v232_v39, %v236_v26  ;;  %v247_v49 = vsel %vm6060_vm2, %v242_v43, %v246_v28  ;;  %v529_v51 = vor.u32 %v528_v44, %v524_v41  ;;  %v258_v6 = vshll.u32 %v6100_v63, 16  ;;  %v5719_v43 = vld [vmem:[%s8530_s1 + $0x90] sm:$0xff]   ;;  %v6147_v44 = vld [vmem:[%s6018_s9 + $0x18] sm:$0xf]  ;;  %v5741_v12 = vld [vmem:[%s8530_s1 + $0x180] sm:$0xff]   ;;  %s8370_s25 = scalar_lea.vmem %s8532_s3, %s4560_s13 }
  0x1e   : > { %v4753_v53 = vcombine.low %v237_v46, %v247_v49  ;;  %v520_v54 = vrot.slane %v519_v48, 4  ;;  %v262_v7 = vshrl.u32 %v6100_v63, 16  ;;  %v268_v8 = vshll.u32 %v6103_v0, 16  ;;  %v6154_v48 = vld [vmem:[%s6018_s9 + $0x1c] sm:$0xf] }
  0x1f   : > { %5156 = vmatpush3.bf16.msra.mxu0 %v5701_v9  ;;  %5679 = vmatpush3.bf16.msra.mxu1 %v5701_v9  ;;  %v530_v56 = vrot.slane %v529_v51, 4  ;;  %v6119_v9 = vld [vmem:[%s6018_s9 + $0x9c] sm:$0xf]  ;;  %v251_v11 = vrot.slane %v249_v1, 4  ;;  %v254_v14 = vrot.slane %v252_v2, 5  ;;  %v260_v17 = vrot.slane %v258_v6, 5 }
  0x20   : > { %5157 = vmatprep.subr.bf16.mxu0 %v5702_v10  ;;  %5672 = vmatprep.subr.bf16.mxu1 %v5702_v10  ;;  %v525_v60 = vsel %vm6060_vm2, %v520_v54, %v524_v41  ;;  %v264_v18 = vrot.slane %v262_v7, 4  ;;  %v270_v19 = vrot.slane %v268_v8, 5  ;;  %v540_v23 = vshll.u32 %v6119_v9, 16  ;;  %v6157_v49 = vld [vmem:[%s6018_s9 + $0x20] sm:$0x1] }
  0x21   : > { %3276 = vmatprep.mubr.bf16.mxu0 %v4753_v53  ;;  %v535_v3 = vsel %vm6060_vm2, %v530_v56, %v534_v52  ;;  %v255_v22 = vor.u32 %v254_v14, %v251_v11  ;;  %v546_v24 = vshll.u32 %v6122_v15, 16  ;;  %v556_v28 = vshll.u32 %v218_v16, 16  ;;  %v5720_v56 = vld [vmem:[%s8530_s1 + $0xd8] sm:$0xff]   ;;  %v6171_v1 = vld [vmem:[%s6018_s9 + $0xac] sm:$0xf]  ;;  %v5724_v11 = vld [vmem:[%s8530_s1 + $0xe0] sm:$0xff]  }
  0x22   : > { %v4765_v10 = vcombine.low %v525_v60, %v535_v3  ;;  %v265_v26 = vor.u32 %v264_v18, %v260_v17  ;;  %v542_v31 = vrot.slane %v540_v23, 5  ;;  %v6134_v35 = vrot.slane %v677_v47, 4  ;;  %v219_v6 = vld [vmem:[%s6018_s9 + $0xb0] sm:$0x1] }
  0x23   : > { %5158 = vmatpush3.bf16.msra.mxu0 %v5703_v20  ;;  %5680 = vmatpush3.bf16.msra.mxu1 %v5703_v20  ;;  %v537_v20 = vshrl.u32 %v6119_v9, 16  ;;  %v256_v30 = vrot.slane %v255_v22, 4  ;;  %v548_v32 = vrot.slane %v546_v24, 5  ;;  %v558_v37 = vrot.slane %v556_v28, 5  ;;  %v5725_v22 = vld [vmem:[%s8530_s1 + $0x148] sm:$0xff]  }
  0x24   : > { %5159 = vmatprep.subr.bf16.mxu0 %v5704_v25  ;;  %5673 = vmatprep.subr.bf16.mxu1 %v5704_v25  ;;  %v550_v25 = vshrl.u32 %v6122_v15, 16  ;;  %v266_v36 = vrot.slane %v265_v26, 4  ;;  %v4750_v46 = vcombine.low %v6119_v9, %v6122_v15  ;;  %v273_v51 = vshrl.u32 %v6147_v44, 16  ;;  %v5727_v26 = vld [vmem:[%s8530_s1 + $0x108] sm:$0xff]  }
  0x25   : > { %3372 = vmatprep.mubr.bf16.mxu1 %v4765_v10  ;;  %v539_v27 = vrot.slane %v537_v20, 4  ;;  %v261_v39 = vsel %vm6060_vm2, %v256_v30, %v260_v17  ;;  %v276_v52 = vshll.u32 %v6147_v44, 16  ;;  %v570_v16 = vshll.u32 %v6171_v1, 16 }
  0x26   : > { %v552_v33 = vrot.slane %v550_v25, 4  ;;  %v574_v17 = vshrl.u32 %v6171_v1, 16 }
  0x27   : > { %5160 = vmatpush3.bf16.msra.mxu0 %v5705_v38  ;;  %5681 = vmatpush3.bf16.msra.mxu1 %v5705_v38  ;;  %v5718_v38 = vld [vmem:[%s8530_s1 + $0xd0] sm:$0xff]   ;;  %v543_v40 = vor.u32 %v542_v31, %v539_v27  ;;  %v278_v60 = vrot.slane %v276_v52, 5  ;;  %v572_v24 = vrot.slane %v570_v16, 5  ;;  %v6220_v52 = vld [vmem:[%s6018_s9 + $0x2c] sm:$0x1] }
  0x28   : > { %5161 = vmatprep.subr.bf16.mxu0 %v5706_v42  ;;  %5674 = vmatprep.subr.bf16.mxu1 %v5706_v42  ;;  %v553_v41 = vor.u32 %v552_v33, %v548_v32  ;;  %v4738_v42 = vcombine.low %v6090_v59, %v6100_v63  ;;  %v275_v59 = vrot.slane %v273_v51, 4  ;;  %v576_v25 = vrot.slane %v574_v17, 4  ;;  %v6214_v51 = vld [vmem:[%s6018_s9 + $0x28] sm:$0xf]  ;;  %v5733_v17 = vld [vmem:[%s8530_s1 + $0xb0] sm:$0xff]  }
  0x29   : > { %v544_v54 = vrot.slane %v543_v40, 4  ;;  %v684_v40 = vrot.slane %v6100_v63, 5  ;;  %v4609_v27 = vld [vmem:[%s6018_s9 + $0x14] sm:$0x1] }
  0x2a   : > { %v279_v9 = vor.u32 %v278_v60, %v275_v59  ;;  %v316_v59 = vshll.u32 %v6220_v52, 16  ;;  %v6232_v60 = vld [vmem:[%s6018_s9 + $0xb4] sm:$0xf] }
  0x2b   : > { %5162 = vmatpush3.bf16.msra.mxu0 %v5707_v45  ;;  %5682 = vmatpush3.bf16.msra.mxu1 %v5707_v45  ;;  %v271_v45 = vsel %vm6060_vm2, %v266_v36, %v270_v19  ;;  %v549_v2 = vsel %vm6060_vm2, %v544_v54, %v548_v32  ;;  %v577_v32 = vor.u32 %v576_v25, %v572_v24  ;;  %v5726_v36 = vld [vmem:[%s8530_s1 + $0xa0] sm:$0xff]  }
  0x2c   : > { %5259 = vmatprep.subr.bf16.mxu1 %v5710_v55  ;;  %5371 = vmatprep.subr.bf16.mxu0 %v5713_v58  ;;  %v4754_v53 = vcombine.low %v261_v39, %v271_v45  ;;  %v554_v55 = vrot.slane %v553_v41, 4  ;;  %v6166_v58 = vld [vmem:[%s6018_s9 + $0xa8] sm:$0xf]  ;;  %v280_v18 = vrot.slane %v279_v9, 4  ;;  %v585_v9 = vshrl.u32 %v6232_v60, 16 }
  0x2d   : > { %v561_v7 = vshrl.u32 %v6166_v58, 16  ;;  %v564_v15 = vshll.u32 %v6166_v58, 16  ;;  %v5728_v39 = vld [vmem:[%s8530_s1 + $0xe8] sm:$0xff]   ;;  %v4751_v45 = vcombine.low %v6166_v58, %v6171_v1 }
  0x2e   : > { %3277 = vmatmul.mubr.bf16.vlgmr.msra.gmra.mrb[0].mxu0 %v4737_v57  ;;  %3373 = vmatmul.mubr.bf16.vlgmr.msra.gmra.mrb[0].mxu1 %v4749_v61  ;;  %v282_v57 = vshll.u32 %v6154_v48, 16  ;;  %v286_v61 = vshrl.u32 %v6154_v48, 16  ;;  %v559_v3 = vsel %vm6060_vm2, %v554_v55, %v558_v37  ;;  %v306_v55 = vshll.u32 %v6214_v51, 16 }
  0x2f   : > { %5260 = vmatpush3.bf16.msra.mxu1 %v5711_v62  ;;  %5372 = vmatpush3.bf16.msra.mxu0 %v5715_v5  ;;  %v292_v62 = vshll.u32 %v6157_v49, 16  ;;  %v4766_v8 = vcombine.low %v549_v2, %v559_v3  ;;  %v563_v14 = vrot.slane %v561_v7, 4  ;;  %v566_v23 = vrot.slane %v564_v15, 5 }
  0x30   : > { %5261 = vmatprep.subr.bf16.mxu1 %v5712_v4  ;;  %3284 = vmatprep.mubr.bf16.mxu0 %v4754_v53  ;;  %v5721_v4 = vld [vmem:[%s8530_s1 + $0x98] sm:$0xff]   ;;  %v284_v5 = vrot.slane %v282_v57, 5  ;;  %v288_v10 = vrot.slane %v286_v61, 4 }
  0x31   : > { %3380 = vmatprep.mubr.bf16.mxu1 %v4766_v8  ;;  %v294_v20 = vrot.slane %v292_v62, 5  ;;  %5373 = vmatprep.subr.bf16.mxu0 %v5725_v22  ;;  %v567_v31 = vor.u32 %v566_v23, %v563_v14  ;;  %v6235_v61 = vld [vmem:[%s6018_s9 + $0xb8] sm:$0xf]  ;;  %v687_v62 = vrot.slane %v6103_v0, 5  ;;  %v318_v8 = vrot.slane %v316_v59, 5 }
  0x32   : > { %v289_v19 = vor.u32 %v288_v10, %v284_v5  ;;  %v285_v28 = vsel %vm6060_vm2, %v280_v18, %v284_v5  ;;  %v220_v5 = vld [vmem:[%s6018_s9 + $0xbc] sm:$0x1]  ;;  %v588_v10 = vshll.u32 %v6232_v60, 16  ;;  %v594_v14 = vshll.u32 %v6235_v61, 16 }
  0x33   : > { %5262 = vmatpush3.bf16.msra.mxu1 %v5714_v21  ;;  %v580_v21 = vshll.u32 %v219_v6, 16  ;;  %5374 = vmatpush3.bf16.msra.mxu0 %v5727_v26  ;;  %v5732_v6 = vld [vmem:[%s8530_s1 + $0xf0] sm:$0xff]   ;;  %v598_v15 = vshrl.u32 %v6235_v61, 16  ;;  %v604_v16 = vshll.u32 %v220_v5, 16 }
  0x34   : > { %5263 = vmatprep.subr.bf16.mxu1 %v5718_v38  ;;  %v290_v30 = vrot.slane %v289_v19, 4  ;;  %v4739_v38 = vcombine.low %v6147_v44, %v6154_v48  ;;  %v5729_v44 = vld [vmem:[%s8530_s1 + $0xa8] sm:$0xff]   ;;  %v587_v19 = vrot.slane %v585_v9, 4 }
  0x35   : > { %v582_v33 = vrot.slane %v580_v21, 5  ;;  %v5734_v21 = vld [vmem:[%s8530_s1 + $0xf8] sm:$0xff]   ;;  %v600_v25 = vrot.slane %v598_v15, 4  ;;  %v606_v26 = vrot.slane %v604_v16, 5 }
  0x36   : > { %3285 = vmatmul.mubr.bf16.gmra.mrb[4].mxu0 %v4738_v42  ;;  %3381 = vmatmul.mubr.bf16.gmra.mrb[4].mxu1 %v4750_v46  ;;  %v295_v37 = vsel %vm6060_vm2, %v290_v30, %v294_v20  ;;  %v568_v42 = vrot.slane %v567_v31, 4  ;;  %v6211_v46 = vld [vmem:[%s6018_s9 + $0x24] sm:$0xf]  ;;  %v590_v20 = vrot.slane %v588_v10, 5  ;;  %v5735_v31 = vld [vmem:[%s8530_s1 + $0x150] sm:$0xff]  }
  0x37   : > { %5264 = vmatpush3.bf16.msra.mxu1 %v5719_v43  ;;  %v4755_v41 = vcombine.low %v285_v28, %v295_v37  ;;  %v578_v43 = vrot.slane %v577_v32, 4  ;;  %v297_v53 = vshrl.u32 %v6211_v46, 16  ;;  %v300_v54 = vshll.u32 %v6211_v46, 16  ;;  %5375 = vmatprep.subr.bf16.mxu0 %v5735_v31 }
  0x38   : > { %5265 = vmatprep.subr.bf16.mxu1 %v5720_v56  ;;  %v310_v56 = vshrl.u32 %v6214_v51, 16  ;;  %v573_v57 = vsel %vm6060_vm2, %v568_v42, %v572_v24  ;;  %v596_v24 = vrot.slane %v594_v14, 5  ;;  %v591_v30 = vor.u32 %v590_v20, %v587_v19  ;;  %v5744_v20 = vld [vmem:[%s8530_s1 + $0x158] sm:$0xff]  }
  0x39   : > { %3292 = vmatprep.mubr.bf16.mxu0 %v4755_v41  ;;  %v583_v58 = vsel %vm6060_vm2, %v578_v43, %v582_v33  ;;  %v299_v2 = vrot.slane %v297_v53, 4  ;;  %v302_v3 = vrot.slane %v300_v54, 5  ;;  %v6275_v41 = vsel %vm6254_vm5, %v6134_v35, %v680_v50  ;;  %v6289_v53 = vld [vmem:[%s6018_s9 + $0x38] sm:$0x1] }
  0x3a   : > { %v4767_v1 = vcombine.low %v573_v57, %v583_v58  ;;  %v312_v7 = vrot.slane %v310_v56, 4  ;;  %v601_v33 = vor.u32 %v600_v25, %v596_v24  ;;  %v592_v37 = vrot.slane %v591_v30, 4 }
  0x3b   : > { %5266 = vmatpush3.bf16.msra.mxu1 %v5721_v4  ;;  %v308_v4 = vrot.slane %v306_v55, 5  ;;  %v5740_v55 = vld [vmem:[%s8530_s1 + $0x1c0] sm:$0xff]   ;;  %v4752_v57 = vcombine.low %v6232_v60, %v6235_v61  ;;  %v340_v59 = vshll.u32 %v6289_v53, 16 }
  0x3c   : > { %5267 = vmatprep.subr.bf16.mxu1 %v5724_v11  ;;  %3388 = vmatprep.mubr.bf16.mxu1 %v4767_v1  ;;  %v303_v11 = vor.u32 %v302_v3, %v299_v2  ;;  %v602_v43 = vrot.slane %v601_v33, 4  ;;  %v597_v13 = vsel %vm6060_vm2, %v592_v37, %v596_v24  ;;  %v4577_v1 = vld [vmem:[%s6018_s9 + $0xc] sm:$0xf]  ;;  %v6305_v2 = vld [vmem:[%s6018_s9 + $0x10] sm:$0xf] }
  0x3d   : > { %v313_v18 = vor.u32 %v312_v7, %v308_v4  ;;  %v608_v7 = vld [vmem:[%s6018_s9] sm:$0xe]  ;;  %v342_v9 = vrot.slane %v340_v59, 5  ;;  %v837_v10 = vshrl.u32 %v4577_v1, 16  ;;  %v846_v61 = vshll.u32 %v6305_v2, 16 }
  0x3e   : > { %3293 = vmatmul.mubr.bf16.gmra.mrb[8].mxu0 %v4739_v38  ;;  %3389 = vmatmul.mubr.bf16.gmra.mrb[8].mxu1 %v4751_v45  ;;  %v304_v23 = vrot.slane %v303_v11, 4  ;;  %v4740_v38 = vcombine.low %v6211_v46, %v6214_v51  ;;  %v5737_v45 = vld [vmem:[%s8530_s1 + $0x110] sm:$0xff]   ;;  %v607_v56 = vsel %vm6060_vm2, %v602_v43, %v606_v26  ;;  %v840_v11 = vshll.u32 %v4577_v1, 16  ;;  %v6319_v26 = vld [vmem:[%s6018_s9 + $0x3c] sm:$0xf] }
  0x3f   : > { %5268 = vmatpush3.bf16.msra.mxu1 %v5726_v36  ;;  %v314_v28 = vrot.slane %v313_v18, 4  ;;  %v6281_v46 = vld [vmem:[%s6018_s9 + $0x30] sm:$0xf]  ;;  %5376 = vmatpush3.bf16.msra.mxu0 %v5737_v45  ;;  %v4768_v3 = vcombine.low %v597_v13, %v607_v56  ;;  %v850_v14 = vshrl.u32 %v6305_v2, 16  ;;  %v4785_v15 = vcombine.low %v4577_v1, %v6305_v2 }
  0x40   : > { %5269 = vmatprep.subr.bf16.mxu1 %v5728_v39  ;;  %v309_v32 = vsel %vm6060_vm2, %v304_v23, %v308_v4  ;;  %v5736_v39 = vld [vmem:[%s8530_s1 + $0xb8] sm:$0xff]   ;;  %v321_v50 = vshrl.u32 %v6281_v46, 16  ;;  %v324_v35 = vshll.u32 %v6281_v46, 16  ;;  %v842_v18 = vrot.slane %v840_v11, 5  ;;  %5377 = vmatprep.subr.bf16.mxu0 %v5744_v20  ;;  %v5750_v11 = vld [vmem:[%s8530_s1 + $0x160] sm:$0xff]  }
  0x41   : > { %v319_v36 = vsel %vm6060_vm2, %v314_v28, %v318_v8  ;;  %3396 = vmatprep.mubr.bf16.mxu1 %v4768_v3  ;;  %v4561_v19 = vrot.slane %v608_v7, 9  ;;  %v6314_v23 = vrot.slane %v846_v61, 5  ;;  %v852_v24 = vrot.slane %v850_v14, 4 }
  0x42   : > { %v4756_v42 = vcombine.low %v309_v32, %v319_v36  ;;  %v323_v4 = vrot.slane %v321_v50, 4  ;;  %v326_v5 = vrot.slane %v324_v35, 5  ;;  %v6326_v32 = vld [vmem:[%s6018_s9 + $0x40] sm:$0xf]  ;;  %v345_v33 = vshrl.u32 %v6319_v26, 16 }
  0x43   : > { %5270 = vmatpush3.bf16.msra.mxu1 %v5729_v44  ;;  %v6284_v44 = vld [vmem:[%s6018_s9 + $0x34] sm:$0xf]  ;;  %v678_v31 = vsel %vm6254_vm5, %v4561_v19, %v677_v47  ;;  %v853_v37 = vor.u32 %v852_v24, %v6314_v23  ;;  %v348_v47 = vshll.u32 %v6319_v26, 16  ;;  %v354_v13 = vshll.u32 %v6326_v32, 16  ;;  %v6349_v50 = vld [vmem:[%s6018_s9 + $0x18] sm:$0xf] }
  0x44   : > { %5271 = vmatprep.subr.bf16.mxu1 %v5732_v6  ;;  %v330_v54 = vshll.u32 %v6284_v44, 16  ;;  %3300 = vmatprep.mubr.bf16.mxu0 %v4756_v42  ;;  %v334_v58 = vshrl.u32 %v6284_v44, 16  ;;  %v327_v60 = vor.u32 %v326_v5, %v323_v4  ;;  %v4741_v25 = vcombine.low %v6281_v46, %v6284_v44  ;;  %v5745_v42 = vld [vmem:[%s8530_s1 + $0x118] sm:$0xff]  }
  0x45   : > { %v4769_v45 = vcombine.low %v678_v31, %v6275_v41  ;;  %v347_v46 = vrot.slane %v345_v33, 4  ;;  %v6352_v35 = vld [vmem:[%s6018_s9 + $0x1c] sm:$0xf]  ;;  %v358_v56 = vshrl.u32 %v6326_v32, 16  ;;  %5378 = vmatpush3.bf16.msra.mxu0 %v5745_v42  ;;  %v356_v59 = vrot.slane %v354_v13, 5  ;;  %v5748_v41 = vld [vmem:[%s8530_s1 + $0x1c8] sm:$0xff]  }
  0x46   : > { %3301 = vmatmul.mubr.bf16.gmra.mrb[12].mxu0 %v4740_v38  ;;  %v332_v6 = vrot.slane %v330_v54, 5  ;;  %v336_v8 = vrot.slane %v334_v58, 4  ;;  %3397 = vmatmul.mubr.bf16.gmra.mrb[12].mxu1 %v4752_v57  ;;  %v6336_v38 = vld [vmem:[%s6018_s9 + $0x44] sm:$0x1]  ;;  %v609_v57 = vld [vmem:[%s6018_s9 + $0xc] sm:$0xe] }
  0x47   : > { %5272 = vmatpush3.bf16.msra.mxu1 %v5733_v17  ;;  %v839_v17 = vrot.slane %v837_v10, 4  ;;  %3437 = vmatprep.mubr.bf16.mxu1 %v4785_v15  ;;  %v364_v1 = vshll.u32 %v6336_v38, 16  ;;  %v6362_v3 = vrot.slane %v853_v37, 4  ;;  %v360_v5 = vrot.slane %v358_v56, 4  ;;  %v5749_v10 = vld [vmem:[%s8530_s1 + $0x188] sm:$0xff]   ;;  %v5757_v56 = vld [vmem:[%s8530_s1 + $0x1d0] sm:$0xff]  }
  0x48   : > { %5273 = vmatprep.subr.bf16.mxu1 %v5734_v21  ;;  %v337_v16 = vor.u32 %v336_v8, %v332_v6  ;;  %v328_v21 = vrot.slane %v327_v60, 4  ;;  %v861_v8 = vshrl.u32 %v6349_v50, 16  ;;  %v4562_v14 = vrot.slane %v609_v57, 9  ;;  %5379 = vmatprep.subr.bf16.mxu0 %v5750_v11  ;;  %v5756_v42 = vld [vmem:[%s8530_s1 + $0x168] sm:$0xff]  }
  0x49   : > { %v843_v30 = vor.u32 %v842_v18, %v839_v17  ;;  %v366_v7 = vrot.slane %v364_v1, 5  ;;  %v361_v61 = vor.u32 %v360_v5, %v356_v59  ;;  %v6384_v17 = vld [vmem:[%s6018_s9 + $0x50] sm:$0x1] }
  0x4a   : > { %v338_v28 = vrot.slane %v337_v16, 4  ;;  %v333_v36 = vsel %vm6060_vm2, %v328_v21, %v332_v6  ;;  %v4786_v6 = vcombine.low %v6349_v50, %v6352_v35  ;;  %v6381_v16 = vld [vmem:[%s6018_s9 + $0x4c] sm:$0xf] }
  0x4b   : > { %5274 = vmatpush3.bf16.msra.mxu1 %v5736_v39  ;;  %v686_v39 = vrot.slane %v684_v40, 4  ;;  %v6356_v58 = vrot.slane %v843_v30, 4  ;;  %v378_v20 = vshll.u32 %v6381_v16, 16  ;;  %v382_v21 = vshrl.u32 %v6381_v16, 16  ;;  %v6401_v30 = vld [vmem:[%s6018_s9 + $0x28] sm:$0xf] }
  0x4c   : > { %5483 = vmatprep.subr.bf16.mxu1 %v5740_v55  ;;  %v343_v43 = vsel %vm6060_vm2, %v338_v28, %v342_v9  ;;  %v350_v55 = vrot.slane %v348_v47, 5  ;;  %v6368_v9 = vld [vmem:[%s6018_s9 + $0x48] sm:$0xf]  ;;  %v362_v24 = vrot.slane %v361_v61, 4  ;;  %v6398_v28 = vld [vmem:[%s6018_s9 + $0x24] sm:$0xf] }
  0x4d   : > { %v4757_v54 = vcombine.low %v333_v36, %v343_v43  ;;  %v688_v15 = vsel %vm6254_vm5, %v686_v39, %v687_v62  ;;  %v369_v18 = vshrl.u32 %v6368_v9, 16  ;;  %v372_v19 = vshll.u32 %v6368_v9, 16  ;;  %v610_v39 = vld [vmem:[%s6018_s9 + $0x18] sm:$0xe]  ;;  %v6437_v61 = vld [vmem:[%s6018_s9 + $0x5c] sm:$0x1] }
  0x4e   : > { %v351_v4 = vor.u32 %v350_v55, %v347_v46  ;;  %3438 = vmatmul.mubr.bf16.vlgmr.msra.gmra.mrb[16].mxu1 %v4769_v45  ;;  %v685_v62 = vsel %vm6254_vm5, %v4562_v14, %v684_v40  ;;  %v380_v37 = vrot.slane %v378_v20, 5  ;;  %v367_v63 = vsel %vm6060_vm2, %v362_v24, %v366_v7  ;;  %v6427_v7 = vld [vmem:[%s6018_s9 + $0x54] sm:$0xf] }
  0x4f   : > { %3308 = vmatprep.mubr.bf16.mxu0 %v4757_v54  ;;  %5484 = vmatpush3.bf16.msra.mxu1 %v5741_v12  ;;  %v4770_v31 = vcombine.low %v685_v62, %v688_v15  ;;  %v371_v33 = vrot.slane %v369_v18, 4  ;;  %v374_v36 = vrot.slane %v372_v19, 5  ;;  %v5751_v12 = vld [vmem:[%s8530_s1 + $0x120] sm:$0xff]   ;;  %v4742_v40 = vcombine.low %v6319_v26, %v6326_v32  ;;  %v5758_v19 = vld [vmem:[%s8530_s1 + $0x128] sm:$0xff]   ;;  %v6452_v62 = vld [vmem:[%s6018_s9 + $0x30] sm:$0xf] }
  0x50   : > { %3309 = vmatmul.mubr.bf16.gmra.mrb[16].mxu0 %v4741_v25  ;;  %v352_v60 = vrot.slane %v351_v4, 4  ;;  %3445 = vmatprep.mubr.bf16.mxu1 %v4786_v6  ;;  %v388_v25 = vshll.u32 %v6384_v17, 16  ;;  %v384_v47 = vrot.slane %v382_v21, 4  ;;  %v864_v45 = vshll.u32 %v6349_v50, 16  ;;  %v6475_v50 = vld [vmem:[%s6018_s9 + $0x64] sm:$0xf] }
  0x51   : > { %5485 = vmatprep.subr.bf16.mxu1 %v5748_v41  ;;  %v874_v46 = vshrl.u32 %v6352_v35, 16  ;;  %v375_v13 = vor.u32 %v374_v36, %v371_v33  ;;  %5380 = vmatpush3.bf16.msra.mxu0 %v5751_v12  ;;  %v4787_v26 = vcombine.low %v6398_v28, %v6401_v30  ;;  %v4563_v1 = vrot.slane %v610_v39, 9  ;;  %v611_v12 = vld [vmem:[%s6018_s9 + $0x24] sm:$0xe] }
  0x52   : > { %v357_v0 = vsel %vm6060_vm2, %v352_v60, %v356_v59  ;;  %v385_v54 = vor.u32 %v384_v47, %v380_v37  ;;  %v390_v55 = vrot.slane %v388_v25, 5  ;;  %5381 = vmatprep.subr.bf16.mxu0 %v5756_v42  ;;  %v885_v59 = vshrl.u32 %v6398_v28, 16  ;;  %v6455_v25 = vld [vmem:[%s6018_s9 + $0x34] sm:$0xf] }
  0x53   : > { %5486 = vmatpush3.bf16.msra.mxu1 %v5749_v10  ;;  %v4758_v43 = vcombine.low %v357_v0, %v367_v63  ;;  %v376_v57 = vrot.slane %v375_v13, 4  ;;  %v691_v41 = vrot.slane %v6154_v48, 5  ;;  %v4743_v5 = vcombine.low %v6368_v9, %v6381_v16  ;;  %v6434_v48 = vld [vmem:[%s6018_s9 + $0x58] sm:$0xf]  ;;  %v5759_v63 = vld [vmem:[%s8530_s1 + $0x190] sm:$0xff]  }
  0x54   : > { %v386_v4 = vrot.slane %v385_v54, 4  ;;  %v694_v6 = vrot.slane %v6157_v49, 5  ;;  %v393_v14 = vshrl.u32 %v6427_v7, 16  ;;  %5487 = vmatprep.subr.bf16.mxu1 %v5757_v56  ;;  %v396_v9 = vshll.u32 %v6427_v7, 16 }
  0x55   : > { %3316 = vmatprep.mubr.bf16.mxu0 %v4758_v43  ;;  %v381_v10 = vsel %vm6060_vm2, %v376_v57, %v380_v37  ;;  %v692_v11 = vsel %vm6254_vm5, %v4563_v1, %v691_v41  ;;  %v693_v60 = vrot.slane %v691_v41, 4  ;;  %v402_v15 = vshll.u32 %v6434_v48, 16  ;;  %5382 = vmatpush3.bf16.msra.mxu0 %v5758_v19  ;;  %v6470_v43 = vld [vmem:[%s6018_s9 + $0x60] sm:$0xf]  ;;  %v6482_v57 = vld [vmem:[%s6018_s9 + $0x68] sm:$0x1] }
  0x56   : > { %3446 = vmatmul.mubr.bf16.gmra.mrb[20].mxu1 %v4770_v31  ;;  %v391_v49 = vsel %vm6060_vm2, %v386_v4, %v390_v55  ;;  %v406_v18 = vshrl.u32 %v6434_v48, 16  ;;  %v395_v0 = vrot.slane %v393_v14, 4  ;;  %v412_v24 = vshll.u32 %v6437_v61, 16  ;;  %v5762_v14 = vld [vmem:[%s8530_s1 + $0x170] sm:$0xff]  }
  0x57   : > { %3453 = vmatprep.mubr.bf16.mxu1 %v4787_v26  ;;  %v4759_v20 = vcombine.low %v381_v10, %v391_v49  ;;  %v695_v21 = vsel %vm6254_vm5, %v693_v60, %v694_v6  ;;  %v398_v33 = vrot.slane %v396_v9, 5  ;;  %v404_v36 = vrot.slane %v402_v15, 5  ;;  %5488 = vmatpush3.bf16.msra.mxu1 %v5759_v63  ;;  %v6487_v10 = vld [vmem:[%s6018_s9 + $0x3c] sm:$0xf] }
  0x58   : > { %3317 = vmatmul.mubr.bf16.gmra.mrb[20].mxu0 %v4742_v40  ;;  %v4771_v31 = vcombine.low %v692_v11, %v695_v21  ;;  %v408_v37 = vrot.slane %v406_v18, 4  ;;  %v6463_v40 = vrot.slane %v861_v8, 4  ;;  %v6465_v47 = vrot.slane %v864_v45, 5  ;;  %v612_v18 = vld [vmem:[%s6018_s9 + $0x30] sm:$0xe]  ;;  %5383 = vmatprep.subr.bf16.mxu0 %v5762_v14 }
  0x59   : > { %3324 = vmatprep.mubr.bf16.mxu0 %v4759_v20  ;;  %v888_v39 = vshll.u32 %v6398_v28, 16  ;;  %v898_v42 = vshrl.u32 %v6401_v30, 16  ;;  %v399_v13 = vor.u32 %v398_v33, %v395_v0  ;;  %v414_v55 = vrot.slane %v412_v24, 5 }
  0x5a   : > { %v409_v54 = vor.u32 %v408_v37, %v404_v36  ;;  %v4788_v26 = vcombine.low %v6452_v62, %v6455_v25  ;;  %v6477_v8 = vrot.slane %v885_v59, 4  ;;  %v909_v28 = vshrl.u32 %v6452_v62, 16  ;;  %v6490_v59 = vld [vmem:[%s6018_s9 + $0x40] sm:$0xf]  ;;  %v5763_v37 = vld [vmem:[%s8530_s1 + $0x130] sm:$0xff]  }
  0x5b   : > { %v4564_v45 = vrot.slane %v611_v12, 9  ;;  %v698_v56 = vrot.slane %v6214_v51, 5  ;;  %v400_v1 = vrot.slane %v399_v13, 4  ;;  %v701_v4 = vrot.slane %v6220_v52, 5  ;;  %5384 = vmatpush3.bf16.msra.mxu0 %v5763_v37 }
  0x5c   : > { %v410_v41 = vrot.slane %v409_v54, 4  ;;  %v417_v6 = vshrl.u32 %v6470_v43, 16  ;;  %v420_v51 = vshll.u32 %v6470_v43, 16  ;;  %v430_v15 = vshrl.u32 %v6475_v50, 16 }
  0x5d   : > { %v699_v11 = vsel %vm6254_vm5, %v4564_v45, %v698_v56  ;;  %v700_v60 = vrot.slane %v698_v56, 4  ;;  %v405_v52 = vsel %vm6060_vm2, %v400_v1, %v404_v36  ;;  %v4744_v24 = vcombine.low %v6427_v7, %v6434_v48  ;;  %v6525_v1 = vld [vmem:[%s6018_s9 + $0x70] sm:$0xf] }
  0x5e   : > { %3454 = vmatmul.mubr.bf16.gmra.mrb[24].mxu1 %v4771_v31  ;;  %v415_v49 = vsel %vm6060_vm2, %v410_v41, %v414_v55  ;;  %v419_v9 = vrot.slane %v417_v6, 4  ;;  %v422_v21 = vrot.slane %v420_v51, 5  ;;  %v432_v33 = vrot.slane %v430_v15, 4  ;;  %v6519_v55 = vld [vmem:[%s6018_s9 + $0x6c] sm:$0xf] }
  0x5f   : > { %3461 = vmatprep.mubr.bf16.mxu1 %v4788_v26  ;;  %v4760_v19 = vcombine.low %v405_v52, %v415_v49  ;;  %v702_v20 = vsel %vm6254_vm5, %v700_v60, %v701_v4  ;;  %v436_v36 = vshll.u32 %v6482_v57, 16  ;;  %v6513_v12 = vrot.slane %v888_v39, 5  ;;  %v6530_v6 = vld [vmem:[%s6018_s9 + $0x74] sm:$0x1] }
  0x60   : > { %3325 = vmatmul.mubr.bf16.gmra.mrb[24].mxu0 %v4743_v5  ;;  %v426_v5 = vshll.u32 %v6475_v50, 16  ;;  %v4772_v31 = vcombine.low %v699_v11, %v702_v20  ;;  %v912_v63 = vshll.u32 %v6452_v62, 16  ;;  %v423_v13 = vor.u32 %v422_v21, %v419_v9  ;;  %v6544_v9 = vld [vmem:[%s6018_s9 + $0x4c] sm:$0xf]  ;;  %v5766_v20 = vld [vmem:[%s8530_s1 + $0x1d8] sm:$0xff]  }
  0x61   : > { %3332 = vmatprep.mubr.bf16.mxu0 %v4760_v19  ;;  %v4789_v54 = vcombine.low %v6487_v10, %v6490_v59  ;;  %v6521_v7 = vrot.slane %v909_v28, 4  ;;  %v438_v56 = vrot.slane %v436_v36, 5  ;;  %v933_v62 = vshrl.u32 %v6487_v10, 16  ;;  %5489 = vmatprep.subr.bf16.mxu1 %v5766_v20  ;;  %v6589_v20 = vld [vmem:[%s6018_s9 + $0x58] sm:$0xf] }
  0x62   : > { %v428_v0 = vrot.slane %v426_v5, 5  ;;  %v424_v39 = vrot.slane %v423_v13, 4  ;;  %v4565_v41 = vrot.slane %v612_v18, 9  ;;  %v705_v4 = vrot.slane %v6284_v44, 5  ;;  %v6536_v5 = vld [vmem:[%s6018_s9 + $0x48] sm:$0xf] }
  0x63   : > { %v708_v11 = vrot.slane %v6289_v53, 5  ;;  %v441_v60 = vshrl.u32 %v6519_v55, 16  ;;  %v444_v51 = vshll.u32 %v6519_v55, 16  ;;  %v450_v49 = vshll.u32 %v6525_v1, 16 }
  0x64   : > { %v433_v45 = vor.u32 %v432_v33, %v428_v0  ;;  %v429_v14 = vsel %vm6060_vm2, %v424_v39, %v428_v0  ;;  %v706_v52 = vsel %vm6254_vm5, %v4565_v41, %v705_v4  ;;  %v707_v44 = vrot.slane %v705_v4, 4  ;;  %v6565_v4 = vld [vmem:[%s6018_s9 + $0x78] sm:$0xf] }
  0x65   : > { %v443_v15 = vrot.slane %v441_v60, 4  ;;  %v446_v18 = vrot.slane %v444_v51, 5  ;;  %v454_v19 = vshrl.u32 %v6525_v1, 16  ;;  %v4745_v33 = vcombine.low %v6470_v43, %v6475_v50  ;;  %v5767_v43 = vld [vmem:[%s8530_s1 + $0x198] sm:$0xff]  }
  0x66   : > { %3462 = vmatmul.mubr.bf16.gmra.mrb[28].mxu1 %v4772_v31  ;;  %v434_v28 = vrot.slane %v433_v45, 4  ;;  %v709_v0 = vsel %vm6254_vm5, %v707_v44, %v708_v11  ;;  %v460_v31 = vshll.u32 %v6530_v6, 16  ;;  %v6558_v45 = vrot.slane %v912_v63, 5  ;;  %v6573_v51 = vld [vmem:[%s6018_s9 + $0x7c] sm:$0xf] }
  0x67   : > { %3469 = vmatprep.mubr.bf16.mxu1 %v4789_v54  ;;  %v4773_v36 = vcombine.low %v706_v52, %v709_v0  ;;  %v447_v37 = vor.u32 %v446_v18, %v443_v15  ;;  %v456_v13 = vrot.slane %v454_v19, 4  ;;  %v613_v54 = vld [vmem:[%s6018_s9 + $0x3c] sm:$0xe]  ;;  %v4790_v41 = vcombine.low %v6536_v5, %v6544_v9  ;;  %v6586_v19 = vld [vmem:[%s6018_s9 + $0x54] sm:$0xf]  ;;  %5490 = vmatpush3.bf16.msra.mxu1 %v5767_v43 }
  0x68   : > { %3333 = vmatmul.mubr.bf16.gmra.mrb[28].mxu0 %v4744_v24  ;;  %v439_v53 = vsel %vm6060_vm2, %v434_v28, %v438_v56  ;;  %v452_v24 = vrot.slane %v450_v49, 5  ;;  %v936_v56 = vshll.u32 %v6487_v10, 16  ;;  %v6570_v28 = vrot.slane %v933_v62, 4  ;;  %v6579_v49 = vld [vmem:[%s6018_s9 + $0x80] sm:$0x1] }
  0x69   : > { %v4761_v21 = vcombine.low %v429_v14, %v439_v53  ;;  %v448_v11 = vrot.slane %v447_v37, 4  ;;  %v462_v60 = vrot.slane %v460_v31, 5  ;;  %v957_v10 = vshrl.u32 %v6536_v5, 16  ;;  %v5771_v31 = vld [vmem:[%s8530_s1 + $0x138] sm:$0xff]  }
  0x6a   : > { %v457_v63 = vor.u32 %v456_v13, %v452_v24  ;;  %v4566_v14 = vrot.slane %v613_v54, 9  ;;  %v712_v52 = vrot.slane %v6326_v32, 5  ;;  %v715_v44 = vrot.slane %v6336_v38, 5  ;;  %v5770_v32 = vld [vmem:[%s8530_s1 + $0x178] sm:$0xff]   ;;  %v5773_v54 = vld [vmem:[%s8530_s1 + $0x1e0] sm:$0xff]  }
  0x6b   : > { %3340 = vmatprep.mubr.bf16.mxu0 %v4761_v21  ;;  %v453_v62 = vsel %vm6060_vm2, %v448_v11, %v452_v24  ;;  %v465_v15 = vshrl.u32 %v6565_v4, 16  ;;  %v468_v18 = vshll.u32 %v6565_v4, 16  ;;  %v474_v0 = vshll.u32 %v6573_v51, 16  ;;  %5385 = vmatprep.subr.bf16.mxu0 %v5770_v32 }
  0x6c   : > { %v458_v53 = vrot.slane %v457_v63, 4  ;;  %v713_v38 = vsel %vm6254_vm5, %v4566_v14, %v712_v52  ;;  %v714_v21 = vrot.slane %v712_v52, 4  ;;  %v478_v24 = vshrl.u32 %v6573_v51, 16  ;;  %v614_v14 = vld [vmem:[%s6018_s9 + $0x48] sm:$0xe]  ;;  %5386 = vmatpush3.bf16.msra.mxu0 %v5771_v31  ;;  %5491 = vmatprep.subr.bf16.mxu1 %v5773_v54 }
  0x6d   : > { %v470_v37 = vrot.slane %v468_v18, 5  ;;  %v484_v13 = vshll.u32 %v6579_v49, 16  ;;  %v476_v11 = vrot.slane %v474_v0, 5  ;;  %v4746_v52 = vcombine.low %v6519_v55, %v6525_v1  ;;  %v6621_v0 = vld [vmem:[%s6018_s9 + $0x88] sm:$0xf] }
  0x6e   : > { %3470 = vmatmul.mubr.bf16.gmra.mrb[32].mxu1 %v4773_v36  ;;  %v467_v36 = vrot.slane %v465_v15, 4  ;;  %v716_v43 = vsel %vm6254_vm5, %v714_v21, %v715_v44  ;;  %v480_v63 = vrot.slane %v478_v24, 4  ;;  %v4791_v44 = vcombine.low %v6586_v19, %v6589_v20  ;;  %v6618_v21 = vld [vmem:[%s6018_s9 + $0x84] sm:$0xf] }
  0x6f   : > { %3477 = vmatprep.mubr.bf16.mxu1 %v4790_v41  ;;  %v486_v32 = vrot.slane %v484_v13, 5  ;;  %v4567_v55 = vrot.slane %v614_v14, 9  ;;  %v6630_v31 = vrot.slane %v957_v10, 4  ;;  %v489_v54 = vshrl.u32 %v6618_v21, 16  ;;  %v6640_v10 = vld [vmem:[%s6018_s9 + $0x60] sm:$0xf] }
  0x70   : > { %3341 = vmatmul.mubr.bf16.gmra.mrb[32].mxu0 %v4745_v33  ;;  %v463_v33 = vsel %vm6060_vm2, %v458_v53, %v462_v60  ;;  %v6610_v60 = vrot.slane %v936_v56, 5  ;;  %v4774_v53 = vcombine.low %v713_v38, %v716_v43  ;;  %v471_v15 = vor.u32 %v470_v37, %v467_v36  ;;  %v6625_v38 = vld [vmem:[%s6018_s9 + $0x8c] sm:$0x1] }
  0x71   : > { %v4762_v41 = vcombine.low %v453_v62, %v463_v33  ;;  %v960_v62 = vshll.u32 %v6536_v5, 16  ;;  %v481_v18 = vor.u32 %v480_v63, %v476_v11  ;;  %v5774_v5 = vld [vmem:[%s8530_s1 + $0x1a0] sm:$0xff]   ;;  %v719_v36 = vrot.slane %v6381_v16, 5  ;;  %v6675_v56 = vld [vmem:[%s6018_s9 + $0x6c] sm:$0xf] }
  0x72   : > { %v472_v24 = vrot.slane %v471_v15, 4  ;;  %v722_v37 = vrot.slane %v6384_v17, 5  ;;  %v498_v43 = vshll.u32 %v6621_v0, 16  ;;  %v6645_v16 = vld [vmem:[%s8530_s1 + $0x200] sm:$0xff]   ;;  %v502_v14 = vshrl.u32 %v6621_v0, 16  ;;  %5492 = vmatpush3.bf16.msra.mxu1 %v5774_v5 }
  0x73   : > { %3348 = vmatprep.mubr.bf16.mxu0 %v4762_v41  ;;  %v482_v33 = vrot.slane %v481_v18, 4  ;;  %v492_v41 = vshll.u32 %v6618_v21, 16  ;;  %v721_v63 = vrot.slane %v719_v36, 4  ;;  %5619 = vmatprep.subr.bf16.mxu0 %v6645_v16 }
  0x74   : > { %v477_v13 = vsel %vm6060_vm2, %v472_v24, %v476_v11  ;;  %v720_v11 = vsel %vm6254_vm5, %v4567_v55, %v719_v36  ;;  %v500_v18 = vrot.slane %v498_v43, 5  ;;  %v6659_v24 = vrot.slane %v960_v62, 5  ;;  %v615_v36 = vld [vmem:[%s6018_s9 + $0x54] sm:$0xe] }
  0x75   : > { %v487_v17 = vsel %vm6060_vm2, %v482_v33, %v486_v32  ;;  %v494_v15 = vrot.slane %v492_v41, 5  ;;  %v5778_v32 = vld [vmem:[%s8530_s1 + $0x1e8] sm:$0xff]   ;;  %v723_v55 = vsel %vm6254_vm5, %v721_v63, %v722_v37  ;;  %v504_v5 = vrot.slane %v502_v14, 4 }
  0x76   : > { %3478 = vmatmul.mubr.bf16.gmra.mrb[36].mxu1 %v4774_v53  ;;  %v491_v53 = vrot.slane %v489_v54, 4  ;;  %v508_v33 = vshll.u32 %v6625_v38, 16  ;;  %v981_v54 = vshrl.u32 %v6586_v19, 16  ;;  %v4747_v62 = vcombine.low %v6565_v4, %v6573_v51  ;;  %5493 = vmatprep.subr.bf16.mxu1 %v5778_v32  ;;  %v4625_v4 = vld [vmem:[%s6018_s9 + $0xc] sm:$0xe] }
  0x77   : > { %3485 = vmatprep.mubr.bf16.mxu1 %v4791_v44  ;;  %v6653_v44 = vld [vmem:[%s6018_s9 + $0x64] sm:$0xf]  ;;  %v4775_v41 = vcombine.low %v720_v11, %v723_v55  ;;  %v984_v37 = vshll.u32 %v6586_v19, 16  ;;  %v4568_v26 = vrot.slane %v615_v36, 9  ;;  %v726_v19 = vrot.slane %v6434_v48, 5 }
  0x78   : > { %3349 = vmatmul.mubr.bf16.gmra.mrb[36].mxu0 %v4746_v52  ;;  %v4763_v52 = vcombine.low %v477_v13, %v487_v17  ;;  %v5779_v13 = vld [vmem:[%s8530_s1 + $0x1a8] sm:$0xff]   ;;  %v495_v43 = vor.u32 %v494_v15, %v491_v53  ;;  %v505_v17 = vor.u32 %v504_v5, %v500_v18  ;;  %v510_v63 = vrot.slane %v508_v33, 5  ;;  %v616_v55 = vld [vmem:[%s6018_s9 + $0x60] sm:$0xe] }
  0x79   : > { %v4792_v14 = vcombine.low %v6640_v10, %v6653_v44  ;;  %5494 = vmatpush3.bf16.msra.mxu1 %v5779_v13  ;;  %v1005_v53 = vshrl.u32 %v6640_v10, 16  ;;  %v729_v15 = vrot.slane %v6437_v61, 5  ;;  %v6692_v5 = vsel %vm6060_vm2, %v6356_v58, %v6314_v23  ;;  %v5783_v23 = vld [vmem:[%s8530_s1 + $0x1f0] sm:$0xff]  }
  0x7a   : > { %3356 = vmatprep.mubr.bf16.mxu0 %v4763_v52  ;;  %v6678_v52 = vld [vmem:[%s6018_s9 + $0x70] sm:$0xf]  ;;  %v496_v39 = vrot.slane %v495_v43, 4  ;;  %v506_v11 = vrot.slane %v505_v17, 4  ;;  %8569 = vst [vmem:[#allocation2_spill] sm:$0xff] %v6692_v5  ;;  %v4748_v48 = vcombine.low %v6618_v21, %v6621_v0  ;;  %v727_v61 = vsel %vm6254_vm5, %v4568_v26, %v726_v19  ;;  %5495 = vmatprep.subr.bf16.mxu1 %v5783_v23 }
  0x7b   : > { %v728_v36 = vrot.slane %v726_v19, 4  ;;  %v1318_v21 = vrot.slane %v6305_v2, 5  ;;  %v4569_v43 = vrot.slane %v616_v55, 9  ;;  %v5784_v26 = vld [vmem:[%s8530_s1 + $0x1b0] sm:$0xff]   ;;  %v994_v19 = vshrl.u32 %v6589_v20, 16 }
  0x7c   : > { %v501_v32 = vsel %vm6060_vm2, %v496_v39, %v500_v18  ;;  %v511_v33 = vsel %vm6060_vm2, %v506_v11, %v510_v63  ;;  %v4793_v39 = vcombine.low %v6675_v56, %v6678_v52  ;;  %v856_v18 = vshll.u32 %v4609_v27, 16  ;;  %v6742_v23 = vld [vmem:[%s6018_s9 + $0x78] sm:$0xf] }
  0x7d   : > { %v4764_v13 = vcombine.low %v501_v32, %v511_v33  ;;  %v730_v58 = vsel %vm6254_vm5, %v728_v36, %v729_v15  ;;  %v6713_v11 = vrot.slane %v981_v54, 4  ;;  %v1320_v2 = vrot.slane %v1318_v21, 4  ;;  %v4626_v15 = vld [vmem:[%s6018_s9 + $0x18] sm:$0xe]  ;;  %5496 = vmatpush3.bf16.msra.mxu1 %v5784_v26  ;;  %v4610_v33 = vld [vmem:[%s6018_s9 + $0x20] sm:$0x1] }
  0x7e   : > { %3486 = vmatmul.mubr.bf16.gmra.mrb[40].mxu1 %v4775_v41  ;;  %v1321_v41 = vrot.slane %v4609_v27, 5  ;;  %v4776_v17 = vcombine.low %v727_v61, %v730_v58  ;;  %v858_v63 = vrot.slane %v856_v18, 5  ;;  %v5788_v32 = vld [vmem:[%s8530_s1 + $0x1f8] sm:$0xff]   ;;  %v6722_v55 = vrot.slane %v984_v37, 5  ;;  %v617_v18 = vld [vmem:[%s6018_s9 + $0x6c] sm:$0xe] }
  0x7f   : > { %3493 = vmatprep.mubr.bf16.mxu1 %v4792_v14  ;;  %v733_v14 = vrot.slane %v6475_v50, 5  ;;  %v6732_v61 = vrot.slane %v1005_v53, 4  ;;  %v1008_v36 = vshll.u32 %v6640_v10, 16  ;;  %5497 = vmatprep.subr.bf16.mxu1 %v5788_v32  ;;  %v4642_v53 = vrot.slane %v4626_v15, 9  ;;  %v5789_v58 = vld [vmem:[%s8530_s1 + $0x1b8] sm:$0xff]  }
  0x80   : > { %3357 = vmatmul.mubr.bf16.gmra.mrb[40].mxu0 %v4747_v62  ;;  %v4641_v62 = vrot.slane %v4625_v4, 9  ;;  %v736_v4 = vrot.slane %v6482_v57, 5  ;;  %v6729_v54 = vsel %vm6060_vm2, %v6362_v3, %v858_v63  ;;  %v1322_v37 = vsel %vm6254_vm5, %v1320_v2, %v1321_v41 }
  0x81   : > { %3364 = vmatprep.mubr.bf16.mxu0 %v4764_v13  ;;  %v734_v50 = vsel %vm6254_vm5, %v4569_v43, %v733_v14  ;;  %v735_v57 = vrot.slane %v733_v14, 4  ;;  %8570 = vst [vmem:[#allocation3_spill] sm:$0xff] %v6729_v54  ;;  %v1018_v13 = vshrl.u32 %v6653_v44, 16  ;;  %v867_v10 = vor.u32 %v6465_v47, %v6463_v40  ;;  %5498 = vmatpush3.bf16.msra.mxu1 %v5789_v58 }
  0x82   : > { %v1319_v27 = vsel %vm6254_vm5, %v4641_v62, %v1318_v21  ;;  %v4801_v41 = vcombine.low %v6692_v5, %v6729_v54  ;;  %v1328_v43 = vrot.slane %v4610_v33, 5  ;;  %v4570_v26 = vrot.slane %v617_v18, 9 }
  0x83   : > { %v4817_v62 = vcombine.low %v1319_v27, %v1322_v37  ;;  %v737_v3 = vsel %vm6254_vm5, %v735_v57, %v736_v4  ;;  %v743_v40 = vrot.slane %v6530_v6, 5  ;;  %v870_v47 = vshll.u32 %v6352_v35, 16  ;;  %v4627_v57 = vld [vmem:[%s6018_s9 + $0x24] sm:$0xe] }
  0x84   : > { %v4777_v21 = vcombine.low %v734_v50, %v737_v3  ;;  %v876_v4 = vrot.slane %v874_v46, 4  ;;  %v880_v27 = vshll.u32 %v4610_v33, 16  ;;  %v6764_v6 = vrot.slane %v1008_v36, 5  ;;  %v618_v3 = vld [vmem:[%s6018_s9 + $0x78] sm:$0xe] }
  0x85   : > { %v872_v32 = vrot.slane %v870_v47, 5  ;;  %v1029_v46 = vshrl.u32 %v6675_v56, 16  ;;  %v1042_v36 = vshrl.u32 %v6678_v52, 16 }
  0x86   : > { %3494 = vmatmul.mubr.bf16.gmra.mrb[44].mxu1 %v4776_v17  ;;  %v740_v17 = vrot.slane %v6525_v1, 5  ;;  %v868_v1 = vrot.slane %v867_v10, 4  ;;  %v882_v18 = vrot.slane %v880_v27, 5 }
  0x87   : > { %3501 = vmatprep.mubr.bf16.mxu1 %v4793_v39  ;;  %v1325_v39 = vrot.slane %v6352_v35, 5  ;;  %v5780_v35 = vld [vmem:[%s8530_s1 + $0x208] sm:$0xff]   ;;  %v877_v37 = vor.u32 %v876_v4, %v872_v32 }
  0x88   : > { %3365 = vmatmul.mubr.bf16.gmra.mrb[44].mxu0 %v4748_v48  ;;  %v6752_v48 = vld [vmem:[%s6018_s9 + $0x7c] sm:$0xf]  ;;  %v742_v15 = vrot.slane %v740_v17, 4  ;;  %v741_v10 = vsel %vm6254_vm5, %v4570_v26, %v740_v17  ;;  %v4571_v17 = vrot.slane %v618_v3, 9 }
  0x89   : > { %3598 = vmatprep.mubr.bf16.mxu0 %v4817_v62  ;;  %v1326_v63 = vsel %vm6254_vm5, %v4642_v53, %v1325_v39  ;;  %v1327_v14 = vrot.slane %v1325_v39, 4  ;;  %v4794_v2 = vcombine.low %v6742_v23, %v6752_v48  ;;  %v4611_v62 = vld [vmem:[%s6018_s9 + $0x2c] sm:$0x1]  ;;  %v1032_v53 = vshll.u32 %v6675_v56, 16  ;;  %v6782_v39 = vld [vmem:[%s6018_s9 + $0x84] sm:$0xf] }
  0x8a   : > { %v744_v58 = vsel %vm6254_vm5, %v742_v15, %v743_v40  ;;  %v878_v47 = vrot.slane %v877_v37, 4  ;;  %v4643_v56 = vrot.slane %v4627_v57, 9  ;;  %v1335_v26 = vrot.slane %v4611_v62, 5  ;;  %v4612_v57 = vld [vmem:[%s6018_s9 + $0x38] sm:$0x1] }
  0x8b   : > { %v1329_v50 = vsel %vm6254_vm5, %v1327_v14, %v1328_v43  ;;  %v6786_v43 = vsel %vm6060_vm2, %v868_v1, %v872_v32  ;;  %v747_v40 = vrot.slane %v6573_v51, 5  ;;  %v5785_v51 = vld [vmem:[%s8530_s1 + $0x210] sm:$0xff]  }
  0x8c   : > { %v4818_v33 = vcombine.low %v1326_v63, %v1329_v50  ;;  %8571 = vst [vmem:[#allocation4_spill] sm:$0xff] %v6786_v43  ;;  %v6789_v63 = vld [vmem:[%s6018_s9 + $0x88] sm:$0xf]  ;;  %v6797_v14 = vsel %vm6060_vm2, %v878_v47, %v882_v18  ;;  %v900_v50 = vrot.slane %v898_v42, 4  ;;  %v619_v47 = vld [vmem:[%s6018_s9 + $0x84] sm:$0xe] }
  0x8d   : > { %8572 = vst [vmem:[#allocation5_spill] sm:$0xff] %v6797_v14  ;;  %v4795_v15 = vcombine.low %v6782_v39, %v6789_v63  ;;  %v749_v1 = vrot.slane %v747_v40, 4  ;;  %v6827_v42 = vrot.slane %v1032_v53, 5  ;;  %v1342_v53 = vrot.slane %v4612_v57, 5 }
  0x8e   : > { %3502 = vmatmul.mubr.bf16.gmra.mrb[48].mxu1 %v4777_v21  ;;  %v1332_v21 = vrot.slane %v6401_v30, 5 }
  0x8f   : > { %3509 = vmatprep.mubr.bf16.mxu1 %v4794_v2  ;;  %v4778_v2 = vcombine.low %v741_v10, %v744_v58  ;;  %v904_v10 = vshll.u32 %v4611_v62, 16 }
  0x90   : > { %3599 = vmatmul.mubr.bf16.vlgmr.msra.gmra.mrb[48].mxu0 %v4801_v41  ;;  %v750_v41 = vrot.slane %v6579_v49, 5  ;;  %v1333_v4 = vsel %vm6254_vm5, %v4643_v56, %v1332_v21  ;;  %v1334_v27 = vrot.slane %v1332_v21, 4  ;;  %v4802_v49 = vcombine.low %v6786_v43, %v6797_v14  ;;  %v5790_v56 = vld [vmem:[%s8530_s1 + $0x218] sm:$0xff]  }
  0x91   : > { %5620 = vmatpush3.bf16.msra.mxu0 %v6645_v16  ;;  %3606 = vmatprep.mubr.bf16.mxu0 %v4818_v33  ;;  %v891_v16 = vor.u32 %v6513_v12, %v6477_v8  ;;  %v748_v8 = vsel %vm6254_vm5, %v4571_v17, %v747_v40  ;;  %v894_v12 = vshll.u32 %v6401_v30, 16  ;;  %v4628_v33 = vld [vmem:[%s6018_s9 + $0x30] sm:$0xe]  ;;  %v6825_v30 = vrot.slane %v1029_v46, 4 }
  0x92   : > { %5621 = vmatprep.subr.bf16.mxu0 %v5780_v35  ;;  %v1336_v32 = vsel %vm6254_vm5, %v1334_v27, %v1335_v26  ;;  %v751_v18 = vsel %vm6254_vm5, %v749_v1, %v750_v41  ;;  %v1053_v21 = vshrl.u32 %v6742_v23, 16  ;;  %v4644_v26 = vrot.slane %v4628_v33, 9  ;;  %v6831_v40 = vld [vmem:[%s6018_s9 + $0x90] sm:$0xf]  ;;  %v6834_v41 = vld [vmem:[%s6018_s9 + $0x94] sm:$0xf] }
  0x93   : > { %v4819_v37 = vcombine.low %v1333_v4, %v1336_v32  ;;  %v892_v3 = vrot.slane %v891_v16, 4  ;;  %v896_v58 = vrot.slane %v894_v12, 5  ;;  %v4779_v62 = vcombine.low %v748_v8, %v751_v18  ;;  %v5793_v32 = vld [vmem:[%s8530_s1 + $0x220] sm:$0xff]  }
  0x94   : > { %v906_v17 = vrot.slane %v904_v10, 5  ;;  %v1339_v4 = vrot.slane %v6455_v25, 5  ;;  %v4572_v27 = vrot.slane %v619_v47, 9  ;;  %v754_v16 = vrot.slane %v6621_v0, 5  ;;  %v4629_v10 = vld [vmem:[%s6018_s9 + $0x3c] sm:$0xe] }
  0x95   : > { %5622 = vmatpush3.bf16.msra.mxu0 %v5780_v35  ;;  %v901_v35 = vor.u32 %v900_v50, %v896_v58  ;;  %v6839_v46 = vsel %vm6060_vm2, %v892_v3, %v896_v58  ;;  %v757_v1 = vrot.slane %v6625_v38, 5  ;;  %v4796_v8 = vcombine.low %v6831_v40, %v6834_v41  ;;  %v5796_v58 = vld [vmem:[%s8530_s1 + $0x228] sm:$0xff]  }
  0x96   : > { %5623 = vmatprep.subr.bf16.mxu0 %v5785_v51  ;;  %3510 = vmatmul.mubr.bf16.gmra.mrb[52].mxu1 %v4778_v2  ;;  %8573 = vst [vmem:[#allocation6_spill] sm:$0xff] %v6839_v46  ;;  %v756_v12 = vrot.slane %v754_v16, 4  ;;  %v915_v0 = vor.u32 %v6558_v45, %v6521_v7  ;;  %v8575_v33 = vshrl.u32 %v6455_v25, 16  ;;  %v928_v18 = vshll.u32 %v4612_v57, 16 }
  0x97   : > { %3517 = vmatprep.mubr.bf16.mxu1 %v4795_v15  ;;  %v902_v2 = vrot.slane %v901_v35, 4  ;;  %v1341_v15 = vrot.slane %v1339_v4, 4  ;;  %v1056_v3 = vshll.u32 %v6742_v23, 16  ;;  %v755_v47 = vsel %vm6254_vm5, %v4572_v27, %v754_v16  ;;  %v6873_v23 = vld [vmem:[%s6018_s9 + $0x9c] sm:$0xf] }
  0x98   : > { %3607 = vmatmul.mubr.bf16.gmra.mrb[52].mxu0 %v4802_v49  ;;  %v1340_v49 = vsel %vm6254_vm5, %v4644_v26, %v1339_v4  ;;  %v916_v57 = vrot.slane %v915_v0, 4  ;;  %v6876_v35 = vld [vmem:[%s6018_s9 + $0xa0] sm:$0xf]  ;;  %v930_v4 = vrot.slane %v928_v18, 5  ;;  %v4645_v27 = vrot.slane %v4629_v10, 9 }
  0x99   : > { %3614 = vmatprep.mubr.bf16.mxu0 %v4819_v37  ;;  %5624 = vmatpush3.bf16.msra.mxu0 %v5785_v51  ;;  %v918_v51 = vshll.u32 %v6455_v25, 16  ;;  %v6855_v50 = vsel %vm6060_vm2, %v902_v2, %v906_v17  ;;  %v1343_v38 = vsel %vm6254_vm5, %v1341_v15, %v1342_v53  ;;  %v924_v37 = vrot.slane %v8575_v33, 4  ;;  %v4613_v17 = vld [vmem:[%s6018_s9 + $0x44] sm:$0x1]  ;;  %v620_v53 = vld [vmem:[%s6018_s9 + $0x90] sm:$0xe] }
  0x9a   : > { %5625 = vmatprep.subr.bf16.mxu0 %v5790_v56  ;;  %8574 = vst [vmem:[#allocation7_spill] sm:$0xff] %v6855_v50  ;;  %v4803_v7 = vcombine.low %v6839_v46, %v6855_v50  ;;  %v4820_v45 = vcombine.low %v1340_v49, %v1343_v38  ;;  %v758_v25 = vsel %vm6254_vm5, %v756_v12, %v757_v1  ;;  %v1346_v16 = vrot.slane %v6490_v59, 5  ;;  %v5940_v33 = vld [vmem:[%s6018_s9 + $0x94] sm:$0xf] }
  0x9b   : > { %v920_v26 = vrot.slane %v918_v51, 5  ;;  %v6882_v49 = vrot.slane %v1053_v21, 4  ;;  %v4780_v15 = vcombine.low %v755_v47, %v758_v25  ;;  %v1349_v12 = vrot.slane %v4613_v17, 5  ;;  %v5799_v21 = vld [vmem:[%s8530_s1 + $0x230] sm:$0xff]  }
  0x9c   : > { %v1347_v0 = vsel %vm6254_vm5, %v4645_v27, %v1346_v16  ;;  %v4573_v51 = vrot.slane %v620_v53, 9  ;;  %v4797_v38 = vcombine.low %v6873_v23, %v6876_v35  ;;  %v942_v18 = vshll.u32 %v6490_v59, 16  ;;  %v4630_v53 = vld [vmem:[%s6018_s9 + $0x48] sm:$0xe] }
  0x9d   : > { %5626 = vmatpush3.bf16.msra.mxu0 %v5790_v56  ;;  %v925_v2 = vor.u32 %v924_v37, %v920_v26  ;;  %v6886_v1 = vsel %vm6060_vm2, %v916_v57, %v920_v26  ;;  %v761_v37 = vrot.slane %v5940_v33, 5  ;;  %v8578_v10 = vshrl.u32 %v6490_v59, 16  ;;  %v6927_v33 = vld [vmem:[%s6018_s9 + $0xa8] sm:$0xf] }
  0x9e   : > { %5627 = vmatprep.subr.bf16.mxu0 %v5793_v32  ;;  %3518 = vmatmul.mubr.bf16.gmra.mrb[56].mxu1 %v4779_v62  ;;  %8576 = vst [vmem:[#allocation8_spill] sm:$0xff] %v6886_v1  ;;  %v952_v25 = vshll.u32 %v4613_v17, 16  ;;  %v6907_v57 = vrot.slane %v1056_v3, 5  ;;  %v1077_v26 = vshrl.u32 %v6782_v39, 16  ;;  %v944_v27 = vrot.slane %v942_v18, 5  ;;  %v5802_v3 = vld [vmem:[%s8530_s1 + $0x238] sm:$0xff]  }
  0x9f   : > { %3525 = vmatprep.mubr.bf16.mxu1 %v4796_v8  ;;  %v926_v62 = vrot.slane %v925_v2, 4  ;;  %v1348_v8 = vrot.slane %v1346_v16, 4  ;;  %v948_v47 = vrot.slane %v8578_v10, 4  ;;  %v763_v2 = vrot.slane %v761_v37, 4 }
  0xa0   : > { %3615 = vmatmul.mubr.bf16.gmra.mrb[56].mxu0 %v4803_v7  ;;  %v1080_v17 = vshll.u32 %v6782_v39, 16  ;;  %v6929_v39 = vrot.slane %v1077_v26, 4  ;;  %v1020_v16 = vrot.slane %v1018_v13, 4 }
  0xa1   : > { %3622 = vmatprep.mubr.bf16.mxu0 %v4820_v45  ;;  %5628 = vmatpush3.bf16.msra.mxu0 %v5793_v32  ;;  %v939_v32 = vor.u32 %v6610_v60, %v6570_v28  ;;  %v6901_v7 = vsel %vm6060_vm2, %v926_v62, %v930_v4  ;;  %v1350_v45 = vsel %vm6254_vm5, %v1348_v8, %v1349_v12  ;;  %v4614_v12 = vld [vmem:[%s6018_s9 + $0x50] sm:$0x1]  ;;  %v8579_v62 = vrot.slane %v6054_v29, 5 }
  0xa2   : > { %5629 = vmatprep.subr.bf16.mxu0 %v5796_v58  ;;  %8577 = vst [vmem:[#allocation9_spill] sm:$0xff] %v6901_v7  ;;  %v4804_v28 = vcombine.low %v6886_v1, %v6901_v7  ;;  %v4821_v60 = vcombine.low %v1347_v0, %v1350_v45  ;;  %v762_v4 = vsel %vm6254_vm5, %v4573_v51, %v761_v37  ;;  %v954_v51 = vrot.slane %v952_v25, 5 }
  0xa3   : > { %v940_v59 = vrot.slane %v939_v32, 4  ;;  %v765_v0 = vsel %vm6254_vm5, %v763_v2, %v8579_v62  ;;  %v949_v8 = vor.u32 %v948_v47, %v944_v27  ;;  %v4646_v37 = vrot.slane %v4630_v53, 9  ;;  %v5941_v47 = vld [vmem:[%s6018_s9 + $0xa0] sm:$0xf] }
  0xa4   : > { %v1353_v29 = vrot.slane %v6544_v9, 5  ;;  %v1356_v45 = vrot.slane %v4614_v12, 5  ;;  %v768_v25 = vrot.slane %v5941_v47, 5  ;;  %v6966_v47 = vld [vmem:[%s6018_s9 + $0xb8] sm:$0xf] }
  0xa5   : > { %5630 = vmatpush3.bf16.msra.mxu0 %v5796_v58  ;;  %v621_v58 = vld [vmem:[%s6018_s9 + $0x9c] sm:$0xe]  ;;  %v6933_v32 = vsel %vm6060_vm2, %v940_v59, %v944_v27  ;;  %v950_v18 = vrot.slane %v949_v8, 4  ;;  %v966_v27 = vshll.u32 %v6544_v9, 16 }
  0xa6   : > { %5631 = vmatprep.subr.bf16.mxu0 %v5799_v21  ;;  %3526 = vmatmul.mubr.bf16.gmra.mrb[60].mxu1 %v4780_v15  ;;  %v4781_v15 = vcombine.low %v762_v4, %v765_v0  ;;  %8580 = vst [vmem:[#allocation10_spill] sm:$0xff] %v6933_v32  ;;  %v4574_v10 = vrot.slane %v621_v58, 9  ;;  %v1354_v26 = vsel %vm6254_vm5, %v4646_v37, %v1353_v29  ;;  %v770_v59 = vrot.slane %v768_v25, 4  ;;  %v6959_v0 = vld [vmem:[%s6018_s9 + $0xb4] sm:$0xf] }
  0xa7   : > { %3533 = vmatprep.mubr.bf16.mxu1 %v4797_v38  ;;  %v6936_v38 = vld [vmem:[%s6018_s9 + $0xac] sm:$0xf]  ;;  %v963_v4 = vor.u32 %v6659_v24, %v6630_v31  ;;  %v968_v37 = vrot.slane %v966_v27, 5  ;;  %v1360_v27 = vrot.slane %v6589_v20, 5 }
  0xa8   : > { %3623 = vmatmul.mubr.bf16.gmra.mrb[60].mxu0 %v4804_v28  ;;  %v1355_v28 = vrot.slane %v1353_v29, 4  ;;  %v4798_v2 = vcombine.low %v6927_v33, %v6936_v38  ;;  %v769_v31 = vsel %vm6254_vm5, %v4574_v10, %v768_v25  ;;  %v8582_v29 = vshrl.u32 %v6544_v9, 16  ;;  %v4631_v25 = vld [vmem:[%s6018_s9 + $0x54] sm:$0xe] }
  0xa9   : > { %3630 = vmatprep.mubr.bf16.mxu0 %v4821_v60  ;;  %5632 = vmatpush3.bf16.msra.mxu0 %v5799_v21  ;;  %v5942_v60 = vld [vmem:[%s6018_s9 + $0xa4] sm:$0x1]  ;;  %v6947_v21 = vsel %vm6060_vm2, %v950_v18, %v954_v51  ;;  %v964_v24 = vrot.slane %v963_v4, 4  ;;  %v976_v10 = vshll.u32 %v4614_v12, 16  ;;  %v4799_v12 = vcombine.low %v6959_v0, %v6966_v47 }
  0xaa   : > { %5633 = vmatprep.subr.bf16.mxu0 %v5802_v3  ;;  %v771_v53 = vrot.slane %v5942_v60, 5  ;;  %8581 = vst [vmem:[#allocation11_spill] sm:$0xff] %v6947_v21  ;;  %v4805_v58 = vcombine.low %v6933_v32, %v6947_v21  ;;  %v1357_v62 = vsel %vm6254_vm5, %v1355_v28, %v1356_v45  ;;  %v972_v18 = vrot.slane %v8582_v29, 4  ;;  %v4615_v60 = vld [vmem:[%s6018_s9 + $0x5c] sm:$0x1] }
  0xab   : > { %v4822_v8 = vcombine.low %v1354_v26, %v1357_v62  ;;  %v6969_v45 = vrot.slane %v1080_v17, 5  ;;  %v1101_v28 = vshrl.u32 %v6831_v40, 16  ;;  %v6977_v4 = vsel %vm6060_vm2, %v964_v24, %v968_v37  ;;  %v5944_v29 = vld [vmem:[%s6018_s9 + $0xb0] sm:$0x1] }
  0xac   : > { %v772_v51 = vsel %vm6254_vm5, %v770_v59, %v771_v53  ;;  %v973_v26 = vor.u32 %v972_v18, %v968_v37  ;;  %v622_v53 = vld [vmem:[%s6018_s9 + $0xa8] sm:$0xe]  ;;  %8583 = vst [vmem:[#allocation12_spill] sm:$0xff] %v6977_v4  ;;  %v978_v17 = vrot.slane %v976_v10, 5  ;;  %v4647_v59 = vrot.slane %v4631_v25, 9 }
  0xad   : > { %5634 = vmatpush3.bf16.msra.mxu0 %v5802_v3  ;;  %v1104_v3 = vshll.u32 %v6831_v40, 16  ;;  %v4782_v9 = vcombine.low %v769_v31, %v772_v51  ;;  %v1363_v40 = vrot.slane %v4615_v60, 5  ;;  %v778_v31 = vrot.slane %v5944_v29, 5  ;;  %v4632_v10 = vld [vmem:[%s6018_s9 + $0x60] sm:$0xe] }
  0xae   : > { %3534 = vmatmul.mubr.bf16.gmra.mrb[64].mxu1 %v4781_v15  ;;  %v974_v15 = vrot.slane %v973_v26, 4  ;;  %v987_v24 = vor.u32 %v6722_v55, %v6713_v11  ;;  %v1361_v51 = vsel %vm6254_vm5, %v4647_v59, %v1360_v27  ;;  %v1362_v37 = vrot.slane %v1360_v27, 4  ;;  %v6999_v55 = vld [vmem:[%s6018_s9 + $0xc0] sm:$0xf]  ;;  %v7006_v27 = vld [vmem:[%s6018_s9 + $0xc4] sm:$0xf] }
  0xaf   : > { %3541 = vmatprep.mubr.bf16.mxu1 %v4798_v2  ;;  %v5943_v2 = vld [vmem:[%s6018_s9 + $0xac] sm:$0xf]  ;;  %v990_v18 = vshll.u32 %v6589_v20, 16  ;;  %v996_v59 = vrot.slane %v994_v19, 4  ;;  %v7015_v20 = vrot.slane %v1104_v3, 5  ;;  %v1125_v19 = vshrl.u32 %v6873_v23, 16 }
  0xb0   : > { %3631 = vmatmul.mubr.bf16.gmra.mrb[64].mxu0 %v4805_v58  ;;  %v4575_v58 = vrot.slane %v622_v53, 9  ;;  %v775_v62 = vrot.slane %v5943_v2, 5  ;;  %v1364_v53 = vsel %vm6254_vm5, %v1362_v37, %v1363_v40  ;;  %v7008_v2 = vrot.slane %v1101_v28, 4  ;;  %v623_v37 = vld [vmem:[%s6018_s9 + $0xb4] sm:$0xe] }
  0xb1   : > { %3638 = vmatprep.mubr.bf16.mxu0 %v4822_v8  ;;  %v6988_v8 = vsel %vm6060_vm2, %v974_v15, %v978_v17  ;;  %v988_v17 = vrot.slane %v987_v24, 4  ;;  %v992_v15 = vrot.slane %v990_v18, 5  ;;  %v4823_v29 = vcombine.low %v1361_v51, %v1364_v53  ;;  %v4616_v24 = vld [vmem:[%s6018_s9 + $0x68] sm:$0x1] }
  0xb2   : > { %8584 = vst [vmem:[#allocation13_spill] sm:$0xff] %v6988_v8  ;;  %v4806_v25 = vcombine.low %v6977_v4, %v6988_v8  ;;  %v776_v26 = vsel %vm6254_vm5, %v4575_v58, %v775_v62  ;;  %v777_v11 = vrot.slane %v775_v62, 4  ;;  %v1000_v62 = vshll.u32 %v4615_v60, 16 }
  0xb3   : > { %v997_v40 = vor.u32 %v996_v59, %v992_v15  ;;  %v4648_v51 = vrot.slane %v4632_v10, 9  ;;  %v1367_v18 = vrot.slane %v6653_v44, 5  ;;  %v4576_v3 = vrot.slane %v623_v37, 9  ;;  %v5946_v59 = vld [vmem:[%s6018_s9 + $0xbc] sm:$0x1] }
  0xb4   : > { %v779_v58 = vsel %vm6254_vm5, %v777_v11, %v778_v31  ;;  %v7020_v31 = vsel %vm6060_vm2, %v988_v17, %v992_v15  ;;  %v5945_v11 = vld [vmem:[%s6018_s9 + $0xb8] sm:$0xf]  ;;  %v1011_v17 = vor.u32 %v6764_v6, %v6732_v61  ;;  %v1014_v15 = vshll.u32 %v6653_v44, 16  ;;  %v4633_v10 = vld [vmem:[%s6018_s9 + $0x6c] sm:$0xe] }
  0xb5   : > { %v4783_v28 = vcombine.low %v776_v26, %v779_v58  ;;  %8585 = vst [vmem:[#allocation14_spill] sm:$0xff] %v7020_v31  ;;  %v998_v60 = vrot.slane %v997_v40, 4  ;;  %v782_v53 = vrot.slane %v5945_v11, 5  ;;  %v1368_v40 = vsel %vm6254_vm5, %v4648_v51, %v1367_v18  ;;  %v7043_v6 = vld [vmem:[%s6018_s9 + $0x74] sm:$0x1] }
  0xb6   : > { %3542 = vmatmul.mubr.bf16.gmra.mrb[68].mxu1 %v4782_v9  ;;  %v1002_v9 = vrot.slane %v1000_v62, 5  ;;  %v1369_v37 = vrot.slane %v1367_v18, 4  ;;  %v1012_v11 = vrot.slane %v1011_v17, 4  ;;  %v1016_v61 = vrot.slane %v1014_v15, 5  ;;  %v7050_v18 = vld [vmem:[%s6018_s9 + $0x18] sm:$0xf] }
  0xb7   : > { %3549 = vmatprep.mubr.bf16.mxu1 %v4799_v12  ;;  %v4800_v12 = vcombine.low %v6999_v55, %v7006_v27  ;;  %v1024_v56 = vshll.u32 %v4616_v24, 16  ;;  %v4649_v51 = vrot.slane %v4633_v10, 9  ;;  %v7057_v15 = vld [vmem:[%s6018_s9 + $0x1c] sm:$0xf]  ;;  %v7064_v10 = vld [vmem:[%s6018_s9 + $0x20] sm:$0x1] }
  0xb8   : > { %3639 = vmatmul.mubr.bf16.gmra.mrb[68].mxu0 %v4806_v25  ;;  %v1370_v25 = vrot.slane %v4616_v24, 5  ;;  %v7028_v26 = vsel %vm6060_vm2, %v998_v60, %v1002_v9  ;;  %v783_v9 = vsel %vm6254_vm5, %v4576_v3, %v782_v53  ;;  %v784_v60 = vrot.slane %v782_v53, 4 }
  0xb9   : > { %3646 = vmatprep.mubr.bf16.mxu0 %v4823_v29  ;;  %8586 = vst [vmem:[#allocation15_spill] sm:$0xff] %v7028_v26  ;;  %v785_v29 = vrot.slane %v5946_v59, 5  ;;  %v4807_v62 = vcombine.low %v7020_v31, %v7028_v26  ;;  %v7061_v44 = vsel %vm6060_vm2, %v1012_v11, %v1016_v61  ;;  %v1021_v13 = vor.u32 %v1020_v16, %v1016_v61 }
  0xba   : > { %v1371_v59 = vsel %vm6254_vm5, %v1369_v37, %v1370_v25  ;;  %8587 = vst [vmem:[#allocation16_spill] sm:$0xff] %v7061_v44  ;;  %v1026_v24 = vrot.slane %v1024_v56, 5  ;;  %v1491_v56 = vshrl.u32 %v7057_v15, 16  ;;  %v1497_v61 = vshll.u32 %v7064_v10, 16 }
  0xbb   : > { %v4824_v53 = vcombine.low %v1368_v40, %v1371_v59  ;;  %v786_v17 = vsel %vm6254_vm5, %v784_v60, %v785_v29  ;;  %v1377_v29 = vrot.slane %v7043_v6, 5  ;;  %v1478_v40 = vshrl.u32 %v7050_v18, 16 }
  0xbc   : > { %v4784_v25 = vcombine.low %v783_v9, %v786_v17  ;;  %v1022_v37 = vrot.slane %v1021_v13, 4  ;;  %v1481_v9 = vshll.u32 %v7050_v18, 16  ;;  %v1487_v60 = vshll.u32 %v7057_v15, 16  ;;  %v4634_v13 = vld [vmem:[%s6018_s9 + $0x78] sm:$0xe] }
  0xbd   : > { %v1480_v11 = vrot.slane %v1478_v40, 4  ;;  %v1035_v59 = vor.u32 %v6827_v42, %v6825_v30  ;;  %v7085_v3 = vrot.slane %v1125_v19, 4  ;;  %v1493_v40 = vrot.slane %v1491_v56, 4  ;;  %v7091_v30 = vld [vmem:[%s6018_s9 + $0x80] sm:$0x1] }
  0xbe   : > { %3550 = vmatmul.mubr.bf16.gmra.mrb[72].mxu1 %v4783_v28  ;;  %v1374_v28 = vrot.slane %v6678_v52, 5  ;;  %v1483_v17 = vrot.slane %v1481_v9, 5  ;;  %v7097_v9 = vld [vmem:[%s6018_s9 + $0x24] sm:$0xf]  ;;  %v4650_v56 = vrot.slane %v4634_v13, 9 }
  0xbf   : > { %3557 = vmatprep.mubr.bf16.mxu1 %v4800_v12 }
  0xc0   : > { %3647 = vmatmul.mubr.bf16.gmra.mrb[72].mxu0 %v4807_v62  ;;  %v1375_v12 = vsel %vm6254_vm5, %v4649_v51, %v1374_v28  ;;  %v1376_v62 = vrot.slane %v1374_v28, 4  ;;  %v7080_v51 = vsel %vm6060_vm2, %v1022_v37, %v1026_v24  ;;  %v1489_v28 = vrot.slane %v1487_v60, 5 }
  0xc1   : > { %3654 = vmatprep.mubr.bf16.mxu0 %v4824_v53  ;;  %8588 = vst [vmem:[#allocation17_spill] sm:$0xff] %v7080_v51  ;;  %v1484_v42 = vor.u32 %v1483_v17, %v1480_v11  ;;  %v1036_v24 = vrot.slane %v1035_v59, 4  ;;  %v1044_v37 = vrot.slane %v1042_v36, 4  ;;  %v1499_v60 = vrot.slane %v1497_v61, 5  ;;  %v7105_v36 = vld [vmem:[%s6018_s9 + $0x28] sm:$0xf] }
  0xc2   : > { %v1378_v16 = vsel %vm6254_vm5, %v1376_v62, %v1377_v29  ;;  %v1149_v62 = vshrl.u32 %v6927_v33, 16  ;;  %v4808_v29 = vcombine.low %v7061_v44, %v7080_v51  ;;  %v1494_v19 = vor.u32 %v1493_v40, %v1489_v28  ;;  %v7116_v40 = vld [vmem:[%s6018_s9 + $0x2c] sm:$0x1] }
  0xc3   : > { %v4825_v53 = vcombine.low %v1375_v12, %v1378_v16  ;;  %v1038_v12 = vshll.u32 %v6678_v52, 16  ;;  %v1048_v16 = vshll.u32 %v7043_v6, 16  ;;  %v1485_v58 = vrot.slane %v1484_v42, 4 }
  0xc4   : > { %v4833_v11 = vcombine.low %v7050_v18, %v7057_v15  ;;  %v1381_v59 = vrot.slane %v6752_v48, 5  ;;  %v1495_v17 = vrot.slane %v1494_v19, 4  ;;  %v1384_v52 = vrot.slane %v7091_v30, 5 }
  0xc5   : > { %v1505_v61 = vshll.u32 %v7097_v9, 16  ;;  %v1490_v6 = vsel %vm6060_vm2, %v1485_v58, %v1489_v28  ;;  %v1050_v18 = vrot.slane %v1048_v16, 5  ;;  %v1511_v28 = vshll.u32 %v7105_v36, 16 }
  0xc6   : > { %3558 = vmatmul.mubr.bf16.gmra.mrb[76].mxu1 %v4784_v25  ;;  %v1040_v25 = vrot.slane %v1038_v12, 5  ;;  %v1500_v42 = vsel %vm6060_vm2, %v1495_v17, %v1499_v60  ;;  %v1382_v12 = vsel %vm6254_vm5, %v4650_v56, %v1381_v59  ;;  %v1383_v19 = vrot.slane %v1381_v59, 4 }
  0xc7   : > { %v4849_v26 = vcombine.low %v1490_v6, %v1500_v42  ;;  %v1507_v58 = vrot.slane %v1505_v61, 5  ;;  %v1515_v60 = vshrl.u32 %v7105_v36, 16  ;;  %v1521_v56 = vshll.u32 %v7116_v40, 16  ;;  %v7142_v42 = vld [vmem:[%s6018_s9 + $0x8c] sm:$0x1] }
  0xc8   : > { %3655 = vmatmul.mubr.bf16.gmra.mrb[76].mxu0 %v4808_v29  ;;  %v1502_v29 = vshrl.u32 %v7097_v9, 16  ;;  %v1045_v13 = vor.u32 %v1044_v37, %v1040_v25  ;;  %v1385_v16 = vsel %vm6254_vm5, %v1383_v19, %v1384_v52  ;;  %v7136_v61 = vrot.slane %v1149_v62, 4 }
  0xc9   : > { %3662 = vmatprep.mubr.bf16.mxu0 %v4825_v53  ;;  %v7113_v53 = vsel %vm6060_vm2, %v1036_v24, %v1040_v25  ;;  %v8590_v24 = vshll.u32 %v6873_v23, 16  ;;  %3759 = vmatprep.mubr.bf16.mxu1 %v4849_v26  ;;  %v4826_v59 = vcombine.low %v1382_v12, %v1385_v16  ;;  %v4635_v23 = vld [vmem:[%s6018_s9 + $0x84] sm:$0xe]  ;;  %v1152_v6 = vshll.u32 %v6927_v33, 16  ;;  %v7150_v12 = vld [vmem:[%s6018_s9 + $0x30] sm:$0xf] }
  0xca   : > { %8589 = vst [vmem:[#allocation18_spill] sm:$0xff] %v7113_v53  ;;  %v1504_v51 = vrot.slane %v1502_v29, 4  ;;  %v1046_v31 = vrot.slane %v1045_v13, 4  ;;  %v1513_v29 = vrot.slane %v1511_v28, 5  ;;  %v1517_v13 = vrot.slane %v1515_v60, 4 }
  0xcb   : > { %v7125_v37 = vrot.slane %v8590_v24, 5  ;;  %v1523_v19 = vrot.slane %v1521_v56, 5  ;;  %v1391_v60 = vrot.slane %v7142_v42, 5 }
  0xcc   : > { %v7133_v25 = vsel %vm6060_vm2, %v1046_v31, %v1050_v18  ;;  %v1508_v17 = vor.u32 %v1507_v58, %v1504_v51  ;;  %v1059_v31 = vor.u32 %v6907_v57, %v6882_v49  ;;  %v1062_v18 = vshll.u32 %v6752_v48, 16 }
  0xcd   : > { %8591 = vst [vmem:[#allocation19_spill] sm:$0xff] %v7133_v25  ;;  %v4809_v52 = vcombine.low %v7113_v53, %v7133_v25  ;;  %v8592_v51 = vshrl.u32 %v6752_v48, 16  ;;  %v1518_v33 = vor.u32 %v1517_v13, %v1513_v29  ;;  %v4651_v58 = vrot.slane %v4635_v23, 9  ;;  %v7166_v13 = vld [vmem:[%s6018_s9 + $0x38] sm:$0x1] }
  0xce   : > { %3760 = vmatmul.mubr.bf16.vlgmr.msra.gmra.mrb[80].mxu1 %v4833_v11  ;;  %v1509_v26 = vrot.slane %v1508_v17, 4  ;;  %v1072_v11 = vshll.u32 %v7091_v30, 16  ;;  %v1060_v28 = vrot.slane %v1059_v31, 4  ;;  %v1064_v24 = vrot.slane %v1062_v18, 5  ;;  %v7160_v17 = vld [vmem:[%s6018_s9 + $0x34] sm:$0xf] }
  0xcf   : > { %v1068_v62 = vrot.slane %v8592_v51, 4  ;;  %v4834_v49 = vcombine.low %v7097_v9, %v7105_v36  ;;  %v1388_v57 = vrot.slane %v6789_v63, 5  ;;  %v1519_v16 = vrot.slane %v1518_v33, 4 }
  0xd0   : > { %3663 = vmatmul.mubr.bf16.gmra.mrb[80].mxu0 %v4809_v52  ;;  %v1514_v48 = vsel %vm6060_vm2, %v1509_v26, %v1513_v29  ;;  %v1526_v30 = vshrl.u32 %v7150_v12, 16  ;;  %v1074_v23 = vrot.slane %v1072_v11, 5  ;;  %v7172_v29 = vsel %vm6060_vm2, %v1060_v28, %v1064_v24 }
  0xd1   : > { %3670 = vmatprep.mubr.bf16.mxu0 %v4826_v59  ;;  %v1069_v56 = vor.u32 %v1068_v62, %v1064_v24  ;;  %v1389_v59 = vsel %vm6254_vm5, %v4651_v58, %v1388_v57  ;;  %v1390_v52 = vrot.slane %v1388_v57, 4  ;;  %v1524_v9 = vsel %vm6060_vm2, %v1519_v16, %v1523_v19  ;;  %8593 = vst [vmem:[#allocation20_spill] sm:$0xff] %v7172_v29 }
  0xd2   : > { %v1528_v26 = vrot.slane %v1526_v30, 4  ;;  %v1529_v31 = vshll.u32 %v7150_v12, 16  ;;  %v4850_v18 = vcombine.low %v1514_v48, %v1524_v9  ;;  %v1535_v33 = vshll.u32 %v7160_v17, 16 }
  0xd3   : > { %v1070_v51 = vrot.slane %v1069_v56, 4  ;;  %v1392_v62 = vsel %vm6254_vm5, %v1390_v52, %v1391_v60  ;;  %v1539_v57 = vshrl.u32 %v7160_v17, 16  ;;  %v1545_v19 = vshll.u32 %v7166_v13, 16  ;;  %v4636_v52 = vld [vmem:[%s6018_s9 + $0x90] sm:$0xe] }
  0xd4   : > { %v4827_v11 = vcombine.low %v1389_v59, %v1392_v62  ;;  %v1531_v58 = vrot.slane %v1529_v31, 5  ;;  %3767 = vmatprep.mubr.bf16.mxu1 %v4850_v18  ;;  %v1537_v24 = vrot.slane %v1535_v33, 5  ;;  %v1083_v48 = vor.u32 %v6969_v45, %v6929_v39  ;;  %v4620_v60 = vld [vmem:[%s6018_s9 + $0x98] sm:$0x1] }
  0xd5   : > { %v7182_v28 = vsel %vm6060_vm2, %v1070_v51, %v1074_v23  ;;  %v1086_v16 = vshll.u32 %v6789_v63, 16  ;;  %v1541_v59 = vrot.slane %v1539_v57, 4  ;;  %v7191_v9 = vrot.slane %v1152_v6, 5  ;;  %v7201_v57 = vld [vmem:[%s6018_s9 + $0x3c] sm:$0xf] }
  0xd6   : > { %8594 = vst [vmem:[#allocation21_spill] sm:$0xff] %v7182_v28  ;;  %v4810_v30 = vcombine.low %v7172_v29, %v7182_v28  ;;  %3768 = vmatmul.mubr.bf16.gmra.mrb[84].mxu1 %v4834_v49  ;;  %v1532_v56 = vor.u32 %v1531_v58, %v1528_v26  ;;  %v1084_v23 = vrot.slane %v1083_v48, 4  ;;  %v8595_v39 = vshrl.u32 %v6789_v63, 16  ;;  %v7204_v63 = vld [vmem:[%s6018_s9 + $0x40] sm:$0xf] }
  0xd7   : > { %v1088_v31 = vrot.slane %v1086_v16, 5  ;;  %v1542_v51 = vor.u32 %v1541_v59, %v1537_v24  ;;  %v1547_v62 = vrot.slane %v1545_v19, 5  ;;  %v1096_v33 = vshll.u32 %v7142_v42, 16 }
  0xd8   : > { %v1092_v45 = vrot.slane %v8595_v39, 4  ;;  %3671 = vmatmul.mubr.bf16.gmra.mrb[84].mxu0 %v4810_v30  ;;  %v1533_v18 = vrot.slane %v1532_v56, 4  ;;  %v4835_v6 = vcombine.low %v7150_v12, %v7160_v17  ;;  %v4652_v26 = vrot.slane %v4636_v52, 9  ;;  %v7217_v52 = vld [vmem:[%s6018_s9 + $0x44] sm:$0x1] }
  0xd9   : > { %3678 = vmatprep.mubr.bf16.mxu0 %v4827_v11  ;;  %v1395_v58 = vrot.slane %v6834_v41, 5  ;;  %v1543_v19 = vrot.slane %v1542_v51, 4  ;;  %v7210_v42 = vsel %vm6060_vm2, %v1084_v23, %v1088_v31  ;;  %v1098_v11 = vrot.slane %v1096_v33, 5 }
  0xda   : > { %v1093_v49 = vor.u32 %v1092_v45, %v1088_v31  ;;  %v1538_v48 = vsel %vm6060_vm2, %v1533_v18, %v1537_v24  ;;  %8596 = vst [vmem:[#allocation22_spill] sm:$0xff] %v7210_v42  ;;  %v1398_v56 = vrot.slane %v4620_v60, 5  ;;  %v1550_v39 = vshrl.u32 %v7201_v57, 16 }
  0xdb   : > { %v1396_v12 = vsel %vm6254_vm5, %v4652_v26, %v1395_v58  ;;  %v1397_v30 = vrot.slane %v1395_v58, 4  ;;  %v1548_v59 = vsel %vm6060_vm2, %v1543_v19, %v1547_v62  ;;  %v1553_v24 = vshll.u32 %v7201_v57, 16 }
  0xdc   : > { %v1094_v16 = vrot.slane %v1093_v49, 4  ;;  %v1559_v23 = vshll.u32 %v7204_v63, 16  ;;  %v4851_v31 = vcombine.low %v1538_v48, %v1548_v59  ;;  %v1563_v51 = vshrl.u32 %v7204_v63, 16 }
  0xdd   : > { %v1399_v18 = vsel %vm6254_vm5, %v1397_v30, %v1398_v56  ;;  %v1173_v62 = vshrl.u32 %v6959_v0, 16  ;;  %v1552_v26 = vrot.slane %v1550_v39, 4  ;;  %v1555_v58 = vrot.slane %v1553_v24, 5  ;;  %v7248_v24 = vld [vmem:[%s6018_s9 + $0x4c] sm:$0xf] }
  0xde   : > { %v7224_v45 = vsel %vm6060_vm2, %v1094_v16, %v1098_v11  ;;  %v4828_v49 = vcombine.low %v1396_v12, %v1399_v18  ;;  %3775 = vmatprep.mubr.bf16.mxu1 %v4851_v31  ;;  %v1561_v48 = vrot.slane %v1559_v23, 5  ;;  %v1565_v19 = vrot.slane %v1563_v51, 4  ;;  %v4637_v16 = vld [vmem:[%s6018_s9 + $0x9c] sm:$0xe]  ;;  %v4621_v51 = vld [vmem:[%s6018_s9 + $0xa4] sm:$0x1] }
  0xdf   : > { %8597 = vst [vmem:[#allocation23_spill] sm:$0xff] %v7224_v45  ;;  %v4811_v33 = vcombine.low %v7210_v42, %v7224_v45  ;;  %v1569_v11 = vshll.u32 %v7217_v52, 16  ;;  %3776 = vmatmul.mubr.bf16.gmra.mrb[88].mxu1 %v4835_v6  ;;  %v1107_v30 = vor.u32 %v7015_v20, %v7008_v2  ;;  %v1110_v56 = vshll.u32 %v6834_v41, 16 }
  0xe0   : > { %v8598_v59 = vshrl.u32 %v6834_v41, 16  ;;  %v1120_v39 = vshll.u32 %v4620_v60, 16  ;;  %v1556_v23 = vor.u32 %v1555_v58, %v1552_v26  ;;  %v1566_v31 = vor.u32 %v1565_v19, %v1561_v48  ;;  %v7251_v58 = vld [vmem:[%s6018_s9 + $0x50] sm:$0x1] }
  0xe1   : > { %3679 = vmatmul.mubr.bf16.gmra.mrb[88].mxu0 %v4811_v33  ;;  %v1571_v18 = vrot.slane %v1569_v11, 5  ;;  %v7242_v33 = vld [vmem:[%s6018_s9 + $0x48] sm:$0xf]  ;;  %v1108_v6 = vrot.slane %v1107_v30, 4  ;;  %v1112_v45 = vrot.slane %v1110_v56, 5  ;;  %v4836_v2 = vcombine.low %v7201_v57, %v7204_v63 }
  0xe2   : > { %v1116_v12 = vrot.slane %v8598_v59, 4  ;;  %3686 = vmatprep.mubr.bf16.mxu0 %v4828_v49  ;;  %v4653_v20 = vrot.slane %v4637_v16, 9  ;;  %v1557_v41 = vrot.slane %v1556_v23, 4  ;;  %v1567_v59 = vrot.slane %v1566_v31, 4 }
  0xe3   : > { %v1122_v60 = vrot.slane %v1120_v39, 5  ;;  %v1402_v42 = vrot.slane %v6876_v35, 5  ;;  %v1405_v26 = vrot.slane %v4621_v51, 5  ;;  %v1574_v19 = vshrl.u32 %v7242_v33, 16 }
  0xe4   : > { %v1117_v49 = vor.u32 %v1116_v12, %v1112_v45  ;;  %v1577_v11 = vshll.u32 %v7242_v33, 16  ;;  %v1562_v30 = vsel %vm6060_vm2, %v1557_v41, %v1561_v48  ;;  %v1572_v57 = vsel %vm6060_vm2, %v1567_v59, %v1571_v18 }
  0xe5   : > { %v7261_v16 = vsel %vm6060_vm2, %v1108_v6, %v1112_v45  ;;  %v1403_v56 = vsel %vm6254_vm5, %v4653_v20, %v1402_v42  ;;  %v4852_v12 = vcombine.low %v1562_v30, %v1572_v57  ;;  %v1404_v23 = vrot.slane %v1402_v42, 4  ;;  %v7286_v20 = vld [vmem:[%s6018_s9 + $0xb0] sm:$0x1] }
  0xe6   : > { %8599 = vst [vmem:[#allocation24_spill] sm:$0xff] %v7261_v16  ;;  %v1118_v39 = vrot.slane %v1117_v49, 4  ;;  %v1576_v31 = vrot.slane %v1574_v19, 4  ;;  %v1579_v25 = vrot.slane %v1577_v11, 5  ;;  %v1583_v28 = vshll.u32 %v7248_v24, 16 }
  0xe7   : > { %v1587_v48 = vshrl.u32 %v7248_v24, 16  ;;  %v1593_v41 = vshll.u32 %v7251_v58, 16  ;;  %3783 = vmatprep.mubr.bf16.mxu1 %v4852_v12  ;;  %v1406_v18 = vsel %vm6254_vm5, %v1404_v23, %v1405_v26  ;;  %v1131_v42 = vor.u32 %v7125_v37, %v7085_v3  ;;  %v4638_v11 = vld [vmem:[%s6018_s9 + $0xa8] sm:$0xe] }
  0xe8   : > { %v7270_v45 = vsel %vm6060_vm2, %v1118_v39, %v1122_v60  ;;  %v1134_v6 = vshll.u32 %v6876_v35, 16  ;;  %3784 = vmatmul.mubr.bf16.gmra.mrb[92].mxu1 %v4836_v2  ;;  %v4829_v49 = vcombine.low %v1403_v56, %v1406_v18  ;;  %v1580_v19 = vor.u32 %v1579_v25, %v1576_v31 }
  0xe9   : > { %8600 = vst [vmem:[#allocation25_spill] sm:$0xff] %v7270_v45  ;;  %v4812_v59 = vcombine.low %v7261_v16, %v7270_v45  ;;  %v7281_v60 = vrot.slane %v1173_v62, 4  ;;  %v1585_v30 = vrot.slane %v1583_v28, 5  ;;  %v1589_v26 = vrot.slane %v1587_v48, 4  ;;  %v7290_v28 = vld [vmem:[%s6018_s9 + $0x54] sm:$0xf] }
  0xea   : > { %v1132_v57 = vrot.slane %v1131_v42, 4  ;;  %v1581_v3 = vrot.slane %v1580_v19, 4  ;;  %v1136_v37 = vrot.slane %v1134_v6, 5  ;;  %v8601_v12 = vshrl.u32 %v6876_v35, 16  ;;  %v7297_v42 = vld [vmem:[%s6018_s9 + $0x58] sm:$0xf] }
  0xeb   : > { %3687 = vmatmul.mubr.bf16.gmra.mrb[92].mxu0 %v4812_v59  ;;  %v1144_v23 = vshll.u32 %v4621_v51, 16  ;;  %v1590_v25 = vor.u32 %v1589_v26, %v1585_v30  ;;  %v1595_v2 = vrot.slane %v1593_v41, 5  ;;  %v4654_v56 = vrot.slane %v4638_v11, 9  ;;  %v7300_v51 = vld [vmem:[%s6018_s9 + $0x5c] sm:$0x1] }
  0xec   : > { %v1140_v39 = vrot.slane %v8601_v12, 4  ;;  %3694 = vmatprep.mubr.bf16.mxu0 %v4829_v49  ;;  %v1409_v62 = vrot.slane %v6936_v38, 5  ;;  %v1586_v31 = vsel %vm6060_vm2, %v1581_v3, %v1585_v30  ;;  %v4837_v35 = vcombine.low %v7242_v33, %v7248_v24  ;;  %v4639_v45 = vld [vmem:[%s6018_s9 + $0xb4] sm:$0xe] }
  0xed   : > { %v1146_v18 = vrot.slane %v1144_v23, 5  ;;  %v1591_v6 = vrot.slane %v1590_v25, 4  ;;  %v7304_v41 = vsel %vm6060_vm2, %v1132_v57, %v1136_v37  ;;  %v1412_v11 = vrot.slane %v7286_v20, 5 }
  0xee   : > { %v1141_v48 = vor.u32 %v1140_v39, %v1136_v37  ;;  %8602 = vst [vmem:[#allocation26_spill] sm:$0xff] %v7304_v41  ;;  %v1410_v59 = vsel %vm6254_vm5, %v4654_v56, %v1409_v62  ;;  %v1411_v49 = vrot.slane %v1409_v62, 4  ;;  %v1598_v30 = vshrl.u32 %v7290_v28, 16 }
  0xef   : > { %v1601_v33 = vshll.u32 %v7290_v28, 16  ;;  %v1596_v26 = vsel %vm6060_vm2, %v1591_v6, %v1595_v2  ;;  %v1607_v3 = vshll.u32 %v7297_v42, 16  ;;  %v1611_v57 = vshrl.u32 %v7297_v42, 16 }
  0xf0   : > { %v1142_v19 = vrot.slane %v1141_v48, 4  ;;  %v1617_v37 = vshll.u32 %v7300_v51, 16  ;;  %v4853_v12 = vcombine.low %v1586_v31, %v1596_v26  ;;  %v1413_v23 = vsel %vm6254_vm5, %v1411_v49, %v1412_v11  ;;  %v7333_v11 = vld [vmem:[%s6018_s9 + $0xbc] sm:$0x1] }
  0xf1   : > { %v1600_v25 = vrot.slane %v1598_v30, 4  ;;  %v8604_v56 = vshll.u32 %v6959_v0, 16  ;;  %v4830_v48 = vcombine.low %v1410_v59, %v1413_v23  ;;  %v1603_v6 = vrot.slane %v1601_v33, 5  ;;  %v7340_v23 = vld [vmem:[%s6018_s9 + $0x60] sm:$0xf] }
  0xf2   : > { %v7318_v39 = vsel %vm6060_vm2, %v1142_v19, %v1146_v18  ;;  %v1197_v31 = vshrl.u32 %v6999_v55, 16  ;;  %3791 = vmatprep.mubr.bf16.mxu1 %v4853_v12  ;;  %v1609_v18 = vrot.slane %v1607_v3, 5  ;;  %v1613_v19 = vrot.slane %v1611_v57, 4 }
  0xf3   : > { %8603 = vst [vmem:[#allocation27_spill] sm:$0xff] %v7318_v39  ;;  %v7324_v62 = vrot.slane %v8604_v56, 5  ;;  %v4813_v2 = vcombine.low %v7304_v41, %v7318_v39  ;;  %v1155_v49 = vor.u32 %v7191_v9, %v7136_v61  ;;  %3792 = vmatmul.mubr.bf16.gmra.mrb[96].mxu1 %v4837_v35  ;;  %v1604_v0 = vor.u32 %v1603_v6, %v1600_v25  ;;  %v7343_v61 = vld [vmem:[%s6018_s9 + $0x64] sm:$0xf]  ;;  %v7358_v39 = vld [vmem:[%s6018_s9 + $0x68] sm:$0x1] }
  0xf4   : > { %v1158_v30 = vshll.u32 %v6936_v38, 16  ;;  %v8605_v59 = vshrl.u32 %v6936_v38, 16  ;;  %v1168_v26 = vshll.u32 %v7286_v20, 16  ;;  %v1614_v3 = vor.u32 %v1613_v19, %v1609_v18 }
  0xf5   : > { %3695 = vmatmul.mubr.bf16.gmra.mrb[96].mxu0 %v4813_v2  ;;  %v1619_v57 = vrot.slane %v1617_v37, 5  ;;  %v1156_v12 = vrot.slane %v1155_v49, 4  ;;  %v4655_v56 = vrot.slane %v4639_v45, 9  ;;  %v1605_v9 = vrot.slane %v1604_v0, 4 }
  0xf6   : > { %v1164_v33 = vrot.slane %v8605_v59, 4  ;;  %3702 = vmatprep.mubr.bf16.mxu0 %v4830_v48  ;;  %v1160_v35 = vrot.slane %v1158_v30, 5  ;;  %v4838_v25 = vcombine.low %v7290_v28, %v7297_v42  ;;  %v1416_v38 = vrot.slane %v6966_v47, 5 }
  0xf7   : > { %v1615_v20 = vrot.slane %v1614_v3, 4  ;;  %v1419_v59 = vrot.slane %v7333_v11, 5  ;;  %v1622_v48 = vshrl.u32 %v7340_v23, 16  ;;  %v1625_v37 = vshll.u32 %v7340_v23, 16 }
  0xf8   : > { %v1610_v49 = vsel %vm6060_vm2, %v1605_v9, %v1609_v18  ;;  %v7355_v0 = vsel %vm6060_vm2, %v1156_v12, %v1160_v35  ;;  %v1165_v28 = vor.u32 %v1164_v33, %v1160_v35  ;;  %v1170_v30 = vrot.slane %v1168_v26, 5 }
  0xf9   : > { %8606 = vst [vmem:[#allocation28_spill] sm:$0xff] %v7355_v0  ;;  %v1620_v16 = vsel %vm6060_vm2, %v1615_v20, %v1619_v57  ;;  %v1417_v53 = vsel %vm6254_vm5, %v4655_v56, %v1416_v38  ;;  %v1418_v29 = vrot.slane %v1416_v38, 4  ;;  %v1624_v44 = vrot.slane %v1622_v48, 4 }
  0xfa   : > { %v4854_v12 = vcombine.low %v1610_v49, %v1620_v16  ;;  %v1166_v21 = vrot.slane %v1165_v28, 4  ;;  %v1627_v33 = vrot.slane %v1625_v37, 5  ;;  %v1631_v26 = vshll.u32 %v7343_v61, 16  ;;  %v4640_v28 = vld [vmem:[%s6018_s9 + $0xc0] sm:$0xe] }
  0xfb   : > { %v1420_v35 = vsel %vm6254_vm5, %v1418_v29, %v1419_v59  ;;  %v1635_v8 = vshrl.u32 %v7343_v61, 16  ;;  %v1641_v57 = vshll.u32 %v7358_v39, 16  ;;  %v1179_v56 = vor.u32 %v7324_v62, %v7281_v60 }
  0xfc   : > { %3799 = vmatprep.mubr.bf16.mxu1 %v4854_v12  ;;  %v7377_v38 = vsel %vm6060_vm2, %v1166_v21, %v1170_v30  ;;  %v4831_v16 = vcombine.low %v1417_v53, %v1420_v35  ;;  %v1628_v20 = vor.u32 %v1627_v33, %v1624_v44  ;;  %v1633_v48 = vrot.slane %v1631_v26, 5  ;;  %v7401_v35 = vld [vmem:[%s6018_s9 + $0xc8] sm:$0x1] }
  0xfd   : > { %8607 = vst [vmem:[#allocation29_spill] sm:$0xff] %v7377_v38  ;;  %v7379_v37 = vrot.slane %v1197_v31, 4  ;;  %v1200_v49 = vshll.u32 %v6999_v55, 16  ;;  %v4814_v29 = vcombine.low %v7355_v0, %v7377_v38  ;;  %3800 = vmatmul.mubr.bf16.gmra.mrb[100].mxu1 %v4838_v25  ;;  %v1637_v59 = vrot.slane %v1635_v8, 4 }
  0xfe   : > { %v1629_v32 = vrot.slane %v1628_v20, 4  ;;  %v1643_v60 = vrot.slane %v1641_v57, 5  ;;  %v1182_v62 = vshll.u32 %v6966_v47, 16  ;;  %v8608_v21 = vshrl.u32 %v6966_v47, 16 }
  0xff   : > { %3703 = vmatmul.mubr.bf16.gmra.mrb[100].mxu0 %v4814_v29  ;;  %v1638_v31 = vor.u32 %v1637_v59, %v1633_v48  ;;  %v1180_v55 = vrot.slane %v1179_v56, 4  ;;  %v1192_v30 = vshll.u32 %v7333_v11, 16  ;;  %v1210_v25 = vshrl.u32 %v7006_v27, 16  ;;  %v7408_v56 = vld [vmem:[%s6018_s9 + $0x6c] sm:$0xf] }
 0x100   : > { %v1188_v53 = vrot.slane %v8608_v21, 4  ;;  %3710 = vmatprep.mubr.bf16.mxu0 %v4831_v16  ;;  %v1184_v33 = vrot.slane %v1182_v62, 5  ;;  %v1634_v11 = vsel %vm6060_vm2, %v1629_v32, %v1633_v48  ;;  %v1202_v29 = vrot.slane %v1200_v49, 5  ;;  %v7426_v49 = vld [vmem:[%s6018_s9 + $0x74] sm:$0x1] }
 0x101   : > { %v5235_v2 = vpop.f32.mrb[0].mxu1  ;;  %v5163_v6 = vpop.f32.mrb[0].mxu0  ;;  %v1426_v62 = vrot.slane %v7401_v35, 5  ;;  %v1955_v14 = vrot.slane %v7248_v24, 5 }
 0x102   : > { %v5236_v45 = vpop.f32.mrb[1].mxu1  ;;  %v5164_v19 = vpop.f32.mrb[1].mxu0  ;;  %v7421_v48 = vsel %vm6060_vm2, %v1180_v55, %v1184_v33 }
 0x103   : > { %v5238_v3 = vpop.f32.mrb[2].mxu1  ;;  %v7360_v41 = vpop.f32.mrb[2].mxu0  ;;  %v7391_v12 = vadd.f32 %v5236_v45, %v5235_v2  ;;  %v7396_v26 = vadd.f32 %v5164_v19, %v5163_v6  ;;  %v1639_v2 = vrot.slane %v1638_v31, 4  ;;  %v4656_v45 = vrot.slane %v4640_v28, 9  ;;  %8611 = vst [vmem:[#allocation32_spill] sm:$0xff] %v7421_v48 }
 0x104   : > { %v5239_v18 = vpop.f32.mrb[3].mxu1  ;;  %v7366_v9 = vpop.f32.mrb[3].mxu0  ;;  %v1189_v6 = vor.u32 %v1188_v53, %v1184_v33  ;;  %v1194_v19 = vrot.slane %v1192_v30, 5  ;;  %v1423_v28 = vrot.slane %v7006_v27, 5  ;;  %v1649_v30 = vshll.u32 %v7408_v56, 16 }
 0x105   : > { %8609 = vst [vmem:[#allocation30_spill] sm:$0xff] %v7391_v12  ;;  %v7398_v47 = vadd.f32 %v5239_v18, %v5238_v3  ;;  %v4839_v3 = vcombine.low %v7340_v23, %v7343_v61  ;;  %v7415_v18 = vld [vmem:[%s6018_s9 + $0x70] sm:$0xf]  ;;  %v1644_v32 = vsel %vm6060_vm2, %v1639_v2, %v1643_v60  ;;  %v1646_v23 = vshrl.u32 %v7408_v56, 16 }
 0x106   : > { %v4855_v53 = vcombine.low %v1634_v11, %v1644_v32  ;;  %v1190_v31 = vrot.slane %v1189_v6, 4  ;;  %v1424_v60 = vsel %vm6254_vm5, %v4656_v45, %v1423_v28  ;;  %v1425_v2 = vrot.slane %v1423_v28, 4 }
 0x107   : > { %8610 = vst [vmem:[#allocation31_spill] sm:$0xff] %v7398_v47  ;;  %v1655_v55 = vshll.u32 %v7415_v18, 16  ;;  %v1659_v33 = vshrl.u32 %v7415_v18, 16  ;;  %v1648_v11 = vrot.slane %v1646_v23, 4  ;;  %v1651_v6 = vrot.slane %v1649_v30, 5 }
 0x108   : > { %3807 = vmatprep.mubr.bf16.mxu1 %v4855_v53  ;;  %v7436_v0 = vsel %vm6060_vm2, %v1190_v31, %v1194_v19  ;;  %v1665_v32 = vshll.u32 %v7426_v49, 16  ;;  %v1427_v45 = vsel %vm6254_vm5, %v1425_v2, %v1426_v62  ;;  %v7447_v19 = vadd.f32 %v7366_v9, %v7360_v41 }
 0x109   : > { %v7388_v44 = vpop.f32.mrb[4].mxu0  ;;  %v5241_v20 = vpop.f32.mrb[4].mxu1  ;;  %8612 = vst [vmem:[#allocation33_spill] sm:$0xff] %v7436_v0  ;;  %v4815_v4 = vcombine.low %v7421_v48, %v7436_v0  ;;  %3808 = vmatmul.mubr.bf16.gmra.mrb[104].mxu1 %v4839_v3  ;;  %v1657_v28 = vrot.slane %v1655_v55, 5  ;;  %v4832_v50 = vcombine.low %v1424_v60, %v1427_v45  ;;  %v1652_v7 = vor.u32 %v1651_v6, %v1648_v11 }
 0x10a   : > { %v7393_v8 = vpop.f32.mrb[5].mxu0  ;;  %v5242_v59 = vpop.f32.mrb[5].mxu1  ;;  %v1661_v46 = vrot.slane %v1659_v33, 4  ;;  %v1203_v31 = vor.u32 %v1202_v29, %v7379_v37  ;;  %v1206_v23 = vshll.u32 %v7006_v27, 16  ;;  %v1212_v3 = vrot.slane %v1210_v25, 4 }
 0x10b   : > { %v7403_v57 = vpop.f32.mrb[6].mxu0  ;;  %v5244_v21 = vpop.f32.mrb[6].mxu1  ;;  %3711 = vmatmul.mubr.bf16.gmra.mrb[104].mxu0 %v4815_v4  ;;  %v1653_v62 = vrot.slane %v1652_v7, 4  ;;  %v1667_v2 = vrot.slane %v1665_v32, 5  ;;  %v1216_v55 = vshll.u32 %v7401_v35, 16  ;;  %v7456_v9 = vadd.f32 %v5242_v59, %v5241_v20 }
 0x10c   : > { %v7410_v16 = vpop.f32.mrb[7].mxu0  ;;  %v5245_v38 = vpop.f32.mrb[7].mxu1  ;;  %3718 = vmatprep.mubr.bf16.mxu0 %v4832_v50  ;;  %v1662_v60 = vor.u32 %v1661_v46, %v1657_v28  ;;  %v1204_v33 = vrot.slane %v1203_v31, 4  ;;  %v1208_v41 = vrot.slane %v1206_v23, 5  ;;  %v7459_v37 = vld [vmem:[%s6018_s9 + $0x78] sm:$0xf]  ;;  %v7467_v7 = vadd.f32 %v7393_v8, %v7388_v44 }
 0x10d   : > { %8613 = vst [vmem:[#allocation34_spill] sm:$0xff] %v7456_v9  ;;  %v1658_v46 = vsel %vm6060_vm2, %v1653_v62, %v1657_v28  ;;  %v1218_v11 = vrot.slane %v1216_v55, 5  ;;  %v7469_v6 = vadd.f32 %v5245_v38, %v5244_v21  ;;  %v7472_v20 = vld [vmem:[%s6018_s9 + $0x7c] sm:$0xf]  ;;  %v7475_v59 = vld [vmem:[%s6018_s9 + $0x80] sm:$0x1]  ;;  %v4840_v28 = vcombine.low %v7408_v56, %v7415_v18 }
 0x10e   : > { %v1663_v50 = vrot.slane %v1662_v60, 4  ;;  %v1213_v29 = vor.u32 %v1212_v3, %v1208_v41  ;;  %v1670_v31 = vshrl.u32 %v7459_v37, 16  ;;  %v4705_v44 = vld [vmem:[%s6018_s9 + $0x18] sm:$0xe]  ;;  %v7485_v38 = vsel %vm6060_vm2, %v1204_v33, %v1208_v41 }
 0x10f   : > { %8614 = vst [vmem:[#allocation35_spill] sm:$0xff] %v7469_v6  ;;  %8615 = vst [vmem:[#allocation36_spill] sm:$0xff] %v7485_v38  ;;  %v1673_v3 = vshll.u32 %v7459_v37, 16  ;;  %v1679_v60 = vshll.u32 %v7472_v20, 16  ;;  %v1689_v56 = vshll.u32 %v7475_v59, 16  ;;  %v1927_v33 = vrot.slane %v7057_v15, 5 }
 0x110   : > { %v1668_v45 = vsel %vm6060_vm2, %v1663_v50, %v1667_v2  ;;  %v1214_v21 = vrot.slane %v1213_v29, 4  ;;  %v1672_v62 = vrot.slane %v1670_v31, 4  ;;  %v1683_v2 = vshrl.u32 %v7472_v20, 16  ;;  %v4706_v31 = vld [vmem:[%s6018_s9 + $0x24] sm:$0xe] }
 0x111   : > { %v7443_v53 = vpop.f32.mrb[8].mxu0  ;;  %v5247_v27 = vpop.f32.mrb[8].mxu1  ;;  %v4856_v23 = vcombine.low %v1658_v46, %v1668_v45  ;;  %v1675_v46 = vrot.slane %v1673_v3, 5  ;;  %v4721_v50 = vrot.slane %v4705_v44, 9  ;;  %v1681_v29 = vrot.slane %v1679_v60, 5 }
 0x112   : > { %v7451_v30 = vpop.f32.mrb[9].mxu0  ;;  %v5248_v35 = vpop.f32.mrb[9].mxu1  ;;  %v7493_v55 = vsel %vm6060_vm2, %v1214_v21, %v1218_v11  ;;  %v1685_v45 = vrot.slane %v1683_v2, 4  ;;  %v1937_v0 = vrot.slane %v7116_v40, 5  ;;  %v1691_v1 = vrot.slane %v1689_v56, 5 }
 0x113   : > { %v7454_v4 = vpop.f32.mrb[10].mxu0  ;;  %v5250_v32 = vpop.f32.mrb[10].mxu1  ;;  %3815 = vmatprep.mubr.bf16.mxu1 %v4856_v23  ;;  %8616 = vst [vmem:[#allocation37_spill] sm:$0xff] %v7493_v55  ;;  %v4816_v41 = vcombine.low %v7485_v38, %v7493_v55  ;;  %v1676_v48 = vor.u32 %v1675_v46, %v1672_v62  ;;  %v1929_v23 = vrot.slane %v1927_v33, 4  ;;  %v1928_v15 = vsel %vm6254_vm5, %v4721_v50, %v1927_v33  ;;  %v7532_v33 = vld [vmem:[%s6018_s9 + $0x88] sm:$0xf] }
 0x114   : > { %v7461_v25 = vpop.f32.mrb[11].mxu0  ;;  %v5251_v8 = vpop.f32.mrb[11].mxu1  ;;  %3816 = vmatmul.mubr.bf16.gmra.mrb[108].mxu1 %v4840_v28  ;;  %v1686_v11 = vor.u32 %v1685_v45, %v1681_v29  ;;  %v1930_v44 = vrot.slane %v7064_v10, 5  ;;  %v7507_v28 = vadd.f32 %v7410_v16, %v7403_v57  ;;  %v4722_v3 = vrot.slane %v4706_v31, 9  ;;  %v7523_v16 = vld [vmem:[%s6018_s9 + $0x84] sm:$0xf] }
 0x115   : > { %3719 = vmatmul.mubr.bf16.gmra.mrb[108].mxu0 %v4816_v41  ;;  %v1677_v40 = vrot.slane %v1676_v48, 4  ;;  %v1934_v62 = vrot.slane %v7105_v36, 5  ;;  %v7512_v60 = vadd.f32 %v5248_v35, %v5247_v27  ;;  %v7520_v57 = vadd.f32 %v7451_v30, %v7443_v53  ;;  %v7541_v31 = vld [vmem:[%s6018_s9 + $0x8c] sm:$0x1] }
 0x116   : > { %v1687_v56 = vrot.slane %v1686_v11, 4  ;;  %v1931_v10 = vsel %vm6254_vm5, %v1929_v23, %v1930_v44  ;;  %v4841_v30 = vcombine.low %v7459_v37, %v7472_v20  ;;  %v7538_v45 = vadd.f32 %v5251_v8, %v5250_v32  ;;  %v4707_v23 = vld [vmem:[%s6018_s9 + $0x30] sm:$0xe] }
 0x117   : > { %8617 = vst [vmem:[#allocation38_spill] sm:$0xff] %v7512_v60  ;;  %v1682_v36 = vsel %vm6060_vm2, %v1677_v40, %v1681_v29  ;;  %v4865_v27 = vcombine.low %v1928_v15, %v1931_v10  ;;  %v1935_v35 = vsel %vm6254_vm5, %v4722_v3, %v1934_v62  ;;  %v1936_v50 = vrot.slane %v1934_v62, 4 }
 0x118   : > { %v1692_v53 = vsel %vm6060_vm2, %v1687_v56, %v1691_v1  ;;  %8618 = vst [vmem:[#allocation39_spill] sm:$0xff] %v7538_v45  ;;  %v1694_v44 = vshrl.u32 %v7523_v16, 16  ;;  %v1697_v40 = vshll.u32 %v7523_v16, 16  ;;  %v1703_v37 = vshll.u32 %v7532_v33, 16 }
 0x119   : > { %v7500_v54 = vpop.f32.mrb[12].mxu0  ;;  %v5253_v48 = vpop.f32.mrb[12].mxu1  ;;  %v4857_v11 = vcombine.low %v1682_v36, %v1692_v53  ;;  %5635 = vmatprep.mubr.bf16.mxu0 %v4865_v27  ;;  %v1938_v15 = vsel %vm6254_vm5, %v1936_v50, %v1937_v0  ;;  %v1707_v32 = vshrl.u32 %v7532_v33, 16  ;;  %v1713_v56 = vshll.u32 %v7541_v31, 16  ;;  %v4708_v36 = vld [vmem:[%s6018_s9 + $0x3c] sm:$0xe] }
 0x11a   : > { %v7509_v21 = vpop.f32.mrb[13].mxu0  ;;  %v5254_v41 = vpop.f32.mrb[13].mxu1  ;;  %v4866_v3 = vcombine.low %v1935_v35, %v1938_v15  ;;  %v1696_v8 = vrot.slane %v1694_v44, 4  ;;  %v1699_v62 = vrot.slane %v1697_v40, 5  ;;  %v4723_v10 = vrot.slane %v4707_v23, 9 }
 0x11b   : > { %v7514_v2 = vpop.f32.mrb[14].mxu0  ;;  %v5256_v29 = vpop.f32.mrb[14].mxu1  ;;  %3823 = vmatprep.mubr.bf16.mxu1 %v4857_v11  ;;  %v1705_v0 = vrot.slane %v1703_v37, 5  ;;  %v1709_v27 = vrot.slane %v1707_v32, 4  ;;  %v1941_v50 = vrot.slane %v7160_v17, 5  ;;  %v1944_v53 = vrot.slane %v7166_v13, 5 }
 0x11c   : > { %v7525_v46 = vpop.f32.mrb[15].mxu0  ;;  %v5257_v1 = vpop.f32.mrb[15].mxu1  ;;  %3824 = vmatmul.mubr.bf16.gmra.mrb[112].mxu1 %v4841_v30  ;;  %v1700_v35 = vor.u32 %v1699_v62, %v1696_v8  ;;  %v1715_v15 = vrot.slane %v1713_v56, 5  ;;  %v7556_v55 = vadd.f32 %v7461_v25, %v7454_v4  ;;  %v4724_v30 = vrot.slane %v4708_v36, 9  ;;  %v7567_v17 = vld [vmem:[%s8531_s2] ss:$0 sm:$0xff] }
 0x11d   : > { %5636 = vmatmul.mubr.bf16.vlgmr.msra.gmra.mrb[112].mxu0 %v4866_v3  ;;  %v1710_v11 = vor.u32 %v1709_v27, %v1705_v0  ;;  %v1942_v23 = vsel %vm6254_vm5, %v4723_v10, %v1941_v50  ;;  %v1943_v44 = vrot.slane %v1941_v50, 4  ;;  %v1948_v4 = vrot.slane %v7204_v63, 5  ;;  %v7584_v36 = vld [vmem:[%s6018_s9 + $0x90] sm:$0xf] }
 0x11e   : > { %v1701_v13 = vrot.slane %v1700_v35, 4  ;;  %v1951_v25 = vrot.slane %v7217_v52, 5  ;;  %v7577_v56 = vadd.f32 %v5254_v41, %v5253_v48  ;;  %v7581_v10 = vadd.f32 %v7509_v21, %v7500_v54 }
 0x11f   : > { %v1711_v8 = vrot.slane %v1710_v11, 4  ;;  %v1945_v62 = vsel %vm6254_vm5, %v1943_v44, %v1944_v53  ;;  %v1949_v48 = vsel %vm6254_vm5, %v4724_v30, %v1948_v4  ;;  %v1950_v41 = vrot.slane %v1948_v4, 4  ;;  %v7595_v53 = vld [vmem:[%s6018_s9 + $0x94] sm:$0xf]  ;;  %v4709_v30 = vld [vmem:[%s6018_s9 + $0x48] sm:$0xe] }
 0x120   : > { %8619 = vst [vmem:[#allocation40_spill] sm:$0xff] %v7577_v56  ;;  %v1706_v27 = vsel %vm6060_vm2, %v1701_v13, %v1705_v0  ;;  %v4867_v50 = vcombine.low %v1942_v23, %v1945_v62  ;;  %v3279_v21 = vadd.f32 %v7396_v26, %v7567_v17  ;;  %v4842_v44 = vcombine.low %v7523_v16, %v7532_v33  ;;  %v7608_v23 = vld [vmem:[%s6018_s9 + $0x98] sm:$0x1] }
 0x121   : > { %v7560_v40 = vpop.f32.mrb[16].mxu1  ;;  %v1716_v11 = vsel %vm6060_vm2, %v1711_v8, %v1715_v15  ;;  %v7605_v0 = vadd.f32 %v5257_v1, %v5256_v29  ;;  %v1952_v4 = vsel %vm6254_vm5, %v1950_v41, %v1951_v25  ;;  %v1718_v62 = vshrl.u32 %v7584_v36, 16 }
 0x122   : > { %v7571_v37 = vpop.f32.mrb[17].mxu1  ;;  %v4858_v13 = vcombine.low %v1706_v27, %v1716_v11  ;;  %5639 = vmatprep.mubr.bf16.mxu0 %v4867_v50  ;;  %v1721_v26 = vshll.u32 %v7584_v36, 16  ;;  %v3282_v15 = vadd.f32 %v7447_v19, %v7567_v17  ;;  %v4868_v8 = vcombine.low %v1949_v48, %v1952_v4  ;;  %v4710_v11 = vld [vmem:[%s6018_s9 + $0x54] sm:$0xe] }
 0x123   : > { %v7562_v3 = vpop.f32.mrb[16].mxu0  ;;  %v7586_v63 = vpop.f32.mrb[18].mxu1  ;;  %8620 = vst [vmem:[#allocation41_spill] sm:$0xff] %v7605_v0  ;;  %v1727_v16 = vshll.u32 %v7595_v53, 16  ;;  %v1731_v29 = vshrl.u32 %v7595_v53, 16  ;;  %v1720_v1 = vrot.slane %v1718_v62, 4  ;;  %v7627_v4 = vadd.f32 %v7467_v7, %v7567_v17 }
 0x124   : > { %v7573_v32 = vpop.f32.mrb[17].mxu0  ;;  %v5279_v35 = vpop.f32.mrb[19].mxu1  ;;  %3831 = vmatprep.mubr.bf16.mxu1 %v4858_v13  ;;  %v1723_v38 = vrot.slane %v1721_v26, 5  ;;  %v1737_v27 = vshll.u32 %v7608_v23, 16  ;;  %v4725_v50 = vrot.slane %v4709_v30, 9  ;;  %v1958_v19 = vrot.slane %v7251_v58, 5 }
 0x125   : > { %v7588_v52 = vpop.f32.mrb[18].mxu0  ;;  %3832 = vmatmul.mubr.bf16.gmra.mrb[116].mxu1 %v4842_v44  ;;  %5640 = vmatmul.mubr.bf16.gmra.mrb[116].mxu0 %v4868_v8  ;;  %v1729_v25 = vrot.slane %v1727_v16, 5  ;;  %v1733_v41 = vrot.slane %v1731_v29, 4  ;;  %v7631_v30 = vadd.f32 %v7525_v46, %v7514_v2  ;;  %v1957_v58 = vrot.slane %v1955_v14, 4 }
 0x126   : > { %v7597_v54 = vpop.f32.mrb[19].mxu0  ;;  %v1724_v13 = vor.u32 %v1723_v38, %v1720_v1  ;;  %v1739_v62 = vrot.slane %v1737_v27, 5  ;;  %v1956_v24 = vsel %vm6254_vm5, %v4725_v50, %v1955_v14  ;;  %v4726_v16 = vrot.slane %v4710_v11, 9 }
 0x127   : > { %v1734_v8 = vor.u32 %v1733_v41, %v1729_v25  ;;  %v7645_v38 = vadd.f32 %v7507_v28, %v7567_v17  ;;  %v1962_v46 = vrot.slane %v7297_v42, 5  ;;  %v1965_v1 = vrot.slane %v7300_v51, 5  ;;  %v7662_v42 = vld [vmem:[%s6018_s9 + $0x9c] sm:$0xf] }
 0x128   : > { %v1725_v2 = vrot.slane %v1724_v13, 4  ;;  %v1959_v50 = vsel %vm6254_vm5, %v1957_v58, %v1958_v19  ;;  %v5277_v28 = vadd.f32 %v7571_v37, %v7560_v40  ;;  %v7659_v11 = vadd.f32 %v7573_v32, %v7562_v3  ;;  %v7671_v19 = vld [vmem:[%s6018_s9 + $0xa0] sm:$0xf]  ;;  %v7681_v58 = vld [vmem:[%s6018_s9 + $0xa4] sm:$0x1] }
 0x129   : > { %v7623_v48 = vpop.f32.mrb[20].mxu1  ;;  %v1735_v14 = vrot.slane %v1734_v8, 4  ;;  %v4869_v5 = vcombine.low %v1956_v24, %v1959_v50  ;;  %v1963_v8 = vsel %vm6254_vm5, %v4726_v16, %v1962_v46  ;;  %v1964_v43 = vrot.slane %v1962_v46, 4 }
 0x12a   : > { %v7633_v44 = vpop.f32.mrb[21].mxu1  ;;  %v1730_v13 = vsel %vm6060_vm2, %v1725_v2, %v1729_v25  ;;  %v4843_v3 = vcombine.low %v7584_v36, %v7595_v53  ;;  %v7677_v37 = vadd.f32 %v5277_v28, %v3279_v21  ;;  %v5280_v32 = vadd.f32 %v5279_v35, %v7586_v63  ;;  %v4711_v25 = vld [vmem:[%s6018_s9 + $0x60] sm:$0xe]  ;;  %v4712_v63 = vld [vmem:[%s6018_s9 + $0x6c] sm:$0xe] }
 0x12b   : > { %v7635_v26 = vpop.f32.mrb[20].mxu0  ;;  %v7639_v29 = vpop.f32.mrb[22].mxu1  ;;  %v1740_v40 = vsel %vm6060_vm2, %v1735_v14, %v1739_v62  ;;  %5643 = vmatprep.mubr.bf16.mxu0 %v4869_v5  ;;  %v1966_v16 = vsel %vm6254_vm5, %v1964_v43, %v1965_v1  ;;  %v1742_v2 = vshrl.u32 %v7662_v42, 16  ;;  %v1745_v46 = vshll.u32 %v7662_v42, 16 }
 0x12c   : > { %v7641_v7 = vpop.f32.mrb[21].mxu0  ;;  %v7649_v27 = vpop.f32.mrb[23].mxu1  ;;  %v4859_v24 = vcombine.low %v1730_v13, %v1740_v40  ;;  %v4870_v62 = vcombine.low %v1963_v8, %v1966_v16  ;;  %v7688_v14 = vadd.f32 %v5280_v32, %v3282_v15  ;;  %v1751_v36 = vshll.u32 %v7671_v19, 16 }
 0x12d   : > { %v7651_v41 = vpop.f32.mrb[22].mxu0  ;;  %v1755_v21 = vshrl.u32 %v7671_v19, 16  ;;  %v1744_v50 = vrot.slane %v1742_v2, 4  ;;  %v1747_v5 = vrot.slane %v1745_v46, 5  ;;  %v1761_v28 = vshll.u32 %v7681_v58, 16 }
 0x12e   : > { %v7664_v51 = vpop.f32.mrb[23].mxu0  ;;  %3839 = vmatprep.mubr.bf16.mxu1 %v4859_v24  ;;  %v4727_v43 = vrot.slane %v4711_v25, 9  ;;  %5644 = vmatmul.mubr.bf16.gmra.mrb[120].mxu0 %v4870_v62  ;;  %v1753_v15 = vrot.slane %v1751_v36, 5  ;;  %v1969_v40 = vrot.slane %v7343_v61, 5  ;;  %v1972_v32 = vrot.slane %v7358_v39, 5 }
 0x12f   : > { %3840 = vmatmul.mubr.bf16.gmra.mrb[120].mxu1 %v4843_v3  ;;  %v1757_v8 = vrot.slane %v1755_v21, 4  ;;  %v7708_v2 = vadd.f32 %v7520_v57, %v7567_v17  ;;  %v1748_v25 = vor.u32 %v1747_v5, %v1744_v50  ;;  %v1763_v46 = vrot.slane %v1761_v28, 5 }
 0x130   : > { %v7712_v3 = vadd.f32 %v7597_v54, %v7588_v52  ;;  %v1970_v36 = vsel %vm6254_vm5, %v4727_v43, %v1969_v40  ;;  %v1971_v21 = vrot.slane %v1969_v40, 4  ;;  %v4728_v0 = vrot.slane %v4712_v63, 9 }
 0x131   : > { %v7693_v35 = vpop.f32.mrb[24].mxu1  ;;  %v1758_v39 = vor.u32 %v1757_v8, %v1753_v15  ;;  %v7724_v50 = vadd.f32 %v7556_v55, %v7567_v17  ;;  %v1749_v52 = vrot.slane %v1748_v25, 4  ;;  %v1976_v54 = vrot.slane %v7415_v18, 5  ;;  %v7737_v55 = vld [vmem:[%s6018_s9 + $0xa8] sm:$0xf] }
 0x132   : > { %v7696_v1 = vpop.f32.mrb[25].mxu1  ;;  %v1979_v5 = vrot.slane %v7426_v49, 5  ;;  %v1973_v43 = vsel %vm6254_vm5, %v1971_v21, %v1972_v32  ;;  %v5283_v63 = vadd.f32 %v7633_v44, %v7623_v48  ;;  %v7734_v8 = vadd.f32 %v7641_v7, %v7635_v26  ;;  %v7756_v7 = vld [vmem:[%s6018_s9 + $0xb0] sm:$0x1] }
 0x133   : > { %v7698_v13 = vpop.f32.mrb[24].mxu0  ;;  %v7702_v16 = vpop.f32.mrb[26].mxu1  ;;  %v1759_v28 = vrot.slane %v1758_v39, 4  ;;  %v1754_v18 = vsel %vm6060_vm2, %v1749_v52, %v1753_v15  ;;  %v4871_v40 = vcombine.low %v1970_v36, %v1973_v43  ;;  %v1977_v49 = vsel %vm6254_vm5, %v4728_v0, %v1976_v54  ;;  %v7744_v39 = vld [vmem:[%s6018_s9 + $0xac] sm:$0xf] }
 0x134   : > { %v7704_v24 = vpop.f32.mrb[25].mxu0  ;;  %v7714_v62 = vpop.f32.mrb[27].mxu1  ;;  %v1978_v25 = vrot.slane %v1976_v54, 4  ;;  %v4844_v48 = vcombine.low %v7662_v42, %v7671_v19  ;;  %v7751_v44 = vadd.f32 %v5283_v63, %v7627_v4  ;;  %v5286_v26 = vadd.f32 %v7649_v27, %v7639_v29  ;;  %v4713_v15 = vld [vmem:[%s6018_s9 + $0x78] sm:$0xe] }
 0x135   : > { %v7716_v61 = vpop.f32.mrb[26].mxu0  ;;  %v1764_v32 = vsel %vm6060_vm2, %v1759_v28, %v1763_v46  ;;  %5647 = vmatprep.mubr.bf16.mxu0 %v4871_v40  ;;  %v1766_v21 = vshrl.u32 %v7737_v55, 16  ;;  %v1769_v42 = vshll.u32 %v7737_v55, 16  ;;  %v1775_v27 = vshll.u32 %v7744_v39, 16  ;;  %v4714_v43 = vld [vmem:[%s6018_s9 + $0x84] sm:$0xe] }
 0x136   : > { %v7720_v57 = vpop.f32.mrb[27].mxu0  ;;  %v4860_v36 = vcombine.low %v1754_v18, %v1764_v32  ;;  %v1980_v46 = vsel %vm6254_vm5, %v1978_v25, %v1979_v5  ;;  %v7770_v29 = vadd.f32 %v5286_v26, %v7645_v38  ;;  %v1779_v28 = vshrl.u32 %v7744_v39, 16 }
 0x137   : > { %v4872_v54 = vcombine.low %v1977_v49, %v1980_v46  ;;  %v1768_v18 = vrot.slane %v1766_v21, 4  ;;  %v1771_v40 = vrot.slane %v1769_v42, 5  ;;  %v1785_v25 = vshll.u32 %v7756_v7, 16 }
 0x138   : > { %3847 = vmatprep.mubr.bf16.mxu1 %v4860_v36  ;;  %v4729_v32 = vrot.slane %v4713_v15, 9  ;;  %v1777_v38 = vrot.slane %v1775_v27, 5  ;;  %v1781_v26 = vrot.slane %v1779_v28, 4  ;;  %v1983_v46 = vrot.slane %v7472_v20, 5 }
 0x139   : > { %v7759_v0 = vpop.f32.mrb[28].mxu1  ;;  %3848 = vmatmul.mubr.bf16.gmra.mrb[124].mxu1 %v4844_v48  ;;  %5648 = vmatmul.mubr.bf16.gmra.mrb[124].mxu0 %v4872_v54  ;;  %v1986_v45 = vrot.slane %v7475_v59, 5  ;;  %v7790_v36 = vadd.f32 %v7581_v10, %v7567_v17  ;;  %v1772_v15 = vor.u32 %v1771_v40, %v1768_v18  ;;  %v1787_v21 = vrot.slane %v1785_v25, 5 }
 0x13a   : > { %v7765_v4 = vpop.f32.mrb[29].mxu1  ;;  %v7794_v42 = vadd.f32 %v7664_v51, %v7651_v41  ;;  %v1782_v48 = vor.u32 %v1781_v26, %v1777_v38  ;;  %v1984_v54 = vsel %vm6254_vm5, %v4729_v32, %v1983_v46  ;;  %v1985_v20 = vrot.slane %v1983_v46, 4  ;;  %v7822_v26 = vld [vmem:[%s6018_s9 + $0xb8] sm:$0xf] }
 0x13b   : > { %v7767_v52 = vpop.f32.mrb[28].mxu0  ;;  %v7775_v63 = vpop.f32.mrb[30].mxu1  ;;  %v4730_v59 = vrot.slane %v4714_v43, 9  ;;  %v7800_v27 = vadd.f32 %v7631_v30, %v7567_v17  ;;  %v1773_v10 = vrot.slane %v1772_v15, 4  ;;  %v1990_v28 = vrot.slane %v7532_v33, 5 }
 0x13c   : > { %v7777_v5 = vpop.f32.mrb[29].mxu0  ;;  %v7780_v56 = vpop.f32.mrb[31].mxu1  ;;  %v1993_v18 = vrot.slane %v7541_v31, 5  ;;  %v1783_v40 = vrot.slane %v1782_v48, 4  ;;  %v1987_v41 = vsel %vm6254_vm5, %v1985_v20, %v1986_v45  ;;  %v5289_v51 = vadd.f32 %v7696_v1, %v7693_v35  ;;  %v7813_v30 = vld [vmem:[%s6018_s9 + $0xb4] sm:$0xf] }
 0x13d   : > { %v7782_v49 = vpop.f32.mrb[30].mxu0  ;;  %v7810_v43 = vadd.f32 %v7704_v24, %v7698_v13  ;;  %v1778_v33 = vsel %vm6060_vm2, %v1773_v10, %v1777_v38  ;;  %v4873_v31 = vcombine.low %v1984_v54, %v1987_v41  ;;  %v1991_v45 = vsel %vm6254_vm5, %v4730_v59, %v1990_v28  ;;  %v7838_v15 = vld [vmem:[%s6018_s9 + $0xbc] sm:$0x1]  ;;  %v4715_v48 = vld [vmem:[%s6018_s9 + $0x90] sm:$0xe] }
 0x13e   : > { %v7786_v60 = vpop.f32.mrb[31].mxu0  ;;  %v1992_v32 = vrot.slane %v1990_v28, 4  ;;  %v1788_v13 = vsel %vm6060_vm2, %v1783_v40, %v1787_v21  ;;  %v4845_v24 = vcombine.low %v7737_v55, %v7744_v39  ;;  %v7833_v46 = vadd.f32 %v5289_v51, %v7708_v2 }
 0x13f   : > { %v5292_v38 = vadd.f32 %v7714_v62, %v7702_v16  ;;  %v4861_v59 = vcombine.low %v1778_v33, %v1788_v13  ;;  %5651 = vmatprep.mubr.bf16.mxu0 %v4873_v31  ;;  %v1790_v55 = vshrl.u32 %v7813_v30, 16  ;;  %v1793_v2 = vshll.u32 %v7813_v30, 16  ;;  %v4716_v13 = vld [vmem:[%s6018_s9 + $0x9c] sm:$0xe] }
 0x140   : > { %v1994_v21 = vsel %vm6254_vm5, %v1992_v32, %v1993_v18  ;;  %v1799_v40 = vshll.u32 %v7822_v26, 16  ;;  %v1803_v41 = vshrl.u32 %v7822_v26, 16  ;;  %v1809_v31 = vshll.u32 %v7838_v15, 16 }
 0x141   : > { %v7815_v25 = vpop.f32.mrb[32].mxu1  ;;  %v4874_v62 = vcombine.low %v1991_v45, %v1994_v21  ;;  %v7854_v28 = vadd.f32 %v5292_v38, %v7724_v50  ;;  %3855 = vmatprep.mubr.bf16.mxu1 %v4861_v59  ;;  %v1792_v18 = vrot.slane %v1790_v55, 4  ;;  %v1795_v33 = vrot.slane %v1793_v2, 5 }
 0x142   : > { %v7824_v35 = vpop.f32.mrb[33].mxu1  ;;  %v4731_v32 = vrot.slane %v4715_v48, 9  ;;  %3856 = vmatmul.mubr.bf16.gmra.mrb[128].mxu1 %v4845_v24  ;;  %v1801_v6 = vrot.slane %v1799_v40, 5  ;;  %v1805_v45 = vrot.slane %v1803_v41, 4  ;;  %v1997_v50 = vrot.slane %v7595_v53, 5 }
 0x143   : > { %v7826_v1 = vpop.f32.mrb[32].mxu0  ;;  %v7841_v54 = vpop.f32.mrb[34].mxu1  ;;  %5652 = vmatmul.mubr.bf16.gmra.mrb[128].mxu0 %v4874_v62  ;;  %v2000_v38 = vrot.slane %v7608_v23, 5  ;;  %v7866_v21 = vadd.f32 %v7659_v11, %v7567_v17  ;;  %v1796_v9 = vor.u32 %v1795_v33, %v1792_v18  ;;  %v1811_v59 = vrot.slane %v1809_v31, 5 }
 0x144   : > { %v7843_v20 = vpop.f32.mrb[33].mxu0  ;;  %v7849_v10 = vpop.f32.mrb[35].mxu1  ;;  %v7870_v55 = vadd.f32 %v7720_v57, %v7716_v61  ;;  %v1806_v48 = vor.u32 %v1805_v45, %v1801_v6  ;;  %v1998_v24 = vsel %vm6254_vm5, %v4731_v32, %v1997_v50  ;;  %v1999_v2 = vrot.slane %v1997_v50, 4 }
 0x145   : > { %v7851_v16 = vpop.f32.mrb[34].mxu0  ;;  %v4732_v62 = vrot.slane %v4716_v13, 9  ;;  %v7878_v23 = vadd.f32 %v7712_v3, %v7567_v17  ;;  %v1797_v11 = vrot.slane %v1796_v9, 4  ;;  %v2004_v40 = vrot.slane %v7671_v19, 5  ;;  %v7895_v19 = vld [vmem:[%s6018_s9 + $0xc0] sm:$0xf] }
 0x146   : > { %v7858_v51 = vpop.f32.mrb[35].mxu0  ;;  %v2007_v61 = vrot.slane %v7681_v58, 5  ;;  %v1807_v18 = vrot.slane %v1806_v48, 4  ;;  %v2001_v33 = vsel %vm6254_vm5, %v1999_v2, %v2000_v38  ;;  %v5295_v31 = vadd.f32 %v7765_v4, %v7759_v0  ;;  %v7906_v4 = vld [vmem:[%s6018_s9 + $0xc4] sm:$0xf] }
 0x147   : > { %v7892_v9 = vadd.f32 %v7777_v5, %v7767_v52  ;;  %v1802_v32 = vsel %vm6060_vm2, %v1797_v11, %v1801_v6  ;;  %v4875_v13 = vcombine.low %v1998_v24, %v2001_v33  ;;  %v2005_v45 = vsel %vm6254_vm5, %v4732_v62, %v2004_v40  ;;  %v7922_v24 = vld [vmem:[%s6018_s9 + $0xc8] sm:$0x1]  ;;  %v4717_v2 = vld [vmem:[%s6018_s9 + $0xa8] sm:$0xe] }
 0x148   : > { %v2006_v0 = vrot.slane %v2004_v40, 4  ;;  %v1812_v5 = vsel %vm6060_vm2, %v1807_v18, %v1811_v59  ;;  %v4846_v38 = vcombine.low %v7813_v30, %v7822_v26  ;;  %v7917_v48 = vadd.f32 %v5295_v31, %v7790_v36 }
 0x149   : > { %v7874_v53 = vpop.f32.mrb[36].mxu1  ;;  %v5298_v6 = vadd.f32 %v7780_v56, %v7775_v63  ;;  %v4862_v11 = vcombine.low %v1802_v32, %v1812_v5  ;;  %5655 = vmatprep.mubr.bf16.mxu0 %v4875_v13  ;;  %v1814_v40 = vshrl.u32 %v7895_v19, 16  ;;  %v1817_v30 = vshll.u32 %v7895_v19, 16  ;;  %v4718_v5 = vld [vmem:[%s6018_s9 + $0xb4] sm:$0xe] }
 0x14a   : > { %v7882_v57 = vpop.f32.mrb[37].mxu1  ;;  %8621 = vst [vmem:[#allocation42_spill] sm:$0xff] %v7917_v48  ;;  %v2008_v59 = vsel %vm6254_vm5, %v2006_v0, %v2007_v61  ;;  %v1823_v56 = vshll.u32 %v7906_v4, 16  ;;  %v1827_v63 = vshrl.u32 %v7906_v4, 16  ;;  %v1833_v32 = vshll.u32 %v7922_v24, 16 }
 0x14b   : > { %v7884_v41 = vpop.f32.mrb[36].mxu0  ;;  %v7897_v58 = vpop.f32.mrb[38].mxu1  ;;  %v4876_v36 = vcombine.low %v2005_v45, %v2008_v59  ;;  %v7932_v18 = vadd.f32 %v5298_v6, %v7800_v27  ;;  %3863 = vmatprep.mubr.bf16.mxu1 %v4862_v11  ;;  %v1816_v33 = vrot.slane %v1814_v40, 4  ;;  %v1819_v31 = vrot.slane %v1817_v30, 5 }
 0x14c   : > { %v7899_v3 = vpop.f32.mrb[37].mxu0  ;;  %v7908_v50 = vpop.f32.mrb[39].mxu1  ;;  %v4733_v13 = vrot.slane %v4717_v2, 9  ;;  %3864 = vmatmul.mubr.bf16.gmra.mrb[132].mxu1 %v4846_v38  ;;  %v1825_v61 = vrot.slane %v1823_v56, 5  ;;  %v1829_v0 = vrot.slane %v1827_v63, 4  ;;  %v2011_v45 = vrot.slane %v7744_v39, 5 }
 0x14d   : > { %v7910_v52 = vpop.f32.mrb[38].mxu0  ;;  %8622 = vst [vmem:[#allocation43_spill] sm:$0xff] %v7932_v18  ;;  %5656 = vmatmul.mubr.bf16.gmra.mrb[132].mxu0 %v4876_v36  ;;  %v2014_v27 = vrot.slane %v7756_v7, 5  ;;  %v7944_v59 = vadd.f32 %v7734_v8, %v7567_v17  ;;  %v1820_v11 = vor.u32 %v1819_v31, %v1816_v33  ;;  %v1835_v40 = vrot.slane %v1833_v32, 5 }
 0x14e   : > { %v7925_v62 = vpop.f32.mrb[39].mxu0  ;;  %v7948_v2 = vadd.f32 %v7786_v60, %v7782_v49  ;;  %v1830_v36 = vor.u32 %v1829_v0, %v1825_v61  ;;  %v2012_v39 = vsel %vm6254_vm5, %v4733_v13, %v2011_v45  ;;  %v2013_v7 = vrot.slane %v2011_v45, 4 }
 0x14f   : > { %v4734_v56 = vrot.slane %v4718_v5, 9  ;;  %v7962_v33 = vadd.f32 %v7794_v42, %v7567_v17  ;;  %v1821_v60 = vrot.slane %v1820_v11, 4  ;;  %v2018_v49 = vrot.slane %v7822_v26, 5  ;;  %v7979_v26 = vld [vmem:[%s6018_s9 + $0xcc] sm:$0xf] }
 0x150   : > { %v2021_v31 = vrot.slane %v7838_v15, 5  ;;  %v1831_v13 = vrot.slane %v1830_v36, 4  ;;  %v2015_v5 = vsel %vm6254_vm5, %v2013_v7, %v2014_v27  ;;  %v5301_v42 = vadd.f32 %v7824_v35, %v7815_v25  ;;  %v7988_v27 = vld [vmem:[%s6018_s9 + $0xd0] sm:$0xf] }
 0x151   : > { %v7940_v6 = vpop.f32.mrb[40].mxu1  ;;  %v7976_v45 = vadd.f32 %v7843_v20, %v7826_v1  ;;  %v1826_v11 = vsel %vm6060_vm2, %v1821_v60, %v1825_v61  ;;  %v4877_v47 = vcombine.low %v2012_v39, %v2015_v5  ;;  %v2019_v36 = vsel %vm6254_vm5, %v4734_v56, %v2018_v49  ;;  %v4704_v61 = vld [vmem:[%s6018_s9 + $0xd4] sm:$0x1]  ;;  %v4719_v39 = vld [vmem:[%s6018_s9 + $0xc0] sm:$0xe] }
 0x152   : > { %v7950_v38 = vpop.f32.mrb[41].mxu1  ;;  %v2020_v12 = vrot.slane %v2018_v49, 4  ;;  %v1836_v25 = vsel %vm6060_vm2, %v1831_v13, %v1835_v40  ;;  %v4847_v35 = vcombine.low %v7895_v19, %v7906_v4  ;;  %v7995_v1 = vadd.f32 %v5301_v42, %v7866_v21 }
 0x153   : > { %v7952_v30 = vpop.f32.mrb[40].mxu0  ;;  %v7956_v63 = vpop.f32.mrb[42].mxu1  ;;  %v5304_v20 = vadd.f32 %v7849_v10, %v7841_v54  ;;  %v4863_v7 = vcombine.low %v1826_v11, %v1836_v25  ;;  %5659 = vmatprep.mubr.bf16.mxu0 %v4877_v47  ;;  %v1838_v60 = vshrl.u32 %v7979_v26, 16  ;;  %v1841_v40 = vshll.u32 %v7979_v26, 16  ;;  %v4720_v54 = vld [vmem:[%s6018_s9 + $0xcc] sm:$0xe] }
 0x154   : > { %v7958_v8 = vpop.f32.mrb[41].mxu0  ;;  %v7966_v32 = vpop.f32.mrb[43].mxu1  ;;  %8623 = vst [vmem:[#allocation44_spill] sm:$0xff] %v7995_v1  ;;  %v2022_v56 = vsel %vm6254_vm5, %v2020_v12, %v2021_v31  ;;  %v1847_v21 = vshll.u32 %v7988_v27, 16  ;;  %v1851_v13 = vshrl.u32 %v7988_v27, 16  ;;  %v1857_v42 = vshll.u32 %v4704_v61, 16 }
 0x155   : > { %v7968_v0 = vpop.f32.mrb[42].mxu0  ;;  %v4878_v49 = vcombine.low %v2019_v36, %v2022_v56  ;;  %v8006_v19 = vadd.f32 %v5304_v20, %v7878_v23  ;;  %3871 = vmatprep.mubr.bf16.mxu1 %v4863_v7  ;;  %v1840_v5 = vrot.slane %v1838_v60, 4  ;;  %v1843_v47 = vrot.slane %v1841_v40, 5 }
 0x156   : > { %v7981_v15 = vpop.f32.mrb[43].mxu0  ;;  %v4735_v11 = vrot.slane %v4719_v39, 9  ;;  %3872 = vmatmul.mubr.bf16.gmra.mrb[136].mxu1 %v4847_v35  ;;  %v1849_v25 = vrot.slane %v1847_v21, 5  ;;  %v1853_v36 = vrot.slane %v1851_v13, 4  ;;  %v2025_v23 = vrot.slane %v7906_v4, 5 }
 0x157   : > { %8624 = vst [vmem:[#allocation45_spill] sm:$0xff] %v8006_v19  ;;  %5660 = vmatmul.mubr.bf16.gmra.mrb[136].mxu0 %v4878_v49  ;;  %v2028_v20 = vrot.slane %v7922_v24, 5  ;;  %v3327_v1 = vadd.f32 %v7810_v43, %v7567_v17  ;;  %v1844_v7 = vor.u32 %v1843_v47, %v1840_v5  ;;  %v1859_v60 = vrot.slane %v1857_v42, 5 }
 0x158   : > { %v5216_v39 = vadd.f32 %v7858_v51, %v7851_v16  ;;  %v1854_v35 = vor.u32 %v1853_v36, %v1849_v25  ;;  %v2026_v49 = vsel %vm6254_vm5, %v4735_v11, %v2025_v23  ;;  %v2027_v21 = vrot.slane %v2025_v23, 4 }
 0x159   : > { %v5317_v10 = vpop.f32.mrb[44].mxu1  ;;  %v4736_v4 = vrot.slane %v4720_v54, 9  ;;  %v3330_v24 = vadd.f32 %v7870_v55, %v7567_v17  ;;  %v1845_v48 = vrot.slane %v1844_v7, 4  ;;  %v2032_v43 = vrot.slane %v7988_v27, 5 }
 0x15a   : > { %v5318_v12 = vpop.f32.mrb[45].mxu1  ;;  %v2035_v5 = vrot.slane %v4704_v61, 5  ;;  %v1855_v47 = vrot.slane %v1854_v35, 4  ;;  %v2029_v16 = vsel %vm6254_vm5, %v2027_v21, %v2028_v20  ;;  %v5307_v51 = vadd.f32 %v7882_v57, %v7874_v53 }
 0x15b   : > { %v5229_v31 = vpop.f32.mrb[44].mxu0  ;;  %v5320_v56 = vpop.f32.mrb[46].mxu1  ;;  %v5219_v42 = vadd.f32 %v7899_v3, %v7884_v41  ;;  %v1850_v54 = vsel %vm6060_vm2, %v1845_v48, %v1849_v25  ;;  %v4879_v11 = vcombine.low %v2026_v49, %v2029_v16  ;;  %v2033_v55 = vsel %vm6254_vm5, %v4736_v4, %v2032_v43 }
 0x15c   : > { %v5230_v19 = vpop.f32.mrb[45].mxu0  ;;  %v5321_v40 = vpop.f32.mrb[47].mxu1  ;;  %v2034_v36 = vrot.slane %v2032_v43, 4  ;;  %v1860_v61 = vsel %vm6060_vm2, %v1855_v47, %v1859_v60  ;;  %v4848_v23 = vcombine.low %v7979_v26, %v7988_v27  ;;  %v8037_v20 = vadd.f32 %v5307_v51, %v7944_v59 }
 0x15d   : > { %v5232_v18 = vpop.f32.mrb[46].mxu0  ;;  %v5310_v53 = vadd.f32 %v7908_v50, %v7897_v58  ;;  %v4864_v41 = vcombine.low %v1850_v54, %v1860_v61  ;;  %5663 = vmatprep.mubr.bf16.mxu0 %v4879_v11  ;;  %v5222_v48 = vadd.f32 %v7925_v62, %v7910_v52  ;;  %v5313_v34 = vadd.f32 %v7950_v38, %v7940_v6 }
 0x15e   : > { %v5233_v13 = vpop.f32.mrb[47].mxu0  ;;  %v2036_v3 = vsel %vm6254_vm5, %v2034_v36, %v2035_v5  ;;  %v5225_v58 = vadd.f32 %v7958_v8, %v7952_v30  ;;  %v5316_v50 = vadd.f32 %v7966_v32, %v7956_v63  ;;  %v3335_v52 = vadd.f32 %v7892_v9, %v7567_v17 }
 0x15f   : > { %v4880_v27 = vcombine.low %v2033_v55, %v2036_v3  ;;  %v8048_v59 = vadd.f32 %v5310_v53, %v7962_v33  ;;  %3879 = vmatprep.mubr.bf16.mxu1 %v4864_v41  ;;  %v8056_v62 = vadd.f32 %v5313_v34, %v3327_v1  ;;  %v5228_v6 = vadd.f32 %v7981_v15, %v7968_v0 }
 0x160   : > { %v5319_v38 = vadd.f32 %v5318_v12, %v5317_v10  ;;  %v3338_v30 = vadd.f32 %v7948_v2, %v7567_v17  ;;  %3880 = vmatmul.mubr.bf16.gmra.mrb[140].mxu1 %v4848_v23  ;;  %v8062_v63 = vadd.f32 %v5316_v50, %v3330_v24  ;;  %v5231_v8 = vadd.f32 %v5230_v19, %v5229_v31 }
 0x161   : > { %v5323_v57 = vpop.f32.mrb[48].mxu1  ;;  %5664 = vmatmul.mubr.bf16.gmra.mrb[140].mxu0 %v4880_v27  ;;  %v3343_v9 = vadd.f32 %v7976_v45, %v7567_v17  ;;  %v5322_v35 = vadd.f32 %v5321_v40, %v5320_v56  ;;  %v5234_v49 = vadd.f32 %v5233_v13, %v5232_v18  ;;  %v3346_v0 = vadd.f32 %v5216_v39, %v7567_v17 }
 0x162   : > { %v5324_v26 = vpop.f32.mrb[49].mxu1  ;;  %v8066_v1 = vadd.f32 %v5319_v38, %v3335_v52  ;;  %v3351_v39 = vadd.f32 %v5219_v42, %v7567_v17  ;;  %v3354_v51 = vadd.f32 %v5222_v48, %v7567_v17 }
 0x163   : > { %v5387_v25 = vpop.f32.mrb[48].mxu0  ;;  %v5326_v7 = vpop.f32.mrb[50].mxu1  ;;  %v5325_v15 = vadd.f32 %v5324_v26, %v5323_v57  ;;  %v8069_v21 = vadd.f32 %v5322_v35, %v3338_v30  ;;  %v3359_v57 = vadd.f32 %v5225_v58, %v7567_v17  ;;  %v3367_v30 = vadd.f32 %v5231_v8, %v7567_v17 }
 0x164   : > { %v5388_v22 = vpop.f32.mrb[49].mxu0  ;;  %v5327_v60 = vpop.f32.mrb[51].mxu1 }
 0x165   : > { %v5390_v33 = vpop.f32.mrb[50].mxu0  ;;  %v5389_v10 = vadd.f32 %v5388_v22, %v5387_v25  ;;  %v5328_v12 = vadd.f32 %v5327_v60, %v5326_v7  ;;  %v8071_v4 = vadd.f32 %v5325_v15, %v3343_v9 }
 0x166   : > { %v5391_v32 = vpop.f32.mrb[51].mxu0 }
 0x167   : > { %v5392_v2 = vadd.f32 %v5391_v32, %v5390_v33  ;;  %v8074_v19 = vadd.f32 %v5389_v10, %v7677_v37  ;;  %v8076_v31 = vadd.f32 %v5328_v12, %v3346_v0 }
 0x169   : > { %v5329_v45 = vpop.f32.mrb[52].mxu1  ;;  %v8079_v24 = vadd.f32 %v5392_v2, %v7688_v14 }
 0x16a   : > { %v5330_v56 = vpop.f32.mrb[53].mxu1 }
 0x16b   : > { %v5393_v18 = vpop.f32.mrb[52].mxu0  ;;  %v5331_v40 = vadd.f32 %v5330_v56, %v5329_v45  ;;  %v5332_v43 = vpop.f32.mrb[54].mxu1  ;;  %v8625_v45 = vld [vmem:[#allocation42_spill] sm:$0xff] }
 0x16c   : > { %v5394_v13 = vpop.f32.mrb[53].mxu0  ;;  %v5333_v16 = vpop.f32.mrb[55].mxu1 }
 0x16d   : > { %v5395_v5 = vadd.f32 %v5394_v13, %v5393_v18  ;;  %v5396_v47 = vpop.f32.mrb[54].mxu0  ;;  %v8083_v37 = vadd.f32 %v5331_v40, %v3351_v39  ;;  %v5334_v54 = vadd.f32 %v5333_v16, %v5332_v43  ;;  %v8626_v39 = vld [vmem:[#allocation43_spill] sm:$0xff] }
 0x16e   : > { %v5397_v11 = vpop.f32.mrb[55].mxu0 }
 0x16f   : > { %v8086_v55 = vadd.f32 %v5395_v5, %v7751_v44  ;;  %v5398_v14 = vadd.f32 %v5397_v11, %v5396_v47  ;;  %v8088_v36 = vadd.f32 %v5334_v54, %v3354_v51  ;;  %v3362_v44 = vadd.f32 %v5228_v6, %v7567_v17  ;;  %v8627_v5 = vld [vmem:[#allocation30_spill] sm:$0xff] }
 0x170   : > { %v3375_v47 = vadd.f32 %v8627_v5, %v7567_v17 }
 0x171   : > { %v8091_v42 = vadd.f32 %v5398_v14, %v7770_v29  ;;  %v5335_v61 = vpop.f32.mrb[56].mxu1 }
 0x172   : > { %v5336_v53 = vpop.f32.mrb[57].mxu1 }
 0x173   : > { %v5399_v23 = vpop.f32.mrb[56].mxu0  ;;  %v5337_v41 = vadd.f32 %v5336_v53, %v5335_v61  ;;  %v5338_v48 = vpop.f32.mrb[58].mxu1  ;;  %v8628_v61 = vld [vmem:[#allocation31_spill] sm:$0xff] }
 0x174   : > { %v5400_v3 = vpop.f32.mrb[57].mxu0  ;;  %v5339_v26 = vpop.f32.mrb[59].mxu1 }
 0x175   : > { %v5401_v34 = vadd.f32 %v5400_v3, %v5399_v23  ;;  %v5402_v25 = vpop.f32.mrb[58].mxu0  ;;  %v8095_v27 = vadd.f32 %v5337_v41, %v3359_v57  ;;  %v5340_v50 = vadd.f32 %v5339_v26, %v5338_v48  ;;  %v3378_v23 = vadd.f32 %v8628_v61, %v7567_v17  ;;  %v8629_v3 = vld [vmem:[#allocation44_spill] sm:$0xff]  ;;  %v8630_v26 = vld [vmem:[#allocation45_spill] sm:$0xff] }
 0x176   : > { %v5403_v22 = vpop.f32.mrb[59].mxu0 }
 0x177   : > { %v8098_v29 = vadd.f32 %v5401_v34, %v7833_v46  ;;  %v5404_v7 = vadd.f32 %v5403_v22, %v5402_v25  ;;  %v8100_v52 = vadd.f32 %v5340_v50, %v3362_v44  ;;  %v3370_v46 = vadd.f32 %v5234_v49, %v7567_v17 }
 0x179   : > { %v8103_v58 = vadd.f32 %v5404_v7, %v7854_v28  ;;  %v5341_v38 = vpop.f32.mrb[60].mxu1 }
 0x17a   : > { %v5342_v60 = vpop.f32.mrb[61].mxu1 }
 0x17b   : > { %v5405_v33 = vpop.f32.mrb[60].mxu0  ;;  %v5343_v32 = vadd.f32 %v5342_v60, %v5341_v38  ;;  %v5344_v9 = vpop.f32.mrb[62].mxu1  ;;  %v8631_v38 = vld [vmem:[#allocation34_spill] sm:$0xff] }
 0x17c   : > { %v5406_v6 = vpop.f32.mrb[61].mxu0  ;;  %v5345_v15 = vpop.f32.mrb[63].mxu1 }
 0x17d   : > { %v5407_v35 = vadd.f32 %v5406_v6, %v5405_v33  ;;  %v5408_v0 = vpop.f32.mrb[62].mxu0  ;;  %v8107_v10 = vadd.f32 %v5343_v32, %v3367_v30  ;;  %v5346_v12 = vadd.f32 %v5345_v15, %v5344_v9  ;;  %v3383_v33 = vadd.f32 %v8631_v38, %v7567_v17 }
 0x17e   : > { %v5409_v2 = vpop.f32.mrb[63].mxu0 }
 0x17f   : > { %v8110_v28 = vadd.f32 %v5407_v35, %v8625_v45  ;;  %v5410_v18 = vadd.f32 %v5409_v2, %v5408_v0  ;;  %v8112_v56 = vadd.f32 %v5346_v12, %v3370_v46  ;;  %v8632_v0 = vld [vmem:[#allocation35_spill] sm:$0xff] }
 0x180   : > { %v3386_v15 = vadd.f32 %v8632_v0, %v7567_v17 }
 0x181   : > { %v8115_v8 = vadd.f32 %v5410_v18, %v8626_v39  ;;  %v5347_v40 = vpop.f32.mrb[64].mxu1 }
 0x182   : > { %v5348_v43 = vpop.f32.mrb[65].mxu1 }
 0x183   : > { %v5411_v13 = vpop.f32.mrb[64].mxu0  ;;  %v5349_v49 = vadd.f32 %v5348_v43, %v5347_v40  ;;  %v5350_v51 = vpop.f32.mrb[66].mxu1 }
 0x184   : > { %v5412_v16 = vpop.f32.mrb[65].mxu0  ;;  %v5351_v14 = vpop.f32.mrb[67].mxu1 }
 0x185   : > { %v5413_v54 = vadd.f32 %v5412_v16, %v5411_v13  ;;  %v5414_v11 = vpop.f32.mrb[66].mxu0  ;;  %v8121_v53 = vadd.f32 %v5349_v49, %v3375_v47  ;;  %v5352_v57 = vadd.f32 %v5351_v14, %v5350_v51  ;;  %v8633_v47 = vld [vmem:[#allocation38_spill] sm:$0xff] }
 0x186   : > { %v5415_v41 = vpop.f32.mrb[67].mxu0  ;;  %v3391_v49 = vadd.f32 %v8633_v47, %v7567_v17 }
 0x187   : > { %v8124_v48 = vadd.f32 %v5413_v54, %v8629_v3  ;;  %v5416_v34 = vadd.f32 %v5415_v41, %v5414_v11  ;;  %v8126_v25 = vadd.f32 %v5352_v57, %v3378_v23  ;;  %v8634_v23 = vld [vmem:[#allocation39_spill] sm:$0xff] }
 0x189   : > { %v8129_v44 = vadd.f32 %v5416_v34, %v8630_v26  ;;  %v5353_v50 = vpop.f32.mrb[68].mxu1 }
 0x18a   : > { %v5354_v7 = vpop.f32.mrb[69].mxu1 }
 0x18b   : > { %v5417_v22 = vpop.f32.mrb[68].mxu0  ;;  %v5355_v60 = vadd.f32 %v5354_v7, %v5353_v50  ;;  %v5356_v32 = vpop.f32.mrb[70].mxu1 }
 0x18c   : > { %v5418_v30 = vpop.f32.mrb[69].mxu0  ;;  %v5357_v35 = vpop.f32.mrb[71].mxu1 }
 0x18d   : > { %v5419_v6 = vadd.f32 %v5418_v30, %v5417_v22  ;;  %v5420_v9 = vpop.f32.mrb[70].mxu0  ;;  %v8135_v46 = vadd.f32 %v5355_v60, %v3383_v33  ;;  %v5358_v12 = vadd.f32 %v5357_v35, %v5356_v32  ;;  %v8635_v33 = vld [vmem:[#allocation40_spill] sm:$0xff] }
 0x18e   : > { %v5421_v2 = vpop.f32.mrb[71].mxu0 }
 0x18f   : > { %v8138_v45 = vadd.f32 %v5419_v6, %v8037_v20  ;;  %v5422_v18 = vadd.f32 %v5421_v2, %v5420_v9  ;;  %v8140_v39 = vadd.f32 %v5358_v12, %v3386_v15  ;;  %v5947_v20 = vld [vmem:[%s8531_s2] ss:$0 sm:$0xff]  ;;  %v8636_v15 = vld [vmem:[#allocation41_spill] sm:$0xff] }
 0x190   : > { %v3394_v57 = vadd.f32 %v5947_v20, %v8634_v23  ;;  %v3399_v60 = vadd.f32 %v5947_v20, %v8635_v33 }
 0x191   : > { %v8143_v40 = vadd.f32 %v5422_v18, %v8048_v59  ;;  %v5359_v13 = vpop.f32.mrb[72].mxu1 }
 0x192   : > { %v5360_v5 = vpop.f32.mrb[73].mxu1 }
 0x193   : > { %v5423_v43 = vpop.f32.mrb[72].mxu0  ;;  %v5361_v16 = vadd.f32 %v5360_v5, %v5359_v13  ;;  %v5362_v54 = vpop.f32.mrb[74].mxu1 }
 0x194   : > { %v5424_v51 = vpop.f32.mrb[73].mxu0  ;;  %v5363_v61 = vpop.f32.mrb[75].mxu1 }
 0x195   : > { %v5425_v11 = vadd.f32 %v5424_v51, %v5423_v43  ;;  %v5426_v14 = vpop.f32.mrb[74].mxu0  ;;  %v8151_v59 = vadd.f32 %v5361_v16, %v3391_v49  ;;  %v5364_v41 = vadd.f32 %v5363_v61, %v5362_v54 }
 0x196   : > { %v5427_v3 = vpop.f32.mrb[75].mxu0 }
 0x197   : > { %v8154_v34 = vadd.f32 %v5425_v11, %v8056_v62  ;;  %v5428_v17 = vadd.f32 %v5427_v3, %v5426_v14  ;;  %v8156_v26 = vadd.f32 %v5364_v41, %v3394_v57  ;;  %v3402_v62 = vadd.f32 %v5947_v20, %v8636_v15 }
 0x199   : > { %v8159_v50 = vadd.f32 %v5428_v17, %v8062_v63  ;;  %v5365_v22 = vpop.f32.mrb[76].mxu1 }
 0x19a   : > { %v5366_v38 = vpop.f32.mrb[77].mxu1 }
 0x19b   : > { %v5429_v7 = vpop.f32.mrb[76].mxu0  ;;  %v5367_v30 = vadd.f32 %v5366_v38, %v5365_v22  ;;  %v5368_v6 = vpop.f32.mrb[78].mxu1 }
 0x19c   : > { %v5430_v32 = vpop.f32.mrb[77].mxu0  ;;  %v5369_v0 = vpop.f32.mrb[79].mxu1 }
 0x19d   : > { %v5431_v9 = vadd.f32 %v5430_v32, %v5429_v7  ;;  %v5432_v35 = vpop.f32.mrb[78].mxu0  ;;  %v8163_v12 = vadd.f32 %v5367_v30, %v3399_v60  ;;  %v5370_v2 = vadd.f32 %v5369_v0, %v5368_v6 }
 0x19e   : > { %v5433_v18 = vpop.f32.mrb[79].mxu0 }
 0x19f   : > { %v8166_v63 = vadd.f32 %v5431_v9, %v8066_v1  ;;  %v5434_v13 = vadd.f32 %v5433_v18, %v5432_v35  ;;  %v8168_v43 = vadd.f32 %v5370_v2, %v3402_v62 }
 0x1a1   : > { %v8171_v5 = vadd.f32 %v5434_v13, %v8069_v21  ;;  %v5499_v47 = vpop.f32.mrb[80].mxu1 }
 0x1a2   : > { %v5500_v49 = vpop.f32.mrb[81].mxu1 }
 0x1a3   : > { %v5435_v16 = vpop.f32.mrb[80].mxu0  ;;  %v5501_v51 = vadd.f32 %v5500_v49, %v5499_v47  ;;  %v5502_v54 = vpop.f32.mrb[82].mxu1 }
 0x1a4   : > { %v5436_v11 = vpop.f32.mrb[81].mxu0  ;;  %v5503_v14 = vpop.f32.mrb[83].mxu1 }
 0x1a5   : > { %v5437_v61 = vadd.f32 %v5436_v11, %v5435_v16  ;;  %v5438_v20 = vpop.f32.mrb[82].mxu0  ;;  %v5504_v23 = vadd.f32 %v5503_v14, %v5502_v54  ;;  %v8174_v57 = vadd.f32 %v5501_v51, %v8074_v19 }
 0x1a6   : > { %v5439_v1 = vpop.f32.mrb[83].mxu0 }
 0x1a7   : > { %v8177_v41 = vadd.f32 %v5437_v61, %v8071_v4  ;;  %v5440_v3 = vadd.f32 %v5439_v1, %v5438_v20  ;;  %v8180_v21 = vadd.f32 %v5504_v23, %v8079_v24 }
 0x1a9   : > { %v8183_v17 = vadd.f32 %v5440_v3, %v8076_v31  ;;  %v5505_v22 = vpop.f32.mrb[84].mxu1 }
 0x1aa   : > { %v5506_v7 = vpop.f32.mrb[85].mxu1 }
 0x1ab   : > { %v5441_v38 = vpop.f32.mrb[84].mxu0  ;;  %v5507_v33 = vadd.f32 %v5506_v7, %v5505_v22  ;;  %v5508_v60 = vpop.f32.mrb[86].mxu1 }
 0x1ac   : > { %v5442_v30 = vpop.f32.mrb[85].mxu0  ;;  %v5509_v32 = vpop.f32.mrb[87].mxu1 }
 0x1ad   : > { %v5443_v19 = vadd.f32 %v5442_v30, %v5441_v38  ;;  %v5444_v6 = vpop.f32.mrb[86].mxu0  ;;  %v5510_v9 = vadd.f32 %v5509_v32, %v5508_v60  ;;  %v8186_v4 = vadd.f32 %v5507_v33, %v8086_v55 }
 0x1ae   : > { %v5445_v35 = vpop.f32.mrb[87].mxu0 }
 0x1af   : > { %v8189_v24 = vadd.f32 %v5443_v19, %v8083_v37  ;;  %v5446_v0 = vadd.f32 %v5445_v35, %v5444_v6  ;;  %v8192_v31 = vadd.f32 %v5510_v9, %v8091_v42 }
 0x1b1   : > { %v8195_v15 = vadd.f32 %v5446_v0, %v8088_v36 }
 0x1b2   : > { %v5511_v2 = vpop.f32.mrb[88].mxu1 }
 0x1b3   : > { %v5512_v13 = vpop.f32.mrb[89].mxu1 }
 0x1b4   : > { %v5447_v62 = vpop.f32.mrb[88].mxu0  ;;  %v5513_v49 = vadd.f32 %v5512_v13, %v5511_v2  ;;  %v5514_v55 = vpop.f32.mrb[90].mxu1 }
 0x1b5   : > { %v5448_v18 = vpop.f32.mrb[89].mxu0  ;;  %v5515_v54 = vpop.f32.mrb[91].mxu1 }
 0x1b6   : > { %v5449_v47 = vadd.f32 %v5448_v18, %v5447_v62  ;;  %v5450_v16 = vpop.f32.mrb[90].mxu0  ;;  %v5516_v14 = vadd.f32 %v5515_v54, %v5514_v55  ;;  %v8201_v42 = vadd.f32 %v5513_v49, %v8098_v29 }
 0x1b7   : > { %v5451_v51 = vpop.f32.mrb[91].mxu0 }
 0x1b8   : > { %v8198_v37 = vadd.f32 %v5449_v47, %v8095_v27  ;;  %v5452_v11 = vadd.f32 %v5451_v51, %v5450_v16  ;;  %v8207_v61 = vadd.f32 %v5516_v14, %v8103_v58 }
 0x1ba   : > { %v8204_v36 = vadd.f32 %v5452_v11, %v8100_v52 }
 0x1bb   : > { %v5517_v20 = vpop.f32.mrb[92].mxu1 }
 0x1bc   : > { %v5518_v23 = vpop.f32.mrb[93].mxu1 }
 0x1bd   : > { %v5519_v3 = vadd.f32 %v5518_v23, %v5517_v20  ;;  %v5520_v22 = vpop.f32.mrb[94].mxu1 }
 0x1be   : > { %v5453_v1 = vpop.f32.mrb[92].mxu0  ;;  %v5521_v38 = vpop.f32.mrb[95].mxu1 }
 0x1bf   : > { %v5454_v7 = vpop.f32.mrb[93].mxu0  ;;  %v5522_v60 = vadd.f32 %v5521_v38, %v5520_v22  ;;  %v8210_v30 = vadd.f32 %v5519_v3, %v8110_v28 }
 0x1c0   : > { %v5455_v27 = vadd.f32 %v5454_v7, %v5453_v1  ;;  %v5456_v33 = vpop.f32.mrb[94].mxu0 }
 0x1c1   : > { %v5457_v29 = vpop.f32.mrb[95].mxu0  ;;  %v8216_v58 = vadd.f32 %v5522_v60, %v8115_v8 }
 0x1c2   : > { %v8213_v52 = vadd.f32 %v5455_v27, %v8107_v10  ;;  %v5458_v32 = vadd.f32 %v5457_v29, %v5456_v33 }
 0x1c4   : > { %v8219_v19 = vadd.f32 %v5458_v32, %v8112_v56 }
 0x1c6   : > { %v5523_v9 = vpop.f32.mrb[96].mxu1 }
 0x1c7   : > { %v5524_v0 = vpop.f32.mrb[97].mxu1 }
 0x1c8   : > { %v5459_v6 = vpop.f32.mrb[96].mxu0  ;;  %v5525_v2 = vadd.f32 %v5524_v0, %v5523_v9  ;;  %v5526_v28 = vpop.f32.mrb[98].mxu1 }
 0x1c9   : > { %v5460_v35 = vpop.f32.mrb[97].mxu0  ;;  %v5527_v47 = vpop.f32.mrb[99].mxu1 }
 0x1ca   : > { %v5461_v62 = vadd.f32 %v5460_v35, %v5459_v6  ;;  %v5462_v18 = vpop.f32.mrb[98].mxu0  ;;  %v5528_v16 = vadd.f32 %v5527_v47, %v5526_v28  ;;  %v8225_v8 = vadd.f32 %v5525_v2, %v8124_v48 }
 0x1cb   : > { %v5463_v13 = vpop.f32.mrb[99].mxu0 }
 0x1cc   : > { %v8222_v10 = vadd.f32 %v5461_v62, %v8121_v53  ;;  %v5464_v49 = vadd.f32 %v5463_v13, %v5462_v18  ;;  %v8231_v55 = vadd.f32 %v5528_v16, %v8129_v44 }
 0x1ce   : > { %v8228_v56 = vadd.f32 %v5464_v49, %v8126_v25 }
 0x1d0   : > { %v5529_v51 = vpop.f32.mrb[100].mxu1 }
 0x1d1   : > { %v5530_v54 = vpop.f32.mrb[101].mxu1 }
 0x1d2   : > { %v5465_v11 = vpop.f32.mrb[100].mxu0  ;;  %v5531_v14 = vadd.f32 %v5530_v54, %v5529_v51  ;;  %v5532_v20 = vpop.f32.mrb[102].mxu1 }
 0x1d3   : > { %v5466_v23 = vpop.f32.mrb[101].mxu0  ;;  %v5533_v1 = vpop.f32.mrb[103].mxu1 }
 0x1d4   : > { %v5467_v53 = vadd.f32 %v5466_v23, %v5465_v11  ;;  %v5468_v3 = vpop.f32.mrb[102].mxu0  ;;  %v5534_v22 = vadd.f32 %v5533_v1, %v5532_v20  ;;  %v8234_v7 = vadd.f32 %v5531_v14, %v8138_v45 }
 0x1d5   : > { %v5469_v48 = vpop.f32.mrb[103].mxu0 }
 0x1d6   : > { %v8237_v25 = vadd.f32 %v5467_v53, %v8135_v46  ;;  %v5470_v38 = vadd.f32 %v5469_v48, %v5468_v3  ;;  %v8240_v44 = vadd.f32 %v5534_v22, %v8143_v40 }
 0x1d8   : > { %v8243_v27 = vadd.f32 %v5470_v38, %v8140_v39 }
 0x1dc   : > { %v5535_v33 = vpop.f32.mrb[104].mxu1 }
 0x1dd   : > { %v5536_v60 = vpop.f32.mrb[105].mxu1 }
 0x1de   : > { %v5471_v29 = vpop.f32.mrb[104].mxu0  ;;  %v5537_v32 = vadd.f32 %v5536_v60, %v5535_v33  ;;  %v5538_v6 = vpop.f32.mrb[106].mxu1 }
 0x1df   : > { %v5472_v9 = vpop.f32.mrb[105].mxu0  ;;  %v5539_v35 = vpop.f32.mrb[107].mxu1 }
 0x1e0   : > { %v5473_v45 = vadd.f32 %v5472_v9, %v5471_v29  ;;  %v5474_v0 = vpop.f32.mrb[106].mxu0  ;;  %v5540_v62 = vadd.f32 %v5539_v35, %v5538_v6  ;;  %v8246_v46 = vadd.f32 %v5537_v32, %v8154_v34 }
 0x1e1   : > { %v5475_v2 = vpop.f32.mrb[107].mxu0 }
 0x1e2   : > { %v8249_v40 = vadd.f32 %v5473_v45, %v8151_v59  ;;  %v5476_v18 = vadd.f32 %v5475_v2, %v5474_v0  ;;  %v8252_v39 = vadd.f32 %v5540_v62, %v8159_v50 }
 0x1e4   : > { %v8255_v28 = vadd.f32 %v5476_v18, %v8156_v26 }
 0x1e7   : > { %v5541_v13 = vpop.f32.mrb[108].mxu1 }
 0x1e8   : > { %v5542_v47 = vpop.f32.mrb[109].mxu1  ;;  %v5477_v49 = vpop.f32.mrb[108].mxu0 }
 0x1e9   : > { %v5543_v16 = vadd.f32 %v5542_v47, %v5541_v13  ;;  %v5544_v51 = vpop.f32.mrb[110].mxu1  ;;  %v5478_v54 = vpop.f32.mrb[109].mxu0 }
 0x1ea   : > { %v5545_v11 = vpop.f32.mrb[111].mxu1  ;;  %v5479_v34 = vadd.f32 %v5478_v54, %v5477_v49  ;;  %v5480_v14 = vpop.f32.mrb[110].mxu0 }
 0x1eb   : > { %v5546_v20 = vadd.f32 %v5545_v11, %v5544_v51  ;;  %v8258_v59 = vadd.f32 %v5543_v16, %v8166_v63  ;;  %v5481_v23 = vpop.f32.mrb[111].mxu0 }
 0x1ec   : > { %v8261_v50 = vadd.f32 %v5479_v34, %v8163_v12  ;;  %v5482_v1 = vadd.f32 %v5481_v23, %v5480_v14 }
 0x1ed   : > { %v8264_v26 = vadd.f32 %v5546_v20, %v8171_v5 }
 0x1ee   : > { %v8267_v53 = vadd.f32 %v5482_v1, %v8168_v43 }
 0x1ef   : > { %v5547_v3 = vpop.f32.mrb[112].mxu1 }
 0x1f0   : > { %v5637_v22 = vpop.f32.mrb[112].mxu0  ;;  %v5548_v38 = vpop.f32.mrb[113].mxu1 }
 0x1f1   : > { %v8270_v48 = vadd.f32 %v5637_v22, %v8186_v4  ;;  %v3922_v33 = vpop.f32.mrb[113].mxu0  ;;  %v5549_v63 = vadd.f32 %v5548_v38, %v5547_v3  ;;  %v5550_v12 = vpop.f32.mrb[114].mxu1 }
 0x1f2   : > { %v8273_v60 = vadd.f32 %v3922_v33, %v8174_v57  ;;  %v5638_v29 = vpop.f32.mrb[114].mxu0  ;;  %v5551_v43 = vpop.f32.mrb[115].mxu1 }
 0x1f3   : > { %v4956_v32 = vmul.f32 -1.442695, %v8270_v48  ;;  %v8277_v5 = vadd.f32 %v5638_v29, %v8192_v31  ;;  %v3925_v6 = vpop.f32.mrb[115].mxu0  ;;  %v5552_v35 = vadd.f32 %v5551_v43, %v5550_v12  ;;  %v8284_v45 = vadd.f32 %v5549_v63, %v8177_v41 }
 0x1f4   : > { %v4954_v9 = vmul.f32 -1.442695, %v8273_v60  ;;  %v8281_v4 = vadd.f32 %v3925_v6, %v8180_v21 }
 0x1f5   : > { %5812 = vpow2.f32 %v4956_v32  ;;  %v4957_v57 = vmul.f32 -1.442695, %v8277_v5  ;;  %v8289_v31 = vadd.f32 %v5552_v35, %v8183_v17 }
 0x1f6   : > { %5814 = vpow2.f32 %v4954_v9  ;;  %v4955_v0 = vmul.f32 -1.442695, %v8281_v4 }
 0x1f7   : > { %5816 = vpow2.f32 %v4957_v57 }
 0x1f8   : > { %5818 = vpow2.f32 %v4955_v0  ;;  %v5553_v62 = vpop.f32.mrb[116].mxu1  ;;  %v5641_v2 = vpop.f32.mrb[116].mxu0 }
 0x1f9   : > { %v8292_v18 = vadd.f32 %v5641_v2, %v8210_v30  ;;  %v5554_v21 = vpop.f32.mrb[117].mxu1  ;;  %v3938_v13 = vpop.f32.mrb[117].mxu0 }
 0x1fa   : > { %v5555_v41 = vadd.f32 %v5554_v21, %v5553_v62  ;;  %v8295_v47 = vadd.f32 %v3938_v13, %v8201_v42  ;;  %v5556_v49 = vpop.f32.mrb[118].mxu1  ;;  %v5642_v16 = vpop.f32.mrb[118].mxu0 }
 0x1fb   : > { %v4960_v51 = vmul.f32 -1.442695, %v8292_v18  ;;  %v8299_v17 = vadd.f32 %v5642_v16, %v8216_v58  ;;  %v5557_v54 = vpop.f32.mrb[119].mxu1  ;;  %v3941_v11 = vpop.f32.mrb[119].mxu0 }
 0x1fc   : > { %v4958_v34 = vmul.f32 -1.442695, %v8295_v47  ;;  %v5558_v14 = vadd.f32 %v5557_v54, %v5556_v49  ;;  %v8303_v30 = vadd.f32 %v3941_v11, %v8207_v61  ;;  %v8306_v20 = vadd.f32 %v5555_v41, %v8189_v24 }
 0x1fd   : > { %5820 = vpow2.f32 %v4960_v51  ;;  %v4961_v23 = vmul.f32 -1.442695, %v8299_v17 }
 0x1fe   : > { %5822 = vpow2.f32 %v4958_v34  ;;  %v8310_v58 = vadd.f32 %v5558_v14, %v8195_v15  ;;  %v4959_v24 = vmul.f32 -1.442695, %v8303_v30  ;;  %v8638_v34 = vld [vmem:[#allocation4_spill] sm:$0xff] }
 0x1ff   : > { %v5813_v42 = vpop.eup %5812  ;;  %5824 = vpow2.f32 %v4961_v23  ;;  %v4051_v14 = vunpack.c.l.bf16 %v8638_v34  ;;  %v8639_v23 = vld [vmem:[#allocation2_spill] sm:$0xff] }
 0x200   : > { %v5815_v1 = vpop.eup %5814  ;;  %v4179_v3 = vadd.f32 1.0, %v5813_v42 }
 0x201   : > { %v5817_v22 = vpop.eup %5816  ;;  %v4177_v38 = vadd.f32 1.0, %v5815_v1  ;;  %v5645_v29 = vpop.f32.mrb[120].mxu0  ;;  %v4049_v1 = vunpack.c.l.bf16 %v8639_v23 }
 0x202   : > { %v5819_v33 = vpop.eup %5818  ;;  %5826 = vrcp.f32 %v4179_v3  ;;  %v4180_v61 = vadd.f32 1.0, %v5817_v22  ;;  %v5559_v12 = vpop.f32.mrb[120].mxu1  ;;  %v8315_v32 = vadd.f32 %v5645_v29, %v8234_v7 }
 0x203   : > { %5828 = vrcp.f32 %v4177_v38  ;;  %v4178_v63 = vadd.f32 1.0, %v5819_v33  ;;  %v5560_v15 = vpop.f32.mrb[121].mxu1  ;;  %v3954_v43 = vpop.f32.mrb[121].mxu0 }
 0x204   : > { %5830 = vrcp.f32 %v4180_v61  ;;  %v5561_v6 = vadd.f32 %v5560_v15, %v5559_v12  ;;  %v8318_v9 = vadd.f32 %v3954_v43, %v8225_v8  ;;  %v5562_v35 = vpop.f32.mrb[122].mxu1  ;;  %v5646_v57 = vpop.f32.mrb[122].mxu0  ;;  %v4964_v0 = vmul.f32 -1.442695, %v8315_v32 }
 0x205   : > { %5832 = vrcp.f32 %v4178_v63  ;;  %v8328_v62 = vadd.f32 %v5646_v57, %v8240_v44  ;;  %v5563_v7 = vpop.f32.mrb[123].mxu1  ;;  %v3957_v2 = vpop.f32.mrb[123].mxu0  ;;  %v8641_v63 = vld [vmem:[#allocation3_spill] sm:$0xff] }
 0x206   : > { %5834 = vpow2.f32 %v4959_v24  ;;  %v4962_v21 = vmul.f32 -1.442695, %v8318_v9  ;;  %v5564_v8 = vadd.f32 %v5563_v7, %v5562_v35  ;;  %v8332_v13 = vadd.f32 %v3957_v2, %v8231_v55 }
 0x207   : > { %v8335_v41 = vadd.f32 %v5561_v6, %v8198_v37  ;;  %v5821_v49 = vpop.eup %5820  ;;  %5836 = vpow2.f32 %v4964_v0  ;;  %v4965_v16 = vmul.f32 -1.442695, %v8328_v62  ;;  %v4050_v12 = vunpack.c.l.bf16 %v8641_v63  ;;  %v8643_v63 = vld [vmem:[#allocation6_spill] sm:$0xff] }
 0x208   : > { %v5823_v51 = vpop.eup %5822  ;;  %v4183_v44 = vadd.f32 1.0, %v5821_v49  ;;  %5838 = vpow2.f32 %v4962_v21  ;;  %v8339_v54 = vadd.f32 %v5564_v8, %v8204_v36  ;;  %v4963_v37 = vmul.f32 -1.442695, %v8332_v13  ;;  %v8640_v36 = vld [vmem:[#allocation5_spill] sm:$0xff] }
 0x209   : > { %v5825_v11 = vpop.eup %5824  ;;  %v4181_v55 = vadd.f32 1.0, %v5823_v51  ;;  %5840 = vpow2.f32 %v4965_v16  ;;  %v4052_v38 = vunpack.c.l.bf16 %v8640_v36 }
 0x20a   : > { %5842 = vrcp.f32 %v4183_v44  ;;  %v4184_v3 = vadd.f32 1.0, %v5825_v11 }
 0x20b   : > { %5844 = vrcp.f32 %v4181_v55 }
 0x20c   : > { %v5827_v42 = vpop.eup %5826  ;;  %5846 = vrcp.f32 %v4184_v3  ;;  %v5565_v29 = vpop.f32.mrb[124].mxu1 }
 0x20d   : > { %v5829_v22 = vpop.eup %5828  ;;  %v4275_v33 = vmul.f32 %v5827_v42, %v8270_v48  ;;  %v5649_v15 = vpop.f32.mrb[124].mxu0  ;;  %5848 = vpow2.f32 %v4963_v37 }
 0x20e   : > { %v5831_v61 = vpop.eup %5830  ;;  %v4273_v24 = vmul.f32 %v5829_v22, %v8273_v60  ;;  %v8357_v57 = vadd.f32 %v5649_v15, %v8258_v59  ;;  %v5566_v0 = vpop.f32.mrb[125].mxu1 }
 0x20f   : > { %v5833_v43 = vpop.eup %5832  ;;  %v4307_v6 = vadd.f32 %v4275_v33, %v4051_v14  ;;  %v4276_v35 = vmul.f32 %v5831_v61, %v8277_v5  ;;  %v3970_v48 = vpop.f32.mrb[125].mxu0  ;;  %v5567_v21 = vadd.f32 %v5566_v0, %v5565_v29 }
 0x210   : > { %v5835_v7 = vpop.eup %5834  ;;  %v4305_v2 = vadd.f32 %v4273_v24, %v4049_v1  ;;  %v4274_v60 = vmul.f32 %v5833_v43, %v8281_v4  ;;  %v8361_v8 = vadd.f32 %v3970_v48, %v8246_v46  ;;  %v5568_v49 = vpop.f32.mrb[126].mxu1  ;;  %v4968_v5 = vmul.f32 -1.442695, %v8357_v57  ;;  %v8642_v1 = vld [vmem:[#allocation8_spill] sm:$0xff]  ;;  %v8644_v43 = vld [vmem:[#allocation9_spill] sm:$0xff]  ;;  %v8645_v48 = vld [vmem:[#allocation7_spill] sm:$0xff] }
 0x211   : > { %v5650_v16 = vpop.f32.mrb[126].mxu0  ;;  %v4308_v51 = vadd.f32 %v4276_v35, %v4052_v38  ;;  %v4182_v44 = vadd.f32 1.0, %v5835_v7  ;;  %v5569_v59 = vpop.f32.mrb[127].mxu1  ;;  %v4055_v3 = vunpack.c.l.bf16 %v8642_v1  ;;  %v4054_v7 = vunpack.c.l.bf16 %v8645_v48 }
 0x212   : > { %v8365_v11 = vadd.f32 %v5650_v16, %v8264_v26  ;;  %v3973_v34 = vpop.f32.mrb[127].mxu0  ;;  %v4306_v4 = vadd.f32 %v4274_v60, %v4050_v12  ;;  %v4966_v46 = vmul.f32 -1.442695, %v8361_v8  ;;  %v5570_v14 = vadd.f32 %v5569_v59, %v5568_v49  ;;  %v5837_v37 = vpop.eup %5836 }
 0x213   : > { %v8374_v55 = vadd.f32 %v3973_v34, %v8252_v39  ;;  %v5060_v42 = vpack.c.bf16 %v4308_v51, %v4307_v6  ;;  %5850 = vrcp.f32 %v4182_v44  ;;  %v8377_v26 = vadd.f32 %v5567_v21, %v8213_v52  ;;  %v5839_v23 = vpop.eup %5838 }
 0x214   : > { %v5055_v22 = vpack.c.bf16 %v4306_v4, %v4305_v2  ;;  %v4187_v36 = vadd.f32 1.0, %v5837_v37  ;;  %5852 = vpow2.f32 %v4968_v5  ;;  %v5841_v38 = vpop.eup %5840  ;;  %v4185_v33 = vadd.f32 1.0, %v5839_v23 }
 0x215   : > { %5132 = vst [vmem:[%s8370_s25 + $0x8] sm:$0xff] %v5060_v42   ;;  %5854 = vpow2.f32 %v4966_v46  ;;  %v4969_v39 = vmul.f32 -1.442695, %v8365_v11  ;;  %v8383_v61 = vadd.f32 %v5570_v14, %v8219_v19  ;;  %v5843_v24 = vpop.eup %5842  ;;  %v4053_v12 = vunpack.c.l.bf16 %v8643_v63  ;;  %v5571_v2 = vpop.f32.mrb[128].mxu1  ;;  %v8646_v63 = vld [vmem:[#allocation12_spill] sm:$0xff] }
 0x216   : > { %5056 = vst [vmem:[%s8370_s25] sm:$0xff] %v5055_v22   ;;  %5856 = vrcp.f32 %v4187_v36  ;;  %v4188_v52 = vadd.f32 1.0, %v5841_v38  ;;  %v4967_v29 = vmul.f32 -1.442695, %v8374_v55  ;;  %v5845_v15 = vpop.eup %5844  ;;  %v4056_v6 = vunpack.c.l.bf16 %v8644_v43  ;;  %v5653_v60 = vpop.f32.mrb[128].mxu0 }
 0x217   : > { %v4279_v35 = vmul.f32 %v5843_v24, %v8292_v18  ;;  %5858 = vrcp.f32 %v4185_v33  ;;  %v5847_v0 = vpop.eup %5846  ;;  %v4277_v19 = vmul.f32 %v5845_v15, %v8295_v47  ;;  %v8394_v51 = vadd.f32 %v5653_v60, %v8306_v20  ;;  %v5572_v44 = vpop.f32.mrb[129].mxu1 }
 0x218   : > { %5860 = vrcp.f32 %v4188_v52  ;;  %v5849_v21 = vpop.eup %5848  ;;  %v4280_v16 = vmul.f32 %v5847_v0, %v8299_v17  ;;  %v3986_v5 = vpop.f32.mrb[129].mxu0  ;;  %v5573_v34 = vadd.f32 %v5572_v44, %v5571_v2  ;;  %v8648_v0 = vld [vmem:[#allocation13_spill] sm:$0xff] }
 0x219   : > { %v4311_v49 = vadd.f32 %v4279_v35, %v4055_v3  ;;  %5862 = vpow2.f32 %v4969_v39  ;;  %v4309_v18 = vadd.f32 %v4277_v19, %v4053_v12  ;;  %v4186_v59 = vadd.f32 1.0, %v5849_v21  ;;  %v5574_v4 = vpop.f32.mrb[130].mxu1  ;;  %v5654_v46 = vpop.f32.mrb[130].mxu0  ;;  %v8649_v19 = vld [vmem:[#allocation11_spill] sm:$0xff] }
 0x21a   : > { %5864 = vpow2.f32 %v4967_v29  ;;  %v4312_v47 = vadd.f32 %v4280_v16, %v4056_v6  ;;  %v4972_v14 = vmul.f32 -1.442695, %v8394_v51  ;;  %v8398_v37 = vadd.f32 %v3986_v5, %v8284_v45  ;;  %v5575_v42 = vpop.f32.mrb[131].mxu1  ;;  %v3989_v20 = vpop.f32.mrb[131].mxu0  ;;  %v8647_v29 = vld [vmem:[#allocation10_spill] sm:$0xff] }
 0x21b   : > { %v8401_v17 = vadd.f32 %v5654_v46, %v8310_v58  ;;  %5866 = vrcp.f32 %v4186_v59  ;;  %v5576_v23 = vadd.f32 %v5575_v42, %v5574_v4  ;;  %v8404_v1 = vadd.f32 %v3989_v20, %v8289_v31 }
 0x21c   : > { %v8407_v3 = vadd.f32 %v5573_v34, %v8222_v10  ;;  %v5070_v36 = vpack.c.bf16 %v4312_v47, %v4311_v49  ;;  %5868 = vpow2.f32 %v4972_v14  ;;  %v4970_v45 = vmul.f32 -1.442695, %v8398_v37 }
 0x21d   : > { %v5851_v22 = vpop.eup %5850  ;;  %v4973_v38 = vmul.f32 -1.442695, %v8401_v17  ;;  %v8413_v39 = vadd.f32 %v5576_v23, %v8228_v56  ;;  %v4059_v31 = vunpack.c.l.bf16 %v8646_v63  ;;  %v4971_v10 = vmul.f32 -1.442695, %v8404_v1 }
 0x21e   : > { %v5853_v58 = vpop.eup %5852  ;;  %v4278_v33 = vmul.f32 %v5851_v22, %v8303_v30  ;;  %5134 = vst [vmem:[%s8370_s25 + $0x18] sm:$0xff] %v5070_v36   ;;  %5870 = vpow2.f32 %v4970_v45  ;;  %v4057_v15 = vunpack.c.l.bf16 %v8647_v29  ;;  %v4060_v30 = vunpack.c.l.bf16 %v8648_v0  ;;  %v8651_v0 = vld [vmem:[#allocation14_spill] sm:$0xff] }
 0x21f   : > { %v5855_v24 = vpop.eup %5854  ;;  %v4191_v12 = vadd.f32 1.0, %v5853_v58  ;;  %5872 = vpow2.f32 %v4973_v38  ;;  %v4058_v2 = vunpack.c.l.bf16 %v8649_v19  ;;  %v5577_v49 = vpop.f32.mrb[132].mxu1  ;;  %v8652_v19 = vld [vmem:[#allocation15_spill] sm:$0xff] }
 0x220   : > { %v5857_v52 = vpop.eup %5856  ;;  %v4310_v43 = vadd.f32 %v4278_v33, %v4054_v7  ;;  %v4189_v6 = vadd.f32 1.0, %v5855_v24  ;;  %v5657_v16 = vpop.f32.mrb[132].mxu0 }
 0x221   : > { %v5859_v35 = vpop.eup %5858  ;;  %v4283_v56 = vmul.f32 %v5857_v52, %v8315_v32  ;;  %5874 = vrcp.f32 %v4191_v12  ;;  %v8425_v59 = vadd.f32 %v5657_v16, %v8377_v26  ;;  %v5578_v32 = vpop.f32.mrb[133].mxu1  ;;  %v8653_v16 = vld [vmem:[#allocation17_spill] sm:$0xff] }
 0x222   : > { %v5861_v48 = vpop.eup %5860  ;;  %v5065_v60 = vpack.c.bf16 %v4310_v43, %v4309_v18  ;;  %v4281_v21 = vmul.f32 %v5859_v35, %v8318_v9  ;;  %5876 = vrcp.f32 %v4189_v6  ;;  %v4002_v34 = vpop.f32.mrb[133].mxu0  ;;  %v5579_v18 = vadd.f32 %v5578_v32, %v5577_v49 }
 0x223   : > { %v5863_v44 = vpop.eup %5862  ;;  %v4315_v7 = vadd.f32 %v4283_v56, %v4059_v31  ;;  %v4284_v5 = vmul.f32 %v5861_v48, %v8328_v62  ;;  %5878 = vpow2.f32 %v4971_v10  ;;  %v8429_v9 = vadd.f32 %v4002_v34, %v8335_v41  ;;  %v5580_v14 = vpop.f32.mrb[134].mxu1 }
 0x224   : > { %v5865_v4 = vpop.eup %5864  ;;  %5133 = vst [vmem:[%s8370_s25 + $0x10] sm:$0xff] %v5065_v60   ;;  %v4313_v46 = vadd.f32 %v4281_v21, %v4057_v15  ;;  %v4192_v47 = vadd.f32 1.0, %v5863_v44  ;;  %v5658_v42 = vpop.f32.mrb[134].mxu0  ;;  %v4976_v62 = vmul.f32 -1.442695, %v8425_v59  ;;  %v3866_v12 = vadd.f32 %v5579_v18, %v8237_v25 }
 0x225   : > { %v4316_v20 = vadd.f32 %v4284_v5, %v4060_v30  ;;  %v4190_v23 = vadd.f32 1.0, %v5865_v4  ;;  %v8433_v22 = vadd.f32 %v5658_v42, %v8383_v61  ;;  %v5581_v26 = vpop.f32.mrb[135].mxu1  ;;  %v4005_v36 = vpop.f32.mrb[135].mxu0  ;;  %v4974_v38 = vmul.f32 -1.442695, %v8429_v9 }
 0x226   : > { %v5867_v45 = vpop.eup %5866  ;;  %5880 = vrcp.f32 %v4192_v47  ;;  %v5582_v58 = vadd.f32 %v5581_v26, %v5580_v14  ;;  %v8437_v41 = vadd.f32 %v4005_v36, %v8339_v54  ;;  %v8650_v54 = vld [vmem:[#allocation16_spill] sm:$0xff]  ;;  %v4061_v30 = vunpack.c.l.bf16 %v8651_v0 }
 0x227   : > { %v5869_v33 = vpop.eup %5868  ;;  %v5080_v24 = vpack.c.bf16 %v4316_v20, %v4315_v7  ;;  %v4282_v63 = vmul.f32 %v5867_v45, %v8332_v13  ;;  %5882 = vrcp.f32 %v4190_v23  ;;  %v4977_v31 = vmul.f32 -1.442695, %v8433_v22 }
 0x228   : > { %v4195_v61 = vadd.f32 1.0, %v5869_v33  ;;  %5884 = vpow2.f32 %v4976_v62  ;;  %v5871_v10 = vpop.eup %5870  ;;  %v3869_v29 = vadd.f32 %v5582_v58, %v8243_v27  ;;  %v4063_v43 = vunpack.c.l.bf16 %v8650_v54 }
 0x229   : > { %5136 = vst [vmem:[%s8370_s25 + $0x28] sm:$0xff] %v5080_v24   ;;  %v4314_v52 = vadd.f32 %v4282_v63, %v4058_v2  ;;  %5886 = vpow2.f32 %v4974_v38  ;;  %v5873_v15 = vpop.eup %5872  ;;  %v4193_v6 = vadd.f32 1.0, %v5871_v10  ;;  %v4975_v13 = vmul.f32 -1.442695, %v8437_v41  ;;  %v5583_v27 = vpop.f32.mrb[136].mxu1 }
 0x22a   : > { %5888 = vrcp.f32 %v4195_v61  ;;  %v4196_v48 = vadd.f32 1.0, %v5873_v15  ;;  %v4062_v2 = vunpack.c.l.bf16 %v8652_v19  ;;  %v5661_v21 = vpop.f32.mrb[136].mxu0  ;;  %v4064_v44 = vunpack.c.l.bf16 %v8653_v16  ;;  %v5584_v32 = vpop.f32.mrb[137].mxu1 }
 0x22b   : > { %v5875_v35 = vpop.eup %5874  ;;  %v5075_v56 = vpack.c.bf16 %v4314_v52, %v4313_v46  ;;  %5890 = vpow2.f32 %v4977_v31  ;;  %v8452_v5 = vadd.f32 %v5661_v21, %v3866_v12  ;;  %v4018_v34 = vpop.f32.mrb[137].mxu0  ;;  %v5585_v47 = vadd.f32 %v5584_v32, %v5583_v27  ;;  %v8654_v31 = vld [vmem:[#allocation20_spill] sm:$0xff] }
 0x22c   : > { %v5877_v25 = vpop.eup %5876  ;;  %v4287_v60 = vmul.f32 %v5875_v35, %v8357_v57  ;;  %5892 = vrcp.f32 %v4193_v6  ;;  %v5586_v18 = vpop.f32.mrb[138].mxu1  ;;  %v8456_v20 = vadd.f32 %v4018_v34, %v8407_v3  ;;  %v4067_v61 = vunpack.c.l.bf16 %v8654_v31  ;;  %v8655_v6 = vld [vmem:[#allocation18_spill] sm:$0xff] }
 0x22d   : > { %v5879_v49 = vpop.eup %5878  ;;  %5135 = vst [vmem:[%s8370_s25 + $0x20] sm:$0xff] %v5075_v56   ;;  %v4285_v7 = vmul.f32 %v5877_v25, %v8361_v8  ;;  %5894 = vrcp.f32 %v4196_v48  ;;  %v5662_v57 = vpop.f32.mrb[138].mxu0  ;;  %v4980_v42 = vmul.f32 -1.442695, %v8452_v5  ;;  %v3874_v38 = vadd.f32 %v5585_v47, %v8249_v40 }
 0x22e   : > { %v4319_v4 = vadd.f32 %v4287_v60, %v4063_v43  ;;  %v4194_v46 = vadd.f32 1.0, %v5879_v49  ;;  %5896 = vpow2.f32 %v4975_v13  ;;  %v8458_v23 = vadd.f32 %v5662_v57, %v3869_v29  ;;  %v5587_v8 = vpop.f32.mrb[139].mxu1  ;;  %v4021_v62 = vpop.f32.mrb[139].mxu0 }
 0x22f   : > { %v4317_v14 = vadd.f32 %v4285_v7, %v4061_v30  ;;  %v5588_v36 = vadd.f32 %v5587_v8, %v5586_v18  ;;  %v8461_v45 = vadd.f32 %v4021_v62, %v8413_v39  ;;  %v4978_v24 = vmul.f32 -1.442695, %v8456_v20 }
 0x230   : > { %v5881_v26 = vpop.eup %5880  ;;  %5898 = vrcp.f32 %v4194_v46  ;;  %v4981_v3 = vmul.f32 -1.442695, %v8458_v23  ;;  %v4065_v13 = vunpack.c.l.bf16 %v8655_v6 }
 0x231   : > { %v5883_v58 = vpop.eup %5882  ;;  %v4288_v33 = vmul.f32 %v5881_v26, %v8365_v11  ;;  %5900 = vpow2.f32 %v4980_v42  ;;  %v3877_v10 = vadd.f32 %v5588_v36, %v8255_v28  ;;  %v4979_v40 = vmul.f32 -1.442695, %v8461_v45 }
 0x232   : > { %v5885_v63 = vpop.eup %5884  ;;  %v4286_v12 = vmul.f32 %v5883_v58, %v8374_v55  ;;  %5902 = vpow2.f32 %v4978_v24  ;;  %v8656_v55 = vld [vmem:[#allocation21_spill] sm:$0xff] }
 0x233   : > { %v5887_v52 = vpop.eup %5886  ;;  %v4320_v39 = vadd.f32 %v4288_v33, %v4064_v44  ;;  %v4199_v29 = vadd.f32 1.0, %v5885_v63  ;;  %5904 = vpow2.f32 %v4981_v3  ;;  %v4068_v30 = vunpack.c.l.bf16 %v8656_v55  ;;  %v5589_v25 = vpop.f32.mrb[140].mxu1  ;;  %v8658_v63 = vld [vmem:[#allocation22_spill] sm:$0xff] }
 0x234   : > { %v5889_v15 = vpop.eup %5888  ;;  %v4318_v11 = vadd.f32 %v4286_v12, %v4062_v2  ;;  %v4197_v54 = vadd.f32 1.0, %v5887_v52  ;;  %v5665_v19 = vpop.f32.mrb[140].mxu0  ;;  %v4069_v31 = vunpack.c.l.bf16 %v8658_v63 }
 0x235   : > { %v5891_v43 = vpop.eup %5890  ;;  %v5090_v35 = vpack.c.bf16 %v4320_v39, %v4319_v4  ;;  %v4291_v0 = vmul.f32 %v5889_v15, %v8394_v51  ;;  %5906 = vrcp.f32 %v4199_v29  ;;  %v5590_v21 = vpop.f32.mrb[141].mxu1  ;;  %v8657_v4 = vld [vmem:[#allocation19_spill] sm:$0xff]  ;;  %v8659_v39 = vld [vmem:[#allocation24_spill] sm:$0xff] }
 0x236   : > { %v5893_v28 = vpop.eup %5892  ;;  %v5085_v56 = vpack.c.bf16 %v4318_v11, %v4317_v14  ;;  %5908 = vrcp.f32 %v4197_v54  ;;  %v4200_v48 = vadd.f32 1.0, %v5891_v43  ;;  %v4034_v49 = vpop.f32.mrb[141].mxu0  ;;  %v5591_v44 = vadd.f32 %v5590_v21, %v5589_v25  ;;  %v8662_v21 = vld [vmem:[#allocation28_spill] sm:$0xff] }
 0x237   : > { %v5895_v2 = vpop.eup %5894  ;;  %5138 = vst [vmem:[%s8370_s25 + $0x38] sm:$0xff] %v5090_v35   ;;  %v4323_v60 = vadd.f32 %v4291_v0, %v4067_v61  ;;  %v4289_v27 = vmul.f32 %v5893_v28, %v8398_v37  ;;  %5910 = vpow2.f32 %v4979_v40  ;;  %v8478_v7 = vadd.f32 %v4034_v49, %v3874_v38  ;;  %v5592_v32 = vpop.f32.mrb[142].mxu1 }
 0x238   : > { %v5897_v16 = vpop.eup %5896  ;;  %5137 = vst [vmem:[%s8370_s25 + $0x30] sm:$0xff] %v5085_v56   ;;  %v4292_v51 = vmul.f32 %v5895_v2, %v8401_v17  ;;  %5912 = vrcp.f32 %v4200_v48  ;;  %v5666_v34 = vpop.f32.mrb[142].mxu0  ;;  %v4066_v46 = vunpack.c.l.bf16 %v8657_v4  ;;  %v3882_v8 = vadd.f32 %v5591_v44, %v8261_v50  ;;  %v8663_v4 = vld [vmem:[#allocation26_spill] sm:$0xff] }
 0x239   : > { %v4321_v47 = vadd.f32 %v4289_v27, %v4065_v13  ;;  %v4198_v18 = vadd.f32 1.0, %v5897_v16  ;;  %v5593_v57 = vpop.f32.mrb[143].mxu1  ;;  %v4037_v14 = vpop.f32.mrb[143].mxu0  ;;  %v4982_v62 = vmul.f32 -1.442695, %v8478_v7  ;;  %v8660_v13 = vld [vmem:[#allocation25_spill] sm:$0xff]  ;;  %v4075_v49 = vunpack.c.l.bf16 %v8662_v21 }
 0x23a   : > { %v5899_v37 = vpop.eup %5898  ;;  %v4324_v42 = vadd.f32 %v4292_v51, %v4068_v30  ;;  %v5594_v26 = vadd.f32 %v5593_v57, %v5592_v32  ;;  %v8484_v38 = vadd.f32 %v4037_v14, %v3877_v10  ;;  %v8486_v24 = vadd.f32 %v5665_v19, %v3882_v8 }
 0x23b   : > { %v5901_v17 = vpop.eup %5900  ;;  %v4290_v36 = vmul.f32 %v5899_v37, %v8404_v1  ;;  %5914 = vrcp.f32 %v4198_v18  ;;  %v4071_v1 = vunpack.c.l.bf16 %v8659_v39  ;;  %v4072_v35 = vunpack.c.l.bf16 %v8660_v13  ;;  %v8664_v18 = vld [vmem:[#allocation29_spill] sm:$0xff] }
 0x23c   : > { %v5100_v58 = vpack.c.bf16 %v4324_v42, %v4323_v60  ;;  %v4203_v33 = vadd.f32 1.0, %v5901_v17  ;;  %5916 = vpow2.f32 %v4982_v62  ;;  %v5903_v3 = vpop.eup %5902  ;;  %v3885_v50 = vadd.f32 %v5594_v26, %v8267_v53 }
 0x23d   : > { %v4322_v61 = vadd.f32 %v4290_v36, %v4066_v46  ;;  %v4983_v12 = vmul.f32 -1.442695, %v8484_v38  ;;  %v5905_v52 = vpop.eup %5904  ;;  %v4201_v10 = vadd.f32 1.0, %v5903_v3  ;;  %v4984_v29 = vmul.f32 -1.442695, %v8486_v24  ;;  %v8665_v36 = vld [vmem:[#allocation27_spill] sm:$0xff] }
 0x23e   : > { %5140 = vst [vmem:[%s8370_s25 + $0x48] sm:$0xff] %v5100_v58   ;;  %5918 = vrcp.f32 %v4203_v33  ;;  %v4204_v11 = vadd.f32 1.0, %v5905_v52  ;;  %v8494_v54 = vadd.f32 %v5666_v34, %v3885_v50  ;;  %v4073_v46 = vunpack.c.l.bf16 %v8663_v4 }
 0x23f   : > { %v5907_v40 = vpop.eup %5906  ;;  %v5095_v15 = vpack.c.bf16 %v4322_v61, %v4321_v47  ;;  %5920 = vpow2.f32 %v4983_v12  ;;  %v4076_v57 = vunpack.c.l.bf16 %v8664_v18  ;;  %v4074_v58 = vunpack.c.l.bf16 %v8665_v36  ;;  %v8666_v12 = vld [vmem:[#allocation32_spill] sm:$0xff] }
 0x240   : > { %v5909_v43 = vpop.eup %5908  ;;  %v4295_v53 = vmul.f32 %v5907_v40, %v8425_v59  ;;  %5922 = vrcp.f32 %v4201_v10  ;;  %v4985_v28 = vmul.f32 -1.442695, %v8494_v54  ;;  %v8661_v59 = vld [vmem:[#allocation23_spill] sm:$0xff]  ;;  %v4077_v52 = vunpack.c.l.bf16 %v8666_v12  ;;  %v8667_v10 = vld [vmem:[#allocation33_spill] sm:$0xff] }
 0x241   : > { %v5911_v6 = vpop.eup %5910  ;;  %5139 = vst [vmem:[%s8370_s25 + $0x40] sm:$0xff] %v5095_v15   ;;  %v4293_v0 = vmul.f32 %v5909_v43, %v8429_v9  ;;  %5924 = vrcp.f32 %v4204_v11  ;;  %v4070_v19 = vunpack.c.l.bf16 %v8661_v59  ;;  %v8668_v11 = vld [vmem:[#allocation36_spill] sm:$0xff] }
 0x242   : > { %v5913_v55 = vpop.eup %5912  ;;  %v4327_v30 = vadd.f32 %v4295_v53, %v4071_v1  ;;  %v4202_v56 = vadd.f32 1.0, %v5911_v6  ;;  %5926 = vpow2.f32 %v4984_v29  ;;  %v4078_v29 = vunpack.c.l.bf16 %v8667_v10  ;;  %v8669_v6 = vld [vmem:[#allocation37_spill] sm:$0xff] }
 0x243   : > { %v4325_v48 = vadd.f32 %v4293_v0, %v4069_v31  ;;  %v4296_v25 = vmul.f32 %v5913_v55, %v8433_v22  ;;  %5928 = vpow2.f32 %v4985_v28  ;;  %v4079_v43 = vunpack.c.l.bf16 %v8668_v11 }
 0x244   : > { %5930 = vrcp.f32 %v4202_v56  ;;  %v4080_v13 = vunpack.c.l.bf16 %v8669_v6 }
 0x245   : > { %v5915_v2 = vpop.eup %5914  ;;  %v4328_v60 = vadd.f32 %v4296_v25, %v4072_v35 }
 0x246   : > { %v5917_v27 = vpop.eup %5916  ;;  %v4294_v9 = vmul.f32 %v5915_v2, %v8437_v41 }
 0x247   : > { %v5110_v16 = vpack.c.bf16 %v4328_v60, %v4327_v30  ;;  %v4205_v51 = vadd.f32 1.0, %v5917_v27 }
 0x248   : > { %v5919_v44 = vpop.eup %5918  ;;  %v4326_v32 = vadd.f32 %v4294_v9, %v4070_v19 }
 0x249   : > { %v5921_v34 = vpop.eup %5920  ;;  %5142 = vst [vmem:[%s8370_s25 + $0x58] sm:$0xff] %v5110_v16   ;;  %v4299_v22 = vmul.f32 %v5919_v44, %v8452_v5  ;;  %5932 = vrcp.f32 %v4205_v51 }
 0x24a   : > { %v5923_v47 = vpop.eup %5922  ;;  %v5105_v14 = vpack.c.bf16 %v4326_v32, %v4325_v48  ;;  %v4206_v37 = vadd.f32 1.0, %v5921_v34 }
 0x24b   : > { %v5925_v41 = vpop.eup %5924  ;;  %v4331_v42 = vadd.f32 %v4299_v22, %v4075_v49  ;;  %v4297_v8 = vmul.f32 %v5923_v47, %v8456_v20 }
 0x24c   : > { %v5927_v62 = vpop.eup %5926  ;;  %5141 = vst [vmem:[%s8370_s25 + $0x50] sm:$0xff] %v5105_v14   ;;  %v4300_v26 = vmul.f32 %v5925_v41, %v8458_v23  ;;  %5934 = vrcp.f32 %v4206_v37 }
 0x24d   : > { %v5929_v17 = vpop.eup %5928  ;;  %v4329_v5 = vadd.f32 %v4297_v8, %v4073_v46  ;;  %v4207_v33 = vadd.f32 1.0, %v5927_v62 }
 0x24e   : > { %v5931_v3 = vpop.eup %5930  ;;  %v4332_v63 = vadd.f32 %v4300_v26, %v4076_v57  ;;  %v4208_v31 = vadd.f32 1.0, %v5929_v17 }
 0x24f   : > { %v4298_v61 = vmul.f32 %v5931_v3, %v8461_v45  ;;  %5936 = vrcp.f32 %v4207_v33 }
 0x250   : > { %v5120_v50 = vpack.c.bf16 %v4332_v63, %v4331_v42  ;;  %5938 = vrcp.f32 %v4208_v31 }
 0x251   : > { %v4330_v20 = vadd.f32 %v4298_v61, %v4074_v58 }
 0x252   : > { %5144 = vst [vmem:[%s8370_s25 + $0x68] sm:$0xff] %v5120_v50  }
 0x253   : > { %v5933_v23 = vpop.eup %5932  ;;  %v5115_v39 = vpack.c.bf16 %v4330_v20, %v4329_v5 }
 0x254   : > { %v4301_v1 = vmul.f32 %v5933_v23, %v8478_v7 }
 0x255   : > { %5143 = vst [vmem:[%s8370_s25 + $0x60] sm:$0xff] %v5115_v39  }
 0x256   : > { %v5935_v40 = vpop.eup %5934  ;;  %v4333_v15 = vadd.f32 %v4301_v1, %v4077_v52 }
 0x257   : > { %v4302_v45 = vmul.f32 %v5935_v40, %v8484_v38 }
 0x259   : > { %v5937_v53 = vpop.eup %5936  ;;  %v4334_v35 = vadd.f32 %v4302_v45, %v4078_v29 }
 0x25a   : > { %v5939_v0 = vpop.eup %5938  ;;  %v4303_v28 = vmul.f32 %v5937_v53, %v8486_v24 }
 0x25b   : > { %v4304_v7 = vmul.f32 %v5939_v0, %v8494_v54  ;;  %v5125_v55 = vpack.c.bf16 %v4334_v35, %v4333_v15 }
 0x25c   : > { %v4335_v30 = vadd.f32 %v4303_v28, %v4079_v43 }
 0x25d   : > { %v4336_v56 = vadd.f32 %v4304_v7, %v4080_v13  ;;  %5145 = vst [vmem:[%s8370_s25 + $0x70] sm:$0xff] %v5125_v55  }
 0x25f   : > { %v5130_v48 = vpack.c.bf16 %v4336_v56, %v4335_v30 }
 0x261   : > { %5146 = vst [vmem:[%s8370_s25 + $0x78] sm:$0xff] %v5130_v48  }
 0x262 PF: > { %s13_s12 = sadd.s32 1, %s5954_s12  }
 0x263   : > { %p10_p5 = scmp.ge.s32.totalorder %s13_s12, 4  }
 0x265   :  { %12 = sbr.rel (!%p10_p5) target bundleno = 1 (0x1), region = 64 }

// kernel: _lambda_.4
= control target key start
LH: loop header
LB: loop body
LE: loop exit
PB: predicated region body
PF: predicated region fallthrough
CT: control target
= control target key end

     0   :  { %s6542_s12 = smov 0   ;;  %s6544_s13 = smov 0   ;;  %s8902_s0 = inlined_call_operand.vmem [shape: bf16[4,2,17,17,128], index: 0, kind: input, shape index: {}]   ;;  %s8903_s1 = inlined_call_operand.vmem [shape: bf16[1152,128], index: 1, kind: input, shape index: {}]   ;;  %s8904_s2 = inlined_call_operand.vmem [shape: f32[1,128], index: 2, kind: input, shape index: {}]   ;;  %s8905_s3 = inlined_call_operand.vmem [shape: bf16[512,128], index: 3, kind: output, shape index: {}]  }
   0x1   :  { %s6546_s14 = smov 0  }
   0x2 LB: > { %s5029_s15 = sadd.s32 4294967295, %s6520_s14   ;;  %s6559_s16 = sadd.s32 1, %s6520_s14   ;;  %s6520_s14 = sphi %s6546_s14, %s8947_s14   ;;  %s6516_s13 = sphi %s6544_s13, %s8946_s13   ;;  %s6512_s12 = sphi %s6542_s12, %s8945_s12  }
   0x3   : > { %s17_s17 = ssub.s32 %s6520_s14, %s6559_s16  ;;  %s20_s18 = sadd.s32 1, %s6516_s13 }
   0x4   : > { %p18_p0 = scmp.eq.s32.totalorder %s17_s17, 0  ;;  %p27_p1 = scmp.ne.s32.totalorder %s6516_s13, %s6512_s12 }
   0x5   : > { %p28_p2 = scmp.eq.s32.totalorder %s6520_s14, 0  ;;  %p5032_p4 = scmp.ge.s32.totalorder %s6520_s14, 2 }
   0x6   : > { %s6568_s19 = scalar_select %p18_p0, %s6516_s13, %s20_s18  }
   0x7   : > { %p29_p3 = por %p28_p2, %p27_p1  ;;  %127 = sbr.rel (%p5032_p4) target bundleno = 71 (0x47), region = 24 }
   0xe   : > { %130 = sbr.rel (!%p29_p3) target bundleno = 71 (0x47), region = 28  ;;  %s132_s20 = sand.u32 (%p29_p3), 1, %s6516_s13  }
   0xf   : > { %s6176_s21 = smul.u32 (%p29_p3), 204, %s6520_s14 }
  0x10   : > { %s6175_s22 = smul.u32 (%p29_p3), 816, %s132_s20 }
  0x11   : > { %s6576_s25 = scalar_lea.vmem (%p29_p3), %s8902_s0, %s6176_s21 }
  0x12   : > { %v153_v0 = vld [vmem:[%s6576_s25] sm:$0xff] (%p29_p3)   ;;  %v157_v1 = vld [vmem:[%s6576_s25 + $0x8] sm:$0xff] (%p29_p3)   ;;  %v161_v2 = vld [vmem:[%s6576_s25 + $0x10] sm:$0xff] (%p29_p3)   ;;  %s6581_s26 = scalar_lea.vmem (%p29_p3), [#allocation2], %s6175_s22 }
  0x13   : > { %154 = vst [vmem:[%s6581_s26] sm:$0xff] (%p29_p3), %v153_v0   ;;  %158 = vst [vmem:[%s6581_s26 + $0x8] sm:$0xff] (%p29_p3), %v157_v1   ;;  %v165_v3 = vld [vmem:[%s6576_s25 + $0x18] sm:$0xff] (%p29_p3)   ;;  %v169_v4 = vld [vmem:[%s6576_s25 + $0x20] sm:$0xff] (%p29_p3)  }
  0x14   : > { %162 = vst [vmem:[%s6581_s26 + $0x10] sm:$0xff] (%p29_p3), %v161_v2   ;;  %v173_v5 = vld [vmem:[%s6576_s25 + $0x28] sm:$0xff] (%p29_p3)   ;;  %166 = vst [vmem:[%s6581_s26 + $0x18] sm:$0xff] (%p29_p3), %v165_v3   ;;  %v177_v6 = vld [vmem:[%s6576_s25 + $0x30] sm:$0xff] (%p29_p3)  }
  0x15   : > { %170 = vst [vmem:[%s6581_s26 + $0x20] sm:$0xff] %v169_v4   ;;  %174 = vst [vmem:[%s6581_s26 + $0x28] sm:$0xff] %v173_v5   ;;  %v181_v7 = vld [vmem:[%s6576_s25 + $0x38] sm:$0xff]   ;;  %v185_v8 = vld [vmem:[%s6576_s25 + $0x40] sm:$0xff]  }
  0x16   : > { %178 = vst [vmem:[%s6581_s26 + $0x30] sm:$0xff] %v177_v6   ;;  %182 = vst [vmem:[%s6581_s26 + $0x38] sm:$0xff] %v181_v7   ;;  %v189_v9 = vld [vmem:[%s6576_s25 + $0x48] sm:$0xff]   ;;  %v193_v10 = vld [vmem:[%s6576_s25 + $0x50] sm:$0xff]  }
  0x17   : > { %186 = vst [vmem:[%s6581_s26 + $0x40] sm:$0xff] %v185_v8   ;;  %v197_v11 = vld [vmem:[%s6576_s25 + $0x58] sm:$0xff]   ;;  %190 = vst [vmem:[%s6581_s26 + $0x48] sm:$0xff] %v189_v9   ;;  %v201_v12 = vld [vmem:[%s6576_s25 + $0x60] sm:$0xff]  }
  0x18   : > { %194 = vst [vmem:[%s6581_s26 + $0x50] sm:$0xff] %v193_v10   ;;  %198 = vst [vmem:[%s6581_s26 + $0x58] sm:$0xff] %v197_v11   ;;  %v205_v13 = vld [vmem:[%s6576_s25 + $0x68] sm:$0xff]   ;;  %v209_v14 = vld [vmem:[%s6576_s25 + $0x70] sm:$0xff]  }
  0x19   : > { %202 = vst [vmem:[%s6581_s26 + $0x60] sm:$0xff] %v201_v12   ;;  %206 = vst [vmem:[%s6581_s26 + $0x68] sm:$0xff] %v205_v13   ;;  %v213_v15 = vld [vmem:[%s6576_s25 + $0x78] sm:$0xff]   ;;  %v217_v16 = vld [vmem:[%s6576_s25 + $0x80] sm:$0xff]  }
  0x1a   : > { %210 = vst [vmem:[%s6581_s26 + $0x70] sm:$0xff] %v209_v14   ;;  %v221_v17 = vld [vmem:[%s6576_s25 + $0x88] sm:$0xff]   ;;  %214 = vst [vmem:[%s6581_s26 + $0x78] sm:$0xff] %v213_v15   ;;  %v225_v18 = vld [vmem:[%s6576_s25 + $0x90] sm:$0xff]  }
  0x1b   : > { %218 = vst [vmem:[%s6581_s26 + $0x80] sm:$0xff] %v217_v16   ;;  %222 = vst [vmem:[%s6581_s26 + $0x88] sm:$0xff] %v221_v17   ;;  %v229_v19 = vld [vmem:[%s6576_s25 + $0x98] sm:$0xff]   ;;  %v233_v20 = vld [vmem:[%s6576_s25 + $0xa0] sm:$0xff]  }
  0x1c   : > { %226 = vst [vmem:[%s6581_s26 + $0x90] sm:$0xff] %v225_v18   ;;  %230 = vst [vmem:[%s6581_s26 + $0x98] sm:$0xff] %v229_v19   ;;  %v237_v21 = vld [vmem:[%s6576_s25 + $0xa8] sm:$0xff]   ;;  %v241_v22 = vld [vmem:[%s6576_s25 + $0xb0] sm:$0xff]  }
  0x1d   : > { %234 = vst [vmem:[%s6581_s26 + $0xa0] sm:$0xff] %v233_v20   ;;  %v245_v23 = vld [vmem:[%s6576_s25 + $0xb8] sm:$0xff]   ;;  %238 = vst [vmem:[%s6581_s26 + $0xa8] sm:$0xff] %v237_v21   ;;  %v249_v24 = vld [vmem:[%s6576_s25 + $0xc0] sm:$0xff]  }
  0x1e   : > { %242 = vst [vmem:[%s6581_s26 + $0xb0] sm:$0xff] %v241_v22   ;;  %246 = vst [vmem:[%s6581_s26 + $0xb8] sm:$0xff] %v245_v23   ;;  %v253_v25 = vld [vmem:[%s6576_s25 + $0xc8] sm:$0xf]  ;;  %v255_v26 = vld [vmem:[%s6576_s25 + $0x198] sm:$0xff]  }
  0x1f   : > { %250 = vst [vmem:[%s6581_s26 + $0xc0] sm:$0xff] %v249_v24   ;;  %254 = vst [vmem:[%s6581_s26 + $0xc8] sm:$0xf] %v253_v25  ;;  %v259_v27 = vld [vmem:[%s6576_s25 + $0x1a0] sm:$0xff]   ;;  %v263_v28 = vld [vmem:[%s6576_s25 + $0x1a8] sm:$0xff]  }
  0x20   : > { %256 = vst [vmem:[%s6581_s26 + $0xcc] sm:$0xff] %v255_v26   ;;  %v267_v29 = vld [vmem:[%s6576_s25 + $0x1b0] sm:$0xff]   ;;  %260 = vst [vmem:[%s6581_s26 + $0xd4] sm:$0xff] %v259_v27   ;;  %v271_v30 = vld [vmem:[%s6576_s25 + $0x1b8] sm:$0xff]  }
  0x21   : > { %264 = vst [vmem:[%s6581_s26 + $0xdc] sm:$0xff] %v263_v28   ;;  %268 = vst [vmem:[%s6581_s26 + $0xe4] sm:$0xff] %v267_v29   ;;  %v275_v31 = vld [vmem:[%s6576_s25 + $0x1c0] sm:$0xff]   ;;  %v279_v32 = vld [vmem:[%s6576_s25 + $0x1c8] sm:$0xff]  }
  0x22   : > { %272 = vst [vmem:[%s6581_s26 + $0xec] sm:$0xff] %v271_v30   ;;  %276 = vst [vmem:[%s6581_s26 + $0xf4] sm:$0xff] %v275_v31   ;;  %v283_v33 = vld [vmem:[%s6576_s25 + $0x1d0] sm:$0xff]   ;;  %v287_v34 = vld [vmem:[%s6576_s25 + $0x1d8] sm:$0xff]  }
  0x23   : > { %280 = vst [vmem:[%s6581_s26 + $0xfc] sm:$0xff] %v279_v32   ;;  %v291_v35 = vld [vmem:[%s6576_s25 + $0x1e0] sm:$0xff]   ;;  %284 = vst [vmem:[%s6581_s26 + $0x104] sm:$0xff] %v283_v33   ;;  %v295_v36 = vld [vmem:[%s6576_s25 + $0x1e8] sm:$0xff]  }
  0x24   : > { %288 = vst [vmem:[%s6581_s26 + $0x10c] sm:$0xff] %v287_v34   ;;  %292 = vst [vmem:[%s6581_s26 + $0x114] sm:$0xff] %v291_v35   ;;  %v299_v37 = vld [vmem:[%s6576_s25 + $0x1f0] sm:$0xff]   ;;  %v303_v38 = vld [vmem:[%s6576_s25 + $0x1f8] sm:$0xff]  }
  0x25   : > { %296 = vst [vmem:[%s6581_s26 + $0x11c] sm:$0xff] %v295_v36   ;;  %300 = vst [vmem:[%s6581_s26 + $0x124] sm:$0xff] %v299_v37   ;;  %v307_v39 = vld [vmem:[%s6576_s25 + $0x200] sm:$0xff]   ;;  %v311_v40 = vld [vmem:[%s6576_s25 + $0x208] sm:$0xff]  }
  0x26   : > { %304 = vst [vmem:[%s6581_s26 + $0x12c] sm:$0xff] %v303_v38   ;;  %v315_v41 = vld [vmem:[%s6576_s25 + $0x210] sm:$0xff]   ;;  %308 = vst [vmem:[%s6581_s26 + $0x134] sm:$0xff] %v307_v39   ;;  %v319_v42 = vld [vmem:[%s6576_s25 + $0x218] sm:$0xff]  }
  0x27   : > { %312 = vst [vmem:[%s6581_s26 + $0x13c] sm:$0xff] %v311_v40   ;;  %316 = vst [vmem:[%s6581_s26 + $0x144] sm:$0xff] %v315_v41   ;;  %v323_v43 = vld [vmem:[%s6576_s25 + $0x220] sm:$0xff]   ;;  %v327_v44 = vld [vmem:[%s6576_s25 + $0x228] sm:$0xff]  }
  0x28   : > { %320 = vst [vmem:[%s6581_s26 + $0x14c] sm:$0xff] %v319_v42   ;;  %324 = vst [vmem:[%s6581_s26 + $0x154] sm:$0xff] %v323_v43   ;;  %v331_v45 = vld [vmem:[%s6576_s25 + $0x230] sm:$0xff]   ;;  %v335_v46 = vld [vmem:[%s6576_s25 + $0x238] sm:$0xff]  }
  0x29   : > { %328 = vst [vmem:[%s6581_s26 + $0x15c] sm:$0xff] %v327_v44   ;;  %v339_v47 = vld [vmem:[%s6576_s25 + $0x240] sm:$0xff]   ;;  %332 = vst [vmem:[%s6581_s26 + $0x164] sm:$0xff] %v331_v45   ;;  %v343_v48 = vld [vmem:[%s6576_s25 + $0x248] sm:$0xff]  }
  0x2a   : > { %336 = vst [vmem:[%s6581_s26 + $0x16c] sm:$0xff] %v335_v46   ;;  %340 = vst [vmem:[%s6581_s26 + $0x174] sm:$0xff] %v339_v47   ;;  %v347_v49 = vld [vmem:[%s6576_s25 + $0x250] sm:$0xff]   ;;  %v351_v50 = vld [vmem:[%s6576_s25 + $0x258] sm:$0xff]  }
  0x2b   : > { %344 = vst [vmem:[%s6581_s26 + $0x17c] sm:$0xff] %v343_v48   ;;  %348 = vst [vmem:[%s6581_s26 + $0x184] sm:$0xff] %v347_v49   ;;  %v355_v51 = vld [vmem:[%s6576_s25 + $0x260] sm:$0xf]  ;;  %v357_v52 = vld [vmem:[%s6576_s25 + $0x330] sm:$0xff]  }
  0x2c   : > { %352 = vst [vmem:[%s6581_s26 + $0x18c] sm:$0xff] %v351_v50   ;;  %v361_v53 = vld [vmem:[%s6576_s25 + $0x338] sm:$0xff]   ;;  %356 = vst [vmem:[%s6581_s26 + $0x194] sm:$0xf] %v355_v51  ;;  %v365_v54 = vld [vmem:[%s6576_s25 + $0x340] sm:$0xff]  }
  0x2d   : > { %358 = vst [vmem:[%s6581_s26 + $0x198] sm:$0xff] %v357_v52   ;;  %362 = vst [vmem:[%s6581_s26 + $0x1a0] sm:$0xff] %v361_v53   ;;  %v369_v55 = vld [vmem:[%s6576_s25 + $0x348] sm:$0xff]   ;;  %v373_v56 = vld [vmem:[%s6576_s25 + $0x350] sm:$0xff]  }
  0x2e   : > { %366 = vst [vmem:[%s6581_s26 + $0x1a8] sm:$0xff] %v365_v54   ;;  %370 = vst [vmem:[%s6581_s26 + $0x1b0] sm:$0xff] %v369_v55   ;;  %v377_v57 = vld [vmem:[%s6576_s25 + $0x358] sm:$0xff]   ;;  %v381_v58 = vld [vmem:[%s6576_s25 + $0x360] sm:$0xff]  }
  0x2f   : > { %374 = vst [vmem:[%s6581_s26 + $0x1b8] sm:$0xff] %v373_v56   ;;  %v385_v59 = vld [vmem:[%s6576_s25 + $0x368] sm:$0xff]   ;;  %378 = vst [vmem:[%s6581_s26 + $0x1c0] sm:$0xff] %v377_v57   ;;  %v389_v60 = vld [vmem:[%s6576_s25 + $0x370] sm:$0xff]  }
  0x30   : > { %382 = vst [vmem:[%s6581_s26 + $0x1c8] sm:$0xff] %v381_v58   ;;  %386 = vst [vmem:[%s6581_s26 + $0x1d0] sm:$0xff] %v385_v59   ;;  %v393_v61 = vld [vmem:[%s6576_s25 + $0x378] sm:$0xff]   ;;  %v397_v62 = vld [vmem:[%s6576_s25 + $0x380] sm:$0xff]  }
  0x31   : > { %390 = vst [vmem:[%s6581_s26 + $0x1d8] sm:$0xff] %v389_v60   ;;  %394 = vst [vmem:[%s6581_s26 + $0x1e0] sm:$0xff] %v393_v61   ;;  %v401_v63 = vld [vmem:[%s6576_s25 + $0x388] sm:$0xff]   ;;  %v405_v0 = vld [vmem:[%s6576_s25 + $0x390] sm:$0xff]  }
  0x32   : > { %398 = vst [vmem:[%s6581_s26 + $0x1e8] sm:$0xff] %v397_v62   ;;  %v409_v1 = vld [vmem:[%s6576_s25 + $0x398] sm:$0xff]   ;;  %402 = vst [vmem:[%s6581_s26 + $0x1f0] sm:$0xff] %v401_v63   ;;  %v413_v2 = vld [vmem:[%s6576_s25 + $0x3a0] sm:$0xff]  }
  0x33   : > { %406 = vst [vmem:[%s6581_s26 + $0x1f8] sm:$0xff] %v405_v0   ;;  %410 = vst [vmem:[%s6581_s26 + $0x200] sm:$0xff] %v409_v1   ;;  %v417_v3 = vld [vmem:[%s6576_s25 + $0x3a8] sm:$0xff]   ;;  %v421_v4 = vld [vmem:[%s6576_s25 + $0x3b0] sm:$0xff]  }
  0x34   : > { %414 = vst [vmem:[%s6581_s26 + $0x208] sm:$0xff] %v413_v2   ;;  %418 = vst [vmem:[%s6581_s26 + $0x210] sm:$0xff] %v417_v3   ;;  %v425_v5 = vld [vmem:[%s6576_s25 + $0x3b8] sm:$0xff]   ;;  %v429_v6 = vld [vmem:[%s6576_s25 + $0x3c0] sm:$0xff]  }
  0x35   : > { %422 = vst [vmem:[%s6581_s26 + $0x218] sm:$0xff] %v421_v4   ;;  %v433_v7 = vld [vmem:[%s6576_s25 + $0x3c8] sm:$0xff]   ;;  %426 = vst [vmem:[%s6581_s26 + $0x220] sm:$0xff] %v425_v5   ;;  %v437_v8 = vld [vmem:[%s6576_s25 + $0x3d0] sm:$0xff]  }
  0x36   : > { %430 = vst [vmem:[%s6581_s26 + $0x228] sm:$0xff] %v429_v6   ;;  %434 = vst [vmem:[%s6581_s26 + $0x230] sm:$0xff] %v433_v7   ;;  %v441_v9 = vld [vmem:[%s6576_s25 + $0x3d8] sm:$0xff]   ;;  %v445_v10 = vld [vmem:[%s6576_s25 + $0x3e0] sm:$0xff]  }
  0x37   : > { %438 = vst [vmem:[%s6581_s26 + $0x238] sm:$0xff] %v437_v8   ;;  %442 = vst [vmem:[%s6581_s26 + $0x240] sm:$0xff] %v441_v9   ;;  %v449_v11 = vld [vmem:[%s6576_s25 + $0x3e8] sm:$0xff]   ;;  %v453_v12 = vld [vmem:[%s6576_s25 + $0x3f0] sm:$0xff]  }
  0x38   : > { %446 = vst [vmem:[%s6581_s26 + $0x248] sm:$0xff] %v445_v10   ;;  %v457_v13 = vld [vmem:[%s6576_s25 + $0x3f8] sm:$0xf]  ;;  %450 = vst [vmem:[%s6581_s26 + $0x250] sm:$0xff] %v449_v11   ;;  %v459_v14 = vld [vmem:[%s6576_s25 + $0x4c8] sm:$0xff]  }
  0x39   : > { %454 = vst [vmem:[%s6581_s26 + $0x258] sm:$0xff] %v453_v12   ;;  %458 = vst [vmem:[%s6581_s26 + $0x260] sm:$0xf] %v457_v13  ;;  %v463_v15 = vld [vmem:[%s6576_s25 + $0x4d0] sm:$0xff]   ;;  %v467_v16 = vld [vmem:[%s6576_s25 + $0x4d8] sm:$0xff]  }
  0x3a   : > { %460 = vst [vmem:[%s6581_s26 + $0x264] sm:$0xff] %v459_v14   ;;  %464 = vst [vmem:[%s6581_s26 + $0x26c] sm:$0xff] %v463_v15   ;;  %v471_v17 = vld [vmem:[%s6576_s25 + $0x4e0] sm:$0xff]   ;;  %v475_v18 = vld [vmem:[%s6576_s25 + $0x4e8] sm:$0xff]  }
  0x3b   : > { %468 = vst [vmem:[%s6581_s26 + $0x274] sm:$0xff] %v467_v16   ;;  %v479_v19 = vld [vmem:[%s6576_s25 + $0x4f0] sm:$0xff]   ;;  %472 = vst [vmem:[%s6581_s26 + $0x27c] sm:$0xff] %v471_v17   ;;  %v483_v20 = vld [vmem:[%s6576_s25 + $0x4f8] sm:$0xff]  }
  0x3c   : > { %476 = vst [vmem:[%s6581_s26 + $0x284] sm:$0xff] %v475_v18   ;;  %480 = vst [vmem:[%s6581_s26 + $0x28c] sm:$0xff] %v479_v19   ;;  %v487_v21 = vld [vmem:[%s6576_s25 + $0x500] sm:$0xff]   ;;  %v491_v22 = vld [vmem:[%s6576_s25 + $0x508] sm:$0xff]  }
  0x3d   : > { %484 = vst [vmem:[%s6581_s26 + $0x294] sm:$0xff] %v483_v20   ;;  %488 = vst [vmem:[%s6581_s26 + $0x29c] sm:$0xff] %v487_v21   ;;  %v495_v23 = vld [vmem:[%s6576_s25 + $0x510] sm:$0xff]   ;;  %v499_v24 = vld [vmem:[%s6576_s25 + $0x518] sm:$0xff]  }
  0x3e   : > { %492 = vst [vmem:[%s6581_s26 + $0x2a4] sm:$0xff] %v491_v22   ;;  %v503_v25 = vld [vmem:[%s6576_s25 + $0x520] sm:$0xff]   ;;  %496 = vst [vmem:[%s6581_s26 + $0x2ac] sm:$0xff] %v495_v23   ;;  %v507_v26 = vld [vmem:[%s6576_s25 + $0x528] sm:$0xff]  }
  0x3f   : > { %500 = vst [vmem:[%s6581_s26 + $0x2b4] sm:$0xff] %v499_v24   ;;  %504 = vst [vmem:[%s6581_s26 + $0x2bc] sm:$0xff] %v503_v25   ;;  %v511_v27 = vld [vmem:[%s6576_s25 + $0x530] sm:$0xff]   ;;  %v515_v28 = vld [vmem:[%s6576_s25 + $0x538] sm:$0xff]  }
  0x40   : > { %508 = vst [vmem:[%s6581_s26 + $0x2c4] sm:$0xff] %v507_v26   ;;  %512 = vst [vmem:[%s6581_s26 + $0x2cc] sm:$0xff] %v511_v27   ;;  %v519_v29 = vld [vmem:[%s6576_s25 + $0x540] sm:$0xff]   ;;  %v523_v30 = vld [vmem:[%s6576_s25 + $0x548] sm:$0xff]  }
  0x41   : > { %516 = vst [vmem:[%s6581_s26 + $0x2d4] sm:$0xff] %v515_v28   ;;  %v527_v31 = vld [vmem:[%s6576_s25 + $0x550] sm:$0xff]   ;;  %520 = vst [vmem:[%s6581_s26 + $0x2dc] sm:$0xff] %v519_v29   ;;  %v531_v32 = vld [vmem:[%s6576_s25 + $0x558] sm:$0xff]  }
  0x42   : > { %524 = vst [vmem:[%s6581_s26 + $0x2e4] sm:$0xff] %v523_v30   ;;  %528 = vst [vmem:[%s6581_s26 + $0x2ec] sm:$0xff] %v527_v31   ;;  %v535_v33 = vld [vmem:[%s6576_s25 + $0x560] sm:$0xff]   ;;  %v539_v34 = vld [vmem:[%s6576_s25 + $0x568] sm:$0xff]  }
  0x43   : > { %532 = vst [vmem:[%s6581_s26 + $0x2f4] sm:$0xff] %v531_v32   ;;  %536 = vst [vmem:[%s6581_s26 + $0x2fc] sm:$0xff] %v535_v33   ;;  %v543_v35 = vld [vmem:[%s6576_s25 + $0x570] sm:$0xff]   ;;  %v547_v36 = vld [vmem:[%s6576_s25 + $0x578] sm:$0xff]  }
  0x44   : > { %540 = vst [vmem:[%s6581_s26 + $0x304] sm:$0xff] %v539_v34   ;;  %v551_v37 = vld [vmem:[%s6576_s25 + $0x580] sm:$0xff]   ;;  %544 = vst [vmem:[%s6581_s26 + $0x30c] sm:$0xff] %v543_v35   ;;  %v555_v38 = vld [vmem:[%s6576_s25 + $0x588] sm:$0xff]  }
  0x45   : > { %548 = vst [vmem:[%s6581_s26 + $0x314] sm:$0xff] %v547_v36   ;;  %552 = vst [vmem:[%s6581_s26 + $0x31c] sm:$0xff] %v551_v37   ;;  %v559_v39 = vld [vmem:[%s6576_s25 + $0x590] sm:$0xf] }
  0x46   : > { %556 = vst [vmem:[%s6581_s26 + $0x324] sm:$0xff] %v555_v38   ;;  %560 = vst [vmem:[%s6581_s26 + $0x32c] sm:$0xf] %v559_v39 }
  0x47 PF: > { %p5034_p5 = scmp.ge.s32.totalorder %s6520_s14, 1  ;;  %p990_p6 = scmp.lt.s32.totalorder %s6520_s14, 3 }
  0x49   : > { %p991_p7 = pnand %p5034_p5, %p990_p6 }
  0x4b   : > { %994 = sbr.rel (%p991_p7) target bundleno = 657 (0x291), region = 69 }
  0x52   : > { %v6202_v40 = vld [vmem:[%s8903_s1 + $0x40] sm:$0xff]   ;;  %v6204_v42 = vld [vmem:[%s8903_s1 + $0x48] sm:$0xff]   ;;  %v6206_v44 = vld [vmem:[%s8903_s1 + $0x50] sm:$0xff]   ;;  %s997_s10 = sand.u32 1, %s6512_s12   ;;  %vm1108_vm0 = vsmask.f32 3328 }
  0x53   : > { %v6203_v41 = vld [vmem:[%s8903_s1] sm:$0xff]   ;;  %5639 = vmatprep.subr.bf16.mxu0 %v6202_v40  ;;  %6159 = vmatprep.subr.bf16.mxu1 %v6202_v40  ;;  %v6205_v43 = vld [vmem:[%s8903_s1 + $0x8] sm:$0xff]   ;;  %v6207_v45 = vld [vmem:[%s8903_s1 + $0x10] sm:$0xff]   ;;  %s6177_s21 = smul.u32 816, %s997_s10  ;;  %vm1109_vm1 = vsmask.f32 7440 }
  0x54   : > { %5640 = vmatpush3.bf16.msra.mxu0 %v6203_v41  ;;  %6167 = vmatpush3.bf16.msra.mxu1 %v6203_v41  ;;  %v6208_v46 = vld [vmem:[%s8903_s1 + $0x58] sm:$0xff]   ;;  %v6210_v48 = vld [vmem:[%s8903_s1 + $0x60] sm:$0xff]   ;;  %v6212_v50 = vld [vmem:[%s8903_s1 + $0x68] sm:$0xff]  }
  0x55   : > { %5641 = vmatprep.subr.bf16.mxu0 %v6204_v42  ;;  %6160 = vmatprep.subr.bf16.mxu1 %v6204_v42  ;;  %v6209_v47 = vld [vmem:[%s8903_s1 + $0x18] sm:$0xff]   ;;  %v6211_v49 = vld [vmem:[%s8903_s1 + $0x20] sm:$0xff]   ;;  %s6824_s29 = scalar_lea.vmem [#allocation2], %s6177_s21  ;;  %v6213_v53 = vld [vmem:[%s8903_s1 + $0x28] sm:$0xff]  }
  0x56   : > { %v6218_v51 = vld [vmem:[%s6824_s29 + $0xcc] sm:$0xff]   ;;  %v6219_v52 = vld [vmem:[%s6824_s29 + $0x15c] sm:$0xff]   ;;  %v1028_v57 = vld [vmem:[%s6824_s29 + $0x4] sm:$0xf] }
  0x57   : > { %3810 = vmatprep.mubr.bf16.mxu0 %v6218_v51  ;;  %v6214_v54 = vld [vmem:[%s8903_s1 + $0x70] sm:$0xff]   ;;  %3906 = vmatprep.mubr.bf16.mxu1 %v6219_v52  ;;  %v6216_v58 = vld [vmem:[%s8903_s1 + $0x78] sm:$0xff]   ;;  %v1121_v62 = vshll.u32 %v1028_v57, 16  ;;  %v1125_v1 = vshrl.u32 %v1028_v57, 16  ;;  %v6222_v2 = vld [vmem:[%s8903_s1 + $0xc0] sm:$0xff]  }
  0x58   : > { %5642 = vmatpush3.bf16.msra.mxu0 %v6205_v43  ;;  %6168 = vmatpush3.bf16.msra.mxu1 %v6205_v43  ;;  %v6215_v55 = vld [vmem:[%s8903_s1 + $0x30] sm:$0xff]   ;;  %v6217_v60 = vld [vmem:[%s8903_s1 + $0x38] sm:$0xff]   ;;  %v6225_v3 = vld [vmem:[%s8903_s1 + $0x140] sm:$0xff]  }
  0x59   : > { %5643 = vmatprep.subr.bf16.mxu0 %v6206_v44  ;;  %6161 = vmatprep.subr.bf16.mxu1 %v6206_v44  ;;  %v1027_v56 = vld [vmem:[%s6824_s29] sm:$0xf]  ;;  %v1051_v63 = vld [vmem:[%s6824_s29 + $0x90] sm:$0xf]  ;;  %v6847_v0 = vld [vmem:[%s6824_s29 + $0x94] sm:$0xf] }
  0x5a   : > { %v1112_v59 = vshrl.u32 %v1027_v56, 16  ;;  %v1115_v61 = vshll.u32 %v1027_v56, 16  ;;  %v5229_v4 = vcombine.low %v1027_v56, %v1028_v57  ;;  %v1400_v5 = vshrl.u32 %v1051_v63, 16  ;;  %v6223_v12 = vld [vmem:[%s8903_s1 + $0x80] sm:$0xff]   ;;  %v6224_v13 = vld [vmem:[%s8903_s1 + $0xc8] sm:$0xff]   ;;  %v6232_v29 = vld [vmem:[%s8903_s1 + $0xd0] sm:$0xff]  }
  0x5b   : > { %v1403_v6 = vshll.u32 %v1051_v63, 16  ;;  %v1409_v7 = vshll.u32 %v6847_v0, 16  ;;  %v6856_v10 = vrot.slane %v1121_v62, 5  ;;  %v5241_v11 = vcombine.low %v1051_v63, %v6847_v0  ;;  %v6227_v14 = vld [vmem:[%s8903_s1 + $0x100] sm:$0xff]   ;;  %v6228_v17 = vld [vmem:[%s6824_s29 + $0xd8] sm:$0xff]   ;;  %v6229_v18 = vld [vmem:[%s6824_s29 + $0x168] sm:$0xff]  }
  0x5c   : > { %5644 = vmatpush3.bf16.msra.mxu0 %v6207_v45  ;;  %6169 = vmatpush3.bf16.msra.mxu1 %v6207_v45  ;;  %v1114_v8 = vrot.slane %v1112_v59, 4  ;;  %v1117_v9 = vrot.slane %v1115_v61, 5  ;;  %v1127_v15 = vrot.slane %v1125_v1, 4  ;;  %v1413_v16 = vshrl.u32 %v6847_v0, 16  ;;  %v1029_v19 = vld [vmem:[%s6824_s29 + $0xc] sm:$0xf]  ;;  %vm7024_vm2 = vmor %vm1108_vm0, %vm1109_vm1 }
  0x5d   : > { %5645 = vmatprep.subr.bf16.mxu0 %v6208_v46  ;;  %6162 = vmatprep.subr.bf16.mxu1 %v6208_v46  ;;  %v1030_v20 = vld [vmem:[%s6824_s29 + $0x10] sm:$0xf]  ;;  %v1136_v21 = vshrl.u32 %v1029_v19, 16  ;;  %v1139_v22 = vshll.u32 %v1029_v19, 16  ;;  %v6226_v23 = vld [vmem:[%s8903_s1 + $0x88] sm:$0xff]   ;;  %v6884_v36 = vrot.slane %v1400_v5, 4 }
  0x5e   : > { %v1145_v24 = vshll.u32 %v1030_v20, 16  ;;  %v1149_v25 = vshrl.u32 %v1030_v20, 16  ;;  %v1053_v26 = vld [vmem:[%s6824_s29 + $0x9c] sm:$0xf]  ;;  %v1054_v27 = vld [vmem:[%s6824_s29 + $0xa0] sm:$0xf]  ;;  %v1118_v30 = vor.u32 %v1117_v9, %v1114_v8  ;;  %v1128_v31 = vor.u32 %v1127_v15, %v6856_v10 }
  0x5f   : > { %v1424_v28 = vshrl.u32 %v1053_v26, 16  ;;  %v1138_v32 = vrot.slane %v1136_v21, 4  ;;  %v1141_v33 = vrot.slane %v1139_v22, 5  ;;  %v5230_v37 = vcombine.low %v1029_v19, %v1030_v20  ;;  %v6233_v43 = vld [vmem:[%s8903_s1 + $0x90] sm:$0xff]   ;;  %v6235_v52 = vld [vmem:[%s8903_s1 + $0x98] sm:$0xff]   ;;  %v6240_v61 = vld [vmem:[%s8903_s1 + $0xe0] sm:$0xff]  }
  0x60   : > { %5646 = vmatpush3.bf16.msra.mxu0 %v6209_v47  ;;  %6170 = vmatpush3.bf16.msra.mxu1 %v6209_v47  ;;  %v6882_v34 = vrot.slane %v1145_v24, 5  ;;  %v1151_v35 = vrot.slane %v1149_v25, 4  ;;  %v5242_v38 = vcombine.low %v1053_v26, %v1054_v27  ;;  %v6886_v39 = vrot.slane %v1403_v6, 5  ;;  %v6236_v44 = vld [vmem:[%s6824_s29 + $0xe4] sm:$0xff]   ;;  %v1032_v56 = vld [vmem:[%s6824_s29 + $0x1c] sm:$0xf] }
  0x61   : > { %5647 = vmatprep.subr.bf16.mxu0 %v6210_v48  ;;  %6163 = vmatprep.subr.bf16.mxu1 %v6210_v48  ;;  %v6888_v40 = vrot.slane %v1409_v7, 5  ;;  %v1427_v41 = vshll.u32 %v1053_v26, 16  ;;  %v1433_v42 = vshll.u32 %v1054_v27, 16  ;;  %v6894_v45 = vrot.slane %v1118_v30, 4  ;;  %v1055_v57 = vld [vmem:[%s6824_s29 + $0xa8] sm:$0xf] }
  0x62   : > { %v6896_v46 = vrot.slane %v1128_v31, 4  ;;  %v1415_v47 = vrot.slane %v1413_v16, 4  ;;  %v6898_v48 = vrot.slane %v1424_v28, 4  ;;  %v1437_v51 = vshrl.u32 %v1054_v27, 16  ;;  %v6241_v62 = vld [vmem:[%s8903_s1 + $0x148] sm:$0xff]   ;;  %v6242_v6 = vld [vmem:[%s8903_s1 + $0xa0] sm:$0xff]  }
  0x63   : > { %v6913_v59 = vrot.slane %v1433_v42, 5  ;;  %v6243_v0 = vld [vmem:[%s8903_s1 + $0x108] sm:$0xff]   ;;  %v1169_v9 = vshll.u32 %v1032_v56, 16  ;;  %v1448_v15 = vshrl.u32 %v1055_v57, 16  ;;  %v1451_v16 = vshll.u32 %v1055_v57, 16  ;;  %v6250_v25 = vld [vmem:[%s8903_s1 + $0xf0] sm:$0xff]  }
  0x64   : > { %5648 = vmatpush3.bf16.msra.mxu0 %v6211_v49  ;;  %6171 = vmatpush3.bf16.msra.mxu1 %v6211_v49  ;;  %v6234_v49 = vld [vmem:[%s8903_s1 + $0xd8] sm:$0xff]   ;;  %v6922_v63 = vrot.slane %v1437_v51, 4  ;;  %v6244_v8 = vld [vmem:[%s8903_s1 + $0xe8] sm:$0xff]   ;;  %v1033_v20 = vld [vmem:[%s6824_s29 + $0x24] sm:$0xf] }
  0x65   : > { %5649 = vmatprep.subr.bf16.mxu0 %v6212_v50  ;;  %6164 = vmatprep.subr.bf16.mxu1 %v6212_v50  ;;  %v6237_v50 = vld [vmem:[%s6824_s29 + $0x174] sm:$0xff]   ;;  %8912 = vst [vmem:[#allocation3_spill] sm:$0xff] %v6913_v59  ;;  %v1034_v21 = vld [vmem:[%s6824_s29 + $0x28] sm:$0xf]  ;;  %v6960_v30 = vrot.slane %v1169_v9, 5 }
  0x66   : > { %v6245_v19 = vld [vmem:[%s8903_s1 + $0xa8] sm:$0xff]   ;;  %v6252_v42 = vld [vmem:[%s8903_s1 + $0xf8] sm:$0xff]   ;;  %v1193_v51 = vshll.u32 %v1034_v21, 16 }
  0x67   : > { %v6951_v24 = vld [vmem:[%s6824_s29 + $0xb8] sm:$0xf] }
  0x68   : > { %5650 = vmatpush3.bf16.msra.mxu0 %v6213_v53  ;;  %6172 = vmatpush3.bf16.msra.mxu1 %v6213_v53  ;;  %v1031_v53 = vld [vmem:[%s6824_s29 + $0x18] sm:$0xf]  ;;  %v7014_v9 = vrot.slane %v1193_v51, 5 }
  0x69   : > { %5651 = vmatprep.subr.bf16.mxu0 %v6214_v54  ;;  %6165 = vmatprep.subr.bf16.mxu1 %v6214_v54  ;;  %v1142_v54 = vor.u32 %v1141_v33, %v1138_v32  ;;  %v1160_v5 = vshrl.u32 %v1031_v53, 16  ;;  %v1163_v7 = vshll.u32 %v1031_v53, 16  ;;  %v6962_v32 = vrot.slane %v1448_v15, 4 }
  0x6a   : > { %v5232_v33 = vcombine.low %v1033_v20, %v1034_v21 }
  0x6b   : > { %v6927_v1 = vrot.slane %v1142_v54, 4  ;;  %v1162_v26 = vrot.slane %v1160_v5, 4  ;;  %v1165_v27 = vrot.slane %v1163_v7, 5  ;;  %v6255_v54 = vld [vmem:[%s8903_s1 + $0x110] sm:$0xff]   ;;  %v1092_v5 = vld [vmem:[%s6824_s29 + $0x8] sm:$0x1] }
  0x6c   : > { %5652 = vmatpush3.bf16.msra.mxu0 %v6215_v55  ;;  %6173 = vmatpush3.bf16.msra.mxu1 %v6215_v55  ;;  %v1152_v55 = vor.u32 %v1151_v35, %v6882_v34  ;;  %v6964_v35 = vrot.slane %v1451_v16, 5 }
  0x6d   : > { %5653 = vmatprep.subr.bf16.mxu0 %v6216_v58  ;;  %6166 = vmatprep.subr.bf16.mxu1 %v6216_v58  ;;  %v6911_v58 = vrot.slane %v1427_v41, 5  ;;  %v1184_v41 = vshrl.u32 %v1033_v20, 16 }
  0x6f   : > { %v1186_v7 = vrot.slane %v1184_v41, 4  ;;  %v6260_v41 = vld [vmem:[%s8903_s1 + $0x180] sm:$0xff]  }
  0x70   : > { %5654 = vmatpush3.bf16.msra.mxu0 %v6217_v60  ;;  %6174 = vmatpush3.bf16.msra.mxu1 %v6217_v60  ;;  %v1056_v60 = vld [vmem:[%s6824_s29 + $0xac] sm:$0xf] }
  0x71   : > { %5751 = vmatprep.subr.bf16.mxu1 %v6222_v2  ;;  %5863 = vmatprep.subr.bf16.mxu0 %v6225_v3  ;;  %v6929_v2 = vrot.slane %v1152_v55, 4  ;;  %v5231_v3 = vcombine.low %v1031_v53, %v1032_v56  ;;  %v1461_v22 = vshrl.u32 %v1056_v60, 16  ;;  %v1197_v53 = vshrl.u32 %v1034_v21, 16 }
  0x72   : > { %v1124_v21 = vsel %vm7024_vm2, %v6894_v45, %v6856_v10 }
  0x73   : > { %3811 = vmatmul.mubr.bf16.vlgmr.msra.gmra.mrb[0].mxu0 %v5229_v4  ;;  %3907 = vmatmul.mubr.bf16.vlgmr.msra.gmra.mrb[0].mxu1 %v5241_v11  ;;  %v5243_v4 = vcombine.low %v1055_v57, %v1056_v60  ;;  %v6246_v11 = vld [vmem:[%s6824_s29 + $0xf0] sm:$0xff]   ;;  %v6996_v57 = vld [vmem:[%s6824_s29 + $0x19c] sm:$0xf] }
  0x74   : > { %5752 = vmatpush3.bf16.msra.mxu1 %v6223_v12  ;;  %5864 = vmatpush3.bf16.msra.mxu0 %v6227_v14  ;;  %v1406_v12 = vor.u32 %v6886_v39, %v6884_v36  ;;  %v1173_v14 = vshrl.u32 %v1032_v56, 16  ;;  %v6251_v39 = vld [vmem:[%s8903_s1 + $0xb0] sm:$0xff]  }
  0x75   : > { %5753 = vmatprep.subr.bf16.mxu1 %v6224_v13  ;;  %3818 = vmatprep.mubr.bf16.mxu0 %v6228_v17  ;;  %v1416_v13 = vor.u32 %v1415_v47, %v6888_v40  ;;  %v6247_v17 = vld [vmem:[%s6824_s29 + $0x180] sm:$0xff]   ;;  %v1166_v47 = vor.u32 %v1165_v27, %v1162_v26  ;;  %v6261_v26 = vld [vmem:[%s6824_s29 + $0x108] sm:$0xff]  }
  0x76   : > { %3914 = vmatprep.mubr.bf16.mxu1 %v6229_v18  ;;  %5865 = vmatprep.subr.bf16.mxu0 %v6241_v62  ;;  %v1457_v18 = vshll.u32 %v1056_v60, 16  ;;  %v6956_v28 = vrot.slane %v1406_v12, 4  ;;  %v1175_v31 = vrot.slane %v1173_v14, 4  ;;  %v6256_v56 = vld [vmem:[%s6824_s29 + $0xfc] sm:$0xff]   ;;  %v7038_v27 = vld [vmem:[%s6824_s29 + $0x1a8] sm:$0xf] }
  0x77   : > { %v6999_v60 = vrot.slane %v1166_v47, 4  ;;  %v1093_v47 = vld [vmem:[%s6824_s29 + $0x14] sm:$0x1] }
  0x78   : > { %5754 = vmatpush3.bf16.msra.mxu1 %v6226_v23  ;;  %5866 = vmatpush3.bf16.msra.mxu0 %v6243_v0  ;;  %v6948_v23 = vld [vmem:[%s6824_s29 + $0xb4] sm:$0xf]  ;;  %v6966_v36 = vrot.slane %v1457_v18, 5 }
  0x79   : > { %5755 = vmatprep.subr.bf16.mxu1 %v6232_v29  ;;  %v6958_v29 = vrot.slane %v1416_v13, 4  ;;  %v1472_v55 = vshrl.u32 %v6948_v23, 16  ;;  %v1481_v13 = vshll.u32 %v6951_v24, 16 }
  0x7b   : > { %3819 = vmatmul.mubr.bf16.gmra.mrb[4].mxu0 %v5230_v37  ;;  %3915 = vmatmul.mubr.bf16.gmra.mrb[4].mxu1 %v5242_v38  ;;  %v5244_v37 = vcombine.low %v6948_v23, %v6951_v24  ;;  %v6970_v38 = vrot.slane %v1461_v22, 4  ;;  %v7016_v12 = vrot.slane %v1472_v55, 4 }
  0x7c   : > { %5756 = vmatpush3.bf16.msra.mxu1 %v6233_v43  ;;  %3826 = vmatprep.mubr.bf16.mxu0 %v6236_v44  ;;  %v1187_v43 = vshll.u32 %v1033_v20, 16  ;;  %v6253_v44 = vld [vmem:[%s8903_s1 + $0x150] sm:$0xff]  }
  0x7d   : > { %5757 = vmatprep.subr.bf16.mxu1 %v6234_v49  ;;  %3922 = vmatprep.mubr.bf16.mxu1 %v6237_v50  ;;  %v1176_v49 = vor.u32 %v1175_v31, %v6960_v30  ;;  %v1430_v50 = vor.u32 %v6911_v58, %v6898_v48  ;;  %v6993_v48 = vld [vmem:[%s6824_s29 + $0x198] sm:$0xf]  ;;  %v1475_v58 = vshll.u32 %v6948_v23, 16 }
  0x7e   : > { %5867 = vmatprep.subr.bf16.mxu0 %v6253_v44  ;;  %v5277_v0 = vcombine.low %v6993_v48, %v6996_v57  ;;  %v7061_v44 = vld [vmem:[%s6824_s29 + $0x40] sm:$0xf] }
  0x7f   : > { %5868 = vmatpush3.bf16.msra.mxu0 %v6255_v54  ;;  %v7003_v62 = vrot.slane %v1430_v50, 4  ;;  %v1477_v18 = vrot.slane %v1475_v58, 5  ;;  %v1587_v54 = vshll.u32 %v6996_v57, 16 }
  0x80   : > { %5758 = vmatpush3.bf16.msra.mxu1 %v6235_v52  ;;  %v6254_v52 = vld [vmem:[%s8903_s1 + $0xb8] sm:$0xff]  }
  0x81   : > { %5759 = vmatprep.subr.bf16.mxu1 %v6240_v61  ;;  %v7001_v61 = vrot.slane %v1176_v49, 4  ;;  %8913 = vst [vmem:[#allocation4_spill] sm:$0xff] %v7003_v62  ;;  %v1478_v51 = vor.u32 %v1477_v18, %v7016_v12  ;;  %v7121_v18 = vld [vmem:[%s6824_s29 + $0x48] sm:$0xf] }
  0x83   : > { %3827 = vmatmul.mubr.bf16.gmra.mrb[8].mxu0 %v5231_v3  ;;  %3923 = vmatmul.mubr.bf16.gmra.mrb[8].mxu1 %v5243_v4  ;;  %v1035_v3 = vld [vmem:[%s6824_s29 + $0x30] sm:$0xf]  ;;  %v7009_v4 = vld [vmem:[%s6824_s29 + $0x34] sm:$0xf] }
  0x84   : > { %5760 = vmatpush3.bf16.msra.mxu1 %v6242_v6  ;;  %3834 = vmatprep.mubr.bf16.mxu0 %v6246_v11  ;;  %v1440_v6 = vor.u32 %v6922_v63, %v6913_v59  ;;  %v1199_v11 = vrot.slane %v1197_v53, 4  ;;  %v1208_v14 = vshrl.u32 %v1035_v3, 16  ;;  %v1211_v15 = vshll.u32 %v1035_v3, 16 }
  0x85   : > { %5761 = vmatprep.subr.bf16.mxu1 %v6244_v8  ;;  %3930 = vmatprep.mubr.bf16.mxu1 %v6247_v17  ;;  %v1189_v8 = vrot.slane %v1187_v43, 5  ;;  %v5233_v16 = vcombine.low %v1035_v3, %v7009_v4  ;;  %v1131_v63 = vshll.u32 %v1092_v5, 16  ;;  %v6259_v17 = vld [vmem:[%s8903_s1 + $0x1c0] sm:$0xff]   ;;  %v1581_v53 = vshll.u32 %v6993_v48, 16 }
  0x86   : > { %v7040_v31 = vrot.slane %v1440_v6, 4  ;;  %v1210_v10 = vrot.slane %v1208_v14, 4  ;;  %v1213_v45 = vrot.slane %v1211_v15, 5  ;;  %v1217_v3 = vshll.u32 %v7009_v4, 16  ;;  %v6266_v6 = vld [vmem:[%s6824_s29 + $0x114] sm:$0xff]  }
  0x87   : > { %v1133_v22 = vrot.slane %v1131_v63, 5  ;;  %v1190_v23 = vor.u32 %v1189_v8, %v1186_v7  ;;  %v1221_v5 = vshrl.u32 %v7009_v4, 16  ;;  %v6269_v4 = vld [vmem:[%s8903_s1 + $0x1c8] sm:$0xff]   ;;  %v7107_v14 = vld [vmem:[%s6824_s29 + $0x1b4] sm:$0xf] }
  0x88   : > { %5762 = vmatpush3.bf16.msra.mxu1 %v6245_v19  ;;  %v1485_v19 = vshrl.u32 %v6951_v24, 16  ;;  %v7035_v24 = vld [vmem:[%s6824_s29 + $0x1a4] sm:$0xf]  ;;  %v1214_v7 = vor.u32 %v1213_v45, %v1210_v10 }
  0x89   : > { %5763 = vmatprep.subr.bf16.mxu1 %v6250_v25  ;;  %v1200_v25 = vor.u32 %v1199_v11, %v7014_v9  ;;  %v7090_v11 = vld [vmem:[%s6824_s29 + $0x1b0] sm:$0xf]  ;;  %v7138_v10 = vrot.slane %v1221_v5, 4  ;;  %v1605_v45 = vshll.u32 %v7035_v24, 16 }
  0x8a   : > { %v7064_v49 = vrot.slane %v1485_v19, 4  ;;  %v7124_v19 = vld [vmem:[%s6824_s29 + $0x4c] sm:$0xf]  ;;  %v1626_v5 = vshrl.u32 %v7090_v11, 16 }
  0x8b   : > { %3835 = vmatmul.mubr.bf16.gmra.mrb[12].mxu0 %v5232_v33  ;;  %3931 = vmatmul.mubr.bf16.gmra.mrb[12].mxu1 %v5244_v37  ;;  %v1454_v33 = vor.u32 %v6964_v35, %v6962_v32  ;;  %v7044_v37 = vrot.slane %v1481_v13, 5  ;;  %v5278_v32 = vcombine.low %v7035_v24, %v7038_v27  ;;  %v7058_v35 = vld [vmem:[%s6824_s29 + $0x3c] sm:$0xf]  ;;  %v7068_v50 = vrot.slane %v1200_v25, 4 }
  0x8c   : > { %5764 = vmatpush3.bf16.msra.mxu1 %v6251_v39  ;;  %3842 = vmatprep.mubr.bf16.mxu0 %v6256_v56  ;;  %v1134_v39 = vsel %vm7024_vm2, %v6896_v46, %v1133_v22  ;;  %8917 = vst [vmem:[#allocation6_spill] sm:$0xff] %v7064_v49  ;;  %v7066_v46 = vrot.slane %v1190_v23, 4  ;;  %v1591_v56 = vshrl.u32 %v6996_v57, 16  ;;  %v5234_v58 = vcombine.low %v7058_v35, %v7061_v44  ;;  %v5133_v49 = vld [vmem:[%s6824_s29 + $0x1a0] sm:$0x1] }
  0x8d   : > { %5765 = vmatprep.subr.bf16.mxu1 %v6252_v42  ;;  %3971 = vmatprep.mubr.bf16.mxu1 %v5277_v0  ;;  %8916 = vst [vmem:[#allocation5_spill] sm:$0xff] %v7044_v37  ;;  %v6264_v42 = vld [vmem:[%s8903_s1 + $0x158] sm:$0xff]   ;;  %v5261_v43 = vcombine.low %v1124_v21, %v1134_v39  ;;  %v7074_v55 = vrot.slane %v1454_v33, 4  ;;  %v1155_v0 = vshll.u32 %v1093_v47, 16  ;;  %v1148_v57 = vsel %vm7024_vm2, %v6927_v1, %v6882_v34  ;;  %v1094_v21 = vld [vmem:[%s6824_s29 + $0x20] sm:$0x1] }
  0x8e   : > { %5869 = vmatprep.subr.bf16.mxu0 %v6264_v42  ;;  %v1602_v1 = vshrl.u32 %v7035_v24, 16  ;;  %v7127_v22 = vrot.slane %v1581_v53, 5  ;;  %v7129_v23 = vrot.slane %v1587_v54, 5  ;;  %v7131_v25 = vrot.slane %v1591_v56, 4  ;;  %v6271_v47 = vld [vmem:[%s8903_s1 + $0x160] sm:$0xff]  }
  0x8f   : > { %8918 = vst [vmem:[#allocation7_spill] sm:$0xff] %v7074_v55  ;;  %v1157_v8 = vrot.slane %v1155_v0, 5  ;;  %v7136_v33 = vrot.slane %v1217_v3, 5  ;;  %v7141_v39 = vrot.slane %v1214_v7, 4  ;;  %v1615_v42 = vshrl.u32 %v7038_v27, 16 }
  0x90   : > { %5766 = vmatpush3.bf16.msra.mxu1 %v6254_v52  ;;  %v1578_v52 = vshrl.u32 %v6993_v48, 16  ;;  %v6265_v48 = vld [vmem:[%s8903_s1 + $0x118] sm:$0xff]   ;;  %v1232_v24 = vshrl.u32 %v7058_v35, 16  ;;  %v1241_v56 = vshll.u32 %v7061_v44, 16  ;;  %v7174_v3 = vrot.slane %v1605_v45, 5 }
  0x91   : > { %5975 = vmatprep.subr.bf16.mxu1 %v6259_v17  ;;  %5870 = vmatpush3.bf16.msra.mxu0 %v6265_v48  ;;  %v1158_v63 = vsel %vm7024_vm2, %v6929_v2, %v1157_v8  ;;  %v5279_v17 = vcombine.low %v7090_v11, %v7107_v14  ;;  %v6270_v2 = vld [vmem:[%s8903_s1 + $0x188] sm:$0xff]   ;;  %v1629_v48 = vshll.u32 %v7090_v11, 16  ;;  %v7179_v7 = vld [vmem:[%s6824_s29 + $0x1c0] sm:$0xf]  ;;  %v7187_v8 = vld [vmem:[%s6824_s29 + $0x54] sm:$0xf] }
  0x92   : > { %v7103_v34 = vrot.slane %v1578_v52, 4  ;;  %v1235_v52 = vshll.u32 %v7058_v35, 16  ;;  %5871 = vmatprep.subr.bf16.mxu0 %v6271_v47  ;;  %v6272_v35 = vld [vmem:[%s8903_s1 + $0x120] sm:$0xff]   ;;  %v7172_v0 = vld [vmem:[%s6824_s29 + $0x1bc] sm:$0xf]  ;;  %v7194_v11 = vrot.slane %v1232_v24, 4 }
  0x93   : > { %3843 = vmatmul.mubr.bf16.gmra.mrb[16].mxu0 %v5233_v16  ;;  %3972 = vmatmul.mubr.bf16.vlgmr.msra.gmra.mrb[16].mxu1 %v5261_v43  ;;  %v7113_v16 = vrot.slane %v1478_v51, 4  ;;  %v5235_v43 = vcombine.low %v7121_v18, %v7124_v19  ;;  %v7150_v51 = vrot.slane %v1602_v1, 4  ;;  %v7192_v1 = vrot.slane %v1615_v42, 4  ;;  %v6279_v24 = vld [vmem:[%s8903_s1 + $0x168] sm:$0xff]  }
  0x94   : > { %3850 = vmatprep.mubr.bf16.mxu0 %v6261_v26  ;;  %5976 = vmatpush3.bf16.msra.mxu1 %v6260_v41  ;;  %v5262_v26 = vcombine.low %v1148_v57, %v1158_v63  ;;  %v1611_v41 = vshll.u32 %v7038_v27, 16  ;;  %v1172_v27 = vsel %vm7024_vm2, %v6999_v60, %v6960_v30  ;;  %v6273_v60 = vld [vmem:[%s6824_s29 + $0x120] sm:$0xff]   ;;  %v1635_v57 = vshll.u32 %v7107_v14, 16  ;;  %v7431_v55 = vld [vmem:[%s6824_s29 + $0x1fc] sm:$0xf] }
  0x95   : > { %3979 = vmatprep.mubr.bf16.mxu1 %v5278_v32  ;;  %8919 = vst [vmem:[#allocation8_spill] sm:$0xff] %v7113_v16  ;;  %5977 = vmatprep.subr.bf16.mxu1 %v6269_v4  ;;  %v1179_v32 = vshll.u32 %v1094_v21, 16  ;;  %v7190_v4 = vld [vmem:[%s6824_s29 + $0x58] sm:$0xf]  ;;  %v7196_v63 = vrot.slane %v1235_v52, 5  ;;  %v1256_v45 = vshrl.u32 %v7121_v18, 16  ;;  %v1224_v42 = vor.u32 %v7138_v10, %v7136_v33 }
  0x96   : > { %5872 = vmatpush3.bf16.msra.mxu0 %v6272_v35  ;;  %v1095_v21 = vld [vmem:[%s6824_s29 + $0x2c] sm:$0x1]  ;;  %v7217_v52 = vrot.slane %v1635_v57, 5  ;;  %v1196_v10 = vsel %vm7024_vm2, %v7066_v46, %v7014_v9  ;;  %v7239_v9 = vld [vmem:[%s6824_s29 + $0x60] sm:$0xf] }
  0x97   : > { %v1181_v53 = vrot.slane %v1179_v32, 5  ;;  %v7210_v32 = vrot.slane %v1629_v48, 5  ;;  %v1203_v47 = vshll.u32 %v1095_v21, 16  ;;  %5873 = vmatprep.subr.bf16.mxu0 %v6279_v24  ;;  %v7242_v46 = vld [vmem:[%s6824_s29 + $0x64] sm:$0xf]  ;;  %v6281_v48 = vld [vmem:[%s8903_s1 + $0x128] sm:$0xff]  }
  0x98   : > { %5978 = vmatpush3.bf16.msra.mxu1 %v6270_v2  ;;  %v6282_v21 = vld [vmem:[%s8903_s1 + $0x190] sm:$0xff]  }
  0x99   : > { %v1182_v30 = vsel %vm7024_vm2, %v7001_v61, %v1181_v53  ;;  %v5280_v61 = vcombine.low %v7172_v0, %v7179_v7  ;;  %v7227_v53 = vld [vmem:[%s6824_s29 + $0x1cc] sm:$0xf] }
  0x9a   : > { %5874 = vmatpush3.bf16.msra.mxu0 %v6281_v48  ;;  %v1289_v48 = vshll.u32 %v7190_v4, 16 }
  0x9b   : > { %3851 = vmatmul.mubr.bf16.gmra.mrb[20].mxu0 %v5234_v58  ;;  %3980 = vmatmul.mubr.bf16.gmra.mrb[20].mxu1 %v5262_v26  ;;  %v1245_v58 = vshrl.u32 %v7061_v44, 16  ;;  %v7181_v44 = vrot.slane %v1611_v41, 5  ;;  %v7200_v26 = vrot.slane %v1241_v56, 5  ;;  %v6276_v41 = vld [vmem:[%s6824_s29 + $0x12c] sm:$0xff]  }
  0x9c   : > { %3858 = vmatprep.mubr.bf16.mxu0 %v6266_v6  ;;  %3987 = vmatprep.mubr.bf16.mxu1 %v5279_v17  ;;  %v5263_v6 = vcombine.low %v1172_v27, %v1182_v30  ;;  %v1639_v17 = vshrl.u32 %v7107_v14, 16  ;;  %v5236_v14 = vcombine.low %v7187_v8, %v7190_v4  ;;  %v7224_v27 = vld [vmem:[%s6824_s29 + $0x1c8] sm:$0xf]  ;;  %v6280_v56 = vld [vmem:[%s8903_s1 + $0x1d0] sm:$0xff]   ;;  %v1265_v30 = vshll.u32 %v7124_v19, 16 }
  0x9d   : > { %v7202_v2 = vrot.slane %v1245_v58, 4  ;;  %v1259_v58 = vshll.u32 %v7121_v18, 16  ;;  %5979 = vmatprep.subr.bf16.mxu1 %v6280_v56  ;;  %v1269_v18 = vshrl.u32 %v7124_v19, 16  ;;  %v5281_v57 = vcombine.low %v7224_v27, %v7227_v53  ;;  %v6286_v56 = vld [vmem:[%s8903_s1 + $0x170] sm:$0xff]  }
  0x9e   : > { %v7232_v35 = vrot.slane %v1639_v17, 4  ;;  %v1225_v17 = vrot.slane %v1224_v42, 4  ;;  %5980 = vmatpush3.bf16.msra.mxu1 %v6282_v21  ;;  %v6283_v42 = vld [vmem:[%s6824_s29 + $0x138] sm:$0xff]   ;;  %5875 = vmatprep.subr.bf16.mxu0 %v6286_v56  ;;  %v7279_v21 = vld [vmem:[%s6824_s29 + $0x1d4] sm:$0xf] }
  0xa3   : > { %3859 = vmatmul.mubr.bf16.gmra.mrb[24].mxu0 %v5235_v43  ;;  %3988 = vmatmul.mubr.bf16.gmra.mrb[24].mxu1 %v5263_v6  ;;  %v7208_v43 = vrot.slane %v1626_v5, 4  ;;  %v7236_v5 = vrot.slane %v1256_v45, 4  ;;  %v1650_v45 = vshrl.u32 %v7172_v0, 16 }
  0xa4   : > { %3866 = vmatprep.mubr.bf16.mxu0 %v6273_v60  ;;  %3995 = vmatprep.mubr.bf16.mxu1 %v5280_v61  ;;  %v1205_v60 = vrot.slane %v1203_v47, 5  ;;  %v1096_v61 = vld [vmem:[%s6824_s29 + $0x38] sm:$0x1]  ;;  %v1663_v47 = vshrl.u32 %v7179_v7, 16 }
  0xa5   : > { %v1227_v24 = vshll.u32 %v1096_v61, 16 }
  0xa6   : > { %v1206_v6 = vsel %vm7024_vm2, %v7068_v50, %v1205_v60  ;;  %v5237_v50 = vcombine.low %v7239_v9, %v7242_v46  ;;  %v1283_v60 = vshll.u32 %v7187_v8, 16 }
  0xa7   : > { %v5264_v19 = vcombine.low %v1196_v10, %v1206_v6  ;;  %v1280_v10 = vshrl.u32 %v7187_v8, 16  ;;  %v1229_v6 = vrot.slane %v1227_v24, 5  ;;  %v1261_v8 = vrot.slane %v1259_v58, 5  ;;  %v7296_v24 = vld [vmem:[%s6824_s29 + $0x6c] sm:$0xf] }
  0xa9   : > { %v1230_v61 = vsel %vm7024_vm2, %v1225_v17, %v1229_v6  ;;  %v7307_v56 = vrot.slane %v1280_v10, 4  ;;  %v7312_v6 = vrot.slane %v1289_v48, 5  ;;  %v1677_v10 = vshll.u32 %v7224_v27, 16 }
  0xab   : > { %3867 = vmatmul.mubr.bf16.gmra.mrb[28].mxu0 %v5236_v14  ;;  %v1659_v14 = vshll.u32 %v7179_v7, 16  ;;  %3996 = vmatmul.mubr.bf16.gmra.mrb[28].mxu1 %v5264_v19  ;;  %v1238_v7 = vor.u32 %v7196_v63, %v7194_v11  ;;  %v7286_v11 = vrot.slane %v1265_v30, 5  ;;  %v1271_v63 = vrot.slane %v1269_v18, 4  ;;  %v6287_v19 = vld [vmem:[%s8903_s1 + $0x130] sm:$0xff]  }
  0xac   : > { %3874 = vmatprep.mubr.bf16.mxu0 %v6276_v41  ;;  %v1653_v41 = vshll.u32 %v7172_v0, 16  ;;  %v1220_v0 = vsel %vm7024_vm2, %v7141_v39, %v7136_v33  ;;  %4003 = vmatprep.mubr.bf16.mxu1 %v5281_v57  ;;  %v7282_v33 = vld [vmem:[%s6824_s29 + $0x1d8] sm:$0xf]  ;;  %v1248_v39 = vor.u32 %v7202_v2, %v7200_v26  ;;  %v7299_v2 = vld [vmem:[%s6824_s29 + $0x70] sm:$0xf] }
  0xad   : > { %v5265_v57 = vcombine.low %v1220_v0, %v1230_v61  ;;  %v5282_v17 = vcombine.low %v7279_v21, %v7282_v33  ;;  %v1239_v58 = vrot.slane %v1238_v7, 4  ;;  %v7303_v18 = vrot.slane %v1659_v14, 5  ;;  %v1097_v0 = vld [vmem:[%s6824_s29 + $0x44] sm:$0x1]  ;;  %5876 = vmatpush3.bf16.msra.mxu0 %v6287_v19 }
  0xae   : > { %v7301_v30 = vrot.slane %v1653_v41, 5  ;;  %v1293_v61 = vshrl.u32 %v7190_v4, 16  ;;  %v1249_v54 = vrot.slane %v1248_v39, 4  ;;  %v5238_v41 = vcombine.low %v7296_v24, %v7299_v2 }
  0xaf   : > { %v1251_v14 = vshll.u32 %v1097_v0, 16  ;;  %v1674_v7 = vshrl.u32 %v7224_v27, 16  ;;  %v1683_v4 = vshll.u32 %v7227_v53, 16  ;;  %v1244_v48 = vsel %vm7024_vm2, %v1239_v58, %v7200_v26  ;;  %v7339_v26 = vld [vmem:[%s6824_s29 + $0x78] sm:$0xf] }
  0xb0   : > { %v1272_v19 = vor.u32 %v1271_v63, %v7286_v11  ;;  %v1687_v0 = vshrl.u32 %v7227_v53, 16  ;;  %v1304_v27 = vshrl.u32 %v7239_v9, 16  ;;  %v7342_v58 = vld [vmem:[%s6824_s29 + $0x7c] sm:$0xf]  ;;  %v1098_v63 = vld [vmem:[%s6824_s29 + $0x50] sm:$0x1] }
  0xb1   : > { %v1253_v39 = vrot.slane %v1251_v14, 5  ;;  %v1317_v53 = vshrl.u32 %v7242_v46, 16  ;;  %v1295_v12 = vrot.slane %v1293_v61, 4  ;;  %v7351_v16 = vrot.slane %v1674_v7, 4  ;;  %v6292_v61 = vld [vmem:[%s8903_s1 + $0x198] sm:$0xff]  }
  0xb2   : > { %v7364_v7 = vrot.slane %v1304_v27, 4  ;;  %v1328_v27 = vshrl.u32 %v7296_v24, 16  ;;  %v1365_v59 = vshrl.u32 %v7342_v58, 16 }
  0xb3   : > { %3875 = vmatmul.mubr.bf16.gmra.mrb[32].mxu0 %v5237_v50  ;;  %v7291_v50 = vrot.slane %v1650_v45, 4  ;;  %v7310_v45 = vrot.slane %v1283_v60, 5  ;;  %4004 = vmatmul.mubr.bf16.gmra.mrb[32].mxu1 %v5265_v57  ;;  %v1262_v60 = vor.u32 %v1261_v8, %v7236_v5  ;;  %v7326_v57 = vld [vmem:[%s6824_s29 + $0x1e0] sm:$0xf]  ;;  %v1313_v5 = vshll.u32 %v7242_v46, 16 }
  0xb4   : > { %3882 = vmatprep.mubr.bf16.mxu0 %v6283_v42  ;;  %v7305_v42 = vrot.slane %v1663_v47, 4  ;;  %v6288_v47 = vld [vmem:[%s6824_s29 + $0x144] sm:$0xff]   ;;  %4011 = vmatprep.mubr.bf16.mxu1 %v5282_v17  ;;  %v1307_v17 = vshll.u32 %v7239_v9, 16  ;;  %v1254_v15 = vsel %vm7024_vm2, %v1249_v54, %v1253_v39  ;;  %v7353_v54 = vrot.slane %v1677_v10, 5 }
  0xb5   : > { %v7334_v8 = vld [vmem:[%s6824_s29 + $0x1e4] sm:$0xf]  ;;  %v5266_v14 = vcombine.low %v1244_v48, %v1254_v15  ;;  %v1263_v13 = vrot.slane %v1262_v60, 4  ;;  %v7357_v39 = vrot.slane %v1687_v0, 4  ;;  %v5239_v15 = vcombine.low %v7339_v26, %v7342_v58 }
  0xb6   : > { %v5283_v9 = vcombine.low %v7326_v57, %v7334_v8  ;;  %v1273_v46 = vrot.slane %v1272_v19, 4  ;;  %v1275_v60 = vshll.u32 %v1098_v63, 16  ;;  %v7366_v10 = vrot.slane %v1307_v17, 5  ;;  %v6293_v63 = vld [vmem:[%s6824_s29 + $0x150] sm:$0xff]  }
  0xb7   : > { %v7370_v48 = vrot.slane %v1317_v53, 4  ;;  %v1268_v19 = vsel %vm7024_vm2, %v1263_v13, %v7286_v11  ;;  %v1331_v17 = vshll.u32 %v7296_v24, 16  ;;  %v1286_v53 = vor.u32 %v7310_v45, %v7307_v56  ;;  %v6296_v24 = vld [vmem:[%s8903_s1 + $0x178] sm:$0xff]  }
  0xb8   : > { %v1277_v0 = vrot.slane %v1275_v60, 5  ;;  %v1337_v13 = vshll.u32 %v7299_v2, 16  ;;  %v1341_v11 = vshrl.u32 %v7299_v2, 16  ;;  %v7398_v56 = vld [vmem:[%s6824_s29 + $0x88] sm:$0xf]  ;;  %v1296_v45 = vor.u32 %v1295_v12, %v7312_v6  ;;  %5877 = vmatprep.subr.bf16.mxu0 %v6296_v24 }
  0xb9   : > { %v7413_v12 = vrot.slane %v1331_v17, 5  ;;  %v1361_v2 = vshll.u32 %v7342_v58, 16  ;;  %v1310_v37 = vor.u32 %v7366_v10, %v7364_v7  ;;  %v6301_v58 = vld [vmem:[%s8903_s1 + $0x1a0] sm:$0xff]  }
  0xba   : > { %v7425_v17 = vrot.slane %v1341_v11, 4 }
  0xbb   : > { %3883 = vmatmul.mubr.bf16.gmra.mrb[36].mxu0 %v5238_v41  ;;  %v6291_v41 = vld [vmem:[%s8903_s1 + $0x1d8] sm:$0xff]   ;;  %4012 = vmatmul.mubr.bf16.gmra.mrb[36].mxu1 %v5266_v14  ;;  %v1584_v14 = vor.u32 %v7127_v22, %v7103_v34  ;;  %v1287_v34 = vrot.slane %v1286_v53, 4  ;;  %v1352_v22 = vshrl.u32 %v7339_v26, 16  ;;  %v1297_v53 = vrot.slane %v1296_v45, 4 }
  0xbc   : > { %3890 = vmatprep.mubr.bf16.mxu0 %v6288_v47  ;;  %v7355_v47 = vrot.slane %v1683_v4, 5  ;;  %5981 = vmatprep.subr.bf16.mxu1 %v6291_v41  ;;  %v7368_v4 = vrot.slane %v1313_v5, 5  ;;  %v7379_v41 = vld [vmem:[%s6824_s29 + $0x1ec] sm:$0xf]  ;;  %v7382_v5 = vld [vmem:[%s6824_s29 + $0x1f0] sm:$0xf] }
  0xbd   : > { %4019 = vmatprep.mubr.bf16.mxu1 %v5283_v9  ;;  %5982 = vmatpush3.bf16.msra.mxu1 %v6292_v61  ;;  %v1278_v9 = vsel %vm7024_vm2, %v1273_v46, %v1277_v0  ;;  %v7395_v61 = vld [vmem:[%s6824_s29 + $0x84] sm:$0xf]  ;;  %v5284_v46 = vcombine.low %v7379_v41, %v7382_v5  ;;  %v1099_v0 = vld [vmem:[%s6824_s29 + $0x5c] sm:$0x1]  ;;  %v1292_v11 = vsel %vm7024_vm2, %v1287_v34, %v7312_v6  ;;  %v1585_v45 = vrot.slane %v1584_v14, 4 }
  0xbe   : > { %v5267_v60 = vcombine.low %v1268_v19, %v1278_v9  ;;  %v1594_v19 = vor.u32 %v7131_v25, %v7129_v23  ;;  %v7411_v9 = vrot.slane %v1328_v27, 4  ;;  %v5240_v24 = vcombine.low %v7395_v61, %v7398_v56  ;;  %v6297_v25 = vld [vmem:[%s8903_s1 + $0x138] sm:$0xff]  }
  0xbf   : > { %v7423_v27 = vrot.slane %v1337_v13, 5  ;;  %5878 = vmatpush3.bf16.msra.mxu0 %v6297_v25  ;;  %v1320_v13 = vor.u32 %v7370_v48, %v7368_v4  ;;  %v7446_v25 = vrot.slane %v1352_v22, 4  ;;  %v7450_v7 = vrot.slane %v1361_v2, 5  ;;  %v6302_v2 = vld [vmem:[%s8903_s1 + $0x200] sm:$0xff]  }
  0xc0   : > { %v1608_v6 = vor.u32 %v7174_v3, %v7150_v51  ;;  %v1595_v14 = vrot.slane %v1594_v19, 4  ;;  %v1311_v34 = vrot.slane %v1310_v37, 4  ;;  %v7464_v51 = vrot.slane %v1365_v59, 4  ;;  %6111 = vmatprep.subr.bf16.mxu0 %v6302_v2 }
  0xc1   : > { %v1321_v22 = vrot.slane %v1320_v13, 4  ;;  %v1590_v3 = vsel %vm7024_vm2, %v1585_v45, %v7129_v23  ;;  %v1618_v37 = vor.u32 %v7192_v1, %v7181_v44  ;;  %v1334_v59 = vor.u32 %v7413_v12, %v7411_v9  ;;  %v7485_v9 = vld [vmem:[%s6824_s29 + $0x204] sm:$0xf]  ;;  %v1101_v12 = vld [vmem:[%s6824_s29 + $0x74] sm:$0x1] }
  0xc2   : > { %v1379_v13 = vshll.u32 %v7395_v61, 16  ;;  %v1609_v45 = vrot.slane %v1608_v6, 4  ;;  %v1316_v1 = vsel %vm7024_vm2, %v1311_v34, %v7368_v4  ;;  %v1632_v6 = vor.u32 %v7210_v32, %v7208_v43 }
  0xc3   : > { %3891 = vmatmul.mubr.bf16.gmra.mrb[40].mxu0 %v5239_v15  ;;  %v1355_v15 = vshll.u32 %v7339_v26, 16  ;;  %4020 = vmatmul.mubr.bf16.gmra.mrb[40].mxu1 %v5267_v60  ;;  %v7428_v26 = vld [vmem:[%s6824_s29 + $0x1f8] sm:$0xf]  ;;  %v1389_v4 = vshrl.u32 %v7398_v56, 16  ;;  %v1347_v32 = vshll.u32 %v1101_v12, 16 }
  0xc4   : > { %3898 = vmatprep.mubr.bf16.mxu0 %v6293_v63  ;;  %v1299_v63 = vshll.u32 %v1099_v0, 16  ;;  %4027 = vmatprep.mubr.bf16.mxu1 %v5284_v46  ;;  %v1100_v46 = vld [vmem:[%s6824_s29 + $0x68] sm:$0x1]  ;;  %v6300_v0 = vld [vmem:[%s8903_s1 + $0x1e0] sm:$0xff]   ;;  %v5285_v48 = vcombine.low %v7428_v26, %v7431_v55  ;;  %v7501_v34 = vrot.slane %v1379_v13, 5  ;;  %v1614_v43 = vsel %vm7024_vm2, %v1609_v45, %v7181_v44 }
  0xc5   : > { %v7448_v62 = vrot.slane %v1355_v15, 5  ;;  %5983 = vmatprep.subr.bf16.mxu1 %v6300_v0  ;;  %v1102_v13 = vld [vmem:[%s6824_s29 + $0x80] sm:$0x1]  ;;  %v1368_v45 = vor.u32 %v7464_v51, %v7450_v7  ;;  %v7534_v12 = vld [vmem:[%s6824_s29 + $0x214] sm:$0xf]  ;;  %v1391_v51 = vrot.slane %v1389_v4, 4 }
  0xc6   : > { %v1301_v60 = vrot.slane %v1299_v63, 5  ;;  %v1597_v63 = vshll.u32 %v5133_v49, 16  ;;  %5984 = vmatpush3.bf16.msra.mxu1 %v6301_v58  ;;  %v1376_v49 = vshrl.u32 %v7395_v61, 16  ;;  %v5134_v61 = vld [vmem:[%s6824_s29 + $0x1ac] sm:$0x1]  ;;  %v1344_v58 = vor.u32 %v7425_v17, %v7423_v27 }
  0xc8   : > { %v1302_v10 = vsel %vm7024_vm2, %v1297_v53, %v1301_v60  ;;  %v1599_v53 = vrot.slane %v1597_v63, 5  ;;  %v6299_v60 = vld [vmem:[%s6824_s29 + $0x264] sm:$0xff]   ;;  %v1619_v63 = vrot.slane %v1618_v37, 4 }
  0xc9   : > { %v5268_v15 = vcombine.low %v1292_v11, %v1302_v10  ;;  %v1385_v11 = vshll.u32 %v7398_v56, 16  ;;  %v7492_v10 = vld [vmem:[%s6824_s29 + $0x208] sm:$0xf] }
  0xca   : > { %v1600_v23 = vsel %vm7024_vm2, %v1595_v14, %v1599_v53  ;;  %v7498_v14 = vrot.slane %v1376_v49, 4  ;;  %v1349_v53 = vrot.slane %v1347_v32, 5  ;;  %v6304_v49 = vld [vmem:[%s6824_s29 + $0x270] sm:$0xff]   ;;  %v6307_v37 = vld [vmem:[%s8903_s1 + $0x1e8] sm:$0xff]  }
  0xcb   : > { %3899 = vmatmul.mubr.bf16.gmra.mrb[44].mxu0 %v5240_v24  ;;  %v1323_v24 = vshll.u32 %v1100_v46, 16  ;;  %4028 = vmatmul.mubr.bf16.gmra.mrb[44].mxu1 %v5268_v15  ;;  %v5309_v46 = vcombine.low %v1590_v3, %v1600_v23  ;;  %v1621_v15 = vshll.u32 %v5134_v61, 16  ;;  %v7508_v3 = vrot.slane %v1385_v11, 5  ;;  %v7522_v23 = vld [vmem:[%s6824_s29 + $0x210] sm:$0xf] }
  0xcc   : > { %4035 = vmatprep.mubr.bf16.mxu1 %v5285_v48  ;;  %v1642_v48 = vor.u32 %v7232_v35, %v7217_v52  ;;  %v5286_v35 = vcombine.low %v7485_v9, %v7492_v10  ;;  %5985 = vmatprep.subr.bf16.mxu1 %v6307_v37  ;;  %v1382_v37 = vor.u32 %v7501_v34, %v7498_v14  ;;  %v6315_v34 = vld [vmem:[%s8903_s1 + $0x1b0] sm:$0xff]  }
  0xcd   : > { %v1325_v19 = vrot.slane %v1323_v24, 5  ;;  %4132 = vmatprep.mubr.bf16.mxu0 %v5309_v46  ;;  %v1623_v56 = vrot.slane %v1621_v15, 5  ;;  %v1345_v24 = vrot.slane %v1344_v58, 4  ;;  %v1371_v58 = vshll.u32 %v1102_v13, 16  ;;  %v6306_v13 = vld [vmem:[%s6824_s29 + $0x27c] sm:$0xff]  }
  0xcf   : > { %v1326_v0 = vsel %vm7024_vm2, %v1321_v22, %v1325_v19  ;;  %v1335_v22 = vrot.slane %v1334_v59, 4  ;;  %v5135_v19 = vld [vmem:[%s6824_s29 + $0x1b8] sm:$0x1]  ;;  %v1624_v44 = vsel %vm7024_vm2, %v1619_v63, %v1623_v56  ;;  %v1680_v63 = vor.u32 %v7353_v54, %v7351_v16  ;;  %v5136_v54 = vld [vmem:[%s6824_s29 + $0x1c4] sm:$0x1] }
  0xd0   : > { %v5269_v17 = vcombine.low %v1316_v1, %v1326_v0  ;;  %v6308_v59 = vld [vmem:[%s8903_s1 + $0x1a8] sm:$0xff]   ;;  %v5310_v11 = vcombine.low %v1614_v43, %v1624_v44  ;;  %v1350_v1 = vsel %vm7024_vm2, %v1345_v24, %v1349_v53  ;;  %v1643_v0 = vrot.slane %v1642_v48, 4 }
  0xd1   : > { %v1340_v46 = vsel %vm7024_vm2, %v1335_v22, %v7423_v27  ;;  %v1645_v61 = vshll.u32 %v5135_v19, 16  ;;  %5986 = vmatpush3.bf16.msra.mxu1 %v6308_v59  ;;  %v1666_v27 = vor.u32 %v7305_v42, %v7303_v18  ;;  %v1369_v43 = vrot.slane %v1368_v45, 4  ;;  %v1103_v53 = vld [vmem:[%s6824_s29 + $0x8c] sm:$0x1] }
  0xd2   : > { %v5270_v15 = vcombine.low %v1340_v46, %v1350_v1  ;;  %v1373_v32 = vrot.slane %v1371_v58, 5  ;;  %v8921_v42 = vshll.u32 %v7279_v21, 16  ;;  %v1725_v19 = vshll.u32 %v7326_v57, 16 }
  0xd3   : > { %4133 = vmatmul.mubr.bf16.vlgmr.msra.gmra.mrb[48].mxu0 %v6299_v60  ;;  %4036 = vmatmul.mubr.bf16.gmra.mrb[48].mxu1 %v5269_v17  ;;  %v1358_v60 = vor.u32 %v7448_v62, %v7446_v25  ;;  %v6309_v62 = vld [vmem:[%s8903_s1 + $0x208] sm:$0xff]   ;;  %v1656_v25 = vor.u32 %v7301_v30, %v7291_v50  ;;  %v1647_v48 = vrot.slane %v1645_v61, 5  ;;  %v8920_v50 = vshrl.u32 %v7279_v21, 16 }
  0xd4   : > { %6112 = vmatpush3.bf16.msra.mxu0 %v6302_v2  ;;  %v1633_v2 = vrot.slane %v1632_v6, 4  ;;  %4043 = vmatprep.mubr.bf16.mxu1 %v5286_v35  ;;  %v7554_v4 = vrot.slane %v8921_v42, 5  ;;  %v8922_v35 = vshll.u32 %v7282_v33, 16  ;;  %v1690_v21 = vor.u32 %v7357_v39, %v7355_v47 }
  0xd5   : > { %4140 = vmatprep.mubr.bf16.mxu0 %v5310_v11  ;;  %v1359_v17 = vrot.slane %v1358_v60, 4  ;;  %6113 = vmatprep.subr.bf16.mxu0 %v6309_v62  ;;  %v7550_v30 = vrot.slane %v8920_v50, 4  ;;  %v1648_v16 = vsel %vm7024_vm2, %v1643_v0, %v1647_v48  ;;  %v1657_v24 = vrot.slane %v1656_v25, 4  ;;  %v7593_v0 = vld [vmem:[%s6824_s29 + $0x220] sm:$0xf] }
  0xd6   : > { %v1638_v6 = vsel %vm7024_vm2, %v1633_v2, %v7217_v52  ;;  %v5287_v52 = vcombine.low %v7522_v23, %v7534_v12  ;;  %v7563_v56 = vrot.slane %v8922_v35, 5  ;;  %v1392_v44 = vor.u32 %v1391_v51, %v7508_v3  ;;  %v6314_v2 = vld [vmem:[%s8903_s1 + $0x1f0] sm:$0xff]  }
  0xd7   : > { %v5311_v22 = vcombine.low %v1638_v6, %v1648_v16  ;;  %v1364_v39 = vsel %vm7024_vm2, %v1359_v17, %v7450_v7  ;;  %v1667_v59 = vrot.slane %v1666_v27, 4  ;;  %v1669_v14 = vshll.u32 %v5136_v54, 16  ;;  %v7590_v7 = vld [vmem:[%s6824_s29 + $0x21c] sm:$0xf]  ;;  %5987 = vmatprep.subr.bf16.mxu1 %v6314_v2  ;;  %v1104_v6 = vld [vmem:[%s6824_s29 + $0x98] sm:$0x1] }
  0xd8   : > { %6114 = vmatpush3.bf16.msra.mxu0 %v6309_v62  ;;  %v8923_v11 = vshrl.u32 %v7282_v33, 16  ;;  %v1731_v45 = vshll.u32 %v7334_v8, 16  ;;  %v1735_v46 = vshrl.u32 %v7334_v8, 16  ;;  %v1395_v1 = vshll.u32 %v1103_v53, 16  ;;  %v5137_v62 = vld [vmem:[%s6824_s29 + $0x1d0] sm:$0x1]  ;;  %5988 = vmatpush3.bf16.msra.mxu1 %v6315_v34 }
  0xd9   : > { %v1662_v61 = vsel %vm7024_vm2, %v1657_v24, %v7303_v18  ;;  %v1671_v58 = vrot.slane %v1669_v14, 5  ;;  %v6316_v33 = vld [vmem:[%s8903_s1 + $0x210] sm:$0xff]   ;;  %v7604_v8 = vrot.slane %v1725_v19, 5  ;;  %v1383_v51 = vrot.slane %v1382_v37, 4  ;;  %v7631_v37 = vld [vmem:[%s6824_s29 + $0x22c] sm:$0xf] }
  0xda   : > { %v1713_v60 = vrot.slane %v8923_v11, 4  ;;  %v1397_v18 = vrot.slane %v1395_v1, 5  ;;  %v1681_v17 = vrot.slane %v1680_v63, 4  ;;  %6115 = vmatprep.subr.bf16.mxu0 %v6316_v33  ;;  %v1691_v50 = vrot.slane %v1690_v21, 4  ;;  %v6311_v21 = vld [vmem:[%s6824_s29 + $0x288] sm:$0xff]  }
  0xdb   : > { %4141 = vmatmul.mubr.bf16.gmra.mrb[52].mxu0 %v6304_v49  ;;  %v1722_v49 = vshrl.u32 %v7326_v57, 16  ;;  %4044 = vmatmul.mubr.bf16.gmra.mrb[52].mxu1 %v5270_v15  ;;  %v1374_v57 = vsel %vm7024_vm2, %v1369_v43, %v1373_v32  ;;  %v1672_v48 = vsel %vm7024_vm2, %v1667_v59, %v1671_v58  ;;  %v1393_v15 = vrot.slane %v1392_v44, 4  ;;  %v5138_v44 = vld [vmem:[%s6824_s29 + $0x1dc] sm:$0x1] }
  0xdc   : > { %4148 = vmatprep.mubr.bf16.mxu0 %v5311_v22  ;;  %4051 = vmatprep.mubr.bf16.mxu1 %v5287_v52  ;;  %v5271_v27 = vcombine.low %v1364_v39, %v1374_v57  ;;  %v5288_v43 = vcombine.low %v7590_v7, %v7593_v0  ;;  %v5312_v32 = vcombine.low %v1662_v61, %v1672_v48  ;;  %v1693_v42 = vshll.u32 %v5137_v62, 16 }
  0xdd   : > { %v7602_v25 = vrot.slane %v1722_v49, 4  ;;  %6116 = vmatpush3.bf16.msra.mxu0 %v6316_v33  ;;  %v7611_v52 = vrot.slane %v1731_v45, 5  ;;  %v1419_v16 = vshll.u32 %v1104_v6, 16  ;;  %v1704_v54 = vor.u32 %v7554_v4, %v7550_v30  ;;  %v6313_v6 = vld [vmem:[%s6824_s29 + $0x294] sm:$0xff]  }
  0xde   : > { %v1737_v35 = vrot.slane %v1735_v46, 4  ;;  %v1686_v63 = vsel %vm7024_vm2, %v1681_v17, %v7355_v47  ;;  %v1695_v22 = vrot.slane %v1693_v42, 5  ;;  %v1746_v24 = vshrl.u32 %v7379_v41, 16  ;;  %v7628_v47 = vld [vmem:[%s6824_s29 + $0x228] sm:$0xf] }
  0xdf   : > { %v1749_v53 = vshll.u32 %v7379_v41, 16  ;;  %v1421_v49 = vrot.slane %v1419_v16, 5  ;;  %v1714_v19 = vor.u32 %v1713_v60, %v7563_v56  ;;  %v1388_v30 = vsel %vm7024_vm2, %v1383_v51, %v7508_v3  ;;  %v8925_v42 = vld [vmem:[#allocation4_spill] sm:$0xff]  ;;  %v8926_v16 = vld [vmem:[#allocation3_spill] sm:$0xff] }
  0xe0   : > { %v1398_v4 = vsel %vm7024_vm2, %v1393_v15, %v1397_v18  ;;  %v1696_v41 = vsel %vm7024_vm2, %v1691_v50, %v1695_v22  ;;  %v1464_v2 = vor.u32 %v6970_v38, %v6966_v36  ;;  %v1705_v3 = vrot.slane %v1704_v54, 4  ;;  %v7665_v15 = vld [vmem:[%s6824_s29 + $0x234] sm:$0xf]  ;;  %v7668_v18 = vld [vmem:[%s6824_s29 + $0x238] sm:$0xf] }
  0xe1   : > { %v5313_v39 = vcombine.low %v1686_v63, %v1696_v41  ;;  %v1422_v57 = vsel %vm7024_vm2, %v6958_v29, %v1421_v49  ;;  %v1728_v59 = vor.u32 %v7604_v8, %v7602_v25  ;;  %v1755_v14 = vshll.u32 %v7382_v5, 16  ;;  %v1106_v8 = vld [vmem:[%s6824_s29 + $0xb0] sm:$0x1]  ;;  %v6321_v22 = vld [vmem:[%s8903_s1 + $0x1f8] sm:$0xff]  }
  0xe2   : > { %v1759_v34 = vshrl.u32 %v7382_v5, 16  ;;  %v8924_v38 = vsel %vm7024_vm2, %v6956_v28, %v6888_v40  ;;  %v1738_v60 = vor.u32 %v1737_v35, %v7611_v52  ;;  %v5272_v29 = vcombine.low %v1388_v30, %v1398_v4  ;;  %v5139_v40 = vld [vmem:[%s6824_s29 + $0x1e8] sm:$0x1]  ;;  %5989 = vmatprep.subr.bf16.mxu1 %v6321_v22  ;;  %v5140_v4 = vld [vmem:[%s6824_s29 + $0x1f4] sm:$0x1] }
  0xe3   : > { %4149 = vmatmul.mubr.bf16.gmra.mrb[56].mxu0 %v6306_v13  ;;  %4052 = vmatmul.mubr.bf16.gmra.mrb[56].mxu1 %v5271_v27  ;;  %v1105_v13 = vld [vmem:[%s6824_s29 + $0xa4] sm:$0x1]  ;;  %v5273_v11 = vcombine.low %v8924_v38, %v1422_v57  ;;  %v1715_v45 = vrot.slane %v1714_v19, 4  ;;  %v1717_v46 = vshll.u32 %v5138_v44, 16  ;;  %v7652_v61 = vrot.slane %v1746_v24, 4  ;;  %v6323_v30 = vld [vmem:[%s8903_s1 + $0x218] sm:$0xff]  }
  0xe4   : > { %4156 = vmatprep.mubr.bf16.mxu0 %v5312_v32  ;;  %4059 = vmatprep.mubr.bf16.mxu1 %v5288_v43  ;;  %v1443_v1 = vshll.u32 %v1105_v13, 16  ;;  %v1751_v5 = vrot.slane %v1749_v53, 5  ;;  %v5289_v58 = vcombine.low %v7628_v47, %v7631_v37  ;;  %v1465_v28 = vrot.slane %v1464_v2, 4  ;;  %v8928_v41 = vld [vmem:[#allocation5_spill] sm:$0xff]  ;;  %v8929_v44 = vld [vmem:[#allocation6_spill] sm:$0xff] }
  0xe5   : > { %v1710_v62 = vsel %vm7024_vm2, %v1705_v3, %v7563_v56  ;;  %v1719_v33 = vrot.slane %v1717_v46, 5  ;;  %v7661_v27 = vrot.slane %v1755_v14, 5  ;;  %v1761_v51 = vrot.slane %v1759_v34, 4  ;;  %6117 = vmatprep.subr.bf16.mxu0 %v6323_v30  ;;  %v1107_v13 = vld [vmem:[%s6824_s29 + $0xbc] sm:$0x1]  ;;  %v8930_v14 = vld [vmem:[#allocation7_spill] sm:$0xff] }
  0xe6   : > { %v1445_v25 = vrot.slane %v1443_v1, 5  ;;  %v1729_v48 = vrot.slane %v1728_v59, 4  ;;  %v1739_v43 = vrot.slane %v1738_v60, 4  ;;  %v1741_v32 = vshll.u32 %v5139_v40, 16  ;;  %6118 = vmatpush3.bf16.msra.mxu0 %v6323_v30  ;;  %v6318_v1 = vld [vmem:[%s6824_s29 + $0x2a0] sm:$0xff]  }
  0xe7   : > { %v1720_v17 = vsel %vm7024_vm2, %v1715_v45, %v1719_v33  ;;  %v8927_v54 = vsel %vm7024_vm2, %v8925_v42, %v8926_v16  ;;  %v1467_v63 = vshll.u32 %v1106_v8, 16  ;;  %v1770_v53 = vshrl.u32 %v7428_v26, 16 }
  0xe8   : > { %v1446_v56 = vsel %vm7024_vm2, %v7040_v31, %v1445_v25  ;;  %v5314_v50 = vcombine.low %v1710_v62, %v1720_v17  ;;  %v1743_v24 = vrot.slane %v1741_v32, 5  ;;  %v6322_v31 = vld [vmem:[%s8903_s1 + $0x1b8] sm:$0xff]   ;;  %v1779_v49 = vshll.u32 %v7431_v55, 16 }
  0xe9   : > { %v7680_v35 = vcombine.low %v8927_v54, %v1446_v56  ;;  %v1469_v19 = vrot.slane %v1467_v63, 5  ;;  %5990 = vmatpush3.bf16.msra.mxu1 %v6322_v31  ;;  %v1488_v2 = vor.u32 %v8929_v44, %v8928_v41  ;;  %v1752_v3 = vor.u32 %v1751_v5, %v7652_v61  ;;  %v7721_v61 = vld [vmem:[%s6824_s29 + $0x240] sm:$0xf]  ;;  %v7724_v5 = vld [vmem:[%s6824_s29 + $0x244] sm:$0xf] }
  0xea   : > { %v1734_v59 = vsel %vm7024_vm2, %v1729_v48, %v7611_v52  ;;  %v8931_v34 = vsel %vm7024_vm2, %v8930_v14, %v6966_v36  ;;  %v1762_v60 = vor.u32 %v1761_v51, %v7661_v27  ;;  %v7717_v46 = vrot.slane %v1779_v49, 5  ;;  %v6329_v51 = vld [vmem:[%s8903_s1 + $0x220] sm:$0xff]  }
  0xeb   : > { %4157 = vmatmul.mubr.bf16.gmra.mrb[60].mxu0 %v6311_v21  ;;  %4060 = vmatmul.mubr.bf16.gmra.mrb[60].mxu1 %v5272_v29  ;;  %v1773_v21 = vshll.u32 %v7428_v26, 16  ;;  %v5290_v26 = vcombine.low %v7665_v15, %v7668_v18  ;;  %v1470_v57 = vsel %vm7024_vm2, %v1465_v28, %v1469_v19  ;;  %v1772_v29 = vrot.slane %v1770_v53, 4  ;;  %v6320_v49 = vld [vmem:[%s6824_s29 + $0x2ac] sm:$0xff]  }
  0xec   : > { %4164 = vmatprep.mubr.bf16.mxu0 %v5313_v39  ;;  %4067 = vmatprep.mubr.bf16.mxu1 %v5289_v58  ;;  %v1783_v39 = vshrl.u32 %v7431_v55, 16  ;;  %v1744_v55 = vsel %vm7024_vm2, %v1739_v43, %v1743_v24  ;;  %v7714_v38 = vcombine.low %v8931_v34, %v1470_v57  ;;  %v1765_v52 = vshll.u32 %v5140_v4, 16  ;;  %v7756_v19 = vld [vmem:[%s6824_s29 + $0x24c] sm:$0xf] }
  0xed   : > { %v1775_v45 = vrot.slane %v1773_v21, 5  ;;  %v1489_v58 = vrot.slane %v1488_v2, 4  ;;  %v1491_v40 = vshll.u32 %v1107_v13, 16  ;;  %v5315_v28 = vcombine.low %v1734_v59, %v1744_v55  ;;  %6119 = vmatprep.subr.bf16.mxu0 %v6329_v51  ;;  %v5142_v2 = vld [vmem:[%s6824_s29 + $0x20c] sm:$0x1] }
  0xee   : > { %v1785_v36 = vrot.slane %v1783_v39, 4  ;;  %v1753_v62 = vrot.slane %v1752_v3, 4  ;;  %v1763_v33 = vrot.slane %v1762_v60, 4  ;;  %v1767_v25 = vrot.slane %v1765_v52, 5  ;;  %6120 = vmatpush3.bf16.msra.mxu0 %v6329_v51 }
  0xef   : > { %v1493_v8 = vrot.slane %v1491_v40, 5  ;;  %v1776_v48 = vor.u32 %v1775_v45, %v1772_v29  ;;  %v1797_v17 = vshll.u32 %v7485_v9, 16  ;;  %v1803_v56 = vshll.u32 %v7492_v10, 16 }
  0xf0   : > { %v5291_v32 = vcombine.low %v7721_v61, %v7724_v5  ;;  %v1786_v16 = vor.u32 %v1785_v36, %v7717_v46  ;;  %v1807_v54 = vshrl.u32 %v7492_v10, 16  ;;  %v1758_v63 = vsel %vm7024_vm2, %v1753_v62, %v7661_v27  ;;  %v7759_v10 = vld [vmem:[%s6824_s29 + $0x250] sm:$0xf]  ;;  %v5143_v36 = vld [vmem:[%s6824_s29 + $0x218] sm:$0x1] }
  0xf1   : > { %v1494_v43 = vsel %vm7024_vm2, %v1489_v58, %v1493_v8  ;;  %v1768_v22 = vsel %vm7024_vm2, %v1763_v33, %v1767_v25  ;;  %v1799_v53 = vrot.slane %v1797_v17, 5  ;;  %v7751_v21 = vrot.slane %v1803_v56, 5  ;;  %v6326_v8 = vld [vmem:[%s6824_s29 + $0xd8] sm:$0xff]  }
  0xf2   : > { %v5316_v30 = vcombine.low %v1758_v63, %v1768_v22  ;;  %v1809_v4 = vrot.slane %v1807_v54, 4  ;;  %v1777_v27 = vrot.slane %v1776_v48, 4  ;;  %v1818_v39 = vshrl.u32 %v7522_v23, 16 }
  0xf3   : > { %4165 = vmatmul.mubr.bf16.gmra.mrb[64].mxu0 %v6313_v6  ;;  %4068 = vmatmul.mubr.bf16.gmra.mrb[64].mxu1 %v5273_v11  ;;  %v5141_v6 = vld [vmem:[%s6824_s29 + $0x200] sm:$0x1]  ;;  %v1794_v11 = vshrl.u32 %v7485_v9, 16  ;;  %v1827_v57 = vshll.u32 %v7534_v12, 16  ;;  %v1831_v3 = vshrl.u32 %v7534_v12, 16  ;;  %v5292_v13 = vcombine.low %v7756_v19, %v7759_v10  ;;  %v6325_v12 = vld [vmem:[%s6824_s29 + $0x2b8] sm:$0xff]  }
  0xf4   : > { %4172 = vmatprep.mubr.bf16.mxu0 %v5314_v50  ;;  %4075 = vmatprep.mubr.bf16.mxu1 %v5290_v26  ;;  %v8932_v50 = vld [vmem:[#allocation8_spill] sm:$0xff]  ;;  %v1789_v24 = vshll.u32 %v5141_v6, 16  ;;  %v1821_v26 = vshll.u32 %v7522_v23, 16  ;;  %v1782_v55 = vsel %vm7024_vm2, %v1777_v27, %v7717_v46  ;;  %v1810_v14 = vor.u32 %v1809_v4, %v7751_v21 }
  0xf5   : > { %v8933_v42 = vsel %vm7024_vm2, %v8932_v50, %v8928_v41  ;;  %v1796_v31 = vrot.slane %v1794_v11, 4  ;;  %v1787_v41 = vrot.slane %v1786_v16, 4  ;;  %v1813_v34 = vshll.u32 %v5142_v2, 16 }
  0xf6   : > { %v7742_v9 = vcombine.low %v8933_v42, %v1494_v43  ;;  %v1791_v44 = vrot.slane %v1789_v24, 5  ;;  %v1820_v60 = vrot.slane %v1818_v39, 4  ;;  %v1823_v29 = vrot.slane %v1821_v26, 5  ;;  %v7801_v42 = vld [vmem:[%s6824_s29 + $0x10] sm:$0xf] }
  0xf7   : > { %v1800_v59 = vor.u32 %v1799_v53, %v1796_v31  ;;  %v1829_v45 = vrot.slane %v1827_v57, 5  ;;  %v1833_v52 = vrot.slane %v1831_v3, 4  ;;  %v1811_v58 = vrot.slane %v1810_v14, 4  ;;  %v5144_v31 = vld [vmem:[%s6824_s29 + $0x224] sm:$0x1]  ;;  %v6350_v14 = vld [vmem:[%s8903_s1 + $0x238] sm:$0xff]  }
  0xf8   : > { %v1792_v23 = vsel %vm7024_vm2, %v1787_v41, %v1791_v44  ;;  %v1815_v40 = vrot.slane %v1813_v34, 5  ;;  %v1845_v62 = vshll.u32 %v7590_v7, 16  ;;  %v1851_v33 = vshll.u32 %v7593_v0, 16  ;;  %v5151_v57 = vld [vmem:[%s6824_s29 + $0x18] sm:$0xf] }
  0xf9   : > { %v1801_v46 = vrot.slane %v1800_v59, 4  ;;  %v1855_v25 = vshrl.u32 %v7593_v0, 16  ;;  %v1824_v51 = vor.u32 %v1823_v29, %v1820_v60  ;;  %v1834_v48 = vor.u32 %v1833_v52, %v1829_v45  ;;  %v6327_v0 = vld [vmem:[%s6824_s29 + $0x2c4] sm:$0xff]   ;;  %v5152_v3 = vld [vmem:[%s6824_s29 + $0x1c] sm:$0xf] }
  0xfa   : > { %v1837_v11 = vshll.u32 %v5143_v36, 16  ;;  %v1847_v56 = vrot.slane %v1845_v62, 5  ;;  %v7793_v43 = vrot.slane %v1851_v33, 5  ;;  %v1866_v24 = vshrl.u32 %v7628_v47, 16  ;;  %v5145_v60 = vld [vmem:[%s6824_s29 + $0x230] sm:$0x1] }
  0xfb   : > { %4173 = vmatmul.mubr.bf16.gmra.mrb[68].mxu0 %v6318_v1  ;;  %4076 = vmatmul.mubr.bf16.gmra.mrb[68].mxu1 %v7680_v35  ;;  %v6336_v35 = vld [vmem:[%s8903_s1 + $0x228] sm:$0xff]   ;;  %v5317_v1 = vcombine.low %v1782_v55, %v1792_v23  ;;  %v1806_v6 = vsel %vm7024_vm2, %v1801_v46, %v7751_v21  ;;  %v1857_v50 = vrot.slane %v1855_v25, 4  ;;  %v1825_v54 = vrot.slane %v1824_v51, 4 }
  0xfc   : > { %4180 = vmatprep.mubr.bf16.mxu0 %v5315_v28  ;;  %4083 = vmatprep.mubr.bf16.mxu1 %v5291_v32  ;;  %v1842_v28 = vshrl.u32 %v7590_v7, 16  ;;  %v1816_v7 = vsel %vm7024_vm2, %v1811_v58, %v1815_v40  ;;  %v7798_v32 = vld [vmem:[%s6824_s29 + $0xc] sm:$0xf]  ;;  %v1835_v63 = vrot.slane %v1834_v48, 4  ;;  %v1839_v22 = vrot.slane %v1837_v11, 5 }
  0xfd   : > { %6121 = vmatprep.subr.bf16.mxu0 %v6336_v35  ;;  %v5318_v16 = vcombine.low %v1806_v6, %v1816_v7  ;;  %v1869_v53 = vshll.u32 %v7628_v47, 16  ;;  %v1875_v21 = vshll.u32 %v7631_v37, 16  ;;  %v1830_v27 = vsel %vm7024_vm2, %v1825_v54, %v1829_v45  ;;  %v6334_v6 = vld [vmem:[%s6824_s29 + $0x2dc] sm:$0xff]   ;;  %v5153_v11 = vld [vmem:[%s6824_s29 + $0x24] sm:$0xf] }
  0xfe   : > { %6122 = vmatpush3.bf16.msra.mxu0 %v6336_v35  ;;  %v1844_v17 = vrot.slane %v1842_v28, 4  ;;  %v1840_v47 = vsel %vm7024_vm2, %v1835_v63, %v1839_v22  ;;  %v1858_v41 = vor.u32 %v1857_v50, %v7793_v43  ;;  %v1861_v44 = vshll.u32 %v5144_v31, 16  ;;  %v6331_v35 = vld [vmem:[%s6824_s29 + $0x2d0] sm:$0xff]  }
  0xff   : > { %v1868_v2 = vrot.slane %v1866_v24, 4  ;;  %v7816_v39 = vrot.slane %v1875_v21, 5  ;;  %v1890_v34 = vshrl.u32 %v7665_v15, 16  ;;  %v1899_v29 = vshll.u32 %v7668_v18, 16  ;;  %v5146_v24 = vld [vmem:[%s6824_s29 + $0x23c] sm:$0x1] }
 0x100   : > { %v1848_v4 = vor.u32 %v1847_v56, %v1844_v17  ;;  %v1859_v55 = vrot.slane %v1858_v41, 4  ;;  %v1863_v23 = vrot.slane %v1861_v44, 5  ;;  %v5326_v45 = vcombine.low %v5151_v57, %v5152_v3  ;;  %v7844_v17 = vld [vmem:[%s6824_s29 + $0x28] sm:$0xf] }
 0x101   : > { %v1903_v58 = vshrl.u32 %v7668_v18, 16  ;;  %v1885_v36 = vshll.u32 %v5145_v60, 16  ;;  %v1892_v28 = vrot.slane %v1890_v34, 4  ;;  %v2068_v33 = vshrl.u32 %v5151_v57, 16 }
 0x102   : > { %v1849_v59 = vrot.slane %v1848_v4, 4  ;;  %v7836_v25 = vrot.slane %v1899_v29, 5  ;;  %v2077_v51 = vshll.u32 %v5152_v3, 16  ;;  %v2081_v18 = vshrl.u32 %v5152_v3, 16  ;;  %v6337_v4 = vld [vmem:[%s6824_s29 + $0xfc] sm:$0xff]  }
 0x103   : > { %4181 = vmatmul.mubr.bf16.gmra.mrb[72].mxu0 %v6320_v49  ;;  %4084 = vmatmul.mubr.bf16.gmra.mrb[72].mxu1 %v7714_v38  ;;  %v6343_v38 = vld [vmem:[%s8903_s1 + $0x230] sm:$0xff]   ;;  %v5325_v49 = vcombine.low %v7798_v32, %v7801_v42  ;;  %v1917_v7 = vshll.u32 %v7721_v61, 16  ;;  %v1923_v48 = vshll.u32 %v7724_v5, 16  ;;  %v1927_v54 = vshrl.u32 %v7724_v5, 16 }
 0x104   : > { %4188 = vmatprep.mubr.bf16.mxu0 %v5316_v30  ;;  %4091 = vmatprep.mubr.bf16.mxu1 %v5292_v13  ;;  %v6330_v30 = vld [vmem:[%s6824_s29 + $0xe4] sm:$0xff]   ;;  %v5319_v13 = vcombine.low %v1830_v27, %v1840_v47  ;;  %v1854_v40 = vsel %vm7024_vm2, %v1849_v59, %v7793_v43  ;;  %v1905_v43 = vrot.slane %v1903_v58, 4  ;;  %v2070_v63 = vrot.slane %v2068_v33, 4 }
 0x105   : > { %6123 = vmatprep.subr.bf16.mxu0 %v6343_v38  ;;  %v1938_v31 = vshrl.u32 %v7756_v19, 16  ;;  %v5327_v21 = vcombine.low %v5153_v11, %v7844_v17  ;;  %v1909_v44 = vshll.u32 %v5146_v24, 16  ;;  %v6338_v59 = vld [vmem:[%s6824_s29 + $0x2e8] sm:$0xff]  }
 0x106   : > { %6124 = vmatpush3.bf16.msra.mxu0 %v6343_v38  ;;  %v2071_v38 = vshll.u32 %v5151_v57, 16  ;;  %v1906_v41 = vor.u32 %v1905_v43, %v7836_v25  ;;  %v1929_v57 = vrot.slane %v1927_v54, 4  ;;  %v6340_v33 = vld [vmem:[%s6824_s29 + $0x108] sm:$0xff]   ;;  %v6341_v43 = vld [vmem:[%s6824_s29 + $0x2f4] sm:$0xff]  }
 0x107   : > { %6125 = vmatprep.subr.bf16.mxu0 %v6350_v14  ;;  %v7864_v3 = vrot.slane %v1938_v31, 4  ;;  %v1911_v60 = vrot.slane %v1909_v44, 5 }
 0x108   : > { %v2073_v22 = vrot.slane %v2071_v38, 5 }
 0x10a   : > { %6126 = vmatpush3.bf16.msra.mxu0 %v6350_v14  ;;  %v5156_v14 = vld [vmem:[%s6824_s29 + $0x34] sm:$0xf] }
 0x10b   : > { %4189 = vmatmul.mubr.bf16.gmra.mrb[76].mxu0 %v6325_v12  ;;  %4092 = vmatmul.mubr.bf16.gmra.mrb[76].mxu1 %v7742_v9  ;;  %v1879_v9 = vshrl.u32 %v7631_v37, 16  ;;  %v1871_v37 = vrot.slane %v1869_v53, 5  ;;  %v1893_v12 = vshll.u32 %v7665_v15, 16  ;;  %v1864_v15 = vsel %vm7024_vm2, %v1859_v55, %v1863_v23  ;;  %v5155_v55 = vld [vmem:[%s6824_s29 + $0x30] sm:$0xf] }
 0x10c   : > { %4196 = vmatprep.mubr.bf16.mxu0 %v5317_v1  ;;  %4293 = vmatprep.mubr.bf16.mxu1 %v6326_v8  ;;  %v6333_v1 = vld [vmem:[%s6824_s29 + $0xf0] sm:$0xff]   ;;  %v1914_v8 = vshrl.u32 %v7721_v61, 16  ;;  %v5320_v56 = vcombine.low %v1854_v40, %v1864_v15  ;;  %v7849_v61 = vrot.slane %v2077_v51, 5  ;;  %v2083_v53 = vrot.slane %v2081_v18, 4 }
 0x10d   : > { %v1881_v26 = vrot.slane %v1879_v9, 4  ;;  %v1872_v52 = vor.u32 %v1871_v37, %v1868_v2  ;;  %v1895_v62 = vrot.slane %v1893_v12, 5  ;;  %v1941_v2 = vshll.u32 %v7756_v19, 16 }
 0x10e   : > { %v1916_v9 = vrot.slane %v1914_v8, 4  ;;  %v1947_v37 = vshll.u32 %v7759_v10, 16  ;;  %v2095_v23 = vshll.u32 %v5153_v11, 16  ;;  %v1907_v12 = vrot.slane %v1906_v41, 4 }
 0x10f   : > { %v1882_v46 = vor.u32 %v1881_v26, %v7816_v39  ;;  %v1896_v5 = vor.u32 %v1895_v62, %v1892_v28  ;;  %v1951_v26 = vshrl.u32 %v7759_v10, 16  ;;  %v5147_v10 = vld [vmem:[%s6824_s29 + $0x248] sm:$0x1]  ;;  %v2101_v40 = vshll.u32 %v7844_v17, 16 }
 0x110   : > { %v2105_v15 = vshrl.u32 %v7844_v17, 16  ;;  %v7885_v62 = vrot.slane %v2095_v23, 5  ;;  %v1933_v8 = vshll.u32 %v5147_v10, 16  ;;  %v2116_v51 = vshrl.u32 %v5155_v55, 16  ;;  %v5157_v17 = vld [vmem:[%s6824_s29 + $0x3c] sm:$0xf] }
 0x111   : > { %v1883_v50 = vrot.slane %v1882_v46, 4  ;;  %v1897_v19 = vrot.slane %v1896_v5, 4  ;;  %v2119_v18 = vshll.u32 %v5155_v55, 16  ;;  %v2057_v23 = vshrl.u32 %v7801_v42, 16 }
 0x112   : > { %v1935_v31 = vrot.slane %v1933_v8, 5  ;;  %v7944_v8 = vld [vmem:[%s6824_s29 + $0x54] sm:$0xf] }
 0x113   : > { %4197 = vmatmul.mubr.bf16.gmra.mrb[80].mxu0 %v6327_v0  ;;  %4294 = vmatmul.mubr.bf16.vlgmr.msra.gmra.mrb[80].mxu1 %v5325_v49  ;;  %v1873_v0 = vrot.slane %v1872_v52, 4  ;;  %v1919_v49 = vrot.slane %v1917_v7, 5  ;;  %v7875_v52 = vrot.slane %v1951_v26, 4  ;;  %v1912_v7 = vsel %vm7024_vm2, %v1907_v12, %v1911_v60  ;;  %v6345_v12 = vld [vmem:[%s6824_s29 + $0x300] sm:$0xff]  }
 0x114   : > { %4204 = vmatprep.mubr.bf16.mxu0 %v5318_v16  ;;  %4301 = vmatprep.mubr.bf16.mxu1 %v6330_v30  ;;  %v1887_v16 = vrot.slane %v1885_v36, 5  ;;  %v7852_v30 = vrot.slane %v1923_v48, 5  ;;  %v5328_v36 = vcombine.low %v5155_v55, %v5156_v14  ;;  %v2125_v48 = vshll.u32 %v5156_v14, 16 }
 0x115   : > { %v1878_v27 = vsel %vm7024_vm2, %v1873_v0, %v7816_v39  ;;  %v2084_v39 = vor.u32 %v2083_v53, %v7849_v61  ;;  %v1920_v29 = vor.u32 %v1919_v49, %v1916_v9  ;;  %v2140_v0 = vshrl.u32 %v5157_v17, 16 }
 0x116   : > { %v1888_v47 = vsel %vm7024_vm2, %v1883_v50, %v1887_v16  ;;  %v1930_v38 = vor.u32 %v1929_v57, %v7852_v30  ;;  %v2143_v50 = vshll.u32 %v5157_v17, 16  ;;  %v7899_v53 = vrot.slane %v2105_v15, 4 }
 0x117   : > { %v5321_v34 = vcombine.low %v1878_v27, %v1888_v47  ;;  %v7879_v58 = vrot.slane %v2084_v39, 4  ;;  %v7908_v5 = vrot.slane %v2119_v18, 5  ;;  %v7910_v27 = vrot.slane %v2125_v48, 5 }
 0x118   : > { %v1931_v24 = vrot.slane %v1930_v38, 4  ;;  %v7914_v41 = vrot.slane %v2140_v0, 4  ;;  %v7916_v44 = vrot.slane %v2143_v50, 5  ;;  %v2053_v55 = vshll.u32 %v7801_v42, 16  ;;  %v6347_v50 = vld [vmem:[%s6824_s29 + $0x120] sm:$0xff]  }
 0x119   : > { %v2059_v38 = vrot.slane %v2057_v23, 4  ;;  %v2188_v0 = vshrl.u32 %v7944_v8, 16  ;;  %v7991_v23 = vld [vmem:[%s6824_s29 + $0x6c] sm:$0xf] }
 0x11b   : > { %4205 = vmatmul.mubr.bf16.gmra.mrb[84].mxu0 %v6331_v35  ;;  %4302 = vmatmul.mubr.bf16.gmra.mrb[84].mxu1 %v5326_v45  ;;  %v2074_v35 = vor.u32 %v2073_v22, %v2070_v63  ;;  %v7871_v45 = vrot.slane %v1941_v2, 5  ;;  %v1921_v22 = vrot.slane %v1920_v29, 4 }
 0x11c   : > { %4212 = vmatprep.mubr.bf16.mxu0 %v5319_v13  ;;  %4309 = vmatprep.mubr.bf16.mxu1 %v6333_v1  ;;  %v2092_v13 = vshrl.u32 %v5153_v11, 16  ;;  %v7873_v1 = vrot.slane %v1947_v37, 5  ;;  %v2129_v11 = vshrl.u32 %v5156_v14, 16  ;;  %v5159_v14 = vld [vmem:[%s6824_s29 + $0x48] sm:$0xf] }
 0x11d   : > { %v7877_v46 = vrot.slane %v2074_v35, 4  ;;  %v1944_v9 = vor.u32 %v7871_v45, %v7864_v3  ;;  %v6344_v35 = vld [vmem:[%s6824_s29 + $0x114] sm:$0xff]   ;;  %v1926_v57 = vsel %vm7024_vm2, %v1921_v22, %v7852_v30  ;;  %v1936_v3 = vsel %vm7024_vm2, %v1931_v24, %v1935_v31  ;;  %v7971_v24 = vld [vmem:[%s6824_s29 + $0x60] sm:$0xf] }
 0x11e   : > { %v7883_v28 = vrot.slane %v2092_v13, 4  ;;  %v1954_v49 = vor.u32 %v7875_v52, %v7873_v1  ;;  %v7912_v47 = vrot.slane %v2129_v11, 4  ;;  %v2044_v13 = vshrl.u32 %v7798_v32, 16 }
 0x11f   : > { %v2164_v60 = vshrl.u32 %v5159_v14, 16  ;;  %v5323_v42 = vcombine.low %v1926_v57, %v1936_v3  ;;  %v1945_v45 = vrot.slane %v1944_v9, 4  ;;  %v2215_v57 = vshll.u32 %v7971_v24, 16 }
 0x120   : > { %v2098_v30 = vor.u32 %v7885_v62, %v7883_v28  ;;  %v1955_v52 = vrot.slane %v1954_v49, 4  ;;  %v2046_v15 = vrot.slane %v2044_v13, 4  ;;  %v6352_v28 = vld [vmem:[%s6824_s29 + $0x318] sm:$0xff]  }
 0x121   : > { %v7955_v11 = vrot.slane %v2164_v60, 4  ;;  %v1950_v22 = vsel %vm7024_vm2, %v1945_v45, %v7873_v1 }
 0x123   : > { %4213 = vmatmul.mubr.bf16.gmra.mrb[88].mxu0 %v6334_v6  ;;  %4310 = vmatmul.mubr.bf16.gmra.mrb[88].mxu1 %v5327_v21  ;;  %v1902_v6 = vsel %vm7024_vm2, %v1897_v19, %v7836_v25  ;;  %v7897_v25 = vrot.slane %v2101_v40, 5  ;;  %v5148_v21 = vld [vmem:[%s6824_s29 + $0x254] sm:$0x1] }
 0x124   : > { %4220 = vmatprep.mubr.bf16.mxu0 %v5320_v56  ;;  %4317 = vmatprep.mubr.bf16.mxu1 %v6337_v4  ;;  %v5158_v56 = vld [vmem:[%s6824_s29 + $0x40] sm:$0xf]  ;;  %v5322_v63 = vcombine.low %v1902_v6, %v1912_v7  ;;  %v7906_v4 = vrot.slane %v2116_v51, 4  ;;  %v1957_v39 = vshll.u32 %v5148_v21, 16  ;;  %v5213_v51 = vld [vmem:[%s6824_s29 + $0x14] sm:$0x1]  ;;  %v2132_v7 = vor.u32 %v7912_v47, %v7910_v27 }
 0x125   : > { %v2149_v16 = vshll.u32 %v5158_v56, 16  ;;  %v2153_v54 = vshrl.u32 %v5158_v56, 16  ;;  %v5329_v37 = vcombine.low %v5157_v17, %v5158_v56  ;;  %v2108_v18 = vor.u32 %v7899_v53, %v7897_v25  ;;  %v7976_v21 = vld [vmem:[%s6824_s29 + $0x64] sm:$0xf] }
 0x126   : > { %v1959_v40 = vrot.slane %v1957_v39, 5  ;;  %v2122_v6 = vor.u32 %v7908_v5, %v7906_v4  ;;  %v2221_v3 = vshll.u32 %v7976_v21, 16  ;;  %v2225_v1 = vshrl.u32 %v7976_v21, 16 }
 0x127   : > { %v7918_v2 = vrot.slane %v2149_v16, 5  ;;  %v7920_v26 = vrot.slane %v2153_v54, 4  ;;  %v2191_v16 = vshll.u32 %v7944_v8, 16  ;;  %v8935_v4 = vsel %vm7024_vm2, %v7877_v46, %v7849_v61 }
 0x128   : > { %v1960_v31 = vsel %vm7024_vm2, %v1955_v52, %v1959_v40  ;;  %v5215_v40 = vld [vmem:[%s6824_s29 + $0x2c] sm:$0x1] }
 0x129   : > { %v5324_v60 = vcombine.low %v1950_v22, %v1960_v31 }
 0x12b   : > { %4221 = vmatmul.mubr.bf16.gmra.mrb[92].mxu0 %v6338_v59  ;;  %4318 = vmatmul.mubr.bf16.gmra.mrb[92].mxu1 %v5328_v36  ;;  %v2047_v59 = vshll.u32 %v7798_v32, 16  ;;  %v2167_v32 = vshll.u32 %v5159_v14, 16 }
 0x12c   : > { %4228 = vmatprep.mubr.bf16.mxu0 %v5321_v34  ;;  %4325 = vmatprep.mubr.bf16.mxu1 %v6340_v33  ;;  %v5160_v34 = vld [vmem:[%s6824_s29 + $0x4c] sm:$0xf]  ;;  %v7941_v33 = vrot.slane %v2053_v55, 5  ;;  %v7988_v55 = vrot.slane %v2188_v0, 4 }
 0x12d   : > { %v2173_v10 = vshll.u32 %v5160_v34, 16  ;;  %v2177_v29 = vshrl.u32 %v5160_v34, 16  ;;  %v2049_v36 = vrot.slane %v2047_v59, 5  ;;  %v7957_v17 = vrot.slane %v2167_v32, 5  ;;  %v6348_v59 = vld [vmem:[%s6824_s29 + $0x30c] sm:$0xff]  }
 0x12e   : > { %v5330_v56 = vcombine.low %v5159_v14, %v5160_v34  ;;  %v2060_v49 = vor.u32 %v2059_v38, %v7941_v33  ;;  %v7995_v34 = vrot.slane %v2191_v16, 5  ;;  %v2236_v32 = vshrl.u32 %v7991_v23, 16 }
 0x12f   : > { %v2050_v9 = vor.u32 %v2049_v36, %v2046_v15  ;;  %v7983_v39 = vrot.slane %v2173_v10, 5  ;;  %v7985_v13 = vrot.slane %v2177_v29, 4  ;;  %v5214_v10 = vld [vmem:[%s6824_s29 + $0x20] sm:$0x1]  ;;  %v6351_v15 = vld [vmem:[%s6824_s29 + $0x12c] sm:$0xff]   ;;  %v8007_v38 = vrot.slane %v2215_v57, 5 }
 0x130   : > { %v2061_v45 = vrot.slane %v2060_v49, 4  ;;  %v2087_v22 = vshll.u32 %v5214_v10, 16 }
 0x132   : > { %v2089_v62 = vrot.slane %v2087_v22, 5 }
 0x133   : > { %4229 = vmatmul.mubr.bf16.gmra.mrb[96].mxu0 %v6341_v43  ;;  %4326 = vmatmul.mubr.bf16.gmra.mrb[96].mxu1 %v5329_v37  ;;  %v7960_v43 = vld [vmem:[%s6824_s29 + $0x58] sm:$0xf]  ;;  %v2063_v37 = vshll.u32 %v5213_v51, 16  ;;  %v8009_v51 = vrot.slane %v2221_v3, 5 }
 0x134   : > { %4236 = vmatprep.mubr.bf16.mxu0 %v5322_v63  ;;  %4333 = vmatprep.mubr.bf16.mxu1 %v6344_v35  ;;  %v2197_v54 = vshll.u32 %v7960_v43, 16  ;;  %v2201_v63 = vshrl.u32 %v7960_v43, 16  ;;  %v2212_v35 = vshrl.u32 %v7971_v24, 16  ;;  %v5331_v0 = vcombine.low %v7944_v8, %v7960_v43 }
 0x135   : > { %v2065_v52 = vrot.slane %v2063_v37, 5  ;;  %v8021_v37 = vrot.slane %v2236_v32, 4  ;;  %v2111_v43 = vshll.u32 %v5215_v40, 16  ;;  %v8035_v32 = vld [vmem:[%s6824_s29 + $0x78] sm:$0xf]  ;;  %v8040_v40 = vrot.slane %v2098_v30, 4 }
 0x136   : > { %v8001_v29 = vrot.slane %v2201_v63, 4  ;;  %v8005_v36 = vrot.slane %v2212_v35, 4  ;;  %v2239_v63 = vshll.u32 %v7991_v23, 16  ;;  %v2263_v30 = vshll.u32 %v8035_v32, 16 }
 0x13b   : > { %4237 = vmatmul.mubr.bf16.gmra.mrb[100].mxu0 %v6345_v12  ;;  %4334 = vmatmul.mubr.bf16.gmra.mrb[100].mxu1 %v5330_v56  ;;  %v7997_v12 = vrot.slane %v2197_v54, 5  ;;  %v8011_v56 = vrot.slane %v2225_v1, 4  ;;  %v8016_v54 = vld [vmem:[%s6824_s29 + $0x70] sm:$0xf] }
 0x13c   : > { %4244 = vmatprep.mubr.bf16.mxu0 %v5323_v42  ;;  %4341 = vmatprep.mubr.bf16.mxu1 %v6347_v50  ;;  %v2051_v42 = vrot.slane %v2050_v9, 4  ;;  %v2245_v35 = vshll.u32 %v8016_v54, 16  ;;  %v2249_v8 = vshrl.u32 %v8016_v54, 16 }
 0x13e   : > { %v2056_v10 = vsel %vm7024_vm2, %v2051_v42, %v7941_v33  ;;  %v2113_v33 = vrot.slane %v2111_v43, 5  ;;  %v2090_v43 = vsel %vm7024_vm2, %v7879_v58, %v2089_v62  ;;  %v8098_v62 = vld [vmem:[%s6824_s29 + $0x88] sm:$0xf]  ;;  %v5218_v58 = vld [vmem:[%s6824_s29 + $0x50] sm:$0x1] }
 0x13f   : > { %v5358_v5 = vcombine.low %v8935_v4, %v2090_v43 }
 0x143   : > { %4245 = vmatmul.mubr.bf16.gmra.mrb[104].mxu0 %v6348_v59  ;;  %4342 = vmatmul.mubr.bf16.gmra.mrb[104].mxu1 %v5331_v0  ;;  %v5332_v0 = vcombine.low %v7971_v24, %v7976_v21 }
 0x144   : > { %4252 = vmatprep.mubr.bf16.mxu0 %v5324_v60  ;;  %v2066_v60 = vsel %vm7024_vm2, %v2061_v45, %v2065_v52  ;;  %4349 = vmatprep.mubr.bf16.mxu1 %v6351_v15 }
 0x145   : > { %v5357_v52 = vcombine.low %v2056_v10, %v2066_v60  ;;  %v8084_v10 = vrot.slane %v2263_v30, 5 }
 0x146   : > { %v5727_v50 = vpop.f32.mrb[0].mxu1  ;;  %v5655_v16 = vpop.f32.mrb[0].mxu0 }
 0x147   : > { %v5728_v9 = vpop.f32.mrb[1].mxu1  ;;  %v5656_v49 = vpop.f32.mrb[1].mxu0 }
 0x148   : > { %v8025_v57 = vadd.f32 %v5728_v9, %v5727_v50  ;;  %v5730_v3 = vpop.f32.mrb[2].mxu1  ;;  %v8027_v1 = vadd.f32 %v5656_v49, %v5655_v16  ;;  %v5658_v59 = vpop.f32.mrb[2].mxu0  ;;  %v2260_v50 = vshrl.u32 %v8035_v32, 16  ;;  %v5216_v16 = vld [vmem:[%s6824_s29 + $0x38] sm:$0x1]  ;;  %v8054_v49 = vrot.slane %v2239_v63, 5 }
 0x149   : > { %v5731_v31 = vpop.f32.mrb[3].mxu1  ;;  %v5659_v14 = vpop.f32.mrb[3].mxu0  ;;  %v2109_v9 = vrot.slane %v2108_v18, 4  ;;  %v2135_v22 = vshll.u32 %v5216_v16, 16  ;;  %v6354_v63 = vld [vmem:[%s6824_s29 + $0x138] sm:$0xff]  }
 0x14a   : > { %v8048_v42 = vadd.f32 %v5731_v31, %v5730_v3  ;;  %v8050_v45 = vadd.f32 %v5659_v14, %v5658_v59  ;;  %v8061_v31 = vrot.slane %v2245_v35, 5  ;;  %v8064_v14 = vld [vmem:[%s6824_s29 + $0x7c] sm:$0xf]  ;;  %v5217_v3 = vld [vmem:[%s6824_s29 + $0x44] sm:$0x1]  ;;  %v8070_v59 = vrot.slane %v2249_v8, 4 }
 0x14b   : > { %v8074_v18 = vrot.slane %v2260_v50, 4  ;;  %v2269_v24 = vshll.u32 %v8064_v14, 16  ;;  %4253 = vmatmul.mubr.bf16.gmra.mrb[108].mxu0 %v6352_v28  ;;  %v2104_v8 = vsel %vm7024_vm2, %v8040_v40, %v7897_v25  ;;  %v2273_v60 = vshrl.u32 %v8064_v14, 16  ;;  %v8088_v50 = vld [vmem:[%s6824_s29 + $0x84] sm:$0xf]  ;;  %4350 = vmatmul.mubr.bf16.gmra.mrb[108].mxu1 %v5332_v0 }
 0x14c   : > { %8934 = vst [vmem:[#allocation4_spill] sm:$0xff] %v8048_v42  ;;  %6127 = vmatprep.mubr.bf16.mxu0 %v5357_v52  ;;  %v2114_v53 = vsel %vm7024_vm2, %v2109_v9, %v2113_v33  ;;  %v2123_v25 = vrot.slane %v2122_v6, 4  ;;  %v2159_v40 = vshll.u32 %v5217_v3, 16  ;;  %v2133_v9 = vrot.slane %v2132_v7, 4  ;;  %4357 = vmatprep.mubr.bf16.mxu1 %v6354_v63 }
 0x14d   : > { %v2137_v33 = vrot.slane %v2135_v22, 5  ;;  %v8936_v6 = vor.u32 %v7916_v44, %v7914_v41  ;;  %v2293_v22 = vshll.u32 %v8098_v62, 16  ;;  %v5359_v61 = vcombine.low %v2104_v8, %v2114_v53 }
 0x14e   : > { %v5733_v21 = vpop.f32.mrb[4].mxu1  ;;  %v5661_v35 = vpop.f32.mrb[4].mxu0  ;;  %v8125_v46 = vrot.slane %v2269_v24, 5  ;;  %v8937_v41 = vor.u32 %v7920_v26, %v7918_v2  ;;  %v2161_v43 = vrot.slane %v2159_v40, 5  ;;  %v8130_v0 = vrot.slane %v2273_v60, 4  ;;  %v6356_v40 = vld [vmem:[%s6824_s29 + $0x144] sm:$0xff]  }
 0x14f   : > { %v5734_v16 = vpop.f32.mrb[5].mxu1  ;;  %v5662_v28 = vpop.f32.mrb[5].mxu0  ;;  %v2147_v3 = vrot.slane %v8936_v6, 4 }
 0x150   : > { %v8100_v30 = vadd.f32 %v5734_v16, %v5733_v21  ;;  %v5736_v15 = vpop.f32.mrb[6].mxu1  ;;  %v8102_v48 = vadd.f32 %v5662_v28, %v5661_v35  ;;  %v5664_v52 = vpop.f32.mrb[6].mxu0  ;;  %v2284_v21 = vshrl.u32 %v8088_v50, 16  ;;  %v2287_v35 = vshll.u32 %v8088_v50, 16  ;;  %v5219_v28 = vld [vmem:[%s6824_s29 + $0x5c] sm:$0x1] }
 0x151   : > { %v5737_v19 = vpop.f32.mrb[7].mxu1  ;;  %v5665_v42 = vpop.f32.mrb[7].mxu0  ;;  %v2297_v16 = vshrl.u32 %v8098_v62, 16  ;;  %v2157_v44 = vrot.slane %v8937_v41, 4  ;;  %v2152_v63 = vsel %vm7024_vm2, %v2147_v3, %v7918_v2  ;;  %v2207_v24 = vshll.u32 %v5219_v28, 16 }
 0x152   : > { %v8118_v47 = vadd.f32 %v5737_v19, %v5736_v15  ;;  %v8120_v7 = vadd.f32 %v5665_v42, %v5664_v52  ;;  %v2128_v19 = vsel %vm7024_vm2, %v2123_v25, %v7910_v27  ;;  %v2138_v42 = vsel %vm7024_vm2, %v2133_v9, %v2137_v33  ;;  %v8157_v9 = vld [vmem:[%s6824_s29 + $0x90] sm:$0xf] }
 0x153   : > { %v2183_v15 = vshll.u32 %v5218_v58, 16  ;;  %v8140_v53 = vrot.slane %v2284_v21, 4  ;;  %v8142_v26 = vrot.slane %v2287_v35, 5  ;;  %6128 = vmatmul.mubr.bf16.vlgmr.msra.gmra.mrb[112].mxu0 %v5358_v5  ;;  %v8145_v52 = vrot.slane %v2293_v22, 5 }
 0x154   : > { %v8147_v27 = vrot.slane %v2297_v16, 4  ;;  %v5335_v58 = vcombine.low %v8088_v50, %v8098_v62  ;;  %v8938_v2 = vor.u32 %v7957_v17, %v7955_v11  ;;  %6131 = vmatprep.mubr.bf16.mxu0 %v5359_v61  ;;  %v5360_v5 = vcombine.low %v2128_v19, %v2138_v42  ;;  %v5220_v17 = vld [vmem:[%s6824_s29 + $0x68] sm:$0x1]  ;;  %v5221_v19 = vld [vmem:[%s6824_s29 + $0x74] sm:$0x1] }
 0x155   : > { %v2162_v6 = vsel %vm7024_vm2, %v2157_v44, %v2161_v43  ;;  %v8939_v3 = vor.u32 %v7985_v13, %v7983_v39  ;;  %v8940_v35 = vor.u32 %v7995_v34, %v7988_v55  ;;  %v2185_v41 = vrot.slane %v2183_v15, 5 }
 0x156   : > { %v5739_v8 = vpop.f32.mrb[8].mxu1  ;;  %v5667_v60 = vpop.f32.mrb[8].mxu0  ;;  %v8154_v25 = vrot.slane %v8938_v2, 4  ;;  %v8941_v44 = vor.u32 %v8001_v29, %v7997_v12  ;;  %v2209_v2 = vrot.slane %v2207_v24, 5  ;;  %v2308_v55 = vshrl.u32 %v8157_v9, 16 }
 0x157   : > { %v5740_v33 = vpop.f32.mrb[9].mxu1  ;;  %v5668_v4 = vpop.f32.mrb[9].mxu0  ;;  %v2181_v21 = vrot.slane %v8939_v3, 4  ;;  %v2195_v11 = vrot.slane %v8940_v35, 4  ;;  %v2311_v34 = vshll.u32 %v8157_v9, 16  ;;  %v2228_v24 = vor.u32 %v8011_v56, %v8009_v51 }
 0x158   : > { %v8168_v22 = vadd.f32 %v5740_v33, %v5739_v8  ;;  %v5742_v16 = vpop.f32.mrb[10].mxu1  ;;  %v8170_v28 = vadd.f32 %v5668_v4, %v5667_v60  ;;  %v5670_v61 = vpop.f32.mrb[10].mxu0  ;;  %v2205_v43 = vrot.slane %v8941_v44, 4  ;;  %v2218_v8 = vor.u32 %v8007_v38, %v8005_v36  ;;  %v8188_v29 = vld [vmem:[%s6824_s29 + $0x94] sm:$0xf] }
 0x159   : > { %v5743_v13 = vpop.f32.mrb[11].mxu1  ;;  %v5671_v42 = vpop.f32.mrb[11].mxu0  ;;  %v8942_v60 = vcombine.low %v7991_v23, %v8016_v54  ;;  %v2231_v4 = vshll.u32 %v5220_v17, 16  ;;  %v5361_v3 = vcombine.low %v2152_v63, %v2162_v6  ;;  %v2242_v36 = vor.u32 %v8054_v49, %v8021_v37 }
 0x15a   : > { %v8183_v15 = vadd.f32 %v5743_v13, %v5742_v16  ;;  %v8185_v33 = vadd.f32 %v5671_v42, %v5670_v61  ;;  %v2252_v23 = vor.u32 %v8070_v59, %v8061_v31  ;;  %v2255_v38 = vshll.u32 %v5221_v19, 16 }
 0x15b   : > { %4358 = vmatmul.mubr.bf16.gmra.mrb[112].mxu1 %v8942_v60  ;;  %v2176_v54 = vsel %vm7024_vm2, %v8154_v25, %v7983_v39  ;;  %v2200_v35 = vsel %vm7024_vm2, %v2195_v11, %v7997_v12  ;;  %v2317_v56 = vshll.u32 %v8188_v29, 16  ;;  %v2321_v63 = vshrl.u32 %v8188_v29, 16  ;;  %v5222_v39 = vld [vmem:[%s6824_s29 + $0x80] sm:$0x1]  ;;  %6132 = vmatmul.mubr.bf16.gmra.mrb[116].mxu0 %v5360_v5 }
 0x15c   : > { %4365 = vmatprep.mubr.bf16.mxu1 %v6356_v40  ;;  %v2186_v37 = vsel %vm7024_vm2, %v2181_v21, %v2185_v41  ;;  %v8207_v49 = vrot.slane %v2308_v55, 4  ;;  %v8209_v59 = vrot.slane %v2311_v34, 5  ;;  %v5336_v40 = vcombine.low %v8157_v9, %v8188_v29  ;;  %v6358_v41 = vld [vmem:[%s6824_s29 + $0x150] sm:$0xff]   ;;  %6135 = vmatprep.mubr.bf16.mxu0 %v5361_v3  ;;  %v5227_v29 = vld [vmem:[%s6824_s29 + $0xbc] sm:$0x1] }
 0x15d   : > { %v2210_v12 = vsel %vm7024_vm2, %v2205_v43, %v2209_v2  ;;  %v2219_v11 = vrot.slane %v2218_v8, 4  ;;  %v2229_v17 = vrot.slane %v2228_v24, 4  ;;  %v2233_v16 = vrot.slane %v2231_v4, 5  ;;  %v8224_v2 = vld [vmem:[%s6824_s29 + $0x9c] sm:$0xf] }
 0x15e   : > { %v5745_v25 = vpop.f32.mrb[12].mxu1  ;;  %v5673_v6 = vpop.f32.mrb[12].mxu0  ;;  %v2243_v44 = vrot.slane %v2242_v36, 4  ;;  %v2253_v19 = vrot.slane %v2252_v23, 4  ;;  %v2257_v13 = vrot.slane %v2255_v38, 5  ;;  %v2266_v42 = vor.u32 %v8084_v10, %v8074_v18 }
 0x15f   : > { %v5746_v61 = vpop.f32.mrb[13].mxu1  ;;  %v5674_v21 = vpop.f32.mrb[13].mxu0  ;;  %v2276_v8 = vor.u32 %v8130_v0, %v8125_v46  ;;  %v2279_v60 = vshll.u32 %v5222_v39, 16  ;;  %v5362_v3 = vcombine.low %v2176_v54, %v2186_v37  ;;  %v5363_v36 = vcombine.low %v2200_v35, %v2210_v12  ;;  %v8241_v39 = vld [vmem:[%s6824_s29 + $0xa0] sm:$0xf] }
 0x160   : > { %v8219_v5 = vadd.f32 %v5746_v61, %v5745_v25  ;;  %v5748_v55 = vpop.f32.mrb[14].mxu1  ;;  %v8221_v34 = vadd.f32 %v5674_v21, %v5673_v6  ;;  %v5676_v43 = vpop.f32.mrb[14].mxu0  ;;  %v2332_v18 = vshrl.u32 %v8224_v2, 16  ;;  %v2335_v10 = vshll.u32 %v8224_v2, 16  ;;  %v5223_v54 = vld [vmem:[%s6824_s29 + $0x8c] sm:$0x1] }
 0x161   : > { %v5749_v24 = vpop.f32.mrb[15].mxu1  ;;  %v5677_v4 = vpop.f32.mrb[15].mxu0  ;;  %v8943_v23 = vcombine.low %v8035_v32, %v8064_v14  ;;  %v2224_v0 = vsel %vm7024_vm2, %v2219_v11, %v8009_v51  ;;  %v2290_v35 = vor.u32 %v8142_v26, %v8140_v53  ;;  %v8247_v37 = vld [vmem:[%s6824_s29 + $0xa8] sm:$0xf]  ;;  %v2234_v32 = vsel %vm7024_vm2, %v2229_v17, %v2233_v16 }
 0x162   : > { %v8233_v38 = vadd.f32 %v5749_v24, %v5748_v55  ;;  %v8235_v25 = vadd.f32 %v5677_v4, %v5676_v43  ;;  %v2248_v14 = vsel %vm7024_vm2, %v2243_v44, %v8061_v31  ;;  %v2258_v51 = vsel %vm7024_vm2, %v2253_v19, %v2257_v13  ;;  %v8266_v13 = vld [vmem:[%s6824_s29 + $0xac] sm:$0xf] }
 0x163   : > { %4366 = vmatmul.mubr.bf16.gmra.mrb[116].mxu1 %v8943_v23  ;;  %v2341_v6 = vshll.u32 %v8241_v39, 16  ;;  %v2345_v12 = vshrl.u32 %v8241_v39, 16  ;;  %v2267_v53 = vrot.slane %v2266_v42, 4  ;;  %v2277_v26 = vrot.slane %v2276_v8, 4  ;;  %6136 = vmatmul.mubr.bf16.gmra.mrb[120].mxu0 %v5362_v3  ;;  %v6360_v42 = vld [vmem:[%s6824_s29 + $0x15c] sm:$0xff]  }
 0x164   : > { %4373 = vmatprep.mubr.bf16.mxu1 %v6358_v41  ;;  %v2281_v11 = vrot.slane %v2279_v60, 5  ;;  %v8258_v61 = vrot.slane %v2317_v56, 5  ;;  %v2300_v17 = vor.u32 %v8147_v27, %v8145_v52  ;;  %v2303_v16 = vshll.u32 %v5223_v54, 16  ;;  %6139 = vmatprep.mubr.bf16.mxu0 %v5363_v36  ;;  %v5224_v8 = vld [vmem:[%s6824_s29 + $0x98] sm:$0x1] }
 0x165   : > { %v2356_v31 = vshrl.u32 %v8247_v37, 16  ;;  %v2323_v21 = vrot.slane %v2321_v63, 4  ;;  %v2334_v41 = vrot.slane %v2332_v18, 4  ;;  %v2337_v44 = vrot.slane %v2335_v10, 5  ;;  %v5225_v36 = vld [vmem:[%s6824_s29 + $0xa4] sm:$0x1] }
 0x166   : > { %v8263_v19 = vrot.slane %v2290_v35, 4  ;;  %v5364_v56 = vcombine.low %v2224_v0, %v2234_v32  ;;  %v5365_v55 = vcombine.low %v2248_v14, %v2258_v51  ;;  %v8269_v43 = vrot.slane %v2341_v6, 5  ;;  %v5679_v60 = vpop.f32.mrb[16].mxu0  ;;  %v8299_v14 = vld [vmem:[%s6824_s29 + $0xb4] sm:$0xf] }
 0x167   : > { %v2359_v27 = vshll.u32 %v8247_v37, 16  ;;  %v2347_v24 = vrot.slane %v2345_v12, 4  ;;  %v2272_v63 = vsel %vm7024_vm2, %v2267_v53, %v8125_v46  ;;  %v2282_v4 = vsel %vm7024_vm2, %v2277_v26, %v2281_v11  ;;  %v5680_v18 = vpop.f32.mrb[17].mxu0 }
 0x168   : > { %v2314_v3 = vor.u32 %v8209_v59, %v8207_v49  ;;  %v8281_v10 = vrot.slane %v2300_v17, 4  ;;  %v8283_v23 = vrot.slane %v2303_v16, 5  ;;  %v8285_v0 = vrot.slane %v2356_v31, 4  ;;  %v5682_v35 = vpop.f32.mrb[18].mxu0  ;;  %v8315_v17 = vld [vmem:[%s8904_s2] ss:$0 sm:$0xff] }
 0x169   : > { %v2365_v54 = vshll.u32 %v8266_v13, 16  ;;  %v8291_v46 = vadd.f32 %v5680_v18, %v5679_v60  ;;  %v2296_v49 = vsel %vm7024_vm2, %v8263_v19, %v8145_v52  ;;  %v2324_v59 = vor.u32 %v2323_v21, %v8258_v61  ;;  %v5683_v51 = vpop.f32.mrb[19].mxu0  ;;  %v5767_v16 = vpop.f32.mrb[16].mxu1 }
 0x16a   : > { %v2327_v32 = vshll.u32 %v5224_v8, 16  ;;  %v8301_v6 = vcombine.low %v2272_v63, %v2282_v4  ;;  %v8303_v12 = vrot.slane %v2359_v27, 5  ;;  %v2369_v50 = vshrl.u32 %v8266_v13, 16  ;;  %v5768_v19 = vpop.f32.mrb[17].mxu1 }
 0x16b   : > { %4374 = vmatmul.mubr.bf16.gmra.mrb[120].mxu1 %v5335_v58  ;;  %v2338_v62 = vor.u32 %v2337_v44, %v2334_v41  ;;  %v8307_v58 = vld [vmem:[%s6824_s29 + $0xb8] sm:$0xf]  ;;  %v8309_v53 = vadd.f32 %v5683_v51, %v5682_v35  ;;  %v2315_v26 = vrot.slane %v2314_v3, 4  ;;  %v2348_v52 = vor.u32 %v2347_v24, %v8269_v43  ;;  %6140 = vmatmul.mubr.bf16.gmra.mrb[124].mxu0 %v5364_v56  ;;  %v5770_v4 = vpop.f32.mrb[18].mxu1  ;;  %v6362_v3 = vld [vmem:[%s6824_s29 + $0x168] sm:$0xff]  }
 0x16c   : > { %4381 = vmatprep.mubr.bf16.mxu1 %v6360_v42  ;;  %v2351_v11 = vshll.u32 %v5225_v36, 16  ;;  %v2306_v31 = vsel %vm7024_vm2, %v8281_v10, %v8283_v23  ;;  %v8321_v21 = vrot.slane %v2365_v54, 5  ;;  %v2380_v41 = vshrl.u32 %v8299_v14, 16  ;;  %6143 = vmatprep.mubr.bf16.mxu0 %v5365_v55  ;;  %v5771_v23 = vpop.f32.mrb[19].mxu1 }
 0x16d   : > { %v2383_v44 = vshll.u32 %v8299_v14, 16  ;;  %v2325_v42 = vrot.slane %v2324_v59, 4  ;;  %v2329_v27 = vrot.slane %v2327_v32, 5  ;;  %v2389_v8 = vshll.u32 %v8307_v58, 16 }
 0x16e   : > { %v2393_v60 = vshrl.u32 %v8307_v58, 16  ;;  %v3813_v24 = vadd.f32 %v8027_v1, %v8315_v17  ;;  %v5769_v63 = vadd.f32 %v5768_v19, %v5767_v16  ;;  %v2371_v36 = vrot.slane %v2369_v50, 4  ;;  %v5685_v56 = vpop.f32.mrb[20].mxu0 }
 0x16f   : > { %v2339_v18 = vrot.slane %v2338_v62, 4  ;;  %v3816_v10 = vadd.f32 %v8050_v45, %v8315_v17  ;;  %v2320_v54 = vsel %vm7024_vm2, %v2315_v26, %v8258_v61  ;;  %v2349_v35 = vrot.slane %v2348_v52, 4  ;;  %v5686_v51 = vpop.f32.mrb[21].mxu0 }
 0x170   : > { %v2353_v59 = vrot.slane %v2351_v11, 5  ;;  %v8335_v32 = vadd.f32 %v5769_v63, %v3813_v24  ;;  %v5772_v1 = vadd.f32 %v5771_v23, %v5770_v4  ;;  %v2382_v55 = vrot.slane %v2380_v41, 4  ;;  %v5688_v62 = vpop.f32.mrb[22].mxu0  ;;  %v5226_v11 = vld [vmem:[%s6824_s29 + $0xb0] sm:$0x1]  ;;  %v5773_v24 = vpop.f32.mrb[20].mxu1 }
 0x171   : > { %v2385_v50 = vrot.slane %v2383_v44, 5  ;;  %v8340_v45 = vadd.f32 %v5686_v51, %v5685_v56  ;;  %v2330_v61 = vsel %vm7024_vm2, %v2325_v42, %v2329_v27  ;;  %v8344_v26 = vrot.slane %v2389_v8, 5  ;;  %v5689_v41 = vpop.f32.mrb[23].mxu0  ;;  %v5774_v4 = vpop.f32.mrb[21].mxu1 }
 0x172   : > { %v2395_v52 = vrot.slane %v2393_v60, 4  ;;  %v8347_v16 = vadd.f32 %v5772_v1, %v3816_v10  ;;  %v5337_v44 = vcombine.low %v8224_v2, %v8241_v39  ;;  %v5367_v9 = vcombine.low %v2296_v49, %v2306_v31  ;;  %v8364_v60 = vld [vmem:[%s6824_s29 + $0xc4] sm:$0xf] }
 0x173   : > { %4382 = vmatmul.mubr.bf16.gmra.mrb[124].mxu1 %v5336_v40  ;;  %v8353_v40 = vld [vmem:[%s6824_s29 + $0xc0] sm:$0xf]  ;;  %v8355_v19 = vadd.f32 %v5689_v41, %v5688_v62  ;;  %v2344_v42 = vsel %vm7024_vm2, %v2339_v18, %v8269_v43  ;;  %v2362_v27 = vor.u32 %v8303_v12, %v8285_v0  ;;  %v2372_v8 = vor.u32 %v2371_v36, %v8321_v21  ;;  %v5776_v36 = vpop.f32.mrb[22].mxu1  ;;  %v6364_v18 = vld [vmem:[%s6824_s29 + $0x174] sm:$0xff]  }
 0x174   : > { %4389 = vmatprep.mubr.bf16.mxu1 %v6362_v3  ;;  %v5368_v2 = vcombine.low %v2320_v54, %v2330_v61  ;;  %v2354_v39 = vsel %vm7024_vm2, %v2349_v35, %v2353_v59  ;;  %v2375_v49 = vshll.u32 %v5226_v11, 16  ;;  %v2386_v31 = vor.u32 %v2385_v50, %v2382_v55  ;;  %6144 = vmatmul.mubr.bf16.gmra.mrb[128].mxu0 %v8301_v6  ;;  %v5777_v54 = vpop.f32.mrb[23].mxu1 }
 0x175   : > { %v3821_v63 = vadd.f32 %v8102_v48, %v8315_v17  ;;  %v2396_v43 = vor.u32 %v2395_v52, %v8344_v26  ;;  %v2399_v0 = vshll.u32 %v5227_v29, 16  ;;  %v2404_v12 = vshrl.u32 %v8353_v40, 16  ;;  %6147 = vmatprep.mubr.bf16.mxu0 %v5367_v9 }
 0x176   : > { %v5775_v3 = vadd.f32 %v5774_v4, %v5773_v24  ;;  %v2407_v10 = vshll.u32 %v8353_v40, 16  ;;  %v2413_v23 = vshll.u32 %v8364_v60, 16  ;;  %v2417_v56 = vshrl.u32 %v8364_v60, 16  ;;  %v5691_v6 = vpop.f32.mrb[24].mxu0 }
 0x177   : > { %v3824_v48 = vadd.f32 %v8120_v7, %v8315_v17  ;;  %v5369_v35 = vcombine.low %v2344_v42, %v2354_v39  ;;  %v2363_v59 = vrot.slane %v2362_v27, 4  ;;  %v2373_v1 = vrot.slane %v2372_v8, 4  ;;  %v5692_v50 = vpop.f32.mrb[25].mxu0 }
 0x178   : > { %v8379_v51 = vadd.f32 %v5775_v3, %v3821_v63  ;;  %v5778_v55 = vadd.f32 %v5777_v54, %v5776_v36  ;;  %v2377_v62 = vrot.slane %v2375_v49, 5  ;;  %v2387_v61 = vrot.slane %v2386_v31, 4  ;;  %v5694_v11 = vpop.f32.mrb[26].mxu0  ;;  %v5228_v63 = vld [vmem:[%s6824_s29 + $0xc8] sm:$0x1]  ;;  %v5779_v49 = vpop.f32.mrb[24].mxu1 }
 0x179   : > { %v8381_v52 = vadd.f32 %v5692_v50, %v5691_v6  ;;  %v2397_v41 = vrot.slane %v2396_v43, 4  ;;  %v2401_v9 = vrot.slane %v2399_v0, 5  ;;  %v2406_v29 = vrot.slane %v2404_v12, 4  ;;  %v5695_v42 = vpop.f32.mrb[27].mxu0  ;;  %v5780_v43 = vpop.f32.mrb[25].mxu1  ;;  %v6366_v36 = vld [vmem:[%s6824_s29 + $0x180] sm:$0xff]  }
 0x17a   : > { %v8383_v7 = vadd.f32 %v5778_v55, %v3824_v48  ;;  %v2409_v27 = vrot.slane %v2407_v10, 5  ;;  %v2415_v8 = vrot.slane %v2413_v23, 5  ;;  %v2419_v24 = vrot.slane %v2417_v56, 4 }
 0x17b   : > { %4390 = vmatmul.mubr.bf16.gmra.mrb[128].mxu1 %v5337_v44  ;;  %v8385_v39 = vadd.f32 %v5695_v42, %v5694_v11  ;;  %v5338_v44 = vcombine.low %v8247_v37, %v8266_v13  ;;  %v2368_v31 = vsel %vm7024_vm2, %v2363_v59, %v8321_v21  ;;  %v3829_v4 = vadd.f32 %v8170_v28, %v8315_v17  ;;  %v5782_v13 = vpop.f32.mrb[26].mxu1 }
 0x17c   : > { %4397 = vmatprep.mubr.bf16.mxu1 %v6364_v18  ;;  %6148 = vmatmul.mubr.bf16.gmra.mrb[132].mxu0 %v5368_v2  ;;  %v2378_v0 = vsel %vm7024_vm2, %v2373_v1, %v2377_v62  ;;  %v2392_v12 = vsel %vm7024_vm2, %v2387_v61, %v8344_v26  ;;  %v2402_v3 = vsel %vm7024_vm2, %v2397_v41, %v2401_v9  ;;  %v2423_v10 = vshll.u32 %v5228_v63, 16  ;;  %v5783_v28 = vpop.f32.mrb[27].mxu1 }
 0x17d   : > { %v5781_v37 = vadd.f32 %v5780_v43, %v5779_v49  ;;  %6151 = vmatprep.mubr.bf16.mxu0 %v5369_v35  ;;  %v2410_v21 = vor.u32 %v2409_v27, %v2406_v29  ;;  %v2420_v18 = vor.u32 %v2419_v24, %v2415_v8  ;;  %v3832_v2 = vadd.f32 %v8185_v33, %v8315_v17  ;;  %v6368_v24 = vld [vmem:[%s6824_s29 + $0x18c] sm:$0xff]   ;;  %s8732_s29 = sshll.u32 %s5029_s15, 5 }
 0x17e   : > { %v5697_v23 = vpop.f32.mrb[28].mxu0  ;;  %v5784_v48 = vadd.f32 %v5783_v28, %v5782_v13  ;;  %v5370_v59 = vcombine.low %v2368_v31, %v2378_v0  ;;  %v5371_v1 = vcombine.low %v2392_v12, %v2402_v3  ;;  %v2425_v61 = vrot.slane %v2423_v10, 5  ;;  %v5785_v33 = vpop.f32.mrb[28].mxu1  ;;  %p1021_p8 = scmp.lt.s32.totalorder %s8732_s29, 63 }
 0x17f   : > { %v8405_v56 = vadd.f32 %v5781_v37, %v3829_v4  ;;  %v5698_v54 = vpop.f32.mrb[29].mxu0  ;;  %v2411_v50 = vrot.slane %v2410_v21, 4  ;;  %v2421_v62 = vrot.slane %v2420_v18, 4  ;;  %v5786_v41 = vpop.f32.mrb[29].mxu1  ;;  %v5339_v9 = vcombine.low %v8299_v14, %v8307_v58 }
 0x180   : > { %v8407_v26 = vadd.f32 %v5698_v54, %v5697_v23  ;;  %v5700_v6 = vpop.f32.mrb[30].mxu0  ;;  %v8409_v35 = vadd.f32 %v5784_v48, %v3832_v2  ;;  %v3837_v29 = vadd.f32 %v8221_v34, %v8315_v17  ;;  %v5787_v42 = vadd.f32 %v5786_v41, %v5785_v33  ;;  %v5788_v27 = vpop.f32.mrb[30].mxu1  ;;  %s8949_s29 = smov (!%p1021_p8, %s8732_s29), 63 }
 0x181   : > { %v5701_v55 = vpop.f32.mrb[31].mxu0  ;;  %v2416_v63 = vsel %vm7024_vm2, %v2411_v50, %v2415_v8  ;;  %v2426_v49 = vsel %vm7024_vm2, %v2421_v62, %v2425_v61  ;;  %v3840_v4 = vadd.f32 %v8235_v25, %v8315_v17  ;;  %v5340_v25 = vcombine.low %v8353_v40, %v8364_v60  ;;  %s5036_s14 = sshll.u32 %s8949_s29, 2 }
 0x182   : > { %v8411_v11 = vadd.f32 %v5701_v55, %v5700_v6  ;;  %v8424_v14 = vadd.f32 %v5787_v42, %v3837_v29  ;;  %v5372_v12 = vcombine.low %v2416_v63, %v2426_v49  ;;  %v3848_v23 = vadd.f32 %v8309_v53, %v8315_v17  ;;  %s8785_s28 = scalar_lea.vmem %s8905_s3, %s5036_s14 }
 0x183   : > { %4398 = vmatmul.mubr.bf16.gmra.mrb[132].mxu1 %v5338_v44  ;;  %v5789_v44 = vpop.f32.mrb[31].mxu1  ;;  %v3853_v50 = vadd.f32 %v8340_v45, %v8315_v17  ;;  %v3856_v41 = vadd.f32 %v8355_v19, %v8315_v17 }
 0x184   : > { %4405 = vmatprep.mubr.bf16.mxu1 %v6366_v36  ;;  %6152 = vmatmul.mubr.bf16.gmra.mrb[136].mxu0 %v5370_v59  ;;  %v5790_v58 = vadd.f32 %v5789_v44, %v5788_v27  ;;  %v3845_v36 = vadd.f32 %v8291_v46, %v8315_v17 }
 0x185   : > { %6155 = vmatprep.mubr.bf16.mxu0 %v5371_v1 }
 0x186   : > { %v5703_v31 = vpop.f32.mrb[32].mxu0  ;;  %v8428_v3 = vadd.f32 %v5790_v58, %v3840_v4  ;;  %v5791_v37 = vpop.f32.mrb[32].mxu1  ;;  %v3861_v4 = vadd.f32 %v8381_v52, %v8315_v17 }
 0x187   : > { %v5704_v43 = vpop.f32.mrb[33].mxu0  ;;  %v5792_v13 = vpop.f32.mrb[33].mxu1 }
 0x188   : > { %v8426_v34 = vadd.f32 %v5704_v43, %v5703_v31  ;;  %v5706_v0 = vpop.f32.mrb[34].mxu0  ;;  %v5793_v21 = vadd.f32 %v5792_v13, %v5791_v37  ;;  %v5794_v18 = vpop.f32.mrb[34].mxu1 }
 0x189   : > { %v5707_v8 = vpop.f32.mrb[35].mxu0  ;;  %v5795_v10 = vpop.f32.mrb[35].mxu1 }
 0x18a   : > { %v8430_v20 = vadd.f32 %v5707_v8, %v5706_v0  ;;  %v8438_v2 = vadd.f32 %v5793_v21, %v3845_v36  ;;  %v5796_v48 = vadd.f32 %v5795_v10, %v5794_v18 }
 0x18b   : > { %4406 = vmatmul.mubr.bf16.gmra.mrb[136].mxu1 %v5339_v9 }
 0x18c   : > { %4413 = vmatprep.mubr.bf16.mxu1 %v6368_v24  ;;  %6156 = vmatmul.mubr.bf16.gmra.mrb[140].mxu0 %v5372_v12  ;;  %v8442_v40 = vadd.f32 %v5796_v48, %v3848_v23  ;;  %v3864_v12 = vadd.f32 %v8385_v39, %v8315_v17  ;;  %v3869_v23 = vadd.f32 %v8407_v26, %v8315_v17 }
 0x18e   : > { %v5709_v28 = vpop.f32.mrb[36].mxu0  ;;  %v5797_v46 = vpop.f32.mrb[36].mxu1 }
 0x18f   : > { %v5710_v54 = vpop.f32.mrb[37].mxu0  ;;  %v5798_v55 = vpop.f32.mrb[37].mxu1 }
 0x190   : > { %v8440_v6 = vadd.f32 %v5710_v54, %v5709_v28  ;;  %v5712_v59 = vpop.f32.mrb[38].mxu0  ;;  %v5799_v62 = vadd.f32 %v5798_v55, %v5797_v46  ;;  %v5800_v53 = vpop.f32.mrb[38].mxu1 }
 0x191   : > { %v5713_v60 = vpop.f32.mrb[39].mxu0  ;;  %v5801_v61 = vpop.f32.mrb[39].mxu1 }
 0x192   : > { %v8444_v1 = vadd.f32 %v5713_v60, %v5712_v59  ;;  %v8450_v9 = vadd.f32 %v5799_v62, %v3853_v50  ;;  %v5802_v29 = vadd.f32 %v5801_v61, %v5800_v53  ;;  %v3872_v59 = vadd.f32 %v8411_v11, %v8315_v17 }
 0x193   : > { %4414 = vmatmul.mubr.bf16.gmra.mrb[140].mxu1 %v5340_v25 }
 0x194   : > { %v8454_v63 = vadd.f32 %v5802_v29, %v3856_v41 }
 0x196   : > { %v5715_v33 = vpop.f32.mrb[40].mxu0  ;;  %v5803_v45 = vpop.f32.mrb[40].mxu1 }
 0x197   : > { %v5716_v42 = vpop.f32.mrb[41].mxu0  ;;  %v5804_v31 = vpop.f32.mrb[41].mxu1 }
 0x198   : > { %v8452_v27 = vadd.f32 %v5716_v42, %v5715_v33  ;;  %v5718_v24 = vpop.f32.mrb[42].mxu0  ;;  %v5805_v58 = vadd.f32 %v5804_v31, %v5803_v45  ;;  %v5806_v43 = vpop.f32.mrb[42].mxu1 }
 0x199   : > { %v5719_v49 = vpop.f32.mrb[43].mxu0  ;;  %v5807_v19 = vpop.f32.mrb[43].mxu1 }
 0x19a   : > { %v8456_v44 = vadd.f32 %v5719_v49, %v5718_v24  ;;  %v8462_v8 = vadd.f32 %v5805_v58, %v3861_v4  ;;  %v5808_v37 = vadd.f32 %v5807_v19, %v5806_v43  ;;  %v3877_v24 = vadd.f32 %v8426_v34, %v8315_v17 }
 0x19b   : > { %v3880_v4 = vadd.f32 %v8430_v20, %v8315_v17 }
 0x19c   : > { %v8466_v21 = vadd.f32 %v5808_v37, %v3864_v12 }
 0x19e   : > { %v5721_v0 = vpop.f32.mrb[44].mxu0  ;;  %v5809_v52 = vpop.f32.mrb[44].mxu1 }
 0x19f   : > { %v5722_v13 = vpop.f32.mrb[45].mxu0  ;;  %v5810_v28 = vpop.f32.mrb[45].mxu1 }
 0x1a0   : > { %v8464_v25 = vadd.f32 %v5722_v13, %v5721_v0  ;;  %v5724_v36 = vpop.f32.mrb[46].mxu0  ;;  %v5811_v48 = vadd.f32 %v5810_v28, %v5809_v52  ;;  %v5812_v54 = vpop.f32.mrb[46].mxu1  ;;  %v3885_v52 = vadd.f32 %v8440_v6, %v8315_v17 }
 0x1a1   : > { %v5725_v18 = vpop.f32.mrb[47].mxu0  ;;  %v5813_v39 = vpop.f32.mrb[47].mxu1 }
 0x1a2   : > { %v8468_v10 = vadd.f32 %v5725_v18, %v5724_v36  ;;  %v8474_v60 = vadd.f32 %v5811_v48, %v3869_v23  ;;  %v5814_v46 = vadd.f32 %v5813_v39, %v5812_v54  ;;  %v3888_v54 = vadd.f32 %v8444_v1, %v8315_v17 }
 0x1a4   : > { %v8476_v62 = vadd.f32 %v5814_v46, %v3872_v59 }
 0x1a6   : > { %v5879_v55 = vpop.f32.mrb[48].mxu0  ;;  %v5815_v41 = vpop.f32.mrb[48].mxu1 }
 0x1a7   : > { %v5880_v50 = vpop.f32.mrb[49].mxu0  ;;  %v5816_v42 = vpop.f32.mrb[49].mxu1 }
 0x1a8   : > { %v5881_v53 = vadd.f32 %v5880_v50, %v5879_v55  ;;  %v5882_v61 = vpop.f32.mrb[50].mxu0  ;;  %v5817_v11 = vadd.f32 %v5816_v42, %v5815_v41  ;;  %v5818_v49 = vpop.f32.mrb[50].mxu1 }
 0x1a9   : > { %v5883_v33 = vpop.f32.mrb[51].mxu0  ;;  %v5819_v31 = vpop.f32.mrb[51].mxu1 }
 0x1aa   : > { %v8479_v29 = vadd.f32 %v5881_v53, %v8335_v32  ;;  %v5884_v26 = vadd.f32 %v5883_v33, %v5882_v61  ;;  %v8488_v58 = vadd.f32 %v5817_v11, %v3877_v24  ;;  %v5820_v43 = vadd.f32 %v5819_v31, %v5818_v49 }
 0x1ab   : > { %v3896_v49 = vadd.f32 %v8456_v44, %v8315_v17 }
 0x1ac   : > { %v8484_v45 = vadd.f32 %v5884_v26, %v8347_v16  ;;  %v8490_v0 = vadd.f32 %v5820_v43, %v3880_v4  ;;  %v3893_v26 = vadd.f32 %v8452_v27, %v8315_v17 }
 0x1ae   : > { %v5885_v19 = vpop.f32.mrb[52].mxu0  ;;  %v5821_v34 = vpop.f32.mrb[52].mxu1 }
 0x1af   : > { %v5886_v32 = vpop.f32.mrb[53].mxu0  ;;  %v5822_v18 = vpop.f32.mrb[53].mxu1 }
 0x1b0   : > { %v5887_v12 = vadd.f32 %v5886_v32, %v5885_v19  ;;  %v5888_v37 = vpop.f32.mrb[54].mxu0  ;;  %v5823_v20 = vadd.f32 %v5822_v18, %v5821_v34  ;;  %v5824_v28 = vpop.f32.mrb[54].mxu1 }
 0x1b1   : > { %v5889_v13 = vpop.f32.mrb[55].mxu0  ;;  %v5825_v48 = vpop.f32.mrb[55].mxu1 }
 0x1b2   : > { %v8493_v36 = vadd.f32 %v5887_v12, %v8379_v51  ;;  %v5890_v16 = vadd.f32 %v5889_v13, %v5888_v37  ;;  %v8502_v39 = vadd.f32 %v5823_v20, %v3885_v52  ;;  %v5826_v59 = vadd.f32 %v5825_v48, %v5824_v28 }
 0x1b3   : > { %v3904_v28 = vadd.f32 %v8468_v10, %v8315_v17 }
 0x1b4   : > { %v8498_v23 = vadd.f32 %v5890_v16, %v8383_v7  ;;  %v8504_v55 = vadd.f32 %v5826_v59, %v3888_v54  ;;  %v3901_v16 = vadd.f32 %v8464_v25, %v8315_v17 }
 0x1b6   : > { %v5891_v46 = vpop.f32.mrb[56].mxu0  ;;  %v5827_v6 = vpop.f32.mrb[56].mxu1 }
 0x1b7   : > { %v5892_v51 = vpop.f32.mrb[57].mxu0  ;;  %v5828_v41 = vpop.f32.mrb[57].mxu1 }
 0x1b8   : > { %v5893_v50 = vadd.f32 %v5892_v51, %v5891_v46  ;;  %v5894_v53 = vpop.f32.mrb[58].mxu0  ;;  %v5829_v1 = vadd.f32 %v5828_v41, %v5827_v6  ;;  %v5830_v42 = vpop.f32.mrb[58].mxu1 }
 0x1b9   : > { %v5895_v61 = vpop.f32.mrb[59].mxu0  ;;  %v5831_v11 = vpop.f32.mrb[59].mxu1 }
 0x1ba   : > { %v8507_v33 = vadd.f32 %v5893_v50, %v8405_v56  ;;  %v5896_v7 = vadd.f32 %v5895_v61, %v5894_v53  ;;  %v8516_v31 = vadd.f32 %v5829_v1, %v3893_v26  ;;  %v5832_v4 = vadd.f32 %v5831_v11, %v5830_v42  ;;  %v8944_v42 = vld [vmem:[#allocation4_spill] sm:$0xff] }
 0x1bb   : > { %v3912_v11 = vadd.f32 %v8944_v42, %v8315_v17  ;;  %v3928_v42 = vadd.f32 %v8183_v15, %v8315_v17 }
 0x1bc   : > { %v8512_v24 = vadd.f32 %v5896_v7, %v8409_v35  ;;  %v8518_v19 = vadd.f32 %v5832_v4, %v3896_v49  ;;  %v3909_v7 = vadd.f32 %v8025_v57, %v8315_v17 }
 0x1be   : > { %v5897_v43 = vpop.f32.mrb[60].mxu0  ;;  %v5833_v27 = vpop.f32.mrb[60].mxu1 }
 0x1bf   : > { %v5898_v56 = vpop.f32.mrb[61].mxu0  ;;  %v5834_v34 = vpop.f32.mrb[61].mxu1 }
 0x1c0   : > { %v5899_v32 = vadd.f32 %v5898_v56, %v5897_v43  ;;  %v5900_v12 = vpop.f32.mrb[62].mxu0  ;;  %v5835_v44 = vadd.f32 %v5834_v34, %v5833_v27  ;;  %v5836_v18 = vpop.f32.mrb[62].mxu1  ;;  %v3917_v34 = vadd.f32 %v8100_v30, %v8315_v17 }
 0x1c1   : > { %v5901_v37 = vpop.f32.mrb[63].mxu0  ;;  %v5837_v20 = vpop.f32.mrb[63].mxu1 }
 0x1c2   : > { %v8521_v13 = vadd.f32 %v5899_v32, %v8424_v14  ;;  %v5902_v35 = vadd.f32 %v5901_v37, %v5900_v12  ;;  %v8530_v48 = vadd.f32 %v5835_v44, %v3901_v16  ;;  %v5838_v54 = vadd.f32 %v5837_v20, %v5836_v18 }
 0x1c4   : > { %v8526_v52 = vadd.f32 %v5902_v35, %v8428_v3  ;;  %v8532_v46 = vadd.f32 %v5838_v54, %v3904_v28  ;;  %v3920_v28 = vadd.f32 %v8118_v47, %v8315_v17 }
 0x1c6   : > { %v5903_v59 = vpop.f32.mrb[64].mxu0  ;;  %v5839_v25 = vpop.f32.mrb[64].mxu1 }
 0x1c7   : > { %v5904_v14 = vpop.f32.mrb[65].mxu0  ;;  %v5840_v6 = vpop.f32.mrb[65].mxu1 }
 0x1c8   : > { %v5905_v51 = vadd.f32 %v5904_v14, %v5903_v59  ;;  %v5906_v50 = vpop.f32.mrb[66].mxu0  ;;  %v5841_v10 = vadd.f32 %v5840_v6, %v5839_v25  ;;  %v5842_v41 = vpop.f32.mrb[66].mxu1 }
 0x1c9   : > { %v5907_v53 = vpop.f32.mrb[67].mxu0  ;;  %v5843_v1 = vpop.f32.mrb[67].mxu1 }
 0x1ca   : > { %v8535_v61 = vadd.f32 %v5905_v51, %v8438_v2  ;;  %v5908_v3 = vadd.f32 %v5907_v53, %v5906_v50  ;;  %v8544_v49 = vadd.f32 %v5841_v10, %v3909_v7  ;;  %v5844_v4 = vadd.f32 %v5843_v1, %v5842_v41 }
 0x1cb   : > { %v3925_v7 = vadd.f32 %v8168_v22, %v8315_v17 }
 0x1cc   : > { %v8540_v26 = vadd.f32 %v5908_v3, %v8442_v40  ;;  %v8546_v56 = vadd.f32 %v5844_v4, %v3912_v11 }
 0x1ce   : > { %v5909_v43 = vpop.f32.mrb[68].mxu0  ;;  %v5845_v57 = vpop.f32.mrb[68].mxu1 }
 0x1cf   : > { %v5910_v2 = vpop.f32.mrb[69].mxu0  ;;  %v5846_v35 = vpop.f32.mrb[69].mxu1 }
 0x1d0   : > { %v5911_v32 = vadd.f32 %v5910_v2, %v5909_v43  ;;  %v5912_v12 = vpop.f32.mrb[70].mxu0  ;;  %v5847_v16 = vadd.f32 %v5846_v35, %v5845_v57  ;;  %v5848_v44 = vpop.f32.mrb[70].mxu1  ;;  %v3933_v35 = vadd.f32 %v8219_v5, %v8315_v17 }
 0x1d1   : > { %v5913_v37 = vpop.f32.mrb[71].mxu0  ;;  %v5849_v20 = vpop.f32.mrb[71].mxu1 }
 0x1d2   : > { %v8549_v27 = vadd.f32 %v5911_v32, %v8450_v9  ;;  %v5914_v40 = vadd.f32 %v5913_v37, %v5912_v12  ;;  %v8558_v54 = vadd.f32 %v5847_v16, %v3917_v34  ;;  %v5850_v59 = vadd.f32 %v5849_v20, %v5848_v44 }
 0x1d3   : > { %v3936_v20 = vadd.f32 %v8233_v38, %v8315_v17 }
 0x1d4   : > { %v8554_v18 = vadd.f32 %v5914_v40, %v8454_v63  ;;  %v8560_v51 = vadd.f32 %v5850_v59, %v3920_v28 }
 0x1d6   : > { %v5915_v14 = vpop.f32.mrb[72].mxu0  ;;  %v5851_v30 = vpop.f32.mrb[72].mxu1 }
 0x1d7   : > { %v5916_v9 = vpop.f32.mrb[73].mxu0  ;;  %v5852_v6 = vpop.f32.mrb[73].mxu1 }
 0x1d8   : > { %v5917_v50 = vadd.f32 %v5916_v9, %v5915_v14  ;;  %v5918_v53 = vpop.f32.mrb[74].mxu0  ;;  %v5853_v47 = vadd.f32 %v5852_v6, %v5851_v30  ;;  %v5854_v10 = vpop.f32.mrb[74].mxu1 }
 0x1d9   : > { %v5919_v25 = vpop.f32.mrb[75].mxu0  ;;  %v5855_v1 = vpop.f32.mrb[75].mxu1 }
 0x1da   : > { %v8563_v3 = vadd.f32 %v5917_v50, %v8462_v8  ;;  %v5920_v63 = vadd.f32 %v5919_v25, %v5918_v53  ;;  %v8572_v11 = vadd.f32 %v5853_v47, %v3925_v7  ;;  %v5856_v4 = vadd.f32 %v5855_v1, %v5854_v10 }
 0x1dc   : > { %v8568_v41 = vadd.f32 %v5920_v63, %v8466_v21  ;;  %v8574_v2 = vadd.f32 %v5856_v4, %v3928_v42 }
 0x1de   : > { %v5921_v43 = vpop.f32.mrb[76].mxu0  ;;  %v5857_v22 = vpop.f32.mrb[76].mxu1 }
 0x1df   : > { %v5922_v8 = vpop.f32.mrb[77].mxu0  ;;  %v5858_v40 = vpop.f32.mrb[77].mxu1 }
 0x1e0   : > { %v5923_v32 = vadd.f32 %v5922_v8, %v5921_v43  ;;  %v5924_v12 = vpop.f32.mrb[78].mxu0  ;;  %v5859_v15 = vadd.f32 %v5858_v40, %v5857_v22  ;;  %v5860_v34 = vpop.f32.mrb[78].mxu1 }
 0x1e1   : > { %v5925_v37 = vpop.f32.mrb[79].mxu0  ;;  %v5861_v44 = vpop.f32.mrb[79].mxu1 }
 0x1e2   : > { %v8577_v57 = vadd.f32 %v5923_v32, %v8474_v60  ;;  %v5926_v21 = vadd.f32 %v5925_v37, %v5924_v12  ;;  %v8586_v28 = vadd.f32 %v5859_v15, %v3933_v35  ;;  %v5862_v59 = vadd.f32 %v5861_v44, %v5860_v34 }
 0x1e4   : > { %v8582_v16 = vadd.f32 %v5926_v21, %v8476_v62  ;;  %v8588_v9 = vadd.f32 %v5862_v59, %v3936_v20 }
 0x1e6   : > { %v5927_v14 = vpop.f32.mrb[80].mxu0  ;;  %v5991_v5 = vpop.f32.mrb[80].mxu1 }
 0x1e7   : > { %v5928_v60 = vpop.f32.mrb[81].mxu0  ;;  %v5992_v63 = vpop.f32.mrb[81].mxu1 }
 0x1e8   : > { %v5929_v50 = vadd.f32 %v5928_v60, %v5927_v14  ;;  %v5930_v53 = vpop.f32.mrb[82].mxu0  ;;  %v5993_v6 = vadd.f32 %v5992_v63, %v5991_v5  ;;  %v5994_v7 = vpop.f32.mrb[82].mxu1 }
 0x1e9   : > { %v5931_v25 = vpop.f32.mrb[83].mxu0  ;;  %v5995_v17 = vpop.f32.mrb[83].mxu1 }
 0x1ea   : > { %v8591_v30 = vadd.f32 %v5929_v50, %v8488_v58  ;;  %v5932_v62 = vadd.f32 %v5931_v25, %v5930_v53  ;;  %v5996_v47 = vadd.f32 %v5995_v17, %v5994_v7  ;;  %v8597_v1 = vadd.f32 %v5993_v6, %v8479_v29 }
 0x1ec   : > { %v8594_v38 = vadd.f32 %v5932_v62, %v8490_v0  ;;  %v8600_v8 = vadd.f32 %v5996_v47, %v8484_v45 }
 0x1ee   : > { %v5933_v10 = vpop.f32.mrb[84].mxu0  ;;  %v5997_v32 = vpop.f32.mrb[84].mxu1 }
 0x1ef   : > { %v5934_v42 = vpop.f32.mrb[85].mxu0  ;;  %v5998_v0 = vpop.f32.mrb[85].mxu1 }
 0x1f0   : > { %v5935_v4 = vadd.f32 %v5934_v42, %v5933_v10  ;;  %v5936_v43 = vpop.f32.mrb[86].mxu0  ;;  %v5999_v22 = vadd.f32 %v5998_v0, %v5997_v32  ;;  %v6000_v21 = vpop.f32.mrb[86].mxu1 }
 0x1f1   : > { %v5937_v58 = vpop.f32.mrb[87].mxu0  ;;  %v6001_v29 = vpop.f32.mrb[87].mxu1 }
 0x1f2   : > { %v8603_v12 = vadd.f32 %v5935_v4, %v8502_v39  ;;  %v5938_v37 = vadd.f32 %v5937_v58, %v5936_v43  ;;  %v6002_v35 = vadd.f32 %v6001_v29, %v6000_v21  ;;  %v8609_v34 = vadd.f32 %v5999_v22, %v8493_v36 }
 0x1f4   : > { %v8606_v40 = vadd.f32 %v5938_v37, %v8504_v55  ;;  %v8612_v59 = vadd.f32 %v6002_v35, %v8498_v23 }
 0x1f6   : > { %v5939_v15 = vpop.f32.mrb[88].mxu0  ;;  %v6003_v14 = vpop.f32.mrb[88].mxu1 }
 0x1f7   : > { %v5940_v45 = vpop.f32.mrb[89].mxu0  ;;  %v6004_v55 = vpop.f32.mrb[89].mxu1 }
 0x1f8   : > { %v5941_v44 = vadd.f32 %v5940_v45, %v5939_v15  ;;  %v5942_v20 = vpop.f32.mrb[90].mxu0  ;;  %v6005_v53 = vadd.f32 %v6004_v55, %v6003_v14  ;;  %v6006_v25 = vpop.f32.mrb[90].mxu1 }
 0x1f9   : > { %v5943_v39 = vpop.f32.mrb[91].mxu0  ;;  %v6007_v36 = vpop.f32.mrb[91].mxu1 }
 0x1fa   : > { %v8615_v60 = vadd.f32 %v5941_v44, %v8516_v31  ;;  %v5944_v50 = vadd.f32 %v5943_v39, %v5942_v20  ;;  %v6008_v62 = vadd.f32 %v6007_v36, %v6006_v25  ;;  %v8621_v6 = vadd.f32 %v6005_v53, %v8507_v33 }
 0x1fc   : > { %v8618_v5 = vadd.f32 %v5944_v50, %v8518_v19  ;;  %v8624_v47 = vadd.f32 %v6008_v62, %v8512_v24 }
 0x1fe   : > { %v5945_v63 = vpop.f32.mrb[92].mxu0  ;;  %v6009_v10 = vpop.f32.mrb[92].mxu1 }
 0x1ff   : > { %v5946_v23 = vpop.f32.mrb[93].mxu0  ;;  %v6010_v19 = vpop.f32.mrb[93].mxu1 }
 0x200   : > { %v5947_v7 = vadd.f32 %v5946_v23, %v5945_v63  ;;  %v5948_v17 = vpop.f32.mrb[94].mxu0  ;;  %v6011_v43 = vadd.f32 %v6010_v19, %v6009_v10  ;;  %v6012_v58 = vpop.f32.mrb[94].mxu1 }
 0x201   : > { %v5949_v31 = vpop.f32.mrb[95].mxu0  ;;  %v6013_v33 = vpop.f32.mrb[95].mxu1 }
 0x202   : > { %v8627_v42 = vadd.f32 %v5947_v7, %v8530_v48  ;;  %v5950_v4 = vadd.f32 %v5949_v31, %v5948_v17  ;;  %v6014_v37 = vadd.f32 %v6013_v33, %v6012_v58  ;;  %v8633_v22 = vadd.f32 %v6011_v43, %v8521_v13 }
 0x204   : > { %v8630_v32 = vadd.f32 %v5950_v4, %v8532_v46  ;;  %v8636_v35 = vadd.f32 %v6014_v37, %v8526_v52 }
 0x206   : > { %v5951_v0 = vpop.f32.mrb[96].mxu0  ;;  %v6015_v15 = vpop.f32.mrb[96].mxu1 }
 0x207   : > { %v5952_v24 = vpop.f32.mrb[97].mxu0  ;;  %v6016_v46 = vpop.f32.mrb[97].mxu1 }
 0x208   : > { %v5953_v21 = vadd.f32 %v5952_v24, %v5951_v0  ;;  %v5954_v29 = vpop.f32.mrb[98].mxu0  ;;  %v6017_v20 = vadd.f32 %v6016_v46, %v6015_v15  ;;  %v6018_v39 = vpop.f32.mrb[98].mxu1 }
 0x209   : > { %v5955_v48 = vpop.f32.mrb[99].mxu0  ;;  %v6019_v13 = vpop.f32.mrb[99].mxu1 }
 0x20a   : > { %v8639_v45 = vadd.f32 %v5953_v21, %v8544_v49  ;;  %v5956_v44 = vadd.f32 %v5955_v48, %v5954_v29  ;;  %v6020_v50 = vadd.f32 %v6019_v13, %v6018_v39  ;;  %v8645_v53 = vadd.f32 %v6017_v20, %v8535_v61 }
 0x20c   : > { %v8642_v14 = vadd.f32 %v5956_v44, %v8546_v56  ;;  %v8648_v62 = vadd.f32 %v6020_v50, %v8540_v26 }
 0x20e   : > { %v5957_v55 = vpop.f32.mrb[100].mxu0  ;;  %v6021_v63 = vpop.f32.mrb[100].mxu1 }
 0x20f   : > { %v5958_v52 = vpop.f32.mrb[101].mxu0  ;;  %v6022_v56 = vpop.f32.mrb[101].mxu1 }
 0x210   : > { %v5959_v25 = vadd.f32 %v5958_v52, %v5957_v55  ;;  %v5960_v36 = vpop.f32.mrb[102].mxu0  ;;  %v6023_v17 = vadd.f32 %v6022_v56, %v6021_v63  ;;  %v6024_v31 = vpop.f32.mrb[102].mxu1 }
 0x211   : > { %v5961_v49 = vpop.f32.mrb[103].mxu0  ;;  %v6025_v61 = vpop.f32.mrb[103].mxu1 }
 0x212   : > { %v8651_v23 = vadd.f32 %v5959_v25, %v8558_v54  ;;  %v5962_v7 = vadd.f32 %v5961_v49, %v5960_v36  ;;  %v6026_v4 = vadd.f32 %v6025_v61, %v6024_v31  ;;  %v8657_v43 = vadd.f32 %v6023_v17, %v8549_v27 }
 0x214   : > { %v8654_v10 = vadd.f32 %v5962_v7, %v8560_v51  ;;  %v8660_v37 = vadd.f32 %v6026_v4, %v8554_v18 }
 0x216   : > { %v5963_v19 = vpop.f32.mrb[104].mxu0  ;;  %v6027_v0 = vpop.f32.mrb[104].mxu1 }
 0x217   : > { %v5964_v26 = vpop.f32.mrb[105].mxu0  ;;  %v6028_v51 = vpop.f32.mrb[105].mxu1 }
 0x218   : > { %v5965_v58 = vadd.f32 %v5964_v26, %v5963_v19  ;;  %v5966_v33 = vpop.f32.mrb[106].mxu0  ;;  %v6029_v29 = vadd.f32 %v6028_v51, %v6027_v0  ;;  %v6030_v48 = vpop.f32.mrb[106].mxu1 }
 0x219   : > { %v5967_v54 = vpop.f32.mrb[107].mxu0  ;;  %v6031_v27 = vpop.f32.mrb[107].mxu1 }
 0x21a   : > { %v8663_v24 = vadd.f32 %v5965_v58, %v8572_v11  ;;  %v5968_v21 = vadd.f32 %v5967_v54, %v5966_v33  ;;  %v6032_v44 = vadd.f32 %v6031_v27, %v6030_v48  ;;  %v8669_v20 = vadd.f32 %v6029_v29, %v8563_v3 }
 0x21c   : > { %v8666_v15 = vadd.f32 %v5968_v21, %v8574_v2  ;;  %v8672_v50 = vadd.f32 %v6032_v44, %v8568_v41 }
 0x21e   : > { %v5969_v46 = vpop.f32.mrb[108].mxu0  ;;  %v6033_v55 = vpop.f32.mrb[108].mxu1 }
 0x21f   : > { %v5970_v18 = vpop.f32.mrb[109].mxu0  ;;  %v6034_v2 = vpop.f32.mrb[109].mxu1 }
 0x220   : > { %v5971_v39 = vadd.f32 %v5970_v18, %v5969_v46  ;;  %v5972_v13 = vpop.f32.mrb[110].mxu0  ;;  %v6035_v36 = vadd.f32 %v6034_v2, %v6033_v55  ;;  %v6036_v49 = vpop.f32.mrb[110].mxu1 }
 0x221   : > { %v5973_v11 = vpop.f32.mrb[111].mxu0  ;;  %v6037_v3 = vpop.f32.mrb[111].mxu1 }
 0x222   : > { %v8675_v52 = vadd.f32 %v5971_v39, %v8586_v28  ;;  %v5974_v25 = vadd.f32 %v5973_v11, %v5972_v13  ;;  %v6038_v7 = vadd.f32 %v6037_v3, %v6036_v49  ;;  %v8681_v17 = vadd.f32 %v6035_v36, %v8577_v57 }
 0x224   : > { %v8678_v63 = vadd.f32 %v5974_v25, %v8588_v9  ;;  %v8690_v4 = vadd.f32 %v6038_v7, %v8582_v16 }
 0x226   : > { %v6129_v56 = vpop.f32.mrb[112].mxu0 }
 0x227   : > { %v8684_v41 = vadd.f32 %v6129_v56, %v8609_v34  ;;  %v4456_v31 = vpop.f32.mrb[113].mxu0 }
 0x228   : > { %v8687_v28 = vadd.f32 %v4456_v31, %v8597_v1  ;;  %v6130_v61 = vpop.f32.mrb[114].mxu0 }
 0x229   : > { %v5448_v9 = vmul.f32 -1.442695, %v8684_v41  ;;  %v8694_v19 = vadd.f32 %v6130_v61, %v8612_v59  ;;  %v4459_v26 = vpop.f32.mrb[115].mxu0 }
 0x22a   : > { %v5446_v57 = vmul.f32 -1.442695, %v8687_v28  ;;  %v8698_v34 = vadd.f32 %v4459_v26, %v8600_v8 }
 0x22b   : > { %6370 = vpow2.f32 %v5448_v9  ;;  %v5449_v1 = vmul.f32 -1.442695, %v8694_v19 }
 0x22c   : > { %6372 = vpow2.f32 %v5446_v57  ;;  %v5447_v0 = vmul.f32 -1.442695, %v8698_v34 }
 0x22d   : > { %6374 = vpow2.f32 %v5449_v1 }
 0x22e   : > { %v6039_v58 = vpop.f32.mrb[112].mxu1  ;;  %6376 = vpow2.f32 %v5447_v0  ;;  %v6133_v51 = vpop.f32.mrb[116].mxu0 }
 0x22f   : > { %v6040_v33 = vpop.f32.mrb[113].mxu1  ;;  %v8706_v8 = vadd.f32 %v6133_v51, %v8633_v22  ;;  %v4472_v48 = vpop.f32.mrb[117].mxu0 }
 0x230   : > { %v6041_v54 = vadd.f32 %v6040_v33, %v6039_v58  ;;  %v6042_v16 = vpop.f32.mrb[114].mxu1  ;;  %v8709_v27 = vadd.f32 %v4472_v48, %v8621_v6  ;;  %v6134_v44 = vpop.f32.mrb[118].mxu0 }
 0x231   : > { %v6043_v21 = vpop.f32.mrb[115].mxu1  ;;  %v5452_v18 = vmul.f32 -1.442695, %v8706_v8  ;;  %v8716_v39 = vadd.f32 %v6134_v44, %v8636_v35  ;;  %v4475_v13 = vpop.f32.mrb[119].mxu0 }
 0x232   : > { %v6044_v59 = vadd.f32 %v6043_v21, %v6042_v16  ;;  %v8703_v29 = vadd.f32 %v6041_v54, %v8591_v30  ;;  %v5450_v30 = vmul.f32 -1.442695, %v8709_v27  ;;  %v8720_v22 = vadd.f32 %v4475_v13, %v8624_v47 }
 0x233   : > { %6378 = vpow2.f32 %v5452_v18  ;;  %v5453_v6 = vmul.f32 -1.442695, %v8716_v39 }
 0x234   : > { %v8712_v46 = vadd.f32 %v6044_v59, %v8594_v38  ;;  %6380 = vpow2.f32 %v5450_v30  ;;  %v5451_v2 = vmul.f32 -1.442695, %v8720_v22 }
 0x235   : > { %v6371_v36 = vpop.eup %6370  ;;  %6382 = vpow2.f32 %v5453_v6 }
 0x236   : > { %v6045_v11 = vpop.f32.mrb[116].mxu1  ;;  %v6373_v49 = vpop.eup %6372  ;;  %v4681_v3 = vadd.f32 1.0, %v6371_v36  ;;  %6384 = vpow2.f32 %v5451_v2 }
 0x237   : > { %v6046_v55 = vpop.f32.mrb[117].mxu1  ;;  %v6137_v56 = vpop.f32.mrb[120].mxu0  ;;  %v4679_v61 = vadd.f32 1.0, %v6373_v49 }
 0x238   : > { %v6047_v25 = vadd.f32 %v6046_v55, %v6045_v11  ;;  %v6048_v38 = vpop.f32.mrb[118].mxu1  ;;  %v6375_v31 = vpop.eup %6374  ;;  %v8728_v9 = vadd.f32 %v6137_v56, %v8657_v43  ;;  %6386 = vrcp.f32 %v4681_v3 }
 0x239   : > { %v6049_v35 = vpop.f32.mrb[119].mxu1  ;;  %v4488_v26 = vpop.f32.mrb[121].mxu0  ;;  %v4682_v57 = vadd.f32 1.0, %v6375_v31  ;;  %6388 = vrcp.f32 %v4679_v61 }
 0x23a   : > { %v6050_v7 = vadd.f32 %v6049_v35, %v6048_v38  ;;  %v8725_v47 = vadd.f32 %v6047_v25, %v8603_v12  ;;  %v6377_v58 = vpop.eup %6376  ;;  %v8735_v33 = vadd.f32 %v4488_v26, %v8645_v53  ;;  %v6138_v1 = vpop.f32.mrb[122].mxu0  ;;  %v5456_v43 = vmul.f32 -1.442695, %v8728_v9 }
 0x23b   : > { %v4680_v54 = vadd.f32 1.0, %v6377_v58  ;;  %v8742_v16 = vadd.f32 %v6138_v1, %v8660_v37  ;;  %v4491_v0 = vpop.f32.mrb[123].mxu0  ;;  %6390 = vrcp.f32 %v4682_v57 }
 0x23c   : > { %v8738_v12 = vadd.f32 %v6050_v7, %v8606_v40  ;;  %v5454_v59 = vmul.f32 -1.442695, %v8735_v33  ;;  %v8746_v51 = vadd.f32 %v4491_v0, %v8648_v62 }
 0x23d   : > { %6392 = vrcp.f32 %v4680_v54  ;;  %v5457_v40 = vmul.f32 -1.442695, %v8742_v16  ;;  %v6379_v18 = vpop.eup %6378 }
 0x23e   : > { %v6051_v21 = vpop.f32.mrb[120].mxu1  ;;  %6394 = vpow2.f32 %v5456_v43  ;;  %v5455_v37 = vmul.f32 -1.442695, %v8746_v51  ;;  %v6381_v11 = vpop.eup %6380  ;;  %v4685_v30 = vadd.f32 1.0, %v6379_v18 }
 0x23f   : > { %v6052_v53 = vpop.f32.mrb[121].mxu1  ;;  %6396 = vpow2.f32 %v5454_v59  ;;  %v6141_v55 = vpop.f32.mrb[124].mxu0  ;;  %v4683_v38 = vadd.f32 1.0, %v6381_v11 }
 0x240   : > { %v6053_v48 = vadd.f32 %v6052_v53, %v6051_v21  ;;  %v6054_v44 = vpop.f32.mrb[122].mxu1  ;;  %6398 = vpow2.f32 %v5457_v40  ;;  %v6383_v25 = vpop.eup %6382  ;;  %v8760_v2 = vadd.f32 %v6141_v55, %v8681_v17 }
 0x241   : > { %v6055_v13 = vpop.f32.mrb[123].mxu1  ;;  %6400 = vpow2.f32 %v5455_v37  ;;  %v4504_v36 = vpop.f32.mrb[125].mxu0  ;;  %v4686_v49 = vadd.f32 1.0, %v6383_v25 }
 0x242   : > { %v6056_v62 = vadd.f32 %v6055_v13, %v6054_v44  ;;  %v8752_v6 = vadd.f32 %v6053_v48, %v8615_v60  ;;  %v6385_v35 = vpop.eup %6384  ;;  %6402 = vrcp.f32 %v4685_v30  ;;  %v8763_v3 = vadd.f32 %v4504_v36, %v8669_v20  ;;  %v6142_v7 = vpop.f32.mrb[126].mxu0 }
 0x243   : > { %6404 = vrcp.f32 %v4683_v38  ;;  %v4684_v56 = vadd.f32 1.0, %v6385_v35  ;;  %v5460_v31 = vmul.f32 -1.442695, %v8760_v2  ;;  %v8770_v61 = vadd.f32 %v6142_v7, %v8690_v4  ;;  %v4507_v17 = vpop.f32.mrb[127].mxu0  ;;  %v6387_v26 = vpop.eup %6386 }
 0x244   : > { %v8766_v60 = vadd.f32 %v6056_v62, %v8618_v5  ;;  %6406 = vrcp.f32 %v4686_v49  ;;  %v5458_v57 = vmul.f32 -1.442695, %v8763_v3  ;;  %v8774_v20 = vadd.f32 %v4507_v17, %v8672_v50  ;;  %v6389_v1 = vpop.eup %6388 }
 0x245   : > { %6408 = vrcp.f32 %v4684_v56  ;;  %v5461_v54 = vmul.f32 -1.442695, %v8770_v61  ;;  %v6391_v43 = vpop.eup %6390  ;;  %v4777_v53 = vmul.f32 %v6387_v26, %v8684_v41  ;;  %v4775_v40 = vmul.f32 %v6389_v1, %v8687_v28 }
 0x246   : > { %v6057_v58 = vpop.f32.mrb[124].mxu1  ;;  %6410 = vpow2.f32 %v5460_v31  ;;  %v5459_v21 = vmul.f32 -1.442695, %v8774_v20  ;;  %v4778_v50 = vmul.f32 %v6391_v43, %v8694_v19 }
 0x247   : > { %v6058_v5 = vpop.f32.mrb[125].mxu1  ;;  %v6393_v59 = vpop.eup %6392  ;;  %6412 = vpow2.f32 %v5458_v57 }
 0x248   : > { %v6059_v0 = vadd.f32 %v6058_v5, %v6057_v58  ;;  %v6060_v4 = vpop.f32.mrb[126].mxu1  ;;  %v6395_v44 = vpop.eup %6394  ;;  %v4776_v37 = vmul.f32 %v6393_v59, %v8698_v34  ;;  %6414 = vpow2.f32 %v5461_v54  ;;  %v5552_v28 = vpack.c.bf16 %v4778_v50, %v4777_v53 }
 0x249   : > { %v6061_v48 = vpop.f32.mrb[127].mxu1  ;;  %v6145_v13 = vpop.f32.mrb[128].mxu0  ;;  %v4689_v30 = vadd.f32 1.0, %v6395_v44  ;;  %6416 = vpow2.f32 %v5459_v21 }
 0x24a   : > { %v6062_v18 = vadd.f32 %v6061_v48, %v6060_v4  ;;  %v4384_v41 = vadd.f32 %v6059_v0, %v8627_v42  ;;  %v6397_v11 = vpop.eup %6396  ;;  %v8790_v19 = vadd.f32 %v6145_v13, %v8725_v47  ;;  %v4520_v62 = vpop.f32.mrb[129].mxu0  ;;  %v5547_v25 = vpack.c.bf16 %v4776_v37, %v4775_v40  ;;  %5624 = vst [vmem:[%s8785_s28 + $0x8] sm:$0xff] %v5552_v28  }
 0x24b   : > { %v6399_v55 = vpop.eup %6398  ;;  %v4687_v38 = vadd.f32 1.0, %v6397_v11  ;;  %v8793_v34 = vadd.f32 %v4520_v62, %v8703_v29  ;;  %v6146_v36 = vpop.f32.mrb[130].mxu0  ;;  %6418 = vrcp.f32 %v4689_v30 }
 0x24c   : > { %v4387_v35 = vadd.f32 %v6062_v18, %v8630_v32  ;;  %v6401_v49 = vpop.eup %6400  ;;  %v4690_v42 = vadd.f32 1.0, %v6399_v55  ;;  %v5464_v7 = vmul.f32 -1.442695, %v8790_v19  ;;  %v8799_v47 = vadd.f32 %v6146_v36, %v8738_v12  ;;  %v4523_v56 = vpop.f32.mrb[131].mxu0  ;;  %5548 = vst [vmem:[%s8785_s28] sm:$0xff] %v5547_v25  }
 0x24d   : > { %v6403_v31 = vpop.eup %6402  ;;  %6420 = vrcp.f32 %v4687_v38  ;;  %v4688_v17 = vadd.f32 1.0, %v6401_v49  ;;  %v5462_v29 = vmul.f32 -1.442695, %v8793_v34  ;;  %v8804_v58 = vadd.f32 %v4523_v56, %v8712_v46 }
 0x24e   : > { %v6063_v26 = vpop.f32.mrb[128].mxu1  ;;  %v6405_v32 = vpop.eup %6404  ;;  %6422 = vrcp.f32 %v4690_v42  ;;  %v5465_v1 = vmul.f32 -1.442695, %v8799_v47  ;;  %v4781_v4 = vmul.f32 %v6403_v31, %v8706_v8 }
 0x24f   : > { %v6064_v57 = vpop.f32.mrb[129].mxu1  ;;  %v6407_v5 = vpop.eup %6406  ;;  %6424 = vrcp.f32 %v4688_v17  ;;  %v5463_v43 = vmul.f32 -1.442695, %v8804_v58  ;;  %v4779_v21 = vmul.f32 %v6405_v32, %v8709_v27 }
 0x250   : > { %v6065_v12 = vadd.f32 %v6064_v57, %v6063_v26  ;;  %v6066_v54 = vpop.f32.mrb[130].mxu1  ;;  %v6409_v0 = vpop.eup %6408  ;;  %v4782_v59 = vmul.f32 %v6407_v5, %v8716_v39  ;;  %6426 = vpow2.f32 %v5464_v7 }
 0x251   : > { %v6067_v46 = vpop.f32.mrb[131].mxu1  ;;  %v6411_v53 = vpop.eup %6410  ;;  %v4780_v40 = vmul.f32 %v6409_v0, %v8720_v22  ;;  %6428 = vpow2.f32 %v5462_v29 }
 0x252   : > { %v6068_v50 = vadd.f32 %v6067_v46, %v6066_v54  ;;  %v6149_v48 = vpop.f32.mrb[132].mxu0  ;;  %v4392_v44 = vadd.f32 %v6065_v12, %v8639_v45  ;;  %v6413_v37 = vpop.eup %6412  ;;  %v5562_v18 = vpack.c.bf16 %v4782_v59, %v4781_v4  ;;  %v4693_v13 = vadd.f32 1.0, %v6411_v53 }
 0x253   : > { %6430 = vpow2.f32 %v5465_v1  ;;  %v8813_v8 = vadd.f32 %v6149_v48, %v4384_v41  ;;  %v4536_v27 = vpop.f32.mrb[133].mxu0  ;;  %v6415_v39 = vpop.eup %6414  ;;  %v5557_v11 = vpack.c.bf16 %v4780_v40, %v4779_v21  ;;  %v4691_v28 = vadd.f32 1.0, %v6413_v37 }
 0x254   : > { %6432 = vpow2.f32 %v5463_v43  ;;  %v8816_v22 = vadd.f32 %v4536_v27, %v8752_v6  ;;  %v6150_v30 = vpop.f32.mrb[134].mxu0  ;;  %v6417_v62 = vpop.eup %6416  ;;  %5626 = vst [vmem:[%s8785_s28 + $0x18] sm:$0xff] %v5562_v18   ;;  %v4694_v45 = vadd.f32 1.0, %v6415_v39  ;;  %v4395_v31 = vadd.f32 %v6068_v50, %v8642_v14 }
 0x255   : > { %6434 = vrcp.f32 %v4693_v13  ;;  %v5468_v55 = vmul.f32 -1.442695, %v8813_v8  ;;  %v8820_v25 = vadd.f32 %v6150_v30, %v4387_v35  ;;  %v4539_v38 = vpop.f32.mrb[135].mxu0  ;;  %5625 = vst [vmem:[%s8785_s28 + $0x10] sm:$0xff] %v5557_v11   ;;  %v4692_v41 = vadd.f32 1.0, %v6417_v62  ;;  %v6419_v6 = vpop.eup %6418 }
 0x256   : > { %6436 = vrcp.f32 %v4691_v28  ;;  %v6069_v36 = vpop.f32.mrb[132].mxu1  ;;  %v5466_v49 = vmul.f32 -1.442695, %v8816_v22  ;;  %v8825_v42 = vadd.f32 %v4539_v38, %v8766_v60  ;;  %v4785_v57 = vmul.f32 %v6419_v6, %v8728_v9 }
 0x257   : > { %6438 = vrcp.f32 %v4694_v45  ;;  %v6070_v7 = vpop.f32.mrb[133].mxu1  ;;  %v5469_v56 = vmul.f32 -1.442695, %v8820_v25  ;;  %v6421_v17 = vpop.eup %6420 }
 0x258   : > { %6440 = vrcp.f32 %v4692_v41  ;;  %v6071_v35 = vadd.f32 %v6070_v7, %v6069_v36  ;;  %v6072_v26 = vpop.f32.mrb[134].mxu1  ;;  %v5467_v29 = vmul.f32 -1.442695, %v8825_v42  ;;  %v6423_v32 = vpop.eup %6422  ;;  %v4783_v0 = vmul.f32 %v6421_v17, %v8735_v33 }
 0x259   : > { %6442 = vpow2.f32 %v5468_v55  ;;  %v6073_v1 = vpop.f32.mrb[135].mxu1  ;;  %v6425_v60 = vpop.eup %6424  ;;  %v4786_v5 = vmul.f32 %v6423_v32, %v8742_v16 }
 0x25a   : > { %6444 = vpow2.f32 %v5466_v49  ;;  %v6074_v12 = vadd.f32 %v6073_v1, %v6072_v26  ;;  %v4400_v54 = vadd.f32 %v6071_v35, %v8651_v23  ;;  %v6153_v43 = vpop.f32.mrb[136].mxu0  ;;  %v6427_v14 = vpop.eup %6426  ;;  %v4784_v4 = vmul.f32 %v6425_v60, %v8746_v51 }
 0x25b   : > { %6446 = vpow2.f32 %v5469_v56  ;;  %v4552_v21 = vpop.f32.mrb[137].mxu0  ;;  %v6429_v59 = vpop.eup %6428  ;;  %v5572_v9 = vpack.c.bf16 %v4786_v5, %v4785_v57  ;;  %v4697_v46 = vadd.f32 1.0, %v6427_v14 }
 0x25c   : > { %6448 = vpow2.f32 %v5467_v29  ;;  %v8835_v53 = vadd.f32 %v6153_v43, %v4400_v54  ;;  %v6154_v16 = vpop.f32.mrb[138].mxu0  ;;  %v5567_v50 = vpack.c.bf16 %v4784_v4, %v4783_v0  ;;  %v4695_v23 = vadd.f32 1.0, %v6429_v59 }
 0x25d   : > { %v6431_v40 = vpop.eup %6430  ;;  %v8837_v48 = vadd.f32 %v4552_v21, %v4392_v44  ;;  %v4403_v33 = vadd.f32 %v6074_v12, %v8654_v10  ;;  %v4555_v37 = vpop.f32.mrb[139].mxu0  ;;  %5628 = vst [vmem:[%s8785_s28 + $0x28] sm:$0xff] %v5572_v9   ;;  %6450 = vrcp.f32 %v4697_v46 }
 0x25e   : > { %v6433_v51 = vpop.eup %6432  ;;  %v4698_v18 = vadd.f32 1.0, %v6431_v40  ;;  %v6075_v13 = vpop.f32.mrb[136].mxu1  ;;  %v5472_v27 = vmul.f32 -1.442695, %v8835_v53  ;;  %v8842_v39 = vadd.f32 %v4555_v37, %v4395_v31  ;;  %5627 = vst [vmem:[%s8785_s28 + $0x20] sm:$0xff] %v5567_v50   ;;  %6452 = vrcp.f32 %v4695_v23 }
 0x25f   : > { %v6435_v11 = vpop.eup %6434  ;;  %v4696_v28 = vadd.f32 1.0, %v6433_v51  ;;  %v6076_v30 = vpop.f32.mrb[137].mxu1  ;;  %v5470_v44 = vmul.f32 -1.442695, %v8837_v48  ;;  %v8846_v62 = vadd.f32 %v6154_v16, %v4403_v33 }
 0x260   : > { %v6437_v10 = vpop.eup %6436  ;;  %6454 = vrcp.f32 %v4698_v18  ;;  %v6077_v45 = vadd.f32 %v6076_v30, %v6075_v13  ;;  %v6078_v55 = vpop.f32.mrb[138].mxu1  ;;  %v4789_v41 = vmul.f32 %v6435_v11, %v8760_v2  ;;  %v5471_v6 = vmul.f32 -1.442695, %v8842_v39 }
 0x261   : > { %v6439_v38 = vpop.eup %6438  ;;  %6456 = vrcp.f32 %v4696_v28  ;;  %v5473_v36 = vmul.f32 -1.442695, %v8846_v62  ;;  %v6079_v49 = vpop.f32.mrb[139].mxu1  ;;  %v4787_v29 = vmul.f32 %v6437_v10, %v8763_v3 }
 0x262   : > { %v6441_v7 = vpop.eup %6440  ;;  %v4790_v56 = vmul.f32 %v6439_v38, %v8770_v61  ;;  %6458 = vpow2.f32 %v5472_v27  ;;  %v6080_v31 = vadd.f32 %v6079_v49, %v6078_v55  ;;  %v6157_v17 = vpop.f32.mrb[140].mxu0  ;;  %v4408_v35 = vadd.f32 %v6077_v45, %v8663_v24 }
 0x263   : > { %v6443_v26 = vpop.eup %6442  ;;  %v4788_v32 = vmul.f32 %v6441_v7, %v8774_v20  ;;  %6460 = vpow2.f32 %v5470_v44  ;;  %v4568_v2 = vpop.f32.mrb[141].mxu0 }
 0x264   : > { %v6445_v57 = vpop.eup %6444  ;;  %v5582_v1 = vpack.c.bf16 %v4790_v56, %v4789_v41  ;;  %v4701_v60 = vadd.f32 1.0, %v6443_v26  ;;  %6462 = vpow2.f32 %v5473_v36  ;;  %v8855_v5 = vadd.f32 %v4568_v2, %v4408_v35  ;;  %v6158_v61 = vpop.f32.mrb[142].mxu0 }
 0x265   : > { %v6447_v12 = vpop.eup %6446  ;;  %v5577_v54 = vpack.c.bf16 %v4788_v32, %v4787_v29  ;;  %v4699_v43 = vadd.f32 1.0, %v6445_v57  ;;  %6464 = vpow2.f32 %v5471_v6  ;;  %v4411_v24 = vadd.f32 %v6080_v31, %v8666_v15  ;;  %v4571_v3 = vpop.f32.mrb[143].mxu0 }
 0x266   : > { %v6449_v14 = vpop.eup %6448  ;;  %5630 = vst [vmem:[%s8785_s28 + $0x38] sm:$0xff] %v5582_v1   ;;  %6466 = vrcp.f32 %v4701_v60  ;;  %v4702_v20 = vadd.f32 1.0, %v6447_v12  ;;  %v6081_v0 = vpop.f32.mrb[140].mxu1  ;;  %v5474_v4 = vmul.f32 -1.442695, %v8855_v5 }
 0x267   : > { %5629 = vst [vmem:[%s8785_s28 + $0x30] sm:$0xff] %v5577_v54   ;;  %6468 = vrcp.f32 %v4699_v43  ;;  %v4700_v21 = vadd.f32 1.0, %v6449_v14  ;;  %v6082_v59 = vpop.f32.mrb[141].mxu1  ;;  %v8861_v9 = vadd.f32 %v4571_v3, %v4411_v24  ;;  %v6451_v46 = vpop.eup %6450 }
 0x268   : > { %6470 = vrcp.f32 %v4702_v20  ;;  %v6083_v16 = vadd.f32 %v6082_v59, %v6081_v0  ;;  %v6084_v40 = vpop.f32.mrb[142].mxu1  ;;  %v6453_v50 = vpop.eup %6452  ;;  %v4793_v13 = vmul.f32 %v6451_v46, %v8790_v19 }
 0x269   : > { %6472 = vrcp.f32 %v4700_v21  ;;  %v6085_v15 = vpop.f32.mrb[143].mxu1  ;;  %v5475_v23 = vmul.f32 -1.442695, %v8861_v9  ;;  %v4791_v28 = vmul.f32 %v6453_v50, %v8793_v34 }
 0x26a   : > { %v6455_v33 = vpop.eup %6454  ;;  %v4416_v37 = vadd.f32 %v6083_v16, %v8675_v52  ;;  %6474 = vpow2.f32 %v5474_v4  ;;  %v6086_v51 = vadd.f32 %v6085_v15, %v6084_v40 }
 0x26b   : > { %v6457_v18 = vpop.eup %6456  ;;  %v4794_v27 = vmul.f32 %v6455_v33, %v8799_v47  ;;  %6476 = vpow2.f32 %v5475_v23 }
 0x26c   : > { %v6459_v11 = vpop.eup %6458  ;;  %v4792_v30 = vmul.f32 %v6457_v18, %v8804_v58  ;;  %v8869_v44 = vadd.f32 %v6157_v17, %v4416_v37  ;;  %v4419_v10 = vadd.f32 %v6086_v51, %v8678_v63 }
 0x26d   : > { %v6461_v52 = vpop.eup %6460  ;;  %v5592_v45 = vpack.c.bf16 %v4794_v27, %v4793_v13  ;;  %v4705_v55 = vadd.f32 1.0, %v6459_v11 }
 0x26e   : > { %v6463_v38 = vpop.eup %6462  ;;  %v5587_v41 = vpack.c.bf16 %v4792_v30, %v4791_v28  ;;  %v4703_v19 = vadd.f32 1.0, %v6461_v52  ;;  %v4580_v36 = vadd.f32 %v6158_v61, %v4419_v10  ;;  %v5476_v34 = vmul.f32 -1.442695, %v8869_v44 }
 0x26f   : > { %v6465_v49 = vpop.eup %6464  ;;  %5632 = vst [vmem:[%s8785_s28 + $0x48] sm:$0xff] %v5592_v45   ;;  %6478 = vrcp.f32 %v4705_v55  ;;  %v4706_v47 = vadd.f32 1.0, %v6463_v38 }
 0x270   : > { %v6467_v6 = vpop.eup %6466  ;;  %5631 = vst [vmem:[%s8785_s28 + $0x40] sm:$0xff] %v5587_v41   ;;  %6480 = vrcp.f32 %v4703_v19  ;;  %v4704_v58 = vadd.f32 1.0, %v6465_v49  ;;  %v5477_v7 = vmul.f32 -1.442695, %v4580_v36 }
 0x271   : > { %v6469_v56 = vpop.eup %6468  ;;  %6482 = vrcp.f32 %v4706_v47  ;;  %v4797_v17 = vmul.f32 %v6467_v6, %v8813_v8 }
 0x272   : > { %v6471_v63 = vpop.eup %6470  ;;  %6484 = vrcp.f32 %v4704_v58  ;;  %v4795_v29 = vmul.f32 %v6469_v56, %v8816_v22 }
 0x273   : > { %v6473_v31 = vpop.eup %6472  ;;  %v4798_v35 = vmul.f32 %v6471_v63, %v8820_v25  ;;  %6486 = vpow2.f32 %v5476_v34 }
 0x274   : > { %v6475_v26 = vpop.eup %6474  ;;  %v4796_v32 = vmul.f32 %v6473_v31, %v8825_v42  ;;  %6488 = vpow2.f32 %v5477_v7 }
 0x275   : > { %v6477_v2 = vpop.eup %6476  ;;  %v5602_v57 = vpack.c.bf16 %v4798_v35, %v4797_v17  ;;  %v4707_v1 = vadd.f32 1.0, %v6475_v26 }
 0x276   : > { %v5597_v60 = vpack.c.bf16 %v4796_v32, %v4795_v29  ;;  %v4708_v61 = vadd.f32 1.0, %v6477_v2 }
 0x277   : > { %5634 = vst [vmem:[%s8785_s28 + $0x58] sm:$0xff] %v5602_v57   ;;  %6490 = vrcp.f32 %v4707_v1 }
 0x278   : > { %5633 = vst [vmem:[%s8785_s28 + $0x50] sm:$0xff] %v5597_v60   ;;  %6492 = vrcp.f32 %v4708_v61 }
 0x279   : > { %v6479_v8 = vpop.eup %6478 }
 0x27a   : > { %v6481_v12 = vpop.eup %6480  ;;  %v4801_v22 = vmul.f32 %v6479_v8, %v8835_v53 }
 0x27b   : > { %v6483_v25 = vpop.eup %6482  ;;  %v4799_v24 = vmul.f32 %v6481_v12, %v8837_v48 }
 0x27c   : > { %v6485_v54 = vpop.eup %6484  ;;  %v4802_v42 = vmul.f32 %v6483_v25, %v8846_v62 }
 0x27d   : > { %v6487_v43 = vpop.eup %6486  ;;  %v4800_v3 = vmul.f32 %v6485_v54, %v8842_v39 }
 0x27e   : > { %v6489_v14 = vpop.eup %6488  ;;  %v5612_v20 = vpack.c.bf16 %v4802_v42, %v4801_v22  ;;  %v4709_v0 = vadd.f32 1.0, %v6487_v43 }
 0x27f   : > { %v5607_v4 = vpack.c.bf16 %v4800_v3, %v4799_v24  ;;  %v4710_v21 = vadd.f32 1.0, %v6489_v14 }
 0x280   : > { %5636 = vst [vmem:[%s8785_s28 + $0x68] sm:$0xff] %v5612_v20   ;;  %6494 = vrcp.f32 %v4709_v0 }
 0x281   : > { %v6491_v59 = vpop.eup %6490  ;;  %5635 = vst [vmem:[%s8785_s28 + $0x60] sm:$0xff] %v5607_v4   ;;  %6496 = vrcp.f32 %v4710_v21 }
 0x282   : > { %v6493_v53 = vpop.eup %6492  ;;  %v4803_v62 = vmul.f32 %v6491_v59, %v8855_v5 }
 0x283   : > { %v4804_v46 = vmul.f32 %v6493_v53, %v8861_v9 }
 0x285   : > { %v5617_v48 = vpack.c.bf16 %v4804_v46, %v4803_v62 }
 0x287   : > { %5637 = vst [vmem:[%s8785_s28 + $0x70] sm:$0xff] %v5617_v48  }
 0x28a   : > { %v6495_v16 = vpop.eup %6494 }
 0x28b   : > { %v6497_v39 = vpop.eup %6496  ;;  %v4805_v40 = vmul.f32 %v6495_v16, %v8869_v44 }
 0x28c   : > { %v4806_v50 = vmul.f32 %v6497_v39, %v4580_v36 }
 0x28e   : > { %v5622_v15 = vpack.c.bf16 %v4806_v50, %v4805_v40 }
 0x290   : > { %5638 = vst [vmem:[%s8785_s28 + $0x78] sm:$0xff] %v5622_v15  }
 0x291 PF: > { %p10_p9 = scmp.ge.s32.totalorder %s6559_s16, 4   ;;  %s8945_s12 = smov %s6516_s13 }
 0x292   : > { %s8946_s13 = smov %s6568_s19  ;;  %s8947_s14 = smov %s6559_s16 }
 0x293   :  { %12 = sbr.rel (!%p10_p9) target bundleno = 2 (0x2), region = 113 }

// kernel: _lambda_.6
= control target key start
LH: loop header
LB: loop body
LE: loop exit
PB: predicated region body
PF: predicated region fallthrough
CT: control target
= control target key end

     0   :  { %s3143_s18 = smov 0   ;;  %s3145_s19 = smov 0   ;;  %s3709_s0 = inlined_call_operand.vmem [shape: bf16[4,2,9,9,128], index: 0, kind: input, shape index: {}]   ;;  %s3710_s1 = inlined_call_operand.vmem [shape: bf16[1152,128], index: 1, kind: input, shape index: {}]   ;;  %s3711_s2 = inlined_call_operand.vmem [shape: f32[1,128], index: 2, kind: input, shape index: {}]   ;;  %s3712_s3 = inlined_call_operand.vmem [shape: bf16[128,128], index: 3, kind: input, shape index: {}]   ;;  %s3713_s4 = inlined_call_operand.vmem [shape: f32[1,128], index: 4, kind: input, shape index: {}]   ;;  %s3714_s5 = inlined_call_operand.vmem [shape: bf16[128,128], index: 5, kind: output, shape index: {}]  }
   0x1   :  { %s3147_s20 = smov 0  }
   0x2 LB: > { %s2423_s21 = sadd.s32 4294967295, %s3111_s20   ;;  %s3160_s22 = sadd.s32 1, %s3111_s20   ;;  %s3111_s20 = sphi %s3147_s20, %s3719_s20   ;;  %s3107_s19 = sphi %s3145_s19, %s3718_s19   ;;  %s3103_s18 = sphi %s3143_s18, %s3717_s18  }
   0x3   : > { %s19_s23 = ssub.s32 %s3111_s20, %s3160_s22  ;;  %s22_s24 = sadd.s32 1, %s3107_s19 }
   0x4   : > { %p20_p0 = scmp.eq.s32.totalorder %s19_s23, 0  ;;  %p29_p1 = scmp.ne.s32.totalorder %s3107_s19, %s3103_s18 }
   0x5   : > { %p30_p2 = scmp.eq.s32.totalorder %s3111_s20, 0  ;;  %p2426_p4 = scmp.ge.s32.totalorder %s3111_s20, 2 }
   0x6   : > { %s3169_s25 = scalar_select %p20_p0, %s3107_s19, %s22_s24  }
   0x7   : > { %p31_p3 = por %p30_p2, %p29_p1  ;;  %177 = sbr.rel (%p2426_p4) target bundleno = 37 (0x25), region = 32 }
   0xe   : > { %180 = sbr.rel (!%p31_p3) target bundleno = 37 (0x25), region = 36  ;;  %s182_s26 = sand.u32 (%p31_p3), 1, %s3107_s19  }
   0xf   : > { %s2895_s27 = smul.u32 (%p31_p3), 72, %s3111_s20 }
  0x10   : > { %s2894_s28 = smul.u32 (%p31_p3), 288, %s182_s26 }
  0x11   : > { %s3177_s6 = scalar_lea.vmem (%p31_p3), %s3709_s0, %s2895_s27 }
  0x12   : > { %v203_v0 = vld [vmem:[%s3177_s6] sm:$0xff] (%p31_p3)   ;;  %v207_v1 = vld [vmem:[%s3177_s6 + $0x8] sm:$0xff] (%p31_p3)   ;;  %v211_v2 = vld [vmem:[%s3177_s6 + $0x10] sm:$0xff] (%p31_p3)   ;;  %s3182_s7 = scalar_lea.vmem (%p31_p3), [#allocation2], %s2894_s28 }
  0x13   : > { %204 = vst [vmem:[%s3182_s7] sm:$0xff] (%p31_p3), %v203_v0   ;;  %208 = vst [vmem:[%s3182_s7 + $0x8] sm:$0xff] (%p31_p3), %v207_v1   ;;  %v215_v3 = vld [vmem:[%s3177_s6 + $0x18] sm:$0xff] (%p31_p3)   ;;  %v219_v4 = vld [vmem:[%s3177_s6 + $0x20] sm:$0xff] (%p31_p3)  }
  0x14   : > { %212 = vst [vmem:[%s3182_s7 + $0x10] sm:$0xff] (%p31_p3), %v211_v2   ;;  %v223_v5 = vld [vmem:[%s3177_s6 + $0x28] sm:$0xff] (%p31_p3)   ;;  %216 = vst [vmem:[%s3182_s7 + $0x18] sm:$0xff] (%p31_p3), %v215_v3   ;;  %v227_v6 = vld [vmem:[%s3177_s6 + $0x30] sm:$0xff] (%p31_p3)  }
  0x15   : > { %220 = vst [vmem:[%s3182_s7 + $0x20] sm:$0xff] %v219_v4   ;;  %224 = vst [vmem:[%s3182_s7 + $0x28] sm:$0xff] %v223_v5   ;;  %v231_v7 = vld [vmem:[%s3177_s6 + $0x38] sm:$0xff]   ;;  %v235_v8 = vld [vmem:[%s3177_s6 + $0x40] sm:$0xff]  }
  0x16   : > { %228 = vst [vmem:[%s3182_s7 + $0x30] sm:$0xff] %v227_v6   ;;  %232 = vst [vmem:[%s3182_s7 + $0x38] sm:$0xff] %v231_v7   ;;  %v239_v9 = vld [vmem:[%s3177_s6 + $0x90] sm:$0xff]   ;;  %v243_v10 = vld [vmem:[%s3177_s6 + $0x98] sm:$0xff]  }
  0x17   : > { %236 = vst [vmem:[%s3182_s7 + $0x40] sm:$0xff] %v235_v8   ;;  %v247_v11 = vld [vmem:[%s3177_s6 + $0xa0] sm:$0xff]   ;;  %240 = vst [vmem:[%s3182_s7 + $0x48] sm:$0xff] %v239_v9   ;;  %v251_v12 = vld [vmem:[%s3177_s6 + $0xa8] sm:$0xff]  }
  0x18   : > { %244 = vst [vmem:[%s3182_s7 + $0x50] sm:$0xff] %v243_v10   ;;  %248 = vst [vmem:[%s3182_s7 + $0x58] sm:$0xff] %v247_v11   ;;  %v255_v13 = vld [vmem:[%s3177_s6 + $0xb0] sm:$0xff]   ;;  %v259_v14 = vld [vmem:[%s3177_s6 + $0xb8] sm:$0xff]  }
  0x19   : > { %252 = vst [vmem:[%s3182_s7 + $0x60] sm:$0xff] %v251_v12   ;;  %256 = vst [vmem:[%s3182_s7 + $0x68] sm:$0xff] %v255_v13   ;;  %v263_v15 = vld [vmem:[%s3177_s6 + $0xc0] sm:$0xff]   ;;  %v267_v16 = vld [vmem:[%s3177_s6 + $0xc8] sm:$0xff]  }
  0x1a   : > { %260 = vst [vmem:[%s3182_s7 + $0x70] sm:$0xff] %v259_v14   ;;  %v271_v17 = vld [vmem:[%s3177_s6 + $0xd0] sm:$0xff]   ;;  %264 = vst [vmem:[%s3182_s7 + $0x78] sm:$0xff] %v263_v15   ;;  %v275_v18 = vld [vmem:[%s3177_s6 + $0x120] sm:$0xff]  }
  0x1b   : > { %268 = vst [vmem:[%s3182_s7 + $0x80] sm:$0xff] %v267_v16   ;;  %272 = vst [vmem:[%s3182_s7 + $0x88] sm:$0xff] %v271_v17   ;;  %v279_v19 = vld [vmem:[%s3177_s6 + $0x128] sm:$0xff]   ;;  %v283_v20 = vld [vmem:[%s3177_s6 + $0x130] sm:$0xff]  }
  0x1c   : > { %276 = vst [vmem:[%s3182_s7 + $0x90] sm:$0xff] %v275_v18   ;;  %280 = vst [vmem:[%s3182_s7 + $0x98] sm:$0xff] %v279_v19   ;;  %v287_v21 = vld [vmem:[%s3177_s6 + $0x138] sm:$0xff]   ;;  %v291_v22 = vld [vmem:[%s3177_s6 + $0x140] sm:$0xff]  }
  0x1d   : > { %284 = vst [vmem:[%s3182_s7 + $0xa0] sm:$0xff] %v283_v20   ;;  %v295_v23 = vld [vmem:[%s3177_s6 + $0x148] sm:$0xff]   ;;  %288 = vst [vmem:[%s3182_s7 + $0xa8] sm:$0xff] %v287_v21   ;;  %v299_v24 = vld [vmem:[%s3177_s6 + $0x150] sm:$0xff]  }
  0x1e   : > { %292 = vst [vmem:[%s3182_s7 + $0xb0] sm:$0xff] %v291_v22   ;;  %296 = vst [vmem:[%s3182_s7 + $0xb8] sm:$0xff] %v295_v23   ;;  %v303_v25 = vld [vmem:[%s3177_s6 + $0x158] sm:$0xff]   ;;  %v307_v26 = vld [vmem:[%s3177_s6 + $0x160] sm:$0xff]  }
  0x1f   : > { %300 = vst [vmem:[%s3182_s7 + $0xc0] sm:$0xff] %v299_v24   ;;  %304 = vst [vmem:[%s3182_s7 + $0xc8] sm:$0xff] %v303_v25   ;;  %v311_v27 = vld [vmem:[%s3177_s6 + $0x1b0] sm:$0xff]   ;;  %v315_v28 = vld [vmem:[%s3177_s6 + $0x1b8] sm:$0xff]  }
  0x20   : > { %308 = vst [vmem:[%s3182_s7 + $0xd0] sm:$0xff] %v307_v26   ;;  %v319_v29 = vld [vmem:[%s3177_s6 + $0x1c0] sm:$0xff]   ;;  %312 = vst [vmem:[%s3182_s7 + $0xd8] sm:$0xff] %v311_v27   ;;  %v323_v30 = vld [vmem:[%s3177_s6 + $0x1c8] sm:$0xff]  }
  0x21   : > { %316 = vst [vmem:[%s3182_s7 + $0xe0] sm:$0xff] %v315_v28   ;;  %320 = vst [vmem:[%s3182_s7 + $0xe8] sm:$0xff] %v319_v29   ;;  %v327_v31 = vld [vmem:[%s3177_s6 + $0x1d0] sm:$0xff]   ;;  %v331_v32 = vld [vmem:[%s3177_s6 + $0x1d8] sm:$0xff]  }
  0x22   : > { %324 = vst [vmem:[%s3182_s7 + $0xf0] sm:$0xff] %v323_v30   ;;  %328 = vst [vmem:[%s3182_s7 + $0xf8] sm:$0xff] %v327_v31   ;;  %v335_v33 = vld [vmem:[%s3177_s6 + $0x1e0] sm:$0xff]   ;;  %v339_v34 = vld [vmem:[%s3177_s6 + $0x1e8] sm:$0xff]  }
  0x23   : > { %332 = vst [vmem:[%s3182_s7 + $0x100] sm:$0xff] %v331_v32   ;;  %v343_v35 = vld [vmem:[%s3177_s6 + $0x1f0] sm:$0xff]   ;;  %336 = vst [vmem:[%s3182_s7 + $0x108] sm:$0xff] %v335_v33  }
  0x24   : > { %340 = vst [vmem:[%s3182_s7 + $0x110] sm:$0xff] %v339_v34   ;;  %344 = vst [vmem:[%s3182_s7 + $0x118] sm:$0xff] %v343_v35  }
  0x25 PF: > { %p2428_p5 = scmp.ge.s32.totalorder %s3111_s20, 1  ;;  %p512_p6 = scmp.lt.s32.totalorder %s3111_s20, 3 }
  0x27   : > { %p513_p7 = pnand %p2428_p5, %p512_p6 }
  0x28   : > { %v2921_v36 = vld [vmem:[%s3710_s1 + $0x40] sm:$0xff] (!%p513_p7)   ;;  %v2925_v40 = vld [vmem:[%s3710_s1 + $0x48] sm:$0xff] (!%p513_p7)   ;;  %v2929_v44 = vld [vmem:[%s3710_s1 + $0x50] sm:$0xff] (!%p513_p7)   ;;  %s519_s23 = sand.u32 (!%p513_p7), 1, %s3103_s18   ;;  %vm578_vm0 = vsmask.f32 (!%p513_p7), 3328 }
  0x29   : > { %516 = sbr.rel (%p513_p7) target bundleno = 641 (0x281), region = 77  ;;  %v2922_v37 = vld [vmem:[%s3710_s1] sm:$0xff] (!%p513_p7)   ;;  %2662 = vmatprep.subr.bf16.mxu0 (!%p513_p7), %v2921_v36  ;;  %v2926_v41 = vld [vmem:[%s3710_s1 + $0x8] sm:$0xff] (!%p513_p7)   ;;  %v2930_v45 = vld [vmem:[%s3710_s1 + $0x10] sm:$0xff] (!%p513_p7)   ;;  %vm579_vm1 = vsmask.f32 (!%p513_p7), 7440 }
  0x2a   : > { %v2923_v38 = vld [vmem:[%s3710_s1 + $0xc0] sm:$0xff] (!%p513_p7)   ;;  %2663 = vmatpush3.bf16.msra.mxu0 (!%p513_p7), %v2922_v37  ;;  %v2927_v42 = vld [vmem:[%s3710_s1 + $0xc8] sm:$0xff] (!%p513_p7)   ;;  %v2931_v46 = vld [vmem:[%s3710_s1 + $0xd0] sm:$0xff] (!%p513_p7)   ;;  %s2896_s6 = smul.u32 (!%p513_p7), 288, %s519_s23 }
  0x2b   : > { %v2924_v39 = vld [vmem:[%s3710_s1 + $0x80] sm:$0xff] (!%p513_p7)   ;;  %2702 = vmatprep.subr.bf16.mxu1 (!%p513_p7), %v2923_v38  ;;  %2664 = vmatprep.subr.bf16.mxu0 (!%p513_p7), %v2925_v40  ;;  %v2928_v43 = vld [vmem:[%s3710_s1 + $0x88] sm:$0xff] (!%p513_p7)   ;;  %v2932_v47 = vld [vmem:[%s3710_s1 + $0x90] sm:$0xff] (!%p513_p7)  }
  0x2c   : > { %2703 = vmatpush3.bf16.msra.mxu1 (!%p513_p7), %v2924_v39  ;;  %v2933_v48 = vld [vmem:[%s3710_s1 + $0x58] sm:$0xff] (!%p513_p7)   ;;  %v2937_v52 = vld [vmem:[%s3710_s1 + $0x60] sm:$0xff] (!%p513_p7)   ;;  %v2941_v56 = vld [vmem:[%s3710_s1 + $0x68] sm:$0xff] (!%p513_p7)   ;;  %s3349_s14 = scalar_lea.vmem (!%p513_p7), [#allocation2], %s2896_s6 }
  0x2d   : > { %2704 = vmatprep.subr.bf16.mxu1 (!%p513_p7), %v2927_v42  ;;  %v2934_v49 = vld [vmem:[%s3710_s1 + $0x18] sm:$0xff] (!%p513_p7)   ;;  %v2938_v53 = vld [vmem:[%s3710_s1 + $0x20] sm:$0xff] (!%p513_p7)   ;;  %v2942_v57 = vld [vmem:[%s3710_s1 + $0x28] sm:$0xff] (!%p513_p7)  }
  0x2e   : > { %2665 = vmatpush3.bf16.msra.mxu0 (!%p513_p7), %v2926_v41  ;;  %v2935_v50 = vld [vmem:[%s3710_s1 + $0xd8] sm:$0xff] (!%p513_p7)   ;;  %v2939_v54 = vld [vmem:[%s3710_s1 + $0xe0] sm:$0xff] (!%p513_p7)   ;;  %v2943_v58 = vld [vmem:[%s3710_s1 + $0xe8] sm:$0xff] (!%p513_p7)  }
  0x2f   : > { %2666 = vmatprep.subr.bf16.mxu0 (!%p513_p7), %v2929_v44  ;;  %v2936_v51 = vld [vmem:[%s3710_s1 + $0x98] sm:$0xff] (!%p513_p7)   ;;  %v2940_v55 = vld [vmem:[%s3710_s1 + $0xa0] sm:$0xff] (!%p513_p7)   ;;  %v2944_v59 = vld [vmem:[%s3710_s1 + $0xa8] sm:$0xff] (!%p513_p7)  }
  0x30   : > { %2705 = vmatpush3.bf16.msra.mxu1 %v2928_v43  ;;  %v2945_v60 = vld [vmem:[%s3710_s1 + $0x70] sm:$0xff]   ;;  %v2949_v0 = vld [vmem:[%s3710_s1 + $0x78] sm:$0xff]   ;;  %v553_v5 = vld [vmem:[%s3349_s14] sm:$0xf] }
  0x31   : > { %2706 = vmatprep.subr.bf16.mxu1 %v2931_v46  ;;  %v2946_v61 = vld [vmem:[%s3710_s1 + $0x30] sm:$0xff]   ;;  %v2950_v1 = vld [vmem:[%s3710_s1 + $0x38] sm:$0xff]   ;;  %v554_v6 = vld [vmem:[%s3349_s14 + $0x8] sm:$0xf]  ;;  %v582_v7 = vshrl.u32 %v553_v5, 16  ;;  %v585_v8 = vshll.u32 %v553_v5, 16 }
  0x32   : > { %2667 = vmatpush3.bf16.msra.mxu0 %v2930_v45  ;;  %v2947_v62 = vld [vmem:[%s3710_s1 + $0xf0] sm:$0xff]   ;;  %v2951_v2 = vld [vmem:[%s3710_s1 + $0xf8] sm:$0xff]   ;;  %v596_v9 = vshrl.u32 %v554_v6, 16  ;;  %v599_v10 = vshll.u32 %v554_v6, 16  ;;  %v2487_v11 = vcombine.low %v553_v5, %v554_v6  ;;  %v2955_v12 = vld [vmem:[%s3710_s1 + $0x140] sm:$0xff]  }
  0x33   : > { %2668 = vmatprep.subr.bf16.mxu0 %v2933_v48  ;;  %v2948_v63 = vld [vmem:[%s3710_s1 + $0xb0] sm:$0xff]   ;;  %v2953_v4 = vld [vmem:[%s3710_s1 + $0xb8] sm:$0xff]   ;;  %v584_v15 = vrot.slane %v582_v7, 4  ;;  %v587_v16 = vrot.slane %v585_v8, 5  ;;  %v2957_v20 = vld [vmem:[%s3710_s1 + $0x100] sm:$0xff]  }
  0x34   : > { %2707 = vmatpush3.bf16.msra.mxu1 %v2932_v47  ;;  %v2952_v3 = vld [vmem:[%s3349_s14 + $0x48] ss:$8 sps:$4 sm:$0xff]   ;;  %v3364_v14 = vld [vmem:[%s3349_s14 + $0x98] sm:$0xf]  ;;  %v598_v17 = vrot.slane %v596_v9, 4  ;;  %v601_v18 = vrot.slane %v599_v10, 5  ;;  %vm3373_vm2 = vmor %vm578_vm0, %vm579_vm1 }
  0x35   : > { %2708 = vmatprep.subr.bf16.mxu1 %v2935_v50  ;;  %1776 = vmatprep.mubr.bf16.mxu0 %v2952_v3  ;;  %v3361_v13 = vld [vmem:[%s3349_s14 + $0x90] sm:$0xf]  ;;  %v570_v21 = vld [vmem:[%s3349_s14 + $0x4] sm:$0x1]  ;;  %v571_v22 = vld [vmem:[%s3349_s14 + $0xc] sm:$0x1]  ;;  %v588_v23 = vor.u32 %v587_v16, %v584_v15 }
  0x36   : > { %2669 = vmatpush3.bf16.msra.mxu0 %v2934_v49  ;;  %v2499_v19 = vcombine.low %v3361_v13, %v3364_v14  ;;  %v602_v24 = vor.u32 %v601_v18, %v598_v17  ;;  %v591_v26 = vshll.u32 %v570_v21, 16  ;;  %v605_v29 = vshll.u32 %v571_v22, 16  ;;  %v2958_v30 = vld [vmem:[%s3710_s1 + $0x1c0] sm:$0xff]   ;;  %v2960_v34 = vld [vmem:[%s3710_s1 + $0x148] sm:$0xff]   ;;  %v555_v43 = vld [vmem:[%s3349_s14 + $0x10] sm:$0xf] }
  0x37   : > { %2670 = vmatprep.subr.bf16.mxu0 %v2937_v52  ;;  %v589_v25 = vrot.slane %v588_v23, 4  ;;  %v2959_v33 = vld [vmem:[%s3710_s1 + $0x180] sm:$0xff]   ;;  %v2961_v37 = vld [vmem:[%s3710_s1 + $0x108] sm:$0xff]   ;;  %v720_v41 = vshrl.u32 %v3361_v13, 16  ;;  %v556_v44 = vld [vmem:[%s3349_s14 + $0x18] sm:$0xf] }
  0x38   : > { %2709 = vmatpush3.bf16.msra.mxu1 %v2936_v51  ;;  %1841 = vmatprep.mubr.bf16.mxu1 %v2499_v19  ;;  %v603_v28 = vrot.slane %v602_v24, 4  ;;  %v593_v31 = vrot.slane %v591_v26, 5  ;;  %v607_v32 = vrot.slane %v605_v29, 5  ;;  %v2962_v39 = vld [vmem:[%s3710_s1 + $0x1c8] sm:$0xff]   ;;  %v2963_v40 = vld [vmem:[%s3349_s14 + $0x58] ss:$8 sps:$4 sm:$0xff]   ;;  %v2488_v50 = vcombine.low %v555_v43, %v556_v44 }
  0x39   : > { %2710 = vmatprep.subr.bf16.mxu1 %v2939_v54  ;;  %v2964_v42 = vld [vmem:[%s3710_s1 + $0x188] sm:$0xff]   ;;  %v610_v45 = vshrl.u32 %v555_v43, 16  ;;  %v613_v46 = vshll.u32 %v555_v43, 16  ;;  %v624_v47 = vshrl.u32 %v556_v44, 16  ;;  %v627_v48 = vshll.u32 %v556_v44, 16  ;;  %v2966_v51 = vld [vmem:[%s3710_s1 + $0x150] sm:$0xff]  }
  0x3a   : > { %2671 = vmatpush3.bf16.msra.mxu0 %v2938_v53  ;;  %v594_v35 = vsel %vm3373_vm2, %v589_v25, %v593_v31  ;;  %v608_v36 = vsel %vm3373_vm2, %v603_v28, %v607_v32  ;;  %v723_v49 = vshll.u32 %v3361_v13, 16  ;;  %v3408_v52 = vld [vmem:[%s3349_s14 + $0xa0] sm:$0xf]  ;;  %v573_v3 = vld [vmem:[%s3349_s14 + $0x1c] sm:$0x1]  ;;  %v2969_v9 = vld [vmem:[%s3710_s1 + $0x1d0] sm:$0xff]  }
  0x3b   : > { %2672 = vmatprep.subr.bf16.mxu0 %v2941_v56  ;;  %v2495_v38 = vcombine.low %v594_v35, %v608_v36  ;;  %v612_v53 = vrot.slane %v610_v45, 4  ;;  %v615_v54 = vrot.slane %v613_v46, 5  ;;  %v629_v56 = vrot.slane %v627_v48, 5  ;;  %v2971_v13 = vld [vmem:[%s3710_s1 + $0x158] sm:$0xff]   ;;  %v2974_v21 = vld [vmem:[%s3349_s14 + $0x68] ss:$8 sps:$4 sm:$0xff]  }
  0x3c   : > { %2711 = vmatpush3.bf16.msra.mxu1 %v2940_v55  ;;  %v626_v55 = vrot.slane %v624_v47, 4  ;;  %v633_v7 = vshll.u32 %v573_v3, 16  ;;  %v748_v8 = vshrl.u32 %v3408_v52, 16  ;;  %v2972_v17 = vld [vmem:[%s3710_s1 + $0x118] sm:$0xff]   ;;  %v557_v24 = vld [vmem:[%s3349_s14 + $0x20] sm:$0xf] }
  0x3d   : > { %2712 = vmatprep.subr.bf16.mxu1 %v2943_v58  ;;  %v2975_v23 = vld [vmem:[%s3710_s1 + $0x198] sm:$0xff]   ;;  %v558_v26 = vld [vmem:[%s3349_s14 + $0x28] sm:$0xf]  ;;  %v638_v28 = vshrl.u32 %v557_v24, 16  ;;  %v641_v29 = vshll.u32 %v557_v24, 16 }
  0x3e   : > { %2673 = vmatpush3.bf16.msra.mxu0 %v2942_v57  ;;  %v3411_v57 = vld [vmem:[%s3349_s14 + $0xa8] sm:$0xf]  ;;  %v655_v31 = vshll.u32 %v558_v26, 16  ;;  %v2489_v32 = vcombine.low %v557_v24, %v558_v26  ;;  %v574_v45 = vld [vmem:[%s3349_s14 + $0x24] sm:$0x1]  ;;  %v750_v47 = vrot.slane %v748_v8, 4 }
  0x3f   : > { %2674 = vmatprep.subr.bf16.mxu0 %v2945_v60  ;;  %v2500_v58 = vcombine.low %v3408_v52, %v3411_v57  ;;  %v572_v60 = vld [vmem:[%s3349_s14 + $0x14] sm:$0x1]  ;;  %v762_v18 = vshrl.u32 %v3411_v57, 16  ;;  %v765_v22 = vshll.u32 %v3411_v57, 16  ;;  %v640_v35 = vrot.slane %v638_v28, 4  ;;  %v3020_v27 = vld [vmem:[%s3712_s3 + $0x18] sm:$0xff]  }
  0x40   : > { %2713 = vmatpush3.bf16.msra.mxu1 %v2944_v59  ;;  %v2968_v59 = vld [vmem:[%s3710_s1 + $0x110] sm:$0xff]   ;;  %v619_v5 = vshll.u32 %v572_v60, 16  ;;  %v643_v36 = vrot.slane %v641_v29, 5  ;;  %v2981_v60 = vld [vmem:[%s3710_s1 + $0x1a0] sm:$0xff]   ;;  %v2446_v24 = vld [vmem:[%s3349_s14 + $0xc8] sm:$0xf] }
  0x41   : > { %2714 = vmatprep.subr.bf16.mxu1 %v2947_v62  ;;  %v630_v62 = vor.u32 %v629_v56, %v626_v55 }
  0x42   : > { %2675 = vmatpush3.bf16.msra.mxu0 %v2946_v61  ;;  %v616_v61 = vor.u32 %v615_v54, %v612_v53  ;;  %v621_v10 = vrot.slane %v619_v5, 5  ;;  %v644_v46 = vor.u32 %v643_v36, %v640_v35  ;;  %v764_v53 = vrot.slane %v762_v18, 4  ;;  %v2984_v5 = vld [vmem:[%s3710_s1 + $0x1e8] sm:$0xff]  }
  0x43   : > { %2676 = vmatprep.subr.bf16.mxu0 %v2949_v0  ;;  %v725_v0 = vrot.slane %v723_v49, 5  ;;  %v631_v6 = vrot.slane %v630_v62, 4  ;;  %v575_v49 = vld [vmem:[%s3349_s14 + $0x2c] sm:$0x1]  ;;  %v767_v54 = vrot.slane %v765_v22, 5 }
  0x44   : > { %2715 = vmatpush3.bf16.msra.mxu1 %v2948_v63  ;;  %v722_v63 = vrot.slane %v720_v41, 4  ;;  %v657_v41 = vrot.slane %v655_v31, 5  ;;  %v645_v55 = vrot.slane %v644_v46, 4  ;;  %v661_v56 = vshll.u32 %v575_v49, 16  ;;  %v2992_v49 = vld [vmem:[%s3710_s1 + $0x1b0] sm:$0xff]  }
  0x45   : > { %2716 = vmatprep.subr.bf16.mxu1 %v2951_v2  ;;  %v737_v2 = vshll.u32 %v3364_v14, 16 }
  0x46   : > { %2677 = vmatpush3.bf16.msra.mxu0 %v2950_v1  ;;  %v734_v1 = vshrl.u32 %v3364_v14, 16  ;;  %v751_v14 = vshll.u32 %v3408_v52, 16  ;;  %v726_v25 = vor.u32 %v725_v0, %v722_v63  ;;  %v2980_v52 = vld [vmem:[%s3710_s1 + $0x1e0] sm:$0xff]   ;;  %v2982_v63 = vld [vmem:[%s3710_s1 + $0x168] sm:$0xff]  }
  0x47   : > { %2742 = vmatprep.subr.bf16.mxu0 %v2955_v12  ;;  %v2970_v12 = vld [vmem:[%s3710_s1 + $0x190] sm:$0xff]   ;;  %v739_v43 = vrot.slane %v737_v2, 5  ;;  %v2983_v2 = vld [vmem:[%s3710_s1 + $0x128] sm:$0xff]  }
  0x48   : > { %2717 = vmatpush3.bf16.msra.mxu1 %v2953_v4  ;;  %v617_v4 = vrot.slane %v616_v61, 4  ;;  %v753_v48 = vrot.slane %v751_v14, 5 }
  0x49   : > { %1777 = vmatmul.mubr.bf16.vlgmr.msra.gmra.mrb[0].mxu0 %v2487_v11  ;;  %2782 = vmatprep.subr.bf16.mxu1 %v2958_v30  ;;  %v635_v11 = vrot.slane %v633_v7, 5  ;;  %v652_v30 = vshrl.u32 %v558_v26, 16 }
  0x4a   : > { %2743 = vmatpush3.bf16.msra.mxu0 %v2957_v20  ;;  %1784 = vmatprep.mubr.bf16.mxu0 %v2963_v40  ;;  %v622_v15 = vsel %vm3373_vm2, %v617_v4, %v621_v10  ;;  %v2973_v20 = vld [vmem:[%s3710_s1 + $0x1d8] sm:$0xff]   ;;  %v559_v10 = vld [vmem:[%s3349_s14 + $0x30] sm:$0xf] }
  0x4b   : > { %2744 = vmatprep.subr.bf16.mxu0 %v2960_v34  ;;  %1842 = vmatmul.mubr.bf16.vlgmr.msra.gmra.mrb[0].mxu1 %v2495_v38  ;;  %v636_v16 = vsel %vm3373_vm2, %v631_v6, %v635_v11  ;;  %v2979_v34 = vld [vmem:[%s3710_s1 + $0x120] sm:$0xff]   ;;  %v3461_v38 = vld [vmem:[%s3349_s14 + $0xb8] sm:$0xf]  ;;  %v654_v40 = vrot.slane %v652_v30, 4  ;;  %v754_v11 = vor.u32 %v753_v48, %v750_v47  ;;  %v669_v14 = vshll.u32 %v559_v10, 16 }
  0x4c   : > { %2783 = vmatpush3.bf16.msra.mxu1 %v2959_v33  ;;  %1849 = vmatprep.mubr.bf16.mxu1 %v2500_v58  ;;  %v2496_v19 = vcombine.low %v622_v15, %v636_v16  ;;  %v2977_v33 = vld [vmem:[%s3710_s1 + $0x160] sm:$0xff]   ;;  %v790_v3 = vshrl.u32 %v3461_v38, 16  ;;  %v793_v8 = vshll.u32 %v3461_v38, 16  ;;  %v768_v15 = vor.u32 %v767_v54, %v764_v53 }
  0x4d   : > { %2784 = vmatprep.subr.bf16.mxu1 %v2962_v39  ;;  %v736_v39 = vrot.slane %v734_v1, 4  ;;  %v2985_v6 = vld [vmem:[%s3349_s14 + $0x78] ss:$8 sps:$4 sm:$0xff]   ;;  %v671_v22 = vrot.slane %v669_v14, 5  ;;  %v3508_v29 = vrot.slane %v754_v11, 4  ;;  %v818_v53 = vshrl.u32 %v2446_v24, 16 }
  0x4e   : > { %2745 = vmatpush3.bf16.msra.mxu0 %v2961_v37  ;;  %v3458_v37 = vld [vmem:[%s3349_s14 + $0xb0] sm:$0xf]  ;;  %v3515_v36 = vrot.slane %v790_v3, 4  ;;  %v3001_v14 = vld [vmem:[%s3710_s1 + $0x208] sm:$0xff]  }
  0x4f   : > { %2746 = vmatprep.subr.bf16.mxu0 %v2966_v51  ;;  %v2501_v44 = vcombine.low %v3458_v37, %v3461_v38  ;;  %v658_v51 = vor.u32 %v657_v41, %v654_v40  ;;  %v776_v61 = vshrl.u32 %v3458_v37, 16  ;;  %v779_v0 = vshll.u32 %v3458_v37, 16  ;;  %v577_v37 = vld [vmem:[%s3349_s14 + $0x3c] sm:$0x1]  ;;  %v2991_v40 = vld [vmem:[%s3710_s1 + $0x1f0] sm:$0xff]  }
  0x50   : > { %2785 = vmatpush3.bf16.msra.mxu1 %v2964_v42  ;;  %v3463_v42 = vrot.slane %v726_v25, 4  ;;  %v740_v7 = vor.u32 %v739_v43, %v736_v39  ;;  %v3521_v41 = vrot.slane %v793_v8, 5  ;;  %v820_v3 = vrot.slane %v818_v53, 4 }
  0x51   : > { %1785 = vmatmul.mubr.bf16.gmra.mrb[4].mxu0 %v2488_v50  ;;  %2786 = vmatprep.subr.bf16.mxu1 %v2969_v9  ;;  %v647_v50 = vshll.u32 %v574_v45, 16  ;;  %v659_v58 = vrot.slane %v658_v51, 4  ;;  %v2986_v9 = vld [vmem:[%s3710_s1 + $0x1a8] sm:$0xff]   ;;  %v3510_v30 = vrot.slane %v776_v61, 4  ;;  %v781_v35 = vrot.slane %v779_v0, 5  ;;  %v2998_v0 = vld [vmem:[%s3710_s1 + $0x200] sm:$0xff]  }
  0x52   : > { %2747 = vmatpush3.bf16.msra.mxu0 %v2968_v59  ;;  %1792 = vmatprep.mubr.bf16.mxu0 %v2974_v21  ;;  %v663_v59 = vrot.slane %v661_v56, 5  ;;  %v3506_v25 = vrot.slane %v740_v7, 4  ;;  %v689_v45 = vshll.u32 %v577_v37, 16  ;;  %v821_v56 = vshll.u32 %v2446_v24, 16  ;;  %v2997_v7 = vld [vmem:[%s3349_s14 + $0xd8] ss:$8 sps:$4 sm:$0xff]  }
  0x53   : > { %2748 = vmatprep.subr.bf16.mxu0 %v2971_v13  ;;  %1850 = vmatmul.mubr.bf16.gmra.mrb[4].mxu1 %v2496_v19  ;;  %v649_v57 = vrot.slane %v647_v50, 5  ;;  %v666_v13 = vshrl.u32 %v559_v10, 16  ;;  %v2988_v19 = vld [vmem:[%s3710_s1 + $0x170] sm:$0xff]  }
  0x54   : > { %2787 = vmatpush3.bf16.msra.mxu1 %v2970_v12  ;;  %1857 = vmatprep.mubr.bf16.mxu1 %v2501_v44  ;;  %v664_v1 = vsel %vm3373_vm2, %v659_v58, %v663_v59  ;;  %v560_v12 = vld [vmem:[%s3349_s14 + $0x38] sm:$0xf]  ;;  %v691_v48 = vrot.slane %v689_v45, 5  ;;  %v2455_v59 = vld [vmem:[%s3349_s14 + $0x94] sm:$0x1] }
  0x55   : > { %2788 = vmatprep.subr.bf16.mxu1 %v2973_v20  ;;  %v650_v62 = vsel %vm3373_vm2, %v645_v55, %v649_v57  ;;  %v680_v16 = vshrl.u32 %v560_v12, 16  ;;  %v2490_v18 = vcombine.low %v559_v10, %v560_v12  ;;  %v2990_v20 = vld [vmem:[%s3710_s1 + $0x130] sm:$0xff]   ;;  %v668_v21 = vrot.slane %v666_v13, 4  ;;  %v2994_v55 = vld [vmem:[%s3710_s1 + $0x138] sm:$0xff]  }
  0x56   : > { %2749 = vmatpush3.bf16.msra.mxu0 %v2972_v17  ;;  %v2497_v4 = vcombine.low %v650_v62, %v664_v1  ;;  %v683_v17 = vshll.u32 %v560_v12, 16  ;;  %v2995_v58 = vld [vmem:[%s3710_s1 + $0x1f8] sm:$0xff]   ;;  %v729_v61 = vshll.u32 %v2455_v59, 16  ;;  %v782_v10 = vor.u32 %v781_v35, %v3510_v30  ;;  %v3559_v12 = vld [vmem:[%s3349_s14 + $0x8] sm:$0xf]  ;;  %v3008_v59 = vld [vmem:[%s3710_s1 + $0x220] sm:$0xff]  }
  0x57   : > { %2750 = vmatprep.subr.bf16.mxu0 %v2977_v33  ;;  %v682_v26 = vrot.slane %v680_v16, 4  ;;  %v672_v33 = vor.u32 %v671_v22, %v668_v21  ;;  %v2996_v62 = vld [vmem:[%s3710_s1 + $0x1b8] sm:$0xff]   ;;  %v3562_v13 = vld [vmem:[%s3349_s14 + $0x10] sm:$0xf]  ;;  %v2457_v16 = vld [vmem:[%s3349_s14 + $0xa4] sm:$0x1] }
  0x58   : > { %2789 = vmatpush3.bf16.msra.mxu1 %v2975_v23  ;;  %v2445_v23 = vld [vmem:[%s3349_s14 + $0xc0] sm:$0xf]  ;;  %v685_v28 = vrot.slane %v683_v17, 5  ;;  %v2458_v17 = vld [vmem:[%s3349_s14 + $0xac] sm:$0x1] }
  0x59   : > { %1793 = vmatmul.mubr.bf16.gmra.mrb[8].mxu0 %v2489_v32  ;;  %2790 = vmatprep.subr.bf16.mxu1 %v2980_v52  ;;  %v2502_v31 = vcombine.low %v2445_v23, %v2446_v24  ;;  %v576_v32 = vld [vmem:[%s3349_s14 + $0x34] sm:$0x1]  ;;  %v804_v43 = vshrl.u32 %v2445_v23, 16  ;;  %v673_v44 = vrot.slane %v672_v33, 4  ;;  %v807_v50 = vshll.u32 %v2445_v23, 16  ;;  %v2993_v52 = vld [vmem:[%s3710_s1 + $0x178] sm:$0xff]  }
  0x5a   : > { %2751 = vmatpush3.bf16.msra.mxu0 %v2979_v34  ;;  %1800 = vmatprep.mubr.bf16.mxu0 %v2985_v6  ;;  %v3513_v34 = vrot.slane %v768_v15, 4  ;;  %v675_v38 = vshll.u32 %v576_v32, 16  ;;  %v686_v39 = vor.u32 %v685_v28, %v682_v26  ;;  %v3003_v23 = vld [vmem:[%s3710_s1 + $0x210] sm:$0xff]   ;;  %v3004_v24 = vld [vmem:[%s3349_s14 + $0x60] ss:$8 sps:$4 sm:$0xff]   ;;  %v796_v28 = vor.u32 %v3521_v41, %v3515_v36 }
  0x5b   : > { %2752 = vmatprep.subr.bf16.mxu0 %v2982_v63  ;;  %1858 = vmatmul.mubr.bf16.gmra.mrb[8].mxu1 %v2497_v4  ;;  %v3547_v1 = vrot.slane %v804_v43, 4  ;;  %v731_v4 = vrot.slane %v729_v61, 5  ;;  %v2466_v26 = vld [vmem:[%s3349_s14 + $0x20] sm:$0xf]  ;;  %v2459_v41 = vld [vmem:[%s3349_s14 + $0xb4] sm:$0x1] }
  0x5c   : > { %2791 = vmatpush3.bf16.msra.mxu1 %v2981_v60  ;;  %1865 = vmatprep.mubr.bf16.mxu1 %v2502_v31  ;;  %v677_v46 = vrot.slane %v675_v38, 5  ;;  %v687_v47 = vrot.slane %v686_v39, 4  ;;  %v2456_v60 = vld [vmem:[%s3349_s14 + $0x9c] sm:$0x1]  ;;  %v3002_v39 = vld [vmem:[%s3349_s14 + $0xe8] ss:$8 sps:$4 sm:$0xff]  }
  0x5d   : > { %2792 = vmatprep.subr.bf16.mxu1 %v2984_v5  ;;  %v743_v63 = vshll.u32 %v2456_v60, 16  ;;  %v823_v5 = vrot.slane %v821_v56, 5  ;;  %v732_v8 = vsel %vm3373_vm2, %v3463_v42, %v731_v4  ;;  %v2511_v42 = vcombine.low %v3559_v12, %v3562_v13  ;;  %v2468_v4 = vld [vmem:[%s3349_s14 + $0x30] sm:$0xf] }
  0x5e   : > { %2753 = vmatpush3.bf16.msra.mxu0 %v2983_v2  ;;  %v678_v51 = vsel %vm3373_vm2, %v673_v44, %v677_v46  ;;  %v692_v54 = vsel %vm3373_vm2, %v687_v47, %v691_v48  ;;  %v809_v2 = vrot.slane %v807_v50, 5  ;;  %v903_v36 = vshll.u32 %v2466_v26, 16  ;;  %v2460_v46 = vld [vmem:[%s3349_s14 + $0xbc] sm:$0x1] }
  0x5f   : > { %2754 = vmatprep.subr.bf16.mxu0 %v2988_v19  ;;  %v2498_v57 = vcombine.low %v678_v51, %v692_v54  ;;  %v745_v6 = vrot.slane %v743_v63, 5  ;;  %v771_v19 = vshll.u32 %v2458_v17, 16  ;;  %v824_v31 = vor.u32 %v823_v5, %v820_v3  ;;  %v3006_v51 = vld [vmem:[%s3710_s1 + $0x218] sm:$0xff]  }
  0x60   : > { %2793 = vmatpush3.bf16.msra.mxu1 %v2986_v9  ;;  %v2999_v9 = vld [vmem:[%s3349_s14 + $0x50] ss:$8 sps:$4 sm:$0xff]   ;;  %v810_v30 = vor.u32 %v809_v2, %v3547_v1  ;;  %v785_v47 = vshll.u32 %v2459_v41, 16  ;;  %v905_v48 = vrot.slane %v903_v36, 5  ;;  %v799_v50 = vshll.u32 %v2460_v46, 16 }
  0x61   : > { %1801 = vmatmul.mubr.bf16.gmra.mrb[12].mxu0 %v2490_v18  ;;  %2794 = vmatprep.subr.bf16.mxu1 %v2991_v40  ;;  %v746_v11 = vsel %vm3373_vm2, %v3506_v25, %v745_v6  ;;  %v757_v18 = vshll.u32 %v2457_v16, 16  ;;  %v773_v22 = vrot.slane %v771_v19, 5  ;;  %v2465_v25 = vld [vmem:[%s3349_s14 + $0x18] sm:$0xf]  ;;  %v900_v40 = vshrl.u32 %v2466_v26, 16 }
  0x62   : > { %2755 = vmatpush3.bf16.msra.mxu0 %v2990_v20  ;;  %v2507_v15 = vcombine.low %v732_v8, %v746_v11  ;;  %v783_v20 = vrot.slane %v782_v10, 4  ;;  %v886_v35 = vshrl.u32 %v2465_v25, 16  ;;  %v889_v37 = vshll.u32 %v2465_v25, 16  ;;  %v3009_v63 = vld [vmem:[%s3349_s14 + $0x70] ss:$8 sps:$4 sm:$0xff]  }
  0x63   : > { %2756 = vmatprep.subr.bf16.mxu0 %v2993_v52  ;;  %1866 = vmatmul.mubr.bf16.gmra.mrb[12].mxu1 %v2498_v57  ;;  %v759_v21 = vrot.slane %v757_v18, 5  ;;  %v774_v33 = vsel %vm3373_vm2, %v3513_v34, %v773_v22  ;;  %v2512_v45 = vcombine.low %v2465_v25, %v2466_v26  ;;  %v787_v52 = vrot.slane %v785_v47, 5  ;;  %v3007_v3 = vld [vmem:[%s3349_s14 + $0xf8] ss:$8 sps:$4 sm:$0xff]  }
  0x64   : > { %2795 = vmatpush3.bf16.msra.mxu1 %v2992_v49  ;;  %1971 = vmatprep.mubr.bf16.mxu1 %v2999_v9  ;;  %v888_v43 = vrot.slane %v886_v35, 4  ;;  %v891_v44 = vrot.slane %v889_v37, 5  ;;  %v797_v49 = vrot.slane %v796_v28, 4  ;;  %v811_v53 = vrot.slane %v810_v30, 4  ;;  %v2461_v9 = vld [vmem:[%s3349_s14 + $0xc4] sm:$0x1] }
  0x65   : > { %2796 = vmatprep.subr.bf16.mxu1 %v2995_v58  ;;  %1906 = vmatprep.mubr.bf16.mxu0 %v2507_v15  ;;  %v760_v32 = vsel %vm3373_vm2, %v3508_v29, %v759_v21  ;;  %v902_v29 = vrot.slane %v900_v40, 4  ;;  %v825_v54 = vrot.slane %v824_v31, 4  ;;  %v858_v56 = vshrl.u32 %v3559_v12, 16  ;;  %v3014_v30 = vld [vmem:[%s3349_s14 + $0x80] ss:$8 sps:$4 sm:$0xff]  }
  0x66   : > { %2757 = vmatpush3.bf16.msra.mxu0 %v2994_v55  ;;  %v2508_v38 = vcombine.low %v760_v32, %v774_v33  ;;  %v892_v34 = vor.u32 %v891_v44, %v888_v43  ;;  %v801_v55 = vrot.slane %v799_v50, 5  ;;  %v788_v58 = vsel %vm3373_vm2, %v783_v20, %v787_v52  ;;  %v2469_v32 = vld [vmem:[%s3349_s14 + $0x38] sm:$0xf]  ;;  %v2470_v33 = vld [vmem:[%s3349_s14 + $0x40] sm:$0xf] }
  0x67   : > { %2846 = vmatprep.subr.bf16.mxu0 %v2998_v0  ;;  %v906_v57 = vor.u32 %v905_v48, %v902_v29  ;;  %v861_v60 = vshll.u32 %v3559_v12, 16  ;;  %v860_v1 = vrot.slane %v858_v56, 4  ;;  %v931_v8 = vshll.u32 %v2468_v4, 16  ;;  %v3011_v12 = vld [vmem:[%s3710_s1 + $0x228] sm:$0xff]   ;;  %v3016_v50 = vld [vmem:[%s3710_s1 + $0x238] sm:$0xff]  }
  0x68   : > { %2797 = vmatpush3.bf16.msra.mxu1 %v2996_v62  ;;  %v3599_v61 = vrot.slane %v892_v34, 4  ;;  %v802_v62 = vsel %vm3373_vm2, %v797_v49, %v801_v55  ;;  %v813_v15 = vshll.u32 %v2461_v9, 16  ;;  %v872_v19 = vshrl.u32 %v3562_v13, 16  ;;  %v3012_v37 = vld [vmem:[%s3349_s14 + $0x108] ss:$8 sps:$4 sm:$0xff]  }
  0x69   : > { %1907 = vmatmul.mubr.bf16.vlgmr.msra.gmra.mrb[16].mxu0 %v2997_v7  ;;  %v2509_v2 = vcombine.low %v788_v58, %v802_v62  ;;  %v928_v7 = vshrl.u32 %v2468_v4, 16  ;;  %v3608_v10 = vrot.slane %v906_v57, 4  ;;  %v933_v21 = vrot.slane %v931_v8, 5  ;;  %v2479_v44 = vld [vmem:[%s3349_s14 + $0xc] sm:$0x1] }
  0x6a   : > { %2847 = vmatpush3.bf16.msra.mxu0 %v2998_v0  ;;  %1914 = vmatprep.mubr.bf16.mxu0 %v2508_v38  ;;  %v2467_v0 = vld [vmem:[%s3349_s14 + $0x28] sm:$0xf]  ;;  %v815_v22 = vrot.slane %v813_v15, 5  ;;  %v874_v26 = vrot.slane %v872_v19, 4  ;;  %v3013_v38 = vld [vmem:[%s3710_s1 + $0x230] sm:$0xff]   ;;  %v945_v40 = vshll.u32 %v2469_v32, 16  ;;  %v2514_v43 = vcombine.low %v2469_v32, %v2470_v33 }
  0x6b   : > { %1972 = vmatmul.mubr.bf16.vlgmr.msra.gmra.mrb[16].mxu1 %v2511_v42  ;;  %2848 = vmatprep.subr.bf16.mxu0 %v3001_v14  ;;  %v914_v5 = vshrl.u32 %v2467_v0, 16  ;;  %v917_v6 = vshll.u32 %v2467_v0, 16  ;;  %v2513_v11 = vcombine.low %v2467_v0, %v2468_v4  ;;  %v863_v42 = vrot.slane %v861_v60, 5  ;;  %v2482_v55 = vld [vmem:[%s3349_s14 + $0x24] sm:$0x1] }
  0x6c   : > { %1979 = vmatprep.mubr.bf16.mxu1 %v3004_v24  ;;  %v930_v20 = vrot.slane %v928_v7, 4  ;;  %v816_v28 = vsel %vm3373_vm2, %v811_v53, %v815_v22  ;;  %v956_v36 = vshrl.u32 %v2470_v33, 16  ;;  %v959_v41 = vshll.u32 %v2470_v33, 16  ;;  %v2484_v60 = vld [vmem:[%s3349_s14 + $0x34] sm:$0x1]  ;;  %v3018_v33 = vld [vmem:[%s3712_s3 + $0x8] sm:$0xff]  }
  0x6d   : > { %v916_v16 = vrot.slane %v914_v5, 4  ;;  %v919_v17 = vrot.slane %v917_v6, 5  ;;  %v864_v25 = vor.u32 %v863_v42, %v860_v1  ;;  %v947_v48 = vrot.slane %v945_v40, 5  ;;  %v2486_v8 = vld [vmem:[%s3349_s14 + $0x44] sm:$0x1] }
  0x6e   : > { %2849 = vmatpush3.bf16.msra.mxu0 %v3001_v14  ;;  %v2462_v14 = vld [vmem:[%s3349_s14 + $0xcc] sm:$0x1]  ;;  %v934_v47 = vor.u32 %v933_v21, %v930_v20  ;;  %v958_v49 = vrot.slane %v956_v36, 4  ;;  %v867_v34 = vshll.u32 %v2479_v44, 16  ;;  %v961_v52 = vrot.slane %v959_v41, 5 }
  0x6f   : > { %2850 = vmatprep.subr.bf16.mxu0 %v3003_v23  ;;  %v827_v18 = vshll.u32 %v2462_v14, 16  ;;  %v920_v35 = vor.u32 %v919_v17, %v916_v16  ;;  %v865_v46 = vrot.slane %v864_v25, 4  ;;  %v909_v58 = vshll.u32 %v2482_v55, 16 }
  0x70   : > { %v869_v57 = vrot.slane %v867_v34, 5  ;;  %v935_v7 = vrot.slane %v934_v47, 4  ;;  %v962_v17 = vor.u32 %v961_v52, %v958_v49  ;;  %v965_v20 = vshll.u32 %v2486_v8, 16 }
  0x71   : > { %1915 = vmatmul.mubr.bf16.gmra.mrb[20].mxu0 %v3002_v39  ;;  %v829_v24 = vrot.slane %v827_v18, 5  ;;  %v942_v39 = vshrl.u32 %v2469_v32, 16  ;;  %v911_v5 = vrot.slane %v909_v58, 5  ;;  %v3017_v32 = vld [vmem:[%s3712_s3] sm:$0xff]  }
  0x72   : > { %2851 = vmatpush3.bf16.msra.mxu0 %v3003_v23  ;;  %1922 = vmatprep.mubr.bf16.mxu0 %v2509_v2  ;;  %v875_v23 = vshll.u32 %v3562_v13, 16  ;;  %v921_v2 = vrot.slane %v920_v35, 4  ;;  %v870_v4 = vsel %vm3373_vm2, %v865_v46, %v869_v57  ;;  %v963_v25 = vrot.slane %v962_v17, 4  ;;  %v3019_v35 = vld [vmem:[%s3712_s3 + $0x10] sm:$0xff]   ;;  %v2523_v46 = vld [vmem:[%s3711_s2] ss:$0 sm:$0xff] }
  0x73   : > { %1980 = vmatmul.mubr.bf16.gmra.mrb[20].mxu1 %v2512_v45  ;;  %2852 = vmatprep.subr.bf16.mxu0 %v3006_v51  ;;  %v830_v31 = vsel %vm3373_vm2, %v825_v54, %v829_v24  ;;  %v2480_v45 = vld [vmem:[%s3349_s14 + $0x14] sm:$0x1]  ;;  %v944_v29 = vrot.slane %v942_v39, 4  ;;  %v912_v15 = vsel %vm3373_vm2, %v3608_v10, %v911_v5  ;;  %v967_v10 = vrot.slane %v965_v20, 5  ;;  %v3024_v39 = vld [vmem:[%s3712_s3 + $0x38] sm:$0xff]  }
  0x74   : > { %1987 = vmatprep.mubr.bf16.mxu1 %v3009_v63  ;;  %v2510_v13 = vcombine.low %v816_v28, %v830_v31  ;;  %v877_v53 = vrot.slane %v875_v23, 5  ;;  %v881_v54 = vshll.u32 %v2480_v45, 16  ;;  %2870 = vmatprep.subr.bf16.mxu1 %v3017_v32 }
  0x75   : > { %v948_v62 = vor.u32 %v947_v48, %v944_v29  ;;  %2871 = vmatpush3.bf16.msra.mxu1 %v3017_v32 }
  0x76   : > { %2853 = vmatpush3.bf16.msra.mxu0 %v3006_v51  ;;  %v2481_v51 = vld [vmem:[%s3349_s14 + $0x1c] sm:$0x1]  ;;  %v878_v63 = vor.u32 %v877_v53, %v874_v26  ;;  %v883_v0 = vrot.slane %v881_v54, 5  ;;  %2872 = vmatprep.subr.bf16.mxu1 %v3018_v33 }
  0x77   : > { %2854 = vmatprep.subr.bf16.mxu0 %v3008_v59  ;;  %v895_v56 = vshll.u32 %v2481_v51, 16  ;;  %v949_v14 = vrot.slane %v948_v62, 4 }
  0x78   : > { %v879_v9 = vrot.slane %v878_v63, 4 }
  0x79   : > { %1923 = vmatmul.mubr.bf16.gmra.mrb[24].mxu0 %v3007_v3  ;;  %v897_v1 = vrot.slane %v895_v56, 5  ;;  %v2485_v3 = vld [vmem:[%s3349_s14 + $0x3c] sm:$0x1]  ;;  %2873 = vmatpush3.bf16.msra.mxu1 %v3018_v33 }
  0x7a   : > { %2855 = vmatpush3.bf16.msra.mxu0 %v3008_v59  ;;  %1930 = vmatprep.mubr.bf16.mxu0 %v2510_v13  ;;  %v2483_v59 = vld [vmem:[%s3349_s14 + $0x2c] sm:$0x1]  ;;  %v951_v16 = vshll.u32 %v2485_v3, 16  ;;  %v884_v18 = vsel %vm3373_vm2, %v879_v9, %v883_v0  ;;  %v3021_v13 = vld [vmem:[%s3712_s3 + $0x20] sm:$0xff]   ;;  %s2429_s14 = sshll.u32 %s2423_s21, 3 }
  0x7b   : > { %1988 = vmatmul.mubr.bf16.gmra.mrb[24].mxu1 %v2513_v11  ;;  %2856 = vmatprep.subr.bf16.mxu0 %v3011_v12  ;;  %v923_v6 = vshll.u32 %v2483_v59, 16  ;;  %v898_v11 = vsel %vm3373_vm2, %v3599_v61, %v897_v1  ;;  %v2519_v21 = vcombine.low %v870_v4, %v884_v18  ;;  %p547_p8 = scmp.lt.s32.totalorder %s2429_s14, 15 }
  0x7c   : > { %1995 = vmatprep.mubr.bf16.mxu1 %v3014_v30  ;;  %v2520_v22 = vcombine.low %v898_v11, %v912_v15  ;;  %v953_v23 = vrot.slane %v951_v16, 5  ;;  %v968_v30 = vsel %vm3373_vm2, %v963_v25, %v967_v10  ;;  %2874 = vmatprep.subr.bf16.mxu1 %v3019_v35 }
  0x7d   : > { %v925_v42 = vrot.slane %v923_v6, 5  ;;  %2875 = vmatpush3.bf16.msra.mxu1 %v3019_v35  ;;  %s3721_s14 = smov (!%p547_p8, %s2429_s14), 15 }
  0x7e   : > { %2857 = vmatpush3.bf16.msra.mxu0 %v3011_v12  ;;  %v937_v12 = vshll.u32 %v2484_v60, 16  ;;  %v954_v28 = vsel %vm3373_vm2, %v949_v14, %v953_v23  ;;  %2876 = vmatprep.subr.bf16.mxu1 %v3020_v27  ;;  %s2430_s20 = sshll.u32 %s3721_s14, 2 }
  0x7f   : > { %2858 = vmatprep.subr.bf16.mxu0 %v3013_v38  ;;  %v926_v61 = vsel %vm3373_vm2, %v921_v2, %v925_v42  ;;  %v2522_v31 = vcombine.low %v954_v28, %v968_v30  ;;  %s550_s28 = scalar_lea.vmem %s3714_s5, %s2430_s20 }
  0x80   : > { %v939_v19 = vrot.slane %v937_v12, 5 }
  0x81   : > { %1931 = vmatmul.mubr.bf16.gmra.mrb[28].mxu0 %v3012_v37  ;;  %2877 = vmatpush3.bf16.msra.mxu1 %v3020_v27  ;;  %v3022_v37 = vld [vmem:[%s3712_s3 + $0x28] sm:$0xff]  }
  0x82   : > { %2859 = vmatpush3.bf16.msra.mxu0 %v3013_v38  ;;  %v940_v24 = vsel %vm3373_vm2, %v935_v7, %v939_v19  ;;  %2862 = vmatprep.mubr.bf16.mxu0 %v2519_v21  ;;  %v3023_v38 = vld [vmem:[%s3712_s3 + $0x30] sm:$0xff]  }
  0x83   : > { %1996 = vmatmul.mubr.bf16.gmra.mrb[28].mxu1 %v2514_v43  ;;  %2860 = vmatprep.subr.bf16.mxu0 %v3016_v50  ;;  %v2521_v26 = vcombine.low %v926_v61, %v940_v24 }
  0x84   : > { %2878 = vmatprep.subr.bf16.mxu1 %v3021_v13 }
  0x85   : > { %2879 = vmatpush3.bf16.msra.mxu1 %v3021_v13 }
  0x86   : > { %2861 = vmatpush3.bf16.msra.mxu0 %v3016_v50  ;;  %2880 = vmatprep.subr.bf16.mxu1 %v3022_v37 }
  0x89   : > { %2863 = vmatmul.mubr.bf16.vlgmr.msra.gmra.mrb[32].mxu0 %v2520_v22  ;;  %2881 = vmatpush3.bf16.msra.mxu1 %v3022_v37 }
  0x8a   : > { %2866 = vmatprep.mubr.bf16.mxu0 %v2521_v26  ;;  %2882 = vmatprep.subr.bf16.mxu1 %v3023_v38 }
  0x8d   : > { %2883 = vmatpush3.bf16.msra.mxu1 %v3023_v38 }
  0x8e   : > { %2884 = vmatprep.subr.bf16.mxu1 %v3024_v39 }
  0x91   : > { %2867 = vmatmul.mubr.bf16.gmra.mrb[36].mxu0 %v2522_v31  ;;  %2885 = vmatpush3.bf16.msra.mxu1 %v3024_v39 }
 0x11c   : > { %v2678_v40 = vpop.f32.mrb[0].mxu0 }
 0x11d   : > { %v2679_v36 = vpop.f32.mrb[1].mxu0 }
 0x11e   : > { %v2680_v41 = vadd.f32 %v2679_v36, %v2678_v40  ;;  %v2681_v43 = vpop.f32.mrb[2].mxu0  ;;  %v2718_v29 = vpop.f32.mrb[0].mxu1 }
 0x11f   : > { %v2682_v44 = vpop.f32.mrb[3].mxu0  ;;  %v2719_v48 = vpop.f32.mrb[1].mxu1 }
 0x120   : > { %v2683_v45 = vadd.f32 %v2682_v44, %v2681_v43  ;;  %v1779_v47 = vadd.f32 %v2680_v41, %v2523_v46  ;;  %v2720_v50 = vadd.f32 %v2719_v48, %v2718_v29  ;;  %v2721_v34 = vpop.f32.mrb[2].mxu1 }
 0x121   : > { %v2722_v51 = vpop.f32.mrb[3].mxu1 }
 0x122   : > { %v1782_v49 = vadd.f32 %v2683_v45, %v2523_v46  ;;  %v1844_v52 = vadd.f32 %v2720_v50, %v1779_v47  ;;  %v2723_v53 = vadd.f32 %v2722_v51, %v2721_v34 }
 0x124   : > { %v2684_v54 = vpop.f32.mrb[4].mxu0  ;;  %v1847_v56 = vadd.f32 %v2723_v53, %v1782_v49 }
 0x125   : > { %v2685_v55 = vpop.f32.mrb[5].mxu0 }
 0x126   : > { %v2686_v57 = vadd.f32 %v2685_v55, %v2684_v54  ;;  %v2687_v58 = vpop.f32.mrb[6].mxu0  ;;  %v2724_v63 = vpop.f32.mrb[4].mxu1 }
 0x127   : > { %v2688_v59 = vpop.f32.mrb[7].mxu0  ;;  %v2725_v0 = vpop.f32.mrb[5].mxu1 }
 0x128   : > { %v2689_v60 = vadd.f32 %v2688_v59, %v2687_v58  ;;  %v1787_v62 = vadd.f32 %v2686_v57, %v2523_v46  ;;  %v2726_v2 = vadd.f32 %v2725_v0, %v2724_v63  ;;  %v2727_v3 = vpop.f32.mrb[6].mxu1 }
 0x129   : > { %v2728_v4 = vpop.f32.mrb[7].mxu1 }
 0x12a   : > { %v1790_v1 = vadd.f32 %v2689_v60, %v2523_v46  ;;  %v1852_v5 = vadd.f32 %v2726_v2, %v1787_v62  ;;  %v2729_v6 = vadd.f32 %v2728_v4, %v2727_v3 }
 0x12c   : > { %v2690_v7 = vpop.f32.mrb[8].mxu0  ;;  %v1855_v9 = vadd.f32 %v2729_v6, %v1790_v1 }
 0x12d   : > { %v2691_v8 = vpop.f32.mrb[9].mxu0 }
 0x12e   : > { %v2692_v11 = vadd.f32 %v2691_v8, %v2690_v7  ;;  %v2693_v12 = vpop.f32.mrb[10].mxu0  ;;  %v2730_v16 = vpop.f32.mrb[8].mxu1 }
 0x12f   : > { %v2694_v14 = vpop.f32.mrb[11].mxu0  ;;  %v2731_v17 = vpop.f32.mrb[9].mxu1 }
 0x130   : > { %v2695_v15 = vadd.f32 %v2694_v14, %v2693_v12  ;;  %v1795_v42 = vadd.f32 %v2692_v11, %v2523_v46  ;;  %v2732_v19 = vadd.f32 %v2731_v17, %v2730_v16  ;;  %v2733_v20 = vpop.f32.mrb[10].mxu1 }
 0x131   : > { %v2734_v21 = vpop.f32.mrb[11].mxu1 }
 0x132   : > { %v1798_v18 = vadd.f32 %v2695_v15, %v2523_v46  ;;  %v1860_v22 = vadd.f32 %v2732_v19, %v1795_v42  ;;  %v2735_v61 = vadd.f32 %v2734_v21, %v2733_v20 }
 0x134   : > { %v2696_v23 = vpop.f32.mrb[12].mxu0  ;;  %v1863_v25 = vadd.f32 %v2735_v61, %v1798_v18 }
 0x135   : > { %v2697_v24 = vpop.f32.mrb[13].mxu0 }
 0x136   : > { %v2698_v10 = vadd.f32 %v2697_v24, %v2696_v23  ;;  %v2699_v26 = vpop.f32.mrb[14].mxu0  ;;  %v2736_v32 = vpop.f32.mrb[12].mxu1 }
 0x137   : > { %v2700_v28 = vpop.f32.mrb[15].mxu0  ;;  %v2737_v33 = vpop.f32.mrb[13].mxu1 }
 0x138   : > { %v2701_v30 = vadd.f32 %v2700_v28, %v2699_v26  ;;  %v1803_v31 = vadd.f32 %v2698_v10, %v2523_v46  ;;  %v2738_v27 = vadd.f32 %v2737_v33, %v2736_v32  ;;  %v2739_v13 = vpop.f32.mrb[14].mxu1 }
 0x139   : > { %v2740_v37 = vpop.f32.mrb[15].mxu1 }
 0x13a   : > { %v1806_v35 = vadd.f32 %v2701_v30, %v2523_v46  ;;  %v1868_v38 = vadd.f32 %v2738_v27, %v1803_v31  ;;  %v2741_v39 = vadd.f32 %v2740_v37, %v2739_v13 }
 0x13c   : > { %v1871_v40 = vadd.f32 %v2741_v39, %v1806_v35  ;;  %v2758_v36 = vpop.f32.mrb[16].mxu0 }
 0x13d   : > { %v2759_v43 = vpop.f32.mrb[17].mxu0 }
 0x13e   : > { %v2798_v41 = vpop.f32.mrb[16].mxu1  ;;  %v2760_v45 = vadd.f32 %v2759_v43, %v2758_v36  ;;  %v2761_v47 = vpop.f32.mrb[18].mxu0 }
 0x13f   : > { %v2799_v44 = vpop.f32.mrb[17].mxu1  ;;  %v2762_v49 = vpop.f32.mrb[19].mxu0 }
 0x140   : > { %v2800_v29 = vadd.f32 %v2799_v44, %v2798_v41  ;;  %v2801_v48 = vpop.f32.mrb[18].mxu1  ;;  %v1909_v34 = vadd.f32 %v2760_v45, %v1844_v52  ;;  %v2763_v51 = vadd.f32 %v2762_v49, %v2761_v47 }
 0x141   : > { %v2802_v50 = vpop.f32.mrb[19].mxu1 }
 0x142   : > { %v2803_v53 = vadd.f32 %v2802_v50, %v2801_v48  ;;  %v1912_v46 = vadd.f32 %v2763_v51, %v1847_v56  ;;  %v1974_v54 = vadd.f32 %v2800_v29, %v1909_v34 }
 0x144   : > { %v2764_v55 = vpop.f32.mrb[20].mxu0  ;;  %v1977_v58 = vadd.f32 %v2803_v53, %v1912_v46 }
 0x145   : > { %v2765_v59 = vpop.f32.mrb[21].mxu0 }
 0x146   : > { %v2804_v57 = vpop.f32.mrb[20].mxu1  ;;  %v2766_v62 = vadd.f32 %v2765_v59, %v2764_v55  ;;  %v2767_v63 = vpop.f32.mrb[22].mxu0 }
 0x147   : > { %v2805_v60 = vpop.f32.mrb[21].mxu1  ;;  %v2768_v2 = vpop.f32.mrb[23].mxu0 }
 0x148   : > { %v2806_v0 = vadd.f32 %v2805_v60, %v2804_v57  ;;  %v2807_v1 = vpop.f32.mrb[22].mxu1  ;;  %v1917_v4 = vadd.f32 %v2766_v62, %v1852_v5  ;;  %v2769_v6 = vadd.f32 %v2768_v2, %v2767_v63 }
 0x149   : > { %v2808_v3 = vpop.f32.mrb[23].mxu1 }
 0x14a   : > { %v2809_v7 = vadd.f32 %v2808_v3, %v2807_v1  ;;  %v1920_v8 = vadd.f32 %v2769_v6, %v1855_v9  ;;  %v1982_v52 = vadd.f32 %v2806_v0, %v1917_v4 }
 0x14c   : > { %v2770_v11 = vpop.f32.mrb[24].mxu0  ;;  %v1985_v56 = vadd.f32 %v2809_v7, %v1920_v8 }
 0x14d   : > { %v2771_v14 = vpop.f32.mrb[25].mxu0 }
 0x14e   : > { %v2810_v12 = vpop.f32.mrb[24].mxu1  ;;  %v2772_v42 = vadd.f32 %v2771_v14, %v2770_v11  ;;  %v2773_v16 = vpop.f32.mrb[26].mxu0 }
 0x14f   : > { %v2811_v15 = vpop.f32.mrb[25].mxu1  ;;  %v2774_v19 = vpop.f32.mrb[27].mxu0 }
 0x150   : > { %v2812_v17 = vadd.f32 %v2811_v15, %v2810_v12  ;;  %v2813_v18 = vpop.f32.mrb[26].mxu1  ;;  %v1925_v21 = vadd.f32 %v2772_v42, %v1860_v22  ;;  %v2775_v61 = vadd.f32 %v2774_v19, %v2773_v16 }
 0x151   : > { %v2814_v20 = vpop.f32.mrb[27].mxu1 }
 0x152   : > { %v2815_v23 = vadd.f32 %v2814_v20, %v2813_v18  ;;  %v1928_v24 = vadd.f32 %v2775_v61, %v1863_v25  ;;  %v1990_v5 = vadd.f32 %v2812_v17, %v1925_v21 }
 0x154   : > { %v2776_v10 = vpop.f32.mrb[28].mxu0  ;;  %v1993_v9 = vadd.f32 %v2815_v23, %v1928_v24 }
 0x155   : > { %v2777_v28 = vpop.f32.mrb[29].mxu0 }
 0x156   : > { %v2816_v26 = vpop.f32.mrb[28].mxu1  ;;  %v2778_v31 = vadd.f32 %v2777_v28, %v2776_v10  ;;  %v2779_v32 = vpop.f32.mrb[30].mxu0 }
 0x157   : > { %v2817_v30 = vpop.f32.mrb[29].mxu1  ;;  %v2780_v27 = vpop.f32.mrb[31].mxu0 }
 0x158   : > { %v2818_v33 = vadd.f32 %v2817_v30, %v2816_v26  ;;  %v2819_v35 = vpop.f32.mrb[30].mxu1  ;;  %v1933_v37 = vadd.f32 %v2778_v31, %v1868_v38  ;;  %v2781_v39 = vadd.f32 %v2780_v27, %v2779_v32 }
 0x159   : > { %v2820_v13 = vpop.f32.mrb[31].mxu1 }
 0x15a   : > { %v2821_v36 = vadd.f32 %v2820_v13, %v2819_v35  ;;  %v1936_v41 = vadd.f32 %v2781_v39, %v1871_v40  ;;  %v1998_v22 = vadd.f32 %v2818_v33, %v1933_v37 }
 0x15c   : > { %v2864_v43 = vpop.f32.mrb[32].mxu0  ;;  %v2001_v44 = vadd.f32 %v2821_v36, %v1936_v41  ;;  %v2604_v36 = vld [vmem:[%s3713_s4] ss:$0 sm:$0xff] }
 0x15d   : > { %v2047_v25 = vadd.f32 %v2864_v43, %v1982_v52  ;;  %v2038_v45 = vpop.f32.mrb[33].mxu0 }
 0x15e   : > { %v2039_v47 = vadd.f32 %v2038_v45, %v1974_v54  ;;  %v2865_v29 = vpop.f32.mrb[34].mxu0 }
 0x15f   : > { %v2598_v48 = vmul.f32 -1.442695, %v2047_v25  ;;  %v2050_v49 = vadd.f32 %v2865_v29, %v1985_v56  ;;  %v2041_v50 = vpop.f32.mrb[35].mxu0 }
 0x160   : > { %v2596_v34 = vmul.f32 -1.442695, %v2039_v47  ;;  %v2042_v51 = vadd.f32 %v2041_v50, %v1977_v58 }
 0x161   : > { %3025 = vpow2.f32 %v2598_v48  ;;  %v2599_v53 = vmul.f32 -1.442695, %v2050_v49 }
 0x162   : > { %3027 = vpow2.f32 %v2596_v34  ;;  %v2597_v46 = vmul.f32 -1.442695, %v2042_v51 }
 0x163   : > { %3029 = vpow2.f32 %v2599_v53 }
 0x164   : > { %3031 = vpow2.f32 %v2597_v46  ;;  %v2868_v38 = vpop.f32.mrb[36].mxu0 }
 0x165   : > { %v2063_v40 = vadd.f32 %v2868_v38, %v1998_v22  ;;  %v2054_v55 = vpop.f32.mrb[37].mxu0 }
 0x166   : > { %v2055_v57 = vadd.f32 %v2054_v55, %v1990_v5  ;;  %v2869_v59 = vpop.f32.mrb[38].mxu0 }
 0x167   : > { %v2602_v60 = vmul.f32 -1.442695, %v2063_v40  ;;  %v2066_v62 = vadd.f32 %v2869_v59, %v2001_v44  ;;  %v2057_v54 = vpop.f32.mrb[39].mxu0 }
 0x168   : > { %v2600_v63 = vmul.f32 -1.442695, %v2055_v57  ;;  %v2058_v0 = vadd.f32 %v2057_v54, %v1993_v9 }
 0x169   : > { %3033 = vpow2.f32 %v2602_v60  ;;  %v2603_v1 = vmul.f32 -1.442695, %v2066_v62 }
 0x16a   : > { %3035 = vpow2.f32 %v2600_v63  ;;  %v2601_v58 = vmul.f32 -1.442695, %v2058_v0 }
 0x16b   : > { %v3026_v2 = vpop.eup %3025  ;;  %3037 = vpow2.f32 %v2603_v1 }
 0x16c   : > { %v3028_v3 = vpop.eup %3027  ;;  %v2095_v4 = vadd.f32 1.0, %v3026_v2  ;;  %3039 = vpow2.f32 %v2601_v58 }
 0x16d   : > { %v3030_v6 = vpop.eup %3029  ;;  %v2093_v7 = vadd.f32 1.0, %v3028_v3 }
 0x16e   : > { %v3032_v8 = vpop.eup %3031  ;;  %3041 = vrcp.f32 %v2095_v4  ;;  %v2096_v52 = vadd.f32 1.0, %v3030_v6 }
 0x16f   : > { %3043 = vrcp.f32 %v2093_v7  ;;  %v2094_v11 = vadd.f32 1.0, %v3032_v8 }
 0x170   : > { %3045 = vrcp.f32 %v2096_v52 }
 0x171   : > { %3047 = vrcp.f32 %v2094_v11 }
 0x173   : > { %v3034_v12 = vpop.eup %3033 }
 0x174   : > { %v3036_v56 = vpop.eup %3035  ;;  %v2099_v14 = vadd.f32 1.0, %v3034_v12 }
 0x175   : > { %v3038_v15 = vpop.eup %3037  ;;  %v2097_v42 = vadd.f32 1.0, %v3036_v56 }
 0x176   : > { %v3040_v16 = vpop.eup %3039  ;;  %3049 = vrcp.f32 %v2099_v14  ;;  %v2100_v17 = vadd.f32 1.0, %v3038_v15 }
 0x177   : > { %3051 = vrcp.f32 %v2097_v42  ;;  %v2098_v18 = vadd.f32 1.0, %v3040_v16 }
 0x178   : > { %v3042_v19 = vpop.eup %3041  ;;  %3053 = vrcp.f32 %v2100_v17 }
 0x179   : > { %v3044_v20 = vpop.eup %3043  ;;  %3055 = vrcp.f32 %v2098_v18  ;;  %v2119_v23 = vmul.f32 %v3042_v19, %v2047_v25 }
 0x17a   : > { %v3046_v21 = vpop.eup %3045  ;;  %v2117_v5 = vmul.f32 %v3044_v20, %v2039_v47 }
 0x17b   : > { %v3048_v61 = vpop.eup %3047  ;;  %v2120_v24 = vmul.f32 %v3046_v21, %v2050_v49 }
 0x17c   : > { %v2118_v10 = vmul.f32 %v3048_v61, %v2042_v51 }
 0x17d   : > { %v2126_v26 = vpack.c.bf16 %v2120_v24, %v2119_v23 }
 0x17e   : > { %v2125_v9 = vpack.c.bf16 %v2118_v10, %v2117_v5 }
 0x180   : > { %v3050_v28 = vpop.eup %3049  ;;  %2886 = vmatprep.mubr.bf16.mxu1 %v2125_v9 }
 0x181   : > { %v3052_v30 = vpop.eup %3051  ;;  %2887 = vmatmul.mubr.bf16.vlgmr.msra.gmra.mrb[32].mxu1 %v2126_v26  ;;  %v2123_v33 = vmul.f32 %v3050_v28, %v2063_v40 }
 0x182   : > { %v3054_v31 = vpop.eup %3053  ;;  %v2121_v27 = vmul.f32 %v3052_v30, %v2055_v57 }
 0x183   : > { %v3056_v32 = vpop.eup %3055  ;;  %v2124_v35 = vmul.f32 %v3054_v31, %v2066_v62 }
 0x184   : > { %v2122_v13 = vmul.f32 %v3056_v32, %v2058_v0 }
 0x185   : > { %v2128_v37 = vpack.c.bf16 %v2124_v35, %v2123_v33 }
 0x186   : > { %v2127_v39 = vpack.c.bf16 %v2122_v13, %v2121_v27 }
 0x188   : > { %2890 = vmatprep.mubr.bf16.mxu1 %v2127_v39 }
 0x189   : > { %2891 = vmatmul.mubr.bf16.gmra.mrb[36].mxu1 %v2128_v37 }
 0x254   : > { %v2888_v41 = vpop.f32.mrb[32].mxu1 }
 0x255   : > { %v3686_v22 = vadd.f32 %v2888_v41, %v2604_v36  ;;  %v2234_v43 = vpop.f32.mrb[33].mxu1 }
 0x256   : > { %v3688_v44 = vadd.f32 %v2604_v36, %v2234_v43  ;;  %v2889_v25 = vpop.f32.mrb[34].mxu1 }
 0x257   : > { %v2615_v45 = vmul.f32 -1.442695, %v3686_v22  ;;  %v2246_v47 = vadd.f32 %v2889_v25, %v2604_v36  ;;  %v2237_v29 = vpop.f32.mrb[35].mxu1 }
 0x258   : > { %v2613_v48 = vmul.f32 -1.442695, %v3688_v44  ;;  %v2238_v49 = vadd.f32 %v2604_v36, %v2237_v29 }
 0x259   : > { %3057 = vpow2.f32 %v2615_v45  ;;  %v2616_v50 = vmul.f32 -1.442695, %v2246_v47 }
 0x25a   : > { %3059 = vpow2.f32 %v2613_v48  ;;  %v2614_v34 = vmul.f32 -1.442695, %v2238_v49 }
 0x25b   : > { %3061 = vpow2.f32 %v2616_v50 }
 0x25c   : > { %3063 = vpow2.f32 %v2614_v34  ;;  %v2892_v51 = vpop.f32.mrb[36].mxu1 }
 0x25d   : > { %v2259_v53 = vadd.f32 %v2892_v51, %v2604_v36  ;;  %v2250_v46 = vpop.f32.mrb[37].mxu1 }
 0x25e   : > { %v2251_v38 = vadd.f32 %v2604_v36, %v2250_v46  ;;  %v2893_v40 = vpop.f32.mrb[38].mxu1 }
 0x25f   : > { %v2619_v55 = vmul.f32 -1.442695, %v2259_v53  ;;  %v2262_v57 = vadd.f32 %v2893_v40, %v2604_v36  ;;  %v2253_v59 = vpop.f32.mrb[39].mxu1 }
 0x260   : > { %v2617_v60 = vmul.f32 -1.442695, %v2251_v38  ;;  %v2254_v62 = vadd.f32 %v2604_v36, %v2253_v59 }
 0x261   : > { %3065 = vpow2.f32 %v2619_v55  ;;  %v2620_v54 = vmul.f32 -1.442695, %v2262_v57 }
 0x262   : > { %3067 = vpow2.f32 %v2617_v60  ;;  %v2618_v63 = vmul.f32 -1.442695, %v2254_v62 }
 0x263   : > { %v3058_v0 = vpop.eup %3057  ;;  %3069 = vpow2.f32 %v2620_v54 }
 0x264   : > { %v3060_v1 = vpop.eup %3059  ;;  %v2291_v58 = vadd.f32 1.0, %v3058_v0  ;;  %3071 = vpow2.f32 %v2618_v63 }
 0x265   : > { %v3062_v2 = vpop.eup %3061  ;;  %v2289_v3 = vadd.f32 1.0, %v3060_v1 }
 0x266   : > { %v3064_v4 = vpop.eup %3063  ;;  %3073 = vrcp.f32 %v2291_v58  ;;  %v2292_v6 = vadd.f32 1.0, %v3062_v2 }
 0x267   : > { %3075 = vrcp.f32 %v2289_v3  ;;  %v2290_v7 = vadd.f32 1.0, %v3064_v4 }
 0x268   : > { %3077 = vrcp.f32 %v2292_v6 }
 0x269   : > { %3079 = vrcp.f32 %v2290_v7 }
 0x26b   : > { %v3066_v8 = vpop.eup %3065 }
 0x26c   : > { %v3068_v52 = vpop.eup %3067  ;;  %v2295_v11 = vadd.f32 1.0, %v3066_v8 }
 0x26d   : > { %v3070_v12 = vpop.eup %3069  ;;  %v2293_v56 = vadd.f32 1.0, %v3068_v52 }
 0x26e   : > { %v3072_v14 = vpop.eup %3071  ;;  %3081 = vrcp.f32 %v2295_v11  ;;  %v2296_v15 = vadd.f32 1.0, %v3070_v12 }
 0x26f   : > { %3083 = vrcp.f32 %v2293_v56  ;;  %v2294_v42 = vadd.f32 1.0, %v3072_v14 }
 0x270   : > { %v3074_v16 = vpop.eup %3073  ;;  %3085 = vrcp.f32 %v2296_v15 }
 0x271   : > { %v3076_v17 = vpop.eup %3075  ;;  %3087 = vrcp.f32 %v2294_v42  ;;  %v2315_v20 = vmul.f32 %v3074_v16, %v3686_v22 }
 0x272   : > { %v3078_v18 = vpop.eup %3077  ;;  %v2313_v61 = vmul.f32 %v3076_v17, %v3688_v44 }
 0x273   : > { %v3080_v19 = vpop.eup %3079  ;;  %v2316_v21 = vmul.f32 %v3078_v18, %v2246_v47 }
 0x274   : > { %v2314_v23 = vmul.f32 %v3080_v19, %v2238_v49 }
 0x275   : > { %v2647_v24 = vpack.c.bf16 %v2316_v21, %v2315_v20 }
 0x276   : > { %v2642_v5 = vpack.c.bf16 %v2314_v23, %v2313_v61 }
 0x277   : > { %2659 = vst [vmem:[%s550_s28 + $0x8] sm:$0xff] %v2647_v24  }
 0x278   : > { %v3082_v10 = vpop.eup %3081  ;;  %2643 = vst [vmem:[%s550_s28] sm:$0xff] %v2642_v5  }
 0x279   : > { %v3084_v26 = vpop.eup %3083  ;;  %v2319_v30 = vmul.f32 %v3082_v10, %v2259_v53 }
 0x27a   : > { %v3086_v9 = vpop.eup %3085  ;;  %v2317_v32 = vmul.f32 %v3084_v26, %v2251_v38 }
 0x27b   : > { %v3088_v28 = vpop.eup %3087  ;;  %v2320_v31 = vmul.f32 %v3086_v9, %v2262_v57 }
 0x27c   : > { %v2318_v33 = vmul.f32 %v3088_v28, %v2254_v62 }
 0x27d   : > { %v2657_v35 = vpack.c.bf16 %v2320_v31, %v2319_v30 }
 0x27e   : > { %v2652_v27 = vpack.c.bf16 %v2318_v33, %v2317_v32 }
 0x27f   : > { %2661 = vst [vmem:[%s550_s28 + $0x18] sm:$0xff] %v2657_v35  }
 0x280   : > { %2660 = vst [vmem:[%s550_s28 + $0x10] sm:$0xff] %v2652_v27  }
 0x281 PF: > { %p12_p9 = scmp.ge.s32.totalorder %s3160_s22, 4   ;;  %s3717_s18 = smov %s3107_s19 }
 0x282   : > { %s3718_s19 = smov %s3169_s25  ;;  %s3719_s20 = smov %s3160_s22 }
 0x283   :  { %14 = sbr.rel (!%p12_p9) target bundleno = 2 (0x2), region = 121 }

// kernel: _lambda_.7
= control target key start
LH: loop header
LB: loop body
LE: loop exit
PB: predicated region body
PF: predicated region fallthrough
CT: control target
= control target key end

     0   :  { %s1706_s17 = smov 0   ;;  %s1708_s18 = smov 0   ;;  %s2002_s0 = inlined_call_operand.vmem [shape: bf16[4,2,5,5,128], index: 0, kind: input, shape index: {}]   ;;  %s2003_s1 = inlined_call_operand.vmem [shape: f32[9,128], index: 1, kind: input, shape index: {}]   ;;  %s2004_s2 = inlined_call_operand.vmem [shape: f32[1,128], index: 2, kind: input, shape index: {}]   ;;  %s2005_s3 = inlined_call_operand.vmem [shape: bf16[128,128], index: 3, kind: input, shape index: {}]   ;;  %s2006_s4 = inlined_call_operand.vmem [shape: f32[1,128], index: 4, kind: input, shape index: {}]   ;;  %s2007_s5 = inlined_call_operand.vmem [shape: bf16[128,128], index: 5, kind: input, shape index: {}]   ;;  %s2008_s6 = inlined_call_operand.vmem [shape: f32[1,128], index: 6, kind: input, shape index: {}]   ;;  %s2009_s7 = inlined_call_operand.vmem [shape: bf16[128,128], index: 7, kind: input, shape index: {}]   ;;  %s2010_s8 = inlined_call_operand.vmem [shape: f32[1,128], index: 8, kind: input, shape index: {}]   ;;  %s2011_s9 = inlined_call_operand.vmem [shape: bf16[128,128], index: 9, kind: input, shape index: {}]   ;;  %s2012_s10 = inlined_call_operand.vmem [shape: f32[1,128], index: 10, kind: input, shape index: {}]   ;;  %s2013_s11 = inlined_call_operand.vmem [shape: f32[16,128], index: 11, kind: output, shape index: {}]  }
   0x1   :  { %s1710_s19 = smov 0  }
   0x2 LB: > { %s1331_s20 = sadd.s32 4294967295, %s1642_s19   ;;  %s1723_s21 = sadd.s32 1, %s1642_s19   ;;  %s1642_s19 = sphi %s1710_s19, %s2016_s19   ;;  %s1638_s18 = sphi %s1708_s18, %s2015_s18   ;;  %s1634_s17 = sphi %s1706_s17, %s2014_s17  }
   0x3   : > { %s25_s22 = ssub.s32 %s1642_s19, %s1723_s21  ;;  %s28_s23 = sadd.s32 1, %s1638_s18 }
   0x4   : > { %p26_p0 = scmp.eq.s32.totalorder %s25_s22, 0  ;;  %p35_p1 = scmp.ne.s32.totalorder %s1638_s18, %s1634_s17 }
   0x5   : > { %p36_p2 = scmp.eq.s32.totalorder %s1642_s19, 0  ;;  %p1334_p4 = scmp.ge.s32.totalorder %s1642_s19, 2 }
   0x6   : > { %s1732_s24 = scalar_select %p26_p0, %s1638_s18, %s28_s23  }
   0x7   : > { %p37_p3 = por %p36_p2, %p35_p1  ;;  %327 = sbr.rel (%p1334_p4) target bundleno = 25 (0x19), region = 56 }
   0xe   : > { %330 = sbr.rel (!%p37_p3) target bundleno = 25 (0x19), region = 60  ;;  %s332_s25 = sand.u32 (%p37_p3), 1, %s1638_s18  }
   0xf   : > { %s1528_s26 = smul.u32 (%p37_p3), 20, %s1642_s19 }
  0x10   : > { %s1527_s27 = smul.u32 (%p37_p3), 80, %s332_s25 }
  0x11   : > { %s337_s30 = scalar_lea.vmem (%p37_p3), %s2002_s0, %s1528_s26 }
  0x12   : > { %v353_v0 = vld [vmem:[%s337_s30] sm:$0xff] (%p37_p3)   ;;  %v357_v1 = vld [vmem:[%s337_s30 + $0x8] sm:$0xff] (%p37_p3)   ;;  %v361_v2 = vld [vmem:[%s337_s30 + $0x10] sm:$0xf] (%p37_p3)  ;;  %s334_s12 = scalar_lea.vmem (%p37_p3), [#allocation2], %s1527_s27 }
  0x13   : > { %354 = vst [vmem:[%s334_s12] sm:$0xff] (%p37_p3), %v353_v0   ;;  %358 = vst [vmem:[%s334_s12 + $0x8] sm:$0xff] (%p37_p3), %v357_v1   ;;  %v363_v3 = vld [vmem:[%s337_s30 + $0x28] sm:$0xff] (%p37_p3)   ;;  %v367_v4 = vld [vmem:[%s337_s30 + $0x30] sm:$0xff] (%p37_p3)  }
  0x14   : > { %362 = vst [vmem:[%s334_s12 + $0x10] sm:$0xf] (%p37_p3), %v361_v2  ;;  %v371_v5 = vld [vmem:[%s337_s30 + $0x38] sm:$0xf] (%p37_p3)  ;;  %364 = vst [vmem:[%s334_s12 + $0x14] sm:$0xff] (%p37_p3), %v363_v3   ;;  %v373_v6 = vld [vmem:[%s337_s30 + $0x50] sm:$0xff] (%p37_p3)  }
  0x15   : > { %368 = vst [vmem:[%s334_s12 + $0x1c] sm:$0xff] %v367_v4   ;;  %372 = vst [vmem:[%s334_s12 + $0x24] sm:$0xf] %v371_v5  ;;  %v377_v7 = vld [vmem:[%s337_s30 + $0x58] sm:$0xff]   ;;  %v381_v8 = vld [vmem:[%s337_s30 + $0x60] sm:$0xf] }
  0x16   : > { %374 = vst [vmem:[%s334_s12 + $0x28] sm:$0xff] %v373_v6   ;;  %378 = vst [vmem:[%s334_s12 + $0x30] sm:$0xff] %v377_v7   ;;  %v383_v9 = vld [vmem:[%s337_s30 + $0x78] sm:$0xff]   ;;  %v387_v10 = vld [vmem:[%s337_s30 + $0x80] sm:$0xff]  }
  0x17   : > { %382 = vst [vmem:[%s334_s12 + $0x38] sm:$0xf] %v381_v8  ;;  %v391_v11 = vld [vmem:[%s337_s30 + $0x88] sm:$0xf]  ;;  %384 = vst [vmem:[%s334_s12 + $0x3c] sm:$0xff] %v383_v9  }
  0x18   : > { %388 = vst [vmem:[%s334_s12 + $0x44] sm:$0xff] %v387_v10   ;;  %392 = vst [vmem:[%s334_s12 + $0x4c] sm:$0xf] %v391_v11 }
  0x19 PF: > { %p1336_p5 = scmp.ge.s32.totalorder %s1642_s19, 1  ;;  %p454_p6 = scmp.lt.s32.totalorder %s1642_s19, 3 }
  0x1b   : > { %p455_p7 = pnand %p1336_p5, %p454_p6 }
  0x1c   : > { %v1556_v12 = vld [vmem:[%s2005_s3] sm:$0xff] (!%p455_p7)   ;;  %v514_v13 = vlaneseq (!%p455_p7)  ;;  %v1644_v14 = vmov (!%p455_p7), 0.0   ;;  %v1557_v15 = vld [vmem:[%s2005_s3 + $0x8] sm:$0xff] (!%p455_p7)   ;;  %vm1645_vm0 = vmmov (!%p455_p7), 0   ;;  %s461_s22 = sand.u32 (!%p455_p7), 1, %s1634_s17   ;;  %v1558_v17 = vld [vmem:[%s2005_s3 + $0x10] sm:$0xff] (!%p455_p7)  }
  0x1d   : > { %458 = sbr.rel (%p455_p7) target bundleno = 1094 (0x446), region = 101  ;;  %1447 = vmatprep.subr.bf16.mxu0 (!%p455_p7), %v1644_v14  ;;  %1467 = vmatprep.subr.bf16.mxu1 (!%p455_p7), %v1644_v14  ;;  %v1559_v20 = vld [vmem:[%s2005_s3 + $0x18] sm:$0xff] (!%p455_p7)   ;;  %v1772_v21 = vld [vmem:[%s2003_s1] sm:$0xff] (!%p455_p7)  ;;  %p499_p8 = scmp.lt.s32.totalorder (!%p455_p7), %s1331_s20, 1 }
  0x1e   : > { %1448 = vmatpush3.bf16.msra.mxu0 (!%p455_p7), %v1556_v12  ;;  %1463 = vmatprep.mubr.msk.bf16.mxu0 (!%p455_p7), %vm1645_vm0, %v1644_v14  ;;  %s1529_s23 = smul.u32 (!%p455_p7), 80, %s461_s22  ;;  %v1756_v16 = vshrl.u32 (!%p455_p7), %v514_v13, 7  ;;  %v1560_v50 = vld [vmem:[%s2005_s3 + $0x20] sm:$0xff] (!%p455_p7)  }
  0x1f   : > { %1449 = vmatprep.subr.bf16.mxu0 (!%p455_p7), %v1644_v14  ;;  %1483 = vmatprep.mubr.msk.bf16.mxu1 (!%p455_p7), %vm1645_vm0, %v1644_v14 }
  0x20   : > { %v1762_v18 = vsub.s32 (!%p455_p7), 0, %v1756_v16  ;;  %v537_v19 = vsub.s32 (!%p455_p7), 1, %v1756_v16  ;;  %s1774_s30 = scalar_lea.vmem (!%p455_p7), [#allocation2], %s1529_s23  ;;  %v557_v23 = vsub.s32 (!%p455_p7), 2, %v1756_v16 }
  0x21   : > { %v506_v22 = vld [vmem:[%s1774_s30] sm:$0x3] (!%p455_p7)  ;;  %v507_v24 = vld [vmem:[%s1774_s30 + $0x4] sm:$0x3] (!%p455_p7)  ;;  %v508_v25 = vld [vmem:[%s1774_s30 + $0x8] sm:$0x3] (!%p455_p7) }
  0x22   : > { %1450 = vmatpush3.bf16.msra.mxu0 (!%p455_p7), %v1557_v15  ;;  %v509_v26 = vld [vmem:[%s1774_s30 + $0xc] sm:$0x3] (!%p455_p7)  ;;  %v510_v27 = vunpack.c.l.bf16 (!%p455_p7), %v506_v22  ;;  %v517_v28 = vrot.slane (!%p455_p7), %v1772_v21, %v1762_v18  ;;  %v538_v29 = vrot.slane (!%p455_p7), %v1772_v21, %v537_v19  ;;  %v511_v30 = vunpack.c.l.bf16 (!%p455_p7), %v507_v24  ;;  %v1338_v33 = vld [vmem:[%s1774_s30 + $0x14] sm:$0x3] (!%p455_p7)  ;;  %v1339_v34 = vld [vmem:[%s1774_s30 + $0x18] sm:$0x3] (!%p455_p7) }
  0x23   : > { %1451 = vmatprep.subr.bf16.mxu0 (!%p455_p7), %v1644_v14  ;;  %v512_v31 = vunpack.c.l.bf16 (!%p455_p7), %v508_v25  ;;  %v513_v32 = vunpack.c.l.bf16 (!%p455_p7), %v509_v26  ;;  %v1340_v35 = vld [vmem:[%s1774_s30 + $0x1c] sm:$0x3] (!%p455_p7)  ;;  %v558_v36 = vrot.slane (!%p455_p7), %v1772_v21, %v557_v23  ;;  %v1341_v38 = vld [vmem:[%s1774_s30 + $0x20] sm:$0x3] (!%p455_p7)  ;;  %v531_v39 = vunpack.c.l.bf16 (!%p455_p7), %v1338_v33  ;;  %v548_v43 = vld [vmem:[%s1774_s30 + $0x4] sm:$0x7] (!%p455_p7) }
  0x24   : > { %v518_v37 = vmul.f32 %v517_v28, %v510_v27  ;;  %v532_v40 = vunpack.c.l.bf16 %v1339_v34  ;;  %v533_v41 = vunpack.c.l.bf16 %v1340_v35  ;;  %v547_v42 = vld [vmem:[%s1774_s30] sm:$0x7]  ;;  %v519_v44 = vmul.f32 %v517_v28, %v511_v30  ;;  %v549_v48 = vld [vmem:[%s1774_s30 + $0x8] sm:$0x7]  ;;  %v550_v49 = vld [vmem:[%s1774_s30 + $0xc] sm:$0x7] }
  0x25   : > { %v520_v45 = vmul.f32 %v517_v28, %v512_v31  ;;  %v521_v46 = vmul.f32 %v517_v28, %v513_v32  ;;  %v534_v47 = vunpack.c.l.bf16 %v1341_v38  ;;  %v539_v51 = vmul.f32 %v538_v29, %v531_v39  ;;  %v1342_v59 = vld [vmem:[%s1774_s30 + $0x28] sm:$0x3]  ;;  %v1343_v60 = vld [vmem:[%s1774_s30 + $0x2c] sm:$0x3]  ;;  %v1344_v61 = vld [vmem:[%s1774_s30 + $0x30] sm:$0x3] }
  0x26   : > { %1452 = vmatpush3.bf16.msra.mxu0 %v1558_v17  ;;  %v540_v52 = vmul.f32 %v538_v29, %v532_v40  ;;  %v541_v53 = vmul.f32 %v538_v29, %v533_v41  ;;  %v551_v54 = vunpack.c.l.bf16 %v547_v42  ;;  %v552_v56 = vunpack.c.l.bf16 %v548_v43  ;;  %v1345_v2 = vld [vmem:[%s1774_s30 + $0x34] sm:$0x3]  ;;  %v1346_v7 = vld [vmem:[%s1774_s30 + $0x3c] sm:$0x3]  ;;  %v1347_v8 = vld [vmem:[%s1774_s30 + $0x40] sm:$0x3] }
  0x27   : > { %1453 = vmatprep.subr.bf16.mxu0 %v1644_v14  ;;  %v542_v55 = vmul.f32 %v538_v29, %v534_v47  ;;  %v553_v57 = vunpack.c.l.bf16 %v549_v48  ;;  %v554_v58 = vunpack.c.l.bf16 %v550_v49  ;;  %v543_v62 = vadd.f32 %v539_v51, %v518_v37  ;;  %v1348_v9 = vld [vmem:[%s1774_s30 + $0x44] sm:$0x3]  ;;  %v1349_v15 = vld [vmem:[%s1774_s30 + $0x48] sm:$0x3]  ;;  %v1351_v25 = vld [vmem:[%s1774_s30 + $0x2c] sm:$0x7] }
  0x28   : > { %v544_v63 = vadd.f32 %v540_v52, %v519_v44  ;;  %v545_v0 = vadd.f32 %v541_v53, %v520_v45  ;;  %v559_v1 = vmul.f32 %v558_v36, %v551_v54  ;;  %v560_v4 = vmul.f32 %v558_v36, %v552_v56  ;;  %v1350_v17 = vld [vmem:[%s1774_s30 + $0x28] sm:$0x7]  ;;  %v1352_v30 = vld [vmem:[%s1774_s30 + $0x30] sm:$0x7]  ;;  %v1353_v31 = vld [vmem:[%s1774_s30 + $0x34] sm:$0x7] }
  0x29   : > { %v546_v3 = vadd.f32 %v542_v55, %v521_v46  ;;  %v561_v5 = vmul.f32 %v558_v36, %v553_v57  ;;  %v562_v6 = vmul.f32 %v558_v36, %v554_v58  ;;  %v584_v11 = vunpack.c.l.bf16 %v1342_v59  ;;  %v1561_v19 = vld [vmem:[%s2005_s3 + $0x28] sm:$0xff]   ;;  %v1818_v40 = vld [vmem:[%s1774_s30 + $0x4] sm:$0x3]  ;;  %v1563_v51 = vld [vmem:[%s2005_s3 + $0x38] sm:$0xff]   ;;  %s2018_s20 = smov (!%p499_p8, %s1331_s20), 1 }
  0x2a   : > { %1454 = vmatpush3.bf16.msra.mxu0 %v1559_v20  ;;  %v567_v10 = vrot.slane %v559_v1, 1  ;;  %v585_v12 = vunpack.c.l.bf16 %v1343_v60  ;;  %v586_v13 = vunpack.c.l.bf16 %v1344_v61  ;;  %v568_v20 = vrot.slane %v560_v4, 1  ;;  %v1821_v41 = vld [vmem:[%s1774_s30 + $0x8] sm:$0x3]  ;;  %v1562_v42 = vld [vmem:[%s2005_s3 + $0x30] sm:$0xff]   ;;  %s1337_s29 = sshll.u32 %s2018_s20, 3 }
  0x2b   : > { %1455 = vmatprep.subr.bf16.mxu0 %v1644_v14  ;;  %v569_v22 = vrot.slane %v561_v5, 1  ;;  %v570_v23 = vrot.slane %v562_v6, 1  ;;  %v587_v24 = vunpack.c.l.bf16 %v1345_v2  ;;  %v590_v27 = vsub.s32 3, %v1756_v16  ;;  %v1356_v60 = vld [vmem:[%s1774_s30 + $0xc] sm:$0x3]  ;;  %s502_s13 = scalar_lea.vmem %s2013_s11, %s1337_s29 }
  0x2c   : > { %v575_v26 = vadd.f32 %v567_v10, %v543_v62  ;;  %v605_v28 = vunpack.c.l.bf16 %v1346_v7  ;;  %v606_v29 = vunpack.c.l.bf16 %v1347_v8  ;;  %v576_v32 = vadd.f32 %v568_v20, %v544_v63  ;;  %v1357_v61 = vld [vmem:[%s1774_s30 + $0x10] sm:$0x3]  ;;  %v1358_v62 = vld [vmem:[%s1774_s30 + $0x18] sm:$0x3]  ;;  %v1359_v7 = vld [vmem:[%s1774_s30 + $0x1c] sm:$0x3] }
  0x2d   : > { %v577_v33 = vadd.f32 %v569_v22, %v545_v0  ;;  %v578_v34 = vadd.f32 %v570_v23, %v546_v3  ;;  %v607_v35 = vunpack.c.l.bf16 %v1348_v9  ;;  %v591_v36 = vrot.slane %v1772_v21, %v590_v27  ;;  %v1360_v8 = vld [vmem:[%s1774_s30 + $0x20] sm:$0x3]  ;;  %v1361_v9 = vld [vmem:[%s1774_s30 + $0x24] sm:$0x3] }
  0x2e   : > { %1456 = vmatpush3.bf16.msra.mxu0 %v1560_v50  ;;  %v608_v37 = vunpack.c.l.bf16 %v1349_v15  ;;  %v611_v38 = vsub.s32 4, %v1756_v16  ;;  %v625_v39 = vunpack.c.l.bf16 %v1350_v17  ;;  %v626_v43 = vunpack.c.l.bf16 %v1351_v25  ;;  %v1362_v15 = vld [vmem:[%s1774_s30 + $0x4] sm:$0x7]  ;;  %v1363_v17 = vld [vmem:[%s1774_s30 + $0x8] sm:$0x7] }
  0x2f   : > { %1457 = vmatprep.subr.bf16.mxu0 %v1644_v14  ;;  %v627_v44 = vunpack.c.l.bf16 %v1352_v30  ;;  %v628_v45 = vunpack.c.l.bf16 %v1353_v31  ;;  %v631_v46 = vsub.s32 5, %v1756_v16  ;;  %v592_v47 = vmul.f32 %v591_v36, %v584_v11  ;;  %v1366_v25 = vld [vmem:[%s2003_s1 + $0x8] ss:$0 sm:$0xff]  ;;  %v1365_v30 = vld [vmem:[%s1774_s30 + $0x10] sm:$0x7] }
  0x30   : > { %v593_v48 = vmul.f32 %v591_v36, %v585_v12  ;;  %v594_v49 = vmul.f32 %v591_v36, %v586_v13  ;;  %v595_v50 = vmul.f32 %v591_v36, %v587_v24  ;;  %v612_v52 = vrot.slane %v1772_v21, %v611_v38 }
  0x31   : > { %v632_v53 = vrot.slane %v1772_v21, %v631_v46  ;;  %v658_v54 = vunpack.c.l.bf16 %v1818_v40  ;;  %v659_v55 = vunpack.c.l.bf16 %v1821_v41  ;;  %v596_v56 = vadd.f32 %v592_v47, %v575_v26 }
  0x32   : > { %1458 = vmatpush3.bf16.msra.mxu0 %v1561_v19  ;;  %v597_v57 = vadd.f32 %v593_v48, %v576_v32  ;;  %v598_v58 = vadd.f32 %v594_v49, %v577_v33  ;;  %v599_v59 = vadd.f32 %v595_v50, %v578_v34  ;;  %v613_v63 = vmul.f32 %v612_v52, %v605_v28  ;;  %v1364_v19 = vld [vmem:[%s1774_s30 + $0xc] sm:$0x7] }
  0x33   : > { %1459 = vmatprep.subr.bf16.mxu0 %v1644_v14  ;;  %v614_v0 = vmul.f32 %v612_v52, %v606_v29  ;;  %v615_v1 = vmul.f32 %v612_v52, %v607_v35  ;;  %v616_v2 = vmul.f32 %v612_v52, %v608_v37  ;;  %v633_v3 = vmul.f32 %v632_v53, %v625_v39 }
  0x34   : > { %v634_v4 = vmul.f32 %v632_v53, %v626_v43  ;;  %v635_v5 = vmul.f32 %v632_v53, %v627_v44  ;;  %v636_v6 = vmul.f32 %v632_v53, %v628_v45  ;;  %v617_v10 = vadd.f32 %v613_v63, %v596_v56 }
  0x35   : > { %v618_v11 = vadd.f32 %v614_v0, %v597_v57  ;;  %v619_v12 = vadd.f32 %v615_v1, %v598_v58  ;;  %v620_v13 = vadd.f32 %v616_v2, %v599_v59  ;;  %v641_v20 = vrot.slane %v633_v3, 1 }
  0x36   : > { %1460 = vmatpush3.bf16.msra.mxu0 %v1562_v42  ;;  %v642_v22 = vrot.slane %v634_v4, 1  ;;  %v643_v23 = vrot.slane %v635_v5, 1  ;;  %v644_v24 = vrot.slane %v636_v6, 1  ;;  %v660_v26 = vunpack.c.l.bf16 %v1356_v60 }
  0x37   : > { %1461 = vmatprep.subr.bf16.mxu0 %v1644_v14  ;;  %v661_v27 = vunpack.c.l.bf16 %v1357_v61  ;;  %v664_v28 = vsub.s32 6, %v1756_v16  ;;  %v679_v29 = vunpack.c.l.bf16 %v1358_v62  ;;  %v649_v31 = vadd.f32 %v641_v20, %v617_v10 }
  0x38   : > { %v650_v32 = vadd.f32 %v642_v22, %v618_v11  ;;  %v651_v33 = vadd.f32 %v643_v23, %v619_v12  ;;  %v652_v34 = vadd.f32 %v644_v24, %v620_v13  ;;  %v680_v36 = vunpack.c.l.bf16 %v1359_v7 }
  0x39   : > { %v665_v35 = vrot.slane %v1772_v21, %v664_v28  ;;  %v681_v37 = vunpack.c.l.bf16 %v1360_v8  ;;  %v682_v38 = vunpack.c.l.bf16 %v1361_v9  ;;  %v685_v39 = vsub.s32 7, %v1756_v16 }
  0x3a   : > { %1462 = vmatpush3.bf16.msra.mxu0 %v1563_v51  ;;  %v699_v40 = vunpack.c.l.bf16 %v1362_v15  ;;  %v700_v41 = vunpack.c.l.bf16 %v1363_v17  ;;  %v701_v42 = vunpack.c.l.bf16 %v1364_v19  ;;  %v702_v48 = vunpack.c.l.bf16 %v1365_v30 }
  0x3b   : > { %1487 = vmatprep.subr.bf16.mxu0 %v1644_v14  ;;  %v666_v43 = vmul.f32 %v665_v35, %v658_v54  ;;  %v667_v44 = vmul.f32 %v665_v35, %v659_v55  ;;  %v668_v45 = vmul.f32 %v665_v35, %v660_v26  ;;  %v669_v46 = vmul.f32 %v665_v35, %v661_v27  ;;  %v1367_v55 = vld [vmem:[%s2004_s2] ss:$0 sm:$0xff] }
  0x3c   : > { %v686_v47 = vrot.slane %v1772_v21, %v685_v39  ;;  %v707_v49 = vmul.f32 %v1366_v25, %v699_v40  ;;  %v708_v50 = vmul.f32 %v1366_v25, %v700_v41  ;;  %v709_v60 = vmul.f32 %v1366_v25, %v701_v42 }
  0x3d   : > { %v670_v51 = vadd.f32 %v666_v43, %v649_v31  ;;  %v671_v52 = vadd.f32 %v667_v44, %v650_v32  ;;  %v672_v53 = vadd.f32 %v668_v45, %v651_v33  ;;  %v673_v56 = vadd.f32 %v669_v46, %v652_v34 }
  0x3e   : > { %v687_v57 = vmul.f32 %v686_v47, %v679_v29  ;;  %v688_v58 = vmul.f32 %v686_v47, %v680_v36  ;;  %v689_v59 = vmul.f32 %v686_v47, %v681_v37  ;;  %v690_v16 = vmul.f32 %v686_v47, %v682_v38  ;;  %v1564_v47 = vld [vmem:[%s2007_s5] sm:$0xff]  }
  0x3f   : > { %v710_v61 = vmul.f32 %v1366_v25, %v702_v48  ;;  %v715_v62 = vrot.slane %v707_v49, 1  ;;  %v716_v54 = vrot.slane %v708_v50, 1  ;;  %v717_v2 = vrot.slane %v709_v60, 1  ;;  %1468 = vmatpush3.bf16.msra.mxu1 %v1564_v47  ;;  %v1565_v48 = vld [vmem:[%s2007_s5 + $0x8] sm:$0xff]   ;;  %v1566_v49 = vld [vmem:[%s2007_s5 + $0x10] sm:$0xff]   ;;  %v1567_v50 = vld [vmem:[%s2007_s5 + $0x18] sm:$0xff]  }
  0x40   : > { %v691_v21 = vadd.f32 %v687_v57, %v670_v51  ;;  %v692_v63 = vadd.f32 %v688_v58, %v671_v52  ;;  %v693_v0 = vadd.f32 %v689_v59, %v672_v53  ;;  %v694_v1 = vadd.f32 %v690_v16, %v673_v56  ;;  %1469 = vmatprep.subr.bf16.mxu1 %v1644_v14  ;;  %v1568_v51 = vld [vmem:[%s2007_s5 + $0x20] sm:$0xff]   ;;  %v1569_v52 = vld [vmem:[%s2007_s5 + $0x28] sm:$0xff]   ;;  %v1570_v53 = vld [vmem:[%s2007_s5 + $0x30] sm:$0xff]  }
  0x41   : > { %v718_v3 = vrot.slane %v710_v61, 1  ;;  %v1571_v56 = vld [vmem:[%s2007_s5 + $0x38] sm:$0xff]   ;;  %v799_v57 = vld [vmem:[%s2006_s4] sm:$0x1] }
  0x42   : > { %v723_v4 = vadd.f32 %v715_v62, %v691_v21  ;;  %v724_v5 = vadd.f32 %v716_v54, %v692_v63  ;;  %v725_v6 = vadd.f32 %v717_v2, %v693_v0  ;;  %v1573_v2 = vld [vmem:[%s2009_s7 + $0x8] sm:$0xff]  }
  0x43   : > { %v726_v7 = vadd.f32 %v718_v3, %v694_v1  ;;  %1470 = vmatpush3.bf16.msra.mxu1 %v1565_v48  ;;  %v1572_v1 = vld [vmem:[%s2009_s7] sm:$0xff]   ;;  %v1574_v3 = vld [vmem:[%s2009_s7 + $0x10] sm:$0xff]  }
  0x44   : > { %v734_v8 = vadd.f32 %v1367_v55, %v723_v4  ;;  %v735_v9 = vadd.f32 %v1367_v55, %v724_v5  ;;  %v736_v10 = vadd.f32 %v1367_v55, %v725_v6  ;;  %1471 = vmatprep.subr.bf16.mxu1 %v1644_v14  ;;  %v1575_v4 = vld [vmem:[%s2009_s7 + $0x18] sm:$0xff]   ;;  %v1576_v5 = vld [vmem:[%s2009_s7 + $0x20] sm:$0xff]   ;;  %v1577_v6 = vld [vmem:[%s2009_s7 + $0x28] sm:$0xff]  }
  0x45   : > { %v737_v11 = vadd.f32 %v1367_v55, %v726_v7  ;;  %v1578_v7 = vld [vmem:[%s2009_s7 + $0x30] sm:$0xff]  }
  0x46   : > { %v1368_v12 = vmul.f32 -1.442695, %v734_v8  ;;  %v1369_v13 = vmul.f32 -1.442695, %v735_v9  ;;  %v1370_v15 = vmul.f32 -1.442695, %v736_v10 }
  0x47   : > { %v1371_v17 = vmul.f32 -1.442695, %v737_v11  ;;  %1472 = vmatpush3.bf16.msra.mxu1 %v1566_v49 }
  0x48   : > { %1588 = vpow2.f32 %v1368_v12  ;;  %1473 = vmatprep.subr.bf16.mxu1 %v1644_v14 }
  0x49   : > { %1590 = vpow2.f32 %v1369_v13 }
  0x4a   : > { %1592 = vpow2.f32 %v1370_v15 }
  0x4b   : > { %1594 = vpow2.f32 %v1371_v17  ;;  %1474 = vmatpush3.bf16.msra.mxu1 %v1567_v50 }
  0x4c   : > { %1475 = vmatprep.subr.bf16.mxu1 %v1644_v14 }
  0x4f   : > { %1476 = vmatpush3.bf16.msra.mxu1 %v1568_v51 }
  0x50   : > { %1477 = vmatprep.subr.bf16.mxu1 %v1644_v14 }
  0x52   : > { %v1589_v19 = vpop.eup %1588 }
  0x53   : > { %v1591_v20 = vpop.eup %1590  ;;  %v750_v22 = vadd.f32 1.0, %v1589_v19  ;;  %1478 = vmatpush3.bf16.msra.mxu1 %v1569_v52 }
  0x54   : > { %v1593_v23 = vpop.eup %1592  ;;  %v751_v24 = vadd.f32 1.0, %v1591_v20  ;;  %1479 = vmatprep.subr.bf16.mxu1 %v1644_v14 }
  0x55   : > { %v1595_v25 = vpop.eup %1594  ;;  %v752_v26 = vadd.f32 1.0, %v1593_v23  ;;  %1596 = vrcp.f32 %v750_v22 }
  0x56   : > { %v753_v27 = vadd.f32 1.0, %v1595_v25  ;;  %1598 = vrcp.f32 %v751_v24 }
  0x57   : > { %1600 = vrcp.f32 %v752_v26  ;;  %1480 = vmatpush3.bf16.msra.mxu1 %v1570_v53 }
  0x58   : > { %1602 = vrcp.f32 %v753_v27  ;;  %1481 = vmatprep.subr.bf16.mxu1 %v1644_v14 }
  0x5b   : > { %1482 = vmatpush3.bf16.msra.mxu1 %v1571_v56 }
  0x5c   : > { %1507 = vmatprep.subr.bf16.mxu1 %v1644_v14 }
  0x5f   : > { %v1597_v28 = vpop.eup %1596 }
  0x60   : > { %v1599_v29 = vpop.eup %1598  ;;  %v1857_v30 = vmul.f32 %v1597_v28, %v734_v8  ;;  %v1579_v8 = vld [vmem:[%s2009_s7 + $0x38] sm:$0xff]  }
  0x61   : > { %v1601_v31 = vpop.eup %1600  ;;  %v1859_v32 = vmul.f32 %v1599_v29, %v735_v9  ;;  %v912_v9 = vld [vmem:[%s2008_s6] sm:$0x1] }
  0x62   : > { %v1603_v33 = vpop.eup %1602  ;;  %v1861_v34 = vmul.f32 %v1601_v31, %v736_v10 }
  0x63   : > { %v1863_v35 = vmul.f32 %v1603_v33, %v737_v11  ;;  %v770_v36 = vcombine.low %v1857_v30, %v1859_v32 }
  0x65   : > { %v771_v37 = vcombine.low %v1861_v34, %v1863_v35 }
  0x67   : > { %v774_v38 = vadd.f32 %v771_v37, %v770_v36  ;;  %v1580_v36 = vld [vmem:[%s2011_s9] sm:$0xff]   ;;  %v1585_v37 = vld [vmem:[%s2011_s9 + $0x28] sm:$0xff]  }
  0x69   : > { %v775_v39 = vrot.slane %v774_v38, 4 }
  0x6b   : > { %v776_v40 = vadd.f32 %v775_v39, %v774_v38  ;;  %v1586_v38 = vld [vmem:[%s2011_s9 + $0x30] sm:$0xff]   ;;  %v1587_v39 = vld [vmem:[%s2011_s9 + $0x38] sm:$0xff]  }
  0x6d   : > { %v777_v41 = vrot.slane %v776_v40, 2 }
  0x6f   : > { %v778_v42 = vadd.f32 %v777_v41, %v776_v40  ;;  %v1390_v40 = vld [vmem:[%s2010_s8] ss:$0 sm:$0xff] }
  0x71   : > { %v779_v43 = vrot.slane %v778_v42, 1 }
  0x73   : > { %v780_v44 = vadd.f32 %v779_v43, %v778_v42 }
  0x75   : > { %v781_v45 = vmul.f32 0.0625, %v780_v44 }
  0x77   : > { %v782_v46 = vpack.c.bf16 %v781_v45, %v781_v45 }
  0x79   : > { %1464 = vmatmul.mubr.bf16.vlgmr.msra.gmra.mrb[0].mxu0 %v782_v46 }
  0x7a   : > { %1503 = vmatprep.mubr.msk.bf16.mxu0 %vm1645_vm0, %v1644_v14  ;;  %1488 = vmatpush3.bf16.msra.mxu0 %v1572_v1 }
  0x7b   : > { %1489 = vmatprep.subr.bf16.mxu0 %v1644_v14 }
  0x7e   : > { %1490 = vmatpush3.bf16.msra.mxu0 %v1573_v2 }
  0x7f   : > { %1491 = vmatprep.subr.bf16.mxu0 %v1644_v14 }
  0x82   : > { %1492 = vmatpush3.bf16.msra.mxu0 %v1574_v3 }
  0x83   : > { %1493 = vmatprep.subr.bf16.mxu0 %v1644_v14 }
  0x86   : > { %1494 = vmatpush3.bf16.msra.mxu0 %v1575_v4 }
  0x87   : > { %1495 = vmatprep.subr.bf16.mxu0 %v1644_v14 }
  0x8a   : > { %1496 = vmatpush3.bf16.msra.mxu0 %v1576_v5 }
  0x8b   : > { %1497 = vmatprep.subr.bf16.mxu0 %v1644_v14 }
  0x8e   : > { %1498 = vmatpush3.bf16.msra.mxu0 %v1577_v6 }
  0x8f   : > { %1499 = vmatprep.subr.bf16.mxu0 %v1644_v14 }
  0x92   : > { %1500 = vmatpush3.bf16.msra.mxu0 %v1578_v7 }
  0x93   : > { %1501 = vmatprep.subr.bf16.mxu0 %v1644_v14 }
  0x96   : > { %1502 = vmatpush3.bf16.msra.mxu0 %v1579_v8 }
 0x14c   : > { %v882_v58 = vpop.f32.mrb[0].mxu0 }
 0x14d   : > { %v883_v59 = vadd.f32 %v882_v58, %v799_v57  ;;  %v1465_v16 = vpop.f32.mrb[1].mxu0 }
 0x14e   : > { %v885_v60 = vpop.f32.mrb[2].mxu0 }
 0x14f   : > { %v1380_v61 = vmul.f32 -1.442695, %v883_v59  ;;  %v1466_v62 = vpop.f32.mrb[3].mxu0 }
 0x151   : > { %1604 = vpow2.f32 %v1380_v61 }
 0x15b   : > { %v1605_v54 = vpop.eup %1604 }
 0x15c   : > { %v891_v55 = vadd.f32 1.0, %v1605_v54 }
 0x15e   : > { %1606 = vrcp.f32 %v891_v55 }
 0x168   : > { %v1607_v21 = vpop.eup %1606 }
 0x169   : > { %v894_v63 = vmul.f32 %v1607_v21, %v883_v59 }
 0x16b   : > { %v895_v0 = vpack.c.bf16 %v894_v63, %v894_v63  ;;  %v1178_v63 = vld [vmem:[%s2012_s10] sm:$0x1] }
 0x16d   : > { %1484 = vmatmul.mubr.bf16.vlgmr.msra.gmra.mrb[0].mxu1 %v895_v0 }
 0x16e   : > { %1523 = vmatprep.mubr.msk.bf16.mxu1 %vm1645_vm0, %v1644_v14  ;;  %1508 = vmatpush3.bf16.msra.mxu1 %v1580_v36 }
 0x16f   : > { %1509 = vmatprep.subr.bf16.mxu1 %v1644_v14 }
 0x240   : > { %v995_v10 = vpop.f32.mrb[0].mxu1 }
 0x241   : > { %v996_v11 = vadd.f32 %v995_v10, %v912_v9  ;;  %v1485_v12 = vpop.f32.mrb[1].mxu1 }
 0x242   : > { %v998_v13 = vpop.f32.mrb[2].mxu1 }
 0x243   : > { %v1389_v15 = vmul.f32 -1.442695, %v996_v11  ;;  %v1486_v17 = vpop.f32.mrb[3].mxu1 }
 0x245   : > { %1608 = vpow2.f32 %v1389_v15 }
 0x24f   : > { %v1609_v19 = vpop.eup %1608 }
 0x250   : > { %v1004_v20 = vadd.f32 1.0, %v1609_v19 }
 0x252   : > { %1610 = vrcp.f32 %v1004_v20 }
 0x25c   : > { %v1611_v22 = vpop.eup %1610 }
 0x25d   : > { %v1010_v23 = vrot.slane %v1611_v22, %v1762_v18 }
 0x25f   : > { %v1012_v24 = vcombine.high %v1010_v23, %v1010_v23  ;;  %v1014_v25 = vmul.f32 %v1010_v23, %v1857_v30  ;;  %v1016_v27 = vmul.f32 %v1010_v23, %v1861_v34  ;;  %v1581_v30 = vld [vmem:[%s2011_s9 + $0x8] sm:$0xff]   ;;  %v1583_v34 = vld [vmem:[%s2011_s9 + $0x18] sm:$0xff]  }
 0x260   : > { %1510 = vmatpush3.bf16.msra.mxu1 %v1581_v30 }
 0x261   : > { %v1015_v26 = vmul.f32 %v1012_v24, %v1859_v32  ;;  %v1017_v28 = vmul.f32 %v1012_v24, %v1863_v35  ;;  %1511 = vmatprep.subr.bf16.mxu1 %v1644_v14  ;;  %v1582_v32 = vld [vmem:[%s2011_s9 + $0x10] sm:$0xff]   ;;  %v1584_v35 = vld [vmem:[%s2011_s9 + $0x20] sm:$0xff]  }
 0x263   : > { %v1022_v29 = vcombine.low %v1014_v25, %v1015_v26  ;;  %v1023_v31 = vcombine.low %v1016_v27, %v1017_v28 }
 0x264   : > { %1512 = vmatpush3.bf16.msra.mxu1 %v1582_v32 }
 0x265   : > { %v1026_v33 = vpack.c.bf16 %v1023_v31, %v1022_v29  ;;  %1513 = vmatprep.subr.bf16.mxu1 %v1644_v14 }
 0x267   : > { %1504 = vmatmul.mubr.bf16.vlgmr.msra.gmra.mrb[4].mxu0 %v1026_v33 }
 0x268   : > { %1514 = vmatpush3.bf16.msra.mxu1 %v1583_v34 }
 0x269   : > { %1515 = vmatprep.subr.bf16.mxu1 %v1644_v14 }
 0x26c   : > { %1516 = vmatpush3.bf16.msra.mxu1 %v1584_v35 }
 0x26d   : > { %1517 = vmatprep.subr.bf16.mxu1 %v1644_v14 }
 0x270   : > { %1518 = vmatpush3.bf16.msra.mxu1 %v1585_v37 }
 0x271   : > { %1519 = vmatprep.subr.bf16.mxu1 %v1644_v14 }
 0x274   : > { %1520 = vmatpush3.bf16.msra.mxu1 %v1586_v38 }
 0x275   : > { %1521 = vmatprep.subr.bf16.mxu1 %v1644_v14 }
 0x278   : > { %1522 = vmatpush3.bf16.msra.mxu1 %v1587_v39 }
 0x33a   : > { %v1132_v41 = vpop.f32.mrb[4].mxu0 }
 0x33b   : > { %v1133_v42 = vadd.f32 %v1390_v40, %v1132_v41  ;;  %v1505_v43 = vpop.f32.mrb[5].mxu0 }
 0x33c   : > { %v1135_v44 = vpop.f32.mrb[6].mxu0 }
 0x33d   : > { %v1399_v45 = vmul.f32 -1.442695, %v1133_v42  ;;  %v1136_v46 = vadd.f32 %v1390_v40, %v1135_v44  ;;  %v1506_v47 = vpop.f32.mrb[7].mxu0 }
 0x33f   : > { %1612 = vpow2.f32 %v1399_v45  ;;  %v1400_v48 = vmul.f32 -1.442695, %v1136_v46 }
 0x341   : > { %1614 = vpow2.f32 %v1400_v48 }
 0x349   : > { %v1613_v49 = vpop.eup %1612 }
 0x34a   : > { %v1145_v50 = vadd.f32 1.0, %v1613_v49 }
 0x34b   : > { %v1615_v51 = vpop.eup %1614 }
 0x34c   : > { %1616 = vrcp.f32 %v1145_v50  ;;  %v1146_v14 = vadd.f32 1.0, %v1615_v51 }
 0x34e   : > { %1618 = vrcp.f32 %v1146_v14 }
 0x356   : > { %v1617_v52 = vpop.eup %1616 }
 0x357   : > { %v1151_v56 = vmul.f32 %v1617_v52, %v1133_v42 }
 0x358   : > { %v1619_v53 = vpop.eup %1618 }
 0x359   : > { %v1152_v57 = vmul.f32 %v1619_v53, %v1136_v46 }
 0x35b   : > { %v1153_v58 = vadd.f32 %v1152_v57, %v1151_v56 }
 0x35d   : > { %v1154_v59 = vrot.slane %v1153_v58, 4 }
 0x35f   : > { %v1155_v16 = vadd.f32 %v1154_v59, %v1153_v58 }
 0x361   : > { %v1156_v60 = vrot.slane %v1155_v16, 2 }
 0x363   : > { %v1157_v61 = vadd.f32 %v1156_v60, %v1155_v16 }
 0x365   : > { %v1158_v62 = vrot.slane %v1157_v61, 1 }
 0x367   : > { %v1159_v54 = vadd.f32 %v1158_v62, %v1157_v61 }
 0x369   : > { %v1160_v55 = vmul.f32 0.0625, %v1159_v54 }
 0x36b   : > { %v1161_v21 = vpack.c.bf16 %v1160_v55, %v1160_v55 }
 0x36d   : > { %1524 = vmatmul.mubr.bf16.vlgmr.msra.gmra.mrb[4].mxu1 %v1161_v21 }
 0x440   : > { %v1261_v0 = vpop.f32.mrb[4].mxu1 }
 0x441   : > { %v1262_v1 = vadd.f32 %v1261_v0, %v1178_v63  ;;  %v1525_v2 = vpop.f32.mrb[5].mxu1 }
 0x442   : > { %v1264_v3 = vpop.f32.mrb[6].mxu1 }
 0x443   : > { %v1270_v4 = vrot.slane %v1262_v1, %v1762_v18  ;;  %v1526_v5 = vpop.f32.mrb[7].mxu1 }
 0x445   : > { %1271 = vst [vmem:[%s502_s13] sm:$0xff] %v1270_v4 }
 0x446 PF: > { %p18_p9 = scmp.ge.s32.totalorder %s1723_s21, 4   ;;  %s2014_s17 = smov %s1638_s18 }
 0x447   : > { %s2015_s18 = smov %s1732_s24  ;;  %s2016_s19 = smov %s1723_s21 }
 0x448   :  { %20 = sbr.rel (!%p18_p9) target bundleno = 2 (0x2), region = 145 }

</bundles_post_ra>
